<compile_context>
chip_gen: v7x
topology: tpu7x:2x2x1
jax: 0.10.0
libtpu: 0.0.40
codegen_flags: <defaults>
</compile_context>

<pallas_src>
import functools
import math

import jax
import jax.numpy as jnp
from jax.experimental import pallas as pl
from jax.experimental.pallas import tpu as pltpu


# ----------------------------------------------------------------------------
# Model config (scaled-down MobileNetV2 + DistilBERT)
# ----------------------------------------------------------------------------

CPAD = 128                                 # lane-dense channel padding for CNN
CNN_STEM = 16
CNN_BLOCKS = [(16, 24, 4), (24, 24, 4)]    # (Cin, Cout, expand_ratio)
CNN_OUT = 128                              # stands in for 1280
VOCAB = 100
SEQ = 8
BERT_H = 64                                # stands in for 768
BERT_HEADS = 4
BERT_LAYERS = 2
BERT_FFN = 128
CLS_HIDDEN = 64                            # stands in for 256
NUM_CLASSES = 2


# ----------------------------------------------------------------------------
# In-kernel helpers
# ----------------------------------------------------------------------------

def _layernorm(x, g, b, eps):
    mu = jnp.mean(x, axis=-1, keepdims=True)
    xc = x - mu
    var = jnp.mean(xc * xc, axis=-1, keepdims=True)
    return xc * jax.lax.rsqrt(var + eps) * g + b


def _gelu(x):
    # TODO(synk): HF DistilBERT uses exact erf GELU; tanh approximation here.
    return 0.5 * x * (1.0 + jnp.tanh(0.7978845608028654 *
                                     (x + 0.044715 * x * x * x)))


# ----------------------------------------------------------------------------
# Pallas kernels
# ----------------------------------------------------------------------------

def _mm_act_kernel(x_ref, w_ref, b_ref, o_ref, *, act):
    """Single-block o = act(x @ w + b)."""
    acc = jnp.dot(x_ref[...], w_ref[...],
                  preferred_element_type=jnp.float32) + b_ref[...]
    if act == "relu6":
        acc = jnp.clip(acc, 0.0, 6.0)
    elif act == "relu":
        acc = jnp.maximum(acc, 0.0)
    o_ref[...] = acc


def _ln_kernel(x_ref, g_ref, b_ref, o_ref, *, eps):
    o_ref[...] = _layernorm(x_ref[...], g_ref[...], b_ref[...], eps)


def _ir_block_kernel(x_ref, ew_ref, eb_ref, dww_ref, dwb_ref, pw_ref, pb_ref,
                     o_ref, pad_ref, *, H, W, has_skip):
    """Fused inverted-residual block (per batch element, channels padded to 128).

    expand 1x1 -> ReLU6 -> depthwise 3x3 (pad=1) -> ReLU6 -> project 1x1 (+skip).
    The depthwise halo lives in a zero-bordered VMEM scratch; the interior store
    is placed at sublane offset 8 so it is tile-aligned (zeros at cols 7, 8+W).
    """
    C = x_ref.shape[-1]
    xm = x_ref[...].reshape(H * W, C)

    # 1x1 expand + ReLU6
    t = jnp.dot(xm, ew_ref[...], preferred_element_type=jnp.float32) + eb_ref[...]
    t = jnp.clip(t, 0.0, 6.0)

    # depthwise 3x3, stride 1, pad 1, ReLU6
    pad_ref[...] = jnp.zeros_like(pad_ref)
    pad_ref[1:H + 1, 8:8 + W, :] = t.reshape(H, W, C)
    w = dww_ref[...]                                 # (3, 3, C)
    acc = jnp.zeros((H, W, C), jnp.float32)
    for dh in range(3):
        for dw in range(3):
            acc = acc + pad_ref[dh:dh + H, 7 + dw:7 + dw + W, :] * w[dh, dw, :]
    acc = jnp.clip(acc + dwb_ref[...], 0.0, 6.0)

    # 1x1 project (+ inverted-residual skip)
    y = jnp.dot(acc.reshape(H * W, C), pw_ref[...],
                preferred_element_type=jnp.float32) + pb_ref[...]
    if has_skip:
        y = y + xm
    o_ref[...] = y.reshape(H, W, C)


def _head_pool_kernel(x_ref, w_ref, b_ref, o_ref, *, inv_hw):
    """Fused head 1x1 conv + ReLU6 + AdaptiveAvgPool2d((1,1)) per batch."""
    H, W, C = x_ref.shape
    xm = x_ref[...].reshape(H * W, C)
    y = jnp.dot(xm, w_ref[...], preferred_element_type=jnp.float32) + b_ref[...]
    y = jnp.clip(y, 0.0, 6.0)
    o_ref[...] = jnp.sum(y, axis=0, keepdims=True) * inv_hw


def _bert_layer_kernel(x_ref, mask_ref, wqkv_ref, bqkv_ref, wo_ref, bo_ref,
                       ln1g_ref, ln1b_ref, wff1_ref, bff1_ref, wff2_ref,
                       bff2_ref, ln2g_ref, ln2b_ref, o_ref,
                       *, batch, seq, hidden, heads, eps):
    """Whole DistilBERT transformer layer fused into one kernel.

    x:(B*S,H)  mask:(B,S) additive bias  wqkv:(H,3H)  -> out:(B*S,H)
    """
    dh = hidden // heads
    scale = 1.0 / math.sqrt(dh)

    x = x_ref[...]                                               # (B*S, H)
    qkv = jnp.dot(x, wqkv_ref[...],
                  preferred_element_type=jnp.float32) + bqkv_ref[...]

    ctx_rows = []
    for b in range(batch):
        rows = slice(b * seq, (b + 1) * seq)
        qb = qkv[rows, 0:hidden]
        kb = qkv[rows, hidden:2 * hidden]
        vb = qkv[rows, 2 * hidden:3 * hidden]
        bias = mask_ref[b:b + 1, :]                              # (1, S)
        head_outs = []
        for hh in range(heads):
            cols = slice(hh * dh, (hh + 1) * dh)
            qh, kh, vh = qb[:, cols], kb[:, cols], vb[:, cols]
            s = jax.lax.dot_general(qh, kh, (((1,), (1,)), ((), ())),
                                    preferred_element_type=jnp.float32) * scale
            s = s + bias
            s = s - jnp.max(s, axis=-1, keepdims=True)
            p = jnp.exp(s)
            p = p * pl.reciprocal(jnp.sum(p, axis=-1, keepdims=True), approx=True)
            head_outs.append(jnp.dot(p, vh, preferred_element_type=jnp.float32))
        ctx_rows.append(jnp.concatenate(head_outs, axis=-1))     # (S, H)
    ctx = jnp.concatenate(ctx_rows, axis=0)                      # (B*S, H)

    attn = jnp.dot(ctx, wo_ref[...],
                   preferred_element_type=jnp.float32) + bo_ref[...]
    h1 = _layernorm(x + attn, ln1g_ref[...], ln1b_ref[...], eps)

    f = jnp.dot(h1, wff1_ref[...],
                preferred_element_type=jnp.float32) + bff1_ref[...]
    f = _gelu(f)
    f = jnp.dot(f, wff2_ref[...],
                preferred_element_type=jnp.float32) + bff2_ref[...]
    o_ref[...] = _layernorm(h1 + f, ln2g_ref[...], ln2b_ref[...], eps)


def _cls_kernel(x_ref, w1_ref, b1_ref, w2_ref, b2_ref, o_ref):
    """Fused classifier head: Linear -> ReLU -> Dropout(eval: identity) -> Linear."""
    z = jnp.dot(x_ref[...], w1_ref[...],
                preferred_element_type=jnp.float32) + b1_ref[...]
    z = jnp.maximum(z, 0.0)
    o_ref[...] = jnp.dot(z, w2_ref[...],
                         preferred_element_type=jnp.float32) + b2_ref[...]


# ----------------------------------------------------------------------------
# pallas_call wrappers
# ----------------------------------------------------------------------------

def inverted_residual(x, blk, has_skip):
    B, H, W, C = x.shape
    kernel = functools.partial(_ir_block_kernel, H=H, W=W, has_skip=has_skip)
    return pl.pallas_call(
        kernel,
        out_shape=jax.ShapeDtypeStruct((B, H, W, C), jnp.float32),
        grid=(B,),
        in_specs=[pl.BlockSpec((None, H, W, C), lambda b: (b, 0, 0, 0)),
                  pl.BlockSpec((C, C), lambda b: (0, 0)),
                  pl.BlockSpec((1, C), lambda b: (0, 0)),
                  pl.BlockSpec((3, 3, C), lambda b: (0, 0, 0)),
                  pl.BlockSpec((1, 1, C), lambda b: (0, 0, 0)),
                  pl.BlockSpec((C, C), lambda b: (0, 0)),
                  pl.BlockSpec((1, C), lambda b: (0, 0))],
        out_specs=pl.BlockSpec((None, H, W, C), lambda b: (b, 0, 0, 0)),
        scratch_shapes=[pltpu.VMEM((H + 2, W + 16, C), jnp.float32)],
        compiler_params=pltpu.CompilerParams(dimension_semantics=("arbitrary",)),
    )(x, blk["exp_w"], blk["exp_b"], blk["dw_w"], blk["dw_b"],
      blk["proj_w"], blk["proj_b"])


def head_pool(x, w, b):
    B, H, W, C = x.shape
    kernel = functools.partial(_head_pool_kernel, inv_hw=1.0 / float(H * W))
    out = pl.pallas_call(
        kernel,
        out_shape=jax.ShapeDtypeStruct((B, 1, CNN_OUT), jnp.float32),
        grid=(B,),
        in_specs=[pl.BlockSpec((None, H, W, C), lambda b: (b, 0, 0, 0)),
                  pl.BlockSpec((C, CNN_OUT), lambda b: (0, 0)),
                  pl.BlockSpec((1, CNN_OUT), lambda b: (0, 0))],
        out_specs=pl.BlockSpec((None, 1, CNN_OUT), lambda b: (b, 0, 0)),
        compiler_params=pltpu.CompilerParams(dimension_semantics=("arbitrary",)),
    )(x, w, b)
    return out.reshape(B, CNN_OUT)


# ----------------------------------------------------------------------------
# Glue: im2col for the 3x3 stem conv (K padded 27 -> 32)
# ----------------------------------------------------------------------------

def im2col3x3(x):  # x: [B, H, W, C], pad 1, stride 1
    B, H, W, C = x.shape
    xp = jnp.pad(x, ((0, 0), (1, 1), (1, 1), (0, 0)))
    cols = [xp[:, dh:dh + H, dw:dw + W, :] for dh in range(3) for dw in range(3)]
    col = jnp.concatenate(cols, axis=-1).reshape(B * H * W, 9 * C)
    return jnp.pad(col, ((0, 0), (0, 32 - 9 * C)))


# ----------------------------------------------------------------------------
# Parameters (deterministic synthetic; CNN channels zero-padded to 128 lanes)
# ----------------------------------------------------------------------------

def _pad2(a, r, c):
    return jnp.pad(a, ((0, r - a.shape[0]), (0, c - a.shape[1])))


def init_params(key):
    keys = list(jax.random.split(key, 64))
    it = iter(keys)

    def nrm(shape, scale=0.05):
        return scale * jax.random.normal(next(it), shape, jnp.float32)

    p = {}
    # ---- CNN (MobileNetV2-style features, BN folded into conv bias) ----
    p["stem_w"] = _pad2(nrm((9 * 3, CNN_STEM)), 32, CPAD)
    p["stem_b"] = jnp.zeros((1, CPAD), jnp.float32)

    blocks = []
    for (cin, cout, t) in CNN_BLOCKS:
        cmid = cin * t
        blocks.append(dict(
            exp_w=_pad2(nrm((cin, cmid)), CPAD, CPAD),
            exp_b=jnp.zeros((1, CPAD), jnp.float32),
            dw_w=jnp.pad(nrm((3, 3, cmid)), ((0, 0), (0, 0), (0, CPAD - cmid))),
            dw_b=jnp.zeros((1, 1, CPAD), jnp.float32),
            proj_w=_pad2(nrm((cmid, cout)), CPAD, CPAD),
            proj_b=jnp.zeros((1, CPAD), jnp.float32),
        ))
    p["blocks"] = blocks

    last_c = CNN_BLOCKS[-1][1]
    p["head_w"] = _pad2(nrm((last_c, CNN_OUT)), CPAD, CNN_OUT)
    p["head_b"] = jnp.zeros((1, CNN_OUT), jnp.float32)

    # ---- DistilBERT ----
    p["tok_emb"] = nrm((VOCAB, BERT_H))
    p["pos_emb"] = nrm((SEQ, BERT_H))
    p["emb_ln_g"] = jnp.ones((1, BERT_H), jnp.float32)
    p["emb_ln_b"] = jnp.zeros((1, BERT_H), jnp.float32)

    layers = []
    for _ in range(BERT_LAYERS):
        qw, kw, vw = nrm((BERT_H, BERT_H)), nrm((BERT_H, BERT_H)), nrm((BERT_H, BERT_H))
        layers.append(dict(
            qkv_w=jnp.concatenate([qw, kw, vw], axis=1),     # fused QKV weight
            qkv_b=jnp.zeros((1, 3 * BERT_H), jnp.float32),
            o_w=nrm((BERT_H, BERT_H)), o_b=jnp.zeros((1, BERT_H), jnp.float32),
            ln1_g=jnp.ones((1, BERT_H), jnp.float32),
            ln1_b=jnp.zeros((1, BERT_H), jnp.float32),
            ff1_w=nrm((BERT_H, BERT_FFN)), ff1_b=jnp.zeros((1, BERT_FFN), jnp.float32),
            ff2_w=nrm((BERT_FFN, BERT_H)), ff2_b=jnp.zeros((1, BERT_H), jnp.float32),
            ln2_g=jnp.ones((1, BERT_H), jnp.float32),
            ln2_b=jnp.zeros((1, BERT_H), jnp.float32),
        ))
    p["layers"] = layers

    # ---- classifier head ----
    p["cls1_w"] = nrm((CNN_OUT + BERT_H, CLS_HIDDEN))
    p["cls1_b"] = jnp.zeros((1, CLS_HIDDEN), jnp.float32)
    p["cls2_w"] = nrm((CLS_HIDDEN, NUM_CLASSES))
    p["cls2_b"] = jnp.zeros((1, NUM_CLASSES), jnp.float32)
    return p


# ----------------------------------------------------------------------------
# Forward pass (mirrors MobilenetEnsembleClassifier.forward)
# ----------------------------------------------------------------------------

def forward(params, url_input_ids, url_attention_mask, image_nchw):
    # ---------------- CNN branch ----------------
    x = jnp.transpose(image_nchw, (0, 2, 3, 1)).astype(jnp.float32)  # NCHW->NHWC
    B, H, W, _ = x.shape

    cols = im2col3x3(x)                                              # (B*H*W, 32)
    h = pl.pallas_call(
        functools.partial(_mm_act_kernel, act="relu6"),
        out_shape=jax.ShapeDtypeStruct((B * H * W, CPAD), jnp.float32),
    )(cols, params["stem_w"], params["stem_b"]).reshape(B, H, W, CPAD)

    for blk, (cin, cout, _t) in zip(params["blocks"], CNN_BLOCKS):
        h = inverted_residual(h, blk, has_skip=(cin == cout))

    # head 1x1 conv + ReLU6 + AdaptiveAvgPool2d((1,1)) + flatten (fused)
    image_features = head_pool(h, params["head_w"], params["head_b"])  # (B, CNN_OUT)

    # ---------------- DistilBERT branch ----------------
    emb = jnp.take(params["tok_emb"], url_input_ids, axis=0) + params["pos_emb"][None]
    S = emb.shape[1]
    x2 = pl.pallas_call(
        functools.partial(_ln_kernel, eps=1e-12),
        out_shape=jax.ShapeDtypeStruct((B * S, BERT_H), jnp.float32),
    )(emb.reshape(B * S, BERT_H), params["emb_ln_g"], params["emb_ln_b"])

    mask_bias = (1.0 - url_attention_mask.astype(jnp.float32)) * -1e9   # (B, S)

    layer_kernel = functools.partial(
        _bert_layer_kernel, batch=B, seq=S, hidden=BERT_H, heads=BERT_HEADS,
        eps=1e-12)
    for layer in params["layers"]:
        x2 = pl.pallas_call(
            layer_kernel,
            out_shape=jax.ShapeDtypeStruct((B * S, BERT_H), jnp.float32),
        )(x2, mask_bias,
          layer["qkv_w"], layer["qkv_b"], layer["o_w"], layer["o_b"],
          layer["ln1_g"], layer["ln1_b"], layer["ff1_w"], layer["ff1_b"],
          layer["ff2_w"], layer["ff2_b"], layer["ln2_g"], layer["ln2_b"])

    url_features = x2.reshape(B, S, BERT_H)[:, 0, :]                 # CLS token

    # ---------------- classifier head (fused Linear->ReLU->Linear) ----------
    combined = jnp.concatenate([image_features, url_features], axis=1)
    logits = pl.pallas_call(
        _cls_kernel,
        out_shape=jax.ShapeDtypeStruct((B, NUM_CLASSES), jnp.float32),
    )(combined, params["cls1_w"], params["cls1_b"],
      params["cls2_w"], params["cls2_b"])
    return logits


# ----------------------------------------------------------------------------
# Main
# ----------------------------------------------------------------------------

if __name__ == "__main__":
    key = jax.random.PRNGKey(0)
    k_par, k_img, k_ids = jax.random.split(key, 3)

    params = init_params(k_par)

    B = 2
    image = jax.random.normal(k_img, (B, 3, 16, 16), jnp.float32)          # NCHW
    url_input_ids = jax.random.randint(k_ids, (B, SEQ), 0, VOCAB, jnp.int32)
    url_attention_mask = jnp.array([[1, 1, 1, 1, 1, 1, 0, 0],
                                    [1, 1, 1, 1, 1, 1, 1, 1]], jnp.int32)

    fwd = jax.jit(forward)
    logits = fwd(params, url_input_ids, url_attention_mask, image)
    logits = jax.block_until_ready(logits)

    assert logits.shape == (B, NUM_CLASSES)
    assert bool(jnp.all(jnp.isfinite(logits)))
    print("KERNEL_OK")
</pallas_src>

<mosaic_0001>
module attributes {stable_mosaic.version = 11 : i64} {
  func.func @_ir_block_kernel(%arg0: i32, %arg1: memref<1x16x16x128xf32, #tpu.memory_space<vmem>>, %arg2: memref<128x128xf32, #tpu.memory_space<vmem>>, %arg3: memref<1x128xf32, #tpu.memory_space<vmem>>, %arg4: memref<3x3x128xf32, #tpu.memory_space<vmem>>, %arg5: memref<1x1x128xf32, #tpu.memory_space<vmem>>, %arg6: memref<128x128xf32, #tpu.memory_space<vmem>>, %arg7: memref<1x128xf32, #tpu.memory_space<vmem>>, %arg8: memref<1x16x16x128xf32, #tpu.memory_space<vmem>>, %arg9: memref<18x32x128xf32, #tpu.memory_space<vmem>>) attributes {dimension_semantics = [#tpu.dimension_semantics<arbitrary>], iteration_bounds = array<i64: 2>, scalar_prefetch = 0 : i64, scratch_operands = 1 : i64, tpu.core_type = #tpu.core_type<tc>, window_params = [{transform_indices = @transform_0, window_bounds = array<i64: 1, 16, 16, 128>}, {pipeline_mode = #tpu.pipeline_mode<synchronous>, transform_indices = @transform_1, window_bounds = array<i64: 128, 128>}, {pipeline_mode = #tpu.pipeline_mode<synchronous>, transform_indices = @transform_2, window_bounds = array<i64: 1, 128>}, {pipeline_mode = #tpu.pipeline_mode<synchronous>, transform_indices = @transform_3, window_bounds = array<i64: 3, 3, 128>}, {pipeline_mode = #tpu.pipeline_mode<synchronous>, transform_indices = @transform_4, window_bounds = array<i64: 1, 1, 128>}, {pipeline_mode = #tpu.pipeline_mode<synchronous>, transform_indices = @transform_5, window_bounds = array<i64: 128, 128>}, {pipeline_mode = #tpu.pipeline_mode<synchronous>, transform_indices = @transform_6, window_bounds = array<i64: 1, 128>}, {transform_indices = @transform_7, window_bounds = array<i64: 1, 16, 16, 128>}]} {
    %c0 = arith.constant 0 : index
    %c0_0 = arith.constant 0 : index
    %c0_1 = arith.constant 0 : index
    %c0_2 = arith.constant 0 : index
    %0 = vector.load %arg1[%c0, %c0_0, %c0_1, %c0_2] : memref<1x16x16x128xf32, #tpu.memory_space<vmem>>, vector<1x16x16x128xf32>
    %1 = vector.shape_cast %0 : vector<1x16x16x128xf32> to vector<16x16x128xf32>
    %2 = vector.shape_cast %1 : vector<16x16x128xf32> to vector<256x128xf32>
    %c0_3 = arith.constant 0 : index
    %c0_4 = arith.constant 0 : index
    %3 = vector.load %arg2[%c0_3, %c0_4] : memref<128x128xf32, #tpu.memory_space<vmem>>, vector<128x128xf32>
    %cst = arith.constant dense<0.000000e+00> : vector<256x128xf32>
    %4 = tpu.matmul %2, %3, %cst {dimension_numbers = #tpu.dot_dimension_numbers<[1], [0], [0], [1], [0, 0, 1, 1], [], []>} : vector<256x128xf32>, vector<128x128xf32>, vector<256x128xf32> -> vector<256x128xf32>
    %c0_5 = arith.constant 0 : index
    %c0_6 = arith.constant 0 : index
    %5 = vector.load %arg3[%c0_5, %c0_6] : memref<1x128xf32, #tpu.memory_space<vmem>>, vector<1x128xf32>
    %6 = vector.broadcast %5 : vector<1x128xf32> to vector<256x128xf32>
    %7 = arith.addf %4, %6 : vector<256x128xf32>
    %cst_7 = arith.constant 0.000000e+00 : f32
    %cst_8 = arith.constant 6.000000e+00 : f32
    %8 = vector.broadcast %cst_7 : f32 to vector<256x128xf32>
    %9 = arith.maximumf %8, %7 : vector<256x128xf32>
    %10 = vector.broadcast %cst_8 : f32 to vector<256x128xf32>
    %11 = arith.minimumf %10, %9 : vector<256x128xf32>
    %cst_9 = arith.constant 0.000000e+00 : f32
    %12 = vector.broadcast %cst_9 : f32 to vector<18x32x128xf32>
    %c0_10 = arith.constant 0 : index
    %c0_11 = arith.constant 0 : index
    %c0_12 = arith.constant 0 : index
    %13 = vector.load %arg9[%c0_10, %c0_11, %c0_12] : memref<18x32x128xf32, #tpu.memory_space<vmem>>, vector<18x32x128xf32>
    tpu.vector_store %arg9[%c0_10, %c0_11, %c0_12], %12 {strides = array<i32>} : memref<18x32x128xf32, #tpu.memory_space<vmem>>, vector<18x32x128xf32>,
    %14 = vector.shape_cast %11 : vector<256x128xf32> to vector<16x16x128xf32>
    %c1 = arith.constant 1 : index
    %c8 = arith.constant 8 : index
    %c0_13 = arith.constant 0 : index
    %15 = vector.load %arg9[%c1, %c8, %c0_13] : memref<18x32x128xf32, #tpu.memory_space<vmem>>, vector<16x16x128xf32>
    tpu.vector_store %arg9[%c1, %c8, %c0_13], %14 {strides = array<i32>} : memref<18x32x128xf32, #tpu.memory_space<vmem>>, vector<16x16x128xf32>,
    %c0_14 = arith.constant 0 : index
    %c0_15 = arith.constant 0 : index
    %c0_16 = arith.constant 0 : index
    %16 = vector.load %arg4[%c0_14, %c0_15, %c0_16] : memref<3x3x128xf32, #tpu.memory_space<vmem>>, vector<3x3x128xf32>
    %cst_17 = arith.constant 0.000000e+00 : f32
    %17 = vector.broadcast %cst_17 : f32 to vector<16x16x128xf32>
    %c0_18 = arith.constant 0 : index
    %c7 = arith.constant 7 : index
    %c0_19 = arith.constant 0 : index
    %18 = vector.load %arg9[%c0_18, %c7, %c0_19] : memref<18x32x128xf32, #tpu.memory_space<vmem>>, vector<16x16x128xf32>
    %19 = vector.extract_strided_slice %16 {offsets = [0, 0, 0], sizes = [1, 1, 128], strides = [1, 1, 1]} : vector<3x3x128xf32> to vector<1x1x128xf32>
    %20 = vector.shape_cast %19 : vector<1x1x128xf32> to vector<128xf32>
    %21 = vector.shape_cast %20 : vector<128xf32> to vector<1x1x128xf32>
    %22 = vector.broadcast %21 : vector<1x1x128xf32> to vector<16x16x128xf32>
    %23 = arith.mulf %18, %22 : vector<16x16x128xf32>
    %24 = arith.addf %17, %23 : vector<16x16x128xf32>
    %c0_20 = arith.constant 0 : index
    %c8_21 = arith.constant 8 : index
    %c0_22 = arith.constant 0 : index
    %25 = vector.load %arg9[%c0_20, %c8_21, %c0_22] : memref<18x32x128xf32, #tpu.memory_space<vmem>>, vector<16x16x128xf32>
    %26 = vector.extract_strided_slice %16 {offsets = [0, 1, 0], sizes = [1, 1, 128], strides = [1, 1, 1]} : vector<3x3x128xf32> to vector<1x1x128xf32>
    %27 = vector.shape_cast %26 : vector<1x1x128xf32> to vector<128xf32>
    %28 = vector.shape_cast %27 : vector<128xf32> to vector<1x1x128xf32>
    %29 = vector.broadcast %28 : vector<1x1x128xf32> to vector<16x16x128xf32>
    %30 = arith.mulf %25, %29 : vector<16x16x128xf32>
    %31 = arith.addf %24, %30 : vector<16x16x128xf32>
    %c0_23 = arith.constant 0 : index
    %c9 = arith.constant 9 : index
    %c0_24 = arith.constant 0 : index
    %32 = vector.load %arg9[%c0_23, %c9, %c0_24] : memref<18x32x128xf32, #tpu.memory_space<vmem>>, vector<16x16x128xf32>
    %33 = vector.extract_strided_slice %16 {offsets = [0, 2, 0], sizes = [1, 1, 128], strides = [1, 1, 1]} : vector<3x3x128xf32> to vector<1x1x128xf32>
    %34 = vector.shape_cast %33 : vector<1x1x128xf32> to vector<128xf32>
    %35 = vector.shape_cast %34 : vector<128xf32> to vector<1x1x128xf32>
    %36 = vector.broadcast %35 : vector<1x1x128xf32> to vector<16x16x128xf32>
    %37 = arith.mulf %32, %36 : vector<16x16x128xf32>
    %38 = arith.addf %31, %37 : vector<16x16x128xf32>
    %c1_25 = arith.constant 1 : index
    %c7_26 = arith.constant 7 : index
    %c0_27 = arith.constant 0 : index
    %39 = vector.load %arg9[%c1_25, %c7_26, %c0_27] : memref<18x32x128xf32, #tpu.memory_space<vmem>>, vector<16x16x128xf32>
    %40 = vector.extract_strided_slice %16 {offsets = [1, 0, 0], sizes = [1, 1, 128], strides = [1, 1, 1]} : vector<3x3x128xf32> to vector<1x1x128xf32>
    %41 = vector.shape_cast %40 : vector<1x1x128xf32> to vector<128xf32>
    %42 = vector.shape_cast %41 : vector<128xf32> to vector<1x1x128xf32>
    %43 = vector.broadcast %42 : vector<1x1x128xf32> to vector<16x16x128xf32>
    %44 = arith.mulf %39, %43 : vector<16x16x128xf32>
    %45 = arith.addf %38, %44 : vector<16x16x128xf32>
    %c1_28 = arith.constant 1 : index
    %c8_29 = arith.constant 8 : index
    %c0_30 = arith.constant 0 : index
    %46 = vector.load %arg9[%c1_28, %c8_29, %c0_30] : memref<18x32x128xf32, #tpu.memory_space<vmem>>, vector<16x16x128xf32>
    %47 = vector.extract_strided_slice %16 {offsets = [1, 1, 0], sizes = [1, 1, 128], strides = [1, 1, 1]} : vector<3x3x128xf32> to vector<1x1x128xf32>
    %48 = vector.shape_cast %47 : vector<1x1x128xf32> to vector<128xf32>
    %49 = vector.shape_cast %48 : vector<128xf32> to vector<1x1x128xf32>
    %50 = vector.broadcast %49 : vector<1x1x128xf32> to vector<16x16x128xf32>
    %51 = arith.mulf %46, %50 : vector<16x16x128xf32>
    %52 = arith.addf %45, %51 : vector<16x16x128xf32>
    %c1_31 = arith.constant 1 : index
    %c9_32 = arith.constant 9 : index
    %c0_33 = arith.constant 0 : index
    %53 = vector.load %arg9[%c1_31, %c9_32, %c0_33] : memref<18x32x128xf32, #tpu.memory_space<vmem>>, vector<16x16x128xf32>
    %54 = vector.extract_strided_slice %16 {offsets = [1, 2, 0], sizes = [1, 1, 128], strides = [1, 1, 1]} : vector<3x3x128xf32> to vector<1x1x128xf32>
    %55 = vector.shape_cast %54 : vector<1x1x128xf32> to vector<128xf32>
    %56 = vector.shape_cast %55 : vector<128xf32> to vector<1x1x128xf32>
    %57 = vector.broadcast %56 : vector<1x1x128xf32> to vector<16x16x128xf32>
    %58 = arith.mulf %53, %57 : vector<16x16x128xf32>
    %59 = arith.addf %52, %58 : vector<16x16x128xf32>
    %c2 = arith.constant 2 : index
    %c7_34 = arith.constant 7 : index
    %c0_35 = arith.constant 0 : index
    %60 = vector.load %arg9[%c2, %c7_34, %c0_35] : memref<18x32x128xf32, #tpu.memory_space<vmem>>, vector<16x16x128xf32>
    %61 = vector.extract_strided_slice %16 {offsets = [2, 0, 0], sizes = [1, 1, 128], strides = [1, 1, 1]} : vector<3x3x128xf32> to vector<1x1x128xf32>
    %62 = vector.shape_cast %61 : vector<1x1x128xf32> to vector<128xf32>
    %63 = vector.shape_cast %62 : vector<128xf32> to vector<1x1x128xf32>
    %64 = vector.broadcast %63 : vector<1x1x128xf32> to vector<16x16x128xf32>
    %65 = arith.mulf %60, %64 : vector<16x16x128xf32>
    %66 = arith.addf %59, %65 : vector<16x16x128xf32>
    %c2_36 = arith.constant 2 : index
    %c8_37 = arith.constant 8 : index
    %c0_38 = arith.constant 0 : index
    %67 = vector.load %arg9[%c2_36, %c8_37, %c0_38] : memref<18x32x128xf32, #tpu.memory_space<vmem>>, vector<16x16x128xf32>
    %68 = vector.extract_strided_slice %16 {offsets = [2, 1, 0], sizes = [1, 1, 128], strides = [1, 1, 1]} : vector<3x3x128xf32> to vector<1x1x128xf32>
    %69 = vector.shape_cast %68 : vector<1x1x128xf32> to vector<128xf32>
    %70 = vector.shape_cast %69 : vector<128xf32> to vector<1x1x128xf32>
    %71 = vector.broadcast %70 : vector<1x1x128xf32> to vector<16x16x128xf32>
    %72 = arith.mulf %67, %71 : vector<16x16x128xf32>
    %73 = arith.addf %66, %72 : vector<16x16x128xf32>
    %c2_39 = arith.constant 2 : index
    %c9_40 = arith.constant 9 : index
    %c0_41 = arith.constant 0 : index
    %74 = vector.load %arg9[%c2_39, %c9_40, %c0_41] : memref<18x32x128xf32, #tpu.memory_space<vmem>>, vector<16x16x128xf32>
    %75 = vector.extract_strided_slice %16 {offsets = [2, 2, 0], sizes = [1, 1, 128], strides = [1, 1, 1]} : vector<3x3x128xf32> to vector<1x1x128xf32>
    %76 = vector.shape_cast %75 : vector<1x1x128xf32> to vector<128xf32>
    %77 = vector.shape_cast %76 : vector<128xf32> to vector<1x1x128xf32>
    %78 = vector.broadcast %77 : vector<1x1x128xf32> to vector<16x16x128xf32>
    %79 = arith.mulf %74, %78 : vector<16x16x128xf32>
    %80 = arith.addf %73, %79 : vector<16x16x128xf32>
    %c0_42 = arith.constant 0 : index
    %c0_43 = arith.constant 0 : index
    %c0_44 = arith.constant 0 : index
    %81 = vector.load %arg5[%c0_42, %c0_43, %c0_44] : memref<1x1x128xf32, #tpu.memory_space<vmem>>, vector<1x1x128xf32>
    %82 = vector.broadcast %81 : vector<1x1x128xf32> to vector<16x16x128xf32>
    %83 = arith.addf %80, %82 : vector<16x16x128xf32>
    %cst_45 = arith.constant 0.000000e+00 : f32
    %cst_46 = arith.constant 6.000000e+00 : f32
    %84 = vector.broadcast %cst_45 : f32 to vector<16x16x128xf32>
    %85 = arith.maximumf %84, %83 : vector<16x16x128xf32>
    %86 = vector.broadcast %cst_46 : f32 to vector<16x16x128xf32>
    %87 = arith.minimumf %86, %85 : vector<16x16x128xf32>
    %88 = vector.shape_cast %87 : vector<16x16x128xf32> to vector<256x128xf32>
    %c0_47 = arith.constant 0 : index
    %c0_48 = arith.constant 0 : index
    %89 = vector.load %arg6[%c0_47, %c0_48] : memref<128x128xf32, #tpu.memory_space<vmem>>, vector<128x128xf32>
    %cst_49 = arith.constant dense<0.000000e+00> : vector<256x128xf32>
    %90 = tpu.matmul %88, %89, %cst_49 {dimension_numbers = #tpu.dot_dimension_numbers<[1], [0], [0], [1], [0, 0, 1, 1], [], []>} : vector<256x128xf32>, vector<128x128xf32>, vector<256x128xf32> -> vector<256x128xf32>
    %c0_50 = arith.constant 0 : index
    %c0_51 = arith.constant 0 : index
    %91 = vector.load %arg7[%c0_50, %c0_51] : memref<1x128xf32, #tpu.memory_space<vmem>>, vector<1x128xf32>
    %92 = vector.broadcast %91 : vector<1x128xf32> to vector<256x128xf32>
    %93 = arith.addf %90, %92 : vector<256x128xf32>
    %94 = vector.shape_cast %93 : vector<256x128xf32> to vector<16x16x128xf32>
    %c0_52 = arith.constant 0 : index
    %c0_53 = arith.constant 0 : index
    %c0_54 = arith.constant 0 : index
    %c0_55 = arith.constant 0 : index
    %95 = vector.load %arg8[%c0_52, %c0_53, %c0_54, %c0_55] : memref<1x16x16x128xf32, #tpu.memory_space<vmem>>, vector<1x16x16x128xf32>
    %96 = vector.shape_cast %95 : vector<1x16x16x128xf32> to vector<16x16x128xf32>
    %97 = vector.shape_cast %94 : vector<16x16x128xf32> to vector<1x16x16x128xf32>
    tpu.vector_store %arg8[%c0_52, %c0_53, %c0_54, %c0_55], %97 {strides = array<i32>} : memref<1x16x16x128xf32, #tpu.memory_space<vmem>>, vector<1x16x16x128xf32>,
    return
  }
  func.func @transform_0(%arg0: i32) -> (i32, i32, i32, i32) {
    %c0_i32 = arith.constant 0 : i32
    %c0_i32_0 = arith.constant 0 : i32
    %c0_i32_1 = arith.constant 0 : i32
    %c0_i32_2 = arith.constant 0 : i32
    return %arg0, %c0_i32, %c0_i32_0, %c0_i32_1 : i32, i32, i32, i32
  }
  func.func @transform_1(%arg0: i32) -> (i32, i32) {
    %c0_i32 = arith.constant 0 : i32
    %c0_i32_0 = arith.constant 0 : i32
    %c0_i32_1 = arith.constant 0 : i32
    return %c0_i32, %c0_i32_0 : i32, i32
  }
  func.func @transform_2(%arg0: i32) -> (i32, i32) {
    %c0_i32 = arith.constant 0 : i32
    %c0_i32_0 = arith.constant 0 : i32
    %c0_i32_1 = arith.constant 0 : i32
    return %c0_i32, %c0_i32_0 : i32, i32
  }
  func.func @transform_3(%arg0: i32) -> (i32, i32, i32) {
    %c0_i32 = arith.constant 0 : i32
    %c0_i32_0 = arith.constant 0 : i32
    %c0_i32_1 = arith.constant 0 : i32
    %c0_i32_2 = arith.constant 0 : i32
    return %c0_i32, %c0_i32_0, %c0_i32_1 : i32, i32, i32
  }
  func.func @transform_4(%arg0: i32) -> (i32, i32, i32) {
    %c0_i32 = arith.constant 0 : i32
    %c0_i32_0 = arith.constant 0 : i32
    %c0_i32_1 = arith.constant 0 : i32
    %c0_i32_2 = arith.constant 0 : i32
    return %c0_i32, %c0_i32_0, %c0_i32_1 : i32, i32, i32
  }
  func.func @transform_5(%arg0: i32) -> (i32, i32) {
    %c0_i32 = arith.constant 0 : i32
    %c0_i32_0 = arith.constant 0 : i32
    %c0_i32_1 = arith.constant 0 : i32
    return %c0_i32, %c0_i32_0 : i32, i32
  }
  func.func @transform_6(%arg0: i32) -> (i32, i32) {
    %c0_i32 = arith.constant 0 : i32
    %c0_i32_0 = arith.constant 0 : i32
    %c0_i32_1 = arith.constant 0 : i32
    return %c0_i32, %c0_i32_0 : i32, i32
  }
  func.func @transform_7(%arg0: i32) -> (i32, i32, i32, i32) {
    %c0_i32 = arith.constant 0 : i32
    %c0_i32_0 = arith.constant 0 : i32
    %c0_i32_1 = arith.constant 0 : i32
    %c0_i32_2 = arith.constant 0 : i32
    return %arg0, %c0_i32, %c0_i32_0, %c0_i32_1 : i32, i32, i32, i32
  }
}

module attributes {stable_mosaic.version = 11 : i64} {
  func.func @_mm_act_kernel(%arg0: memref<512x32xf32, #tpu.memory_space<vmem>>, %arg1: memref<32x128xf32, #tpu.memory_space<vmem>>, %arg2: memref<1x128xf32, #tpu.memory_space<vmem>>, %arg3: memref<512x128xf32, #tpu.memory_space<vmem>>) attributes {dimension_semantics = [], scalar_prefetch = 0 : i64, scratch_operands = 0 : i64, tpu.core_type = #tpu.core_type<tc>} {
    %c0 = arith.constant 0 : index
    %c0_0 = arith.constant 0 : index
    %0 = vector.load %arg0[%c0, %c0_0] : memref<512x32xf32, #tpu.memory_space<vmem>>, vector<512x32xf32>
    %c0_1 = arith.constant 0 : index
    %c0_2 = arith.constant 0 : index
    %1 = vector.load %arg1[%c0_1, %c0_2] : memref<32x128xf32, #tpu.memory_space<vmem>>, vector<32x128xf32>
    %cst = arith.constant dense<0.000000e+00> : vector<512x128xf32>
    %2 = tpu.matmul %0, %1, %cst {dimension_numbers = #tpu.dot_dimension_numbers<[1], [0], [0], [1], [0, 0, 1, 1], [], []>} : vector<512x32xf32>, vector<32x128xf32>, vector<512x128xf32> -> vector<512x128xf32>
    %c0_3 = arith.constant 0 : index
    %c0_4 = arith.constant 0 : index
    %3 = vector.load %arg2[%c0_3, %c0_4] : memref<1x128xf32, #tpu.memory_space<vmem>>, vector<1x128xf32>
    %4 = vector.broadcast %3 : vector<1x128xf32> to vector<512x128xf32>
    %5 = arith.addf %2, %4 : vector<512x128xf32>
    %cst_5 = arith.constant 0.000000e+00 : f32
    %cst_6 = arith.constant 6.000000e+00 : f32
    %6 = vector.broadcast %cst_5 : f32 to vector<512x128xf32>
    %7 = arith.maximumf %6, %5 : vector<512x128xf32>
    %8 = vector.broadcast %cst_6 : f32 to vector<512x128xf32>
    %9 = arith.minimumf %8, %7 : vector<512x128xf32>
    %c0_7 = arith.constant 0 : index
    %c0_8 = arith.constant 0 : index
    %10 = vector.load %arg3[%c0_7, %c0_8] : memref<512x128xf32, #tpu.memory_space<vmem>>, vector<512x128xf32>
    tpu.vector_store %arg3[%c0_7, %c0_8], %9 {strides = array<i32>} : memref<512x128xf32, #tpu.memory_space<vmem>>, vector<512x128xf32>,
    return
  }
}

module attributes {stable_mosaic.version = 11 : i64} {
  func.func @_ir_block_kernel(%arg0: i32, %arg1: memref<1x16x16x128xf32, #tpu.memory_space<vmem>>, %arg2: memref<128x128xf32, #tpu.memory_space<vmem>>, %arg3: memref<1x128xf32, #tpu.memory_space<vmem>>, %arg4: memref<3x3x128xf32, #tpu.memory_space<vmem>>, %arg5: memref<1x1x128xf32, #tpu.memory_space<vmem>>, %arg6: memref<128x128xf32, #tpu.memory_space<vmem>>, %arg7: memref<1x128xf32, #tpu.memory_space<vmem>>, %arg8: memref<1x16x16x128xf32, #tpu.memory_space<vmem>>, %arg9: memref<18x32x128xf32, #tpu.memory_space<vmem>>) attributes {dimension_semantics = [#tpu.dimension_semantics<arbitrary>], iteration_bounds = array<i64: 2>, scalar_prefetch = 0 : i64, scratch_operands = 1 : i64, tpu.core_type = #tpu.core_type<tc>, window_params = [{transform_indices = @transform_0, window_bounds = array<i64: 1, 16, 16, 128>}, {pipeline_mode = #tpu.pipeline_mode<synchronous>, transform_indices = @transform_1, window_bounds = array<i64: 128, 128>}, {pipeline_mode = #tpu.pipeline_mode<synchronous>, transform_indices = @transform_2, window_bounds = array<i64: 1, 128>}, {pipeline_mode = #tpu.pipeline_mode<synchronous>, transform_indices = @transform_3, window_bounds = array<i64: 3, 3, 128>}, {pipeline_mode = #tpu.pipeline_mode<synchronous>, transform_indices = @transform_4, window_bounds = array<i64: 1, 1, 128>}, {pipeline_mode = #tpu.pipeline_mode<synchronous>, transform_indices = @transform_5, window_bounds = array<i64: 128, 128>}, {pipeline_mode = #tpu.pipeline_mode<synchronous>, transform_indices = @transform_6, window_bounds = array<i64: 1, 128>}, {transform_indices = @transform_7, window_bounds = array<i64: 1, 16, 16, 128>}]} {
    %c0 = arith.constant 0 : index
    %c0_0 = arith.constant 0 : index
    %c0_1 = arith.constant 0 : index
    %c0_2 = arith.constant 0 : index
    %0 = vector.load %arg1[%c0, %c0_0, %c0_1, %c0_2] : memref<1x16x16x128xf32, #tpu.memory_space<vmem>>, vector<1x16x16x128xf32>
    %1 = vector.shape_cast %0 : vector<1x16x16x128xf32> to vector<16x16x128xf32>
    %2 = vector.shape_cast %1 : vector<16x16x128xf32> to vector<256x128xf32>
    %c0_3 = arith.constant 0 : index
    %c0_4 = arith.constant 0 : index
    %3 = vector.load %arg2[%c0_3, %c0_4] : memref<128x128xf32, #tpu.memory_space<vmem>>, vector<128x128xf32>
    %cst = arith.constant dense<0.000000e+00> : vector<256x128xf32>
    %4 = tpu.matmul %2, %3, %cst {dimension_numbers = #tpu.dot_dimension_numbers<[1], [0], [0], [1], [0, 0, 1, 1], [], []>} : vector<256x128xf32>, vector<128x128xf32>, vector<256x128xf32> -> vector<256x128xf32>
    %c0_5 = arith.constant 0 : index
    %c0_6 = arith.constant 0 : index
    %5 = vector.load %arg3[%c0_5, %c0_6] : memref<1x128xf32, #tpu.memory_space<vmem>>, vector<1x128xf32>
    %6 = vector.broadcast %5 : vector<1x128xf32> to vector<256x128xf32>
    %7 = arith.addf %4, %6 : vector<256x128xf32>
    %cst_7 = arith.constant 0.000000e+00 : f32
    %cst_8 = arith.constant 6.000000e+00 : f32
    %8 = vector.broadcast %cst_7 : f32 to vector<256x128xf32>
    %9 = arith.maximumf %8, %7 : vector<256x128xf32>
    %10 = vector.broadcast %cst_8 : f32 to vector<256x128xf32>
    %11 = arith.minimumf %10, %9 : vector<256x128xf32>
    %cst_9 = arith.constant 0.000000e+00 : f32
    %12 = vector.broadcast %cst_9 : f32 to vector<18x32x128xf32>
    %c0_10 = arith.constant 0 : index
    %c0_11 = arith.constant 0 : index
    %c0_12 = arith.constant 0 : index
    %13 = vector.load %arg9[%c0_10, %c0_11, %c0_12] : memref<18x32x128xf32, #tpu.memory_space<vmem>>, vector<18x32x128xf32>
    tpu.vector_store %arg9[%c0_10, %c0_11, %c0_12], %12 {strides = array<i32>} : memref<18x32x128xf32, #tpu.memory_space<vmem>>, vector<18x32x128xf32>,
    %14 = vector.shape_cast %11 : vector<256x128xf32> to vector<16x16x128xf32>
    %c1 = arith.constant 1 : index
    %c8 = arith.constant 8 : index
    %c0_13 = arith.constant 0 : index
    %15 = vector.load %arg9[%c1, %c8, %c0_13] : memref<18x32x128xf32, #tpu.memory_space<vmem>>, vector<16x16x128xf32>
    tpu.vector_store %arg9[%c1, %c8, %c0_13], %14 {strides = array<i32>} : memref<18x32x128xf32, #tpu.memory_space<vmem>>, vector<16x16x128xf32>,
    %c0_14 = arith.constant 0 : index
    %c0_15 = arith.constant 0 : index
    %c0_16 = arith.constant 0 : index
    %16 = vector.load %arg4[%c0_14, %c0_15, %c0_16] : memref<3x3x128xf32, #tpu.memory_space<vmem>>, vector<3x3x128xf32>
    %cst_17 = arith.constant 0.000000e+00 : f32
    %17 = vector.broadcast %cst_17 : f32 to vector<16x16x128xf32>
    %c0_18 = arith.constant 0 : index
    %c7 = arith.constant 7 : index
    %c0_19 = arith.constant 0 : index
    %18 = vector.load %arg9[%c0_18, %c7, %c0_19] : memref<18x32x128xf32, #tpu.memory_space<vmem>>, vector<16x16x128xf32>
    %19 = vector.extract_strided_slice %16 {offsets = [0, 0, 0], sizes = [1, 1, 128], strides = [1, 1, 1]} : vector<3x3x128xf32> to vector<1x1x128xf32>
    %20 = vector.shape_cast %19 : vector<1x1x128xf32> to vector<128xf32>
    %21 = vector.shape_cast %20 : vector<128xf32> to vector<1x1x128xf32>
    %22 = vector.broadcast %21 : vector<1x1x128xf32> to vector<16x16x128xf32>
    %23 = arith.mulf %18, %22 : vector<16x16x128xf32>
    %24 = arith.addf %17, %23 : vector<16x16x128xf32>
    %c0_20 = arith.constant 0 : index
    %c8_21 = arith.constant 8 : index
    %c0_22 = arith.constant 0 : index
    %25 = vector.load %arg9[%c0_20, %c8_21, %c0_22] : memref<18x32x128xf32, #tpu.memory_space<vmem>>, vector<16x16x128xf32>
    %26 = vector.extract_strided_slice %16 {offsets = [0, 1, 0], sizes = [1, 1, 128], strides = [1, 1, 1]} : vector<3x3x128xf32> to vector<1x1x128xf32>
    %27 = vector.shape_cast %26 : vector<1x1x128xf32> to vector<128xf32>
    %28 = vector.shape_cast %27 : vector<128xf32> to vector<1x1x128xf32>
    %29 = vector.broadcast %28 : vector<1x1x128xf32> to vector<16x16x128xf32>
    %30 = arith.mulf %25, %29 : vector<16x16x128xf32>
    %31 = arith.addf %24, %30 : vector<16x16x128xf32>
    %c0_23 = arith.constant 0 : index
    %c9 = arith.constant 9 : index
    %c0_24 = arith.constant 0 : index
    %32 = vector.load %arg9[%c0_23, %c9, %c0_24] : memref<18x32x128xf32, #tpu.memory_space<vmem>>, vector<16x16x128xf32>
    %33 = vector.extract_strided_slice %16 {offsets = [0, 2, 0], sizes = [1, 1, 128], strides = [1, 1, 1]} : vector<3x3x128xf32> to vector<1x1x128xf32>
    %34 = vector.shape_cast %33 : vector<1x1x128xf32> to vector<128xf32>
    %35 = vector.shape_cast %34 : vector<128xf32> to vector<1x1x128xf32>
    %36 = vector.broadcast %35 : vector<1x1x128xf32> to vector<16x16x128xf32>
    %37 = arith.mulf %32, %36 : vector<16x16x128xf32>
    %38 = arith.addf %31, %37 : vector<16x16x128xf32>
    %c1_25 = arith.constant 1 : index
    %c7_26 = arith.constant 7 : index
    %c0_27 = arith.constant 0 : index
    %39 = vector.load %arg9[%c1_25, %c7_26, %c0_27] : memref<18x32x128xf32, #tpu.memory_space<vmem>>, vector<16x16x128xf32>
    %40 = vector.extract_strided_slice %16 {offsets = [1, 0, 0], sizes = [1, 1, 128], strides = [1, 1, 1]} : vector<3x3x128xf32> to vector<1x1x128xf32>
    %41 = vector.shape_cast %40 : vector<1x1x128xf32> to vector<128xf32>
    %42 = vector.shape_cast %41 : vector<128xf32> to vector<1x1x128xf32>
    %43 = vector.broadcast %42 : vector<1x1x128xf32> to vector<16x16x128xf32>
    %44 = arith.mulf %39, %43 : vector<16x16x128xf32>
    %45 = arith.addf %38, %44 : vector<16x16x128xf32>
    %c1_28 = arith.constant 1 : index
    %c8_29 = arith.constant 8 : index
    %c0_30 = arith.constant 0 : index
    %46 = vector.load %arg9[%c1_28, %c8_29, %c0_30] : memref<18x32x128xf32, #tpu.memory_space<vmem>>, vector<16x16x128xf32>
    %47 = vector.extract_strided_slice %16 {offsets = [1, 1, 0], sizes = [1, 1, 128], strides = [1, 1, 1]} : vector<3x3x128xf32> to vector<1x1x128xf32>
    %48 = vector.shape_cast %47 : vector<1x1x128xf32> to vector<128xf32>
    %49 = vector.shape_cast %48 : vector<128xf32> to vector<1x1x128xf32>
    %50 = vector.broadcast %49 : vector<1x1x128xf32> to vector<16x16x128xf32>
    %51 = arith.mulf %46, %50 : vector<16x16x128xf32>
    %52 = arith.addf %45, %51 : vector<16x16x128xf32>
    %c1_31 = arith.constant 1 : index
    %c9_32 = arith.constant 9 : index
    %c0_33 = arith.constant 0 : index
    %53 = vector.load %arg9[%c1_31, %c9_32, %c0_33] : memref<18x32x128xf32, #tpu.memory_space<vmem>>, vector<16x16x128xf32>
    %54 = vector.extract_strided_slice %16 {offsets = [1, 2, 0], sizes = [1, 1, 128], strides = [1, 1, 1]} : vector<3x3x128xf32> to vector<1x1x128xf32>
    %55 = vector.shape_cast %54 : vector<1x1x128xf32> to vector<128xf32>
    %56 = vector.shape_cast %55 : vector<128xf32> to vector<1x1x128xf32>
    %57 = vector.broadcast %56 : vector<1x1x128xf32> to vector<16x16x128xf32>
    %58 = arith.mulf %53, %57 : vector<16x16x128xf32>
    %59 = arith.addf %52, %58 : vector<16x16x128xf32>
    %c2 = arith.constant 2 : index
    %c7_34 = arith.constant 7 : index
    %c0_35 = arith.constant 0 : index
    %60 = vector.load %arg9[%c2, %c7_34, %c0_35] : memref<18x32x128xf32, #tpu.memory_space<vmem>>, vector<16x16x128xf32>
    %61 = vector.extract_strided_slice %16 {offsets = [2, 0, 0], sizes = [1, 1, 128], strides = [1, 1, 1]} : vector<3x3x128xf32> to vector<1x1x128xf32>
    %62 = vector.shape_cast %61 : vector<1x1x128xf32> to vector<128xf32>
    %63 = vector.shape_cast %62 : vector<128xf32> to vector<1x1x128xf32>
    %64 = vector.broadcast %63 : vector<1x1x128xf32> to vector<16x16x128xf32>
    %65 = arith.mulf %60, %64 : vector<16x16x128xf32>
    %66 = arith.addf %59, %65 : vector<16x16x128xf32>
    %c2_36 = arith.constant 2 : index
    %c8_37 = arith.constant 8 : index
    %c0_38 = arith.constant 0 : index
    %67 = vector.load %arg9[%c2_36, %c8_37, %c0_38] : memref<18x32x128xf32, #tpu.memory_space<vmem>>, vector<16x16x128xf32>
    %68 = vector.extract_strided_slice %16 {offsets = [2, 1, 0], sizes = [1, 1, 128], strides = [1, 1, 1]} : vector<3x3x128xf32> to vector<1x1x128xf32>
    %69 = vector.shape_cast %68 : vector<1x1x128xf32> to vector<128xf32>
    %70 = vector.shape_cast %69 : vector<128xf32> to vector<1x1x128xf32>
    %71 = vector.broadcast %70 : vector<1x1x128xf32> to vector<16x16x128xf32>
    %72 = arith.mulf %67, %71 : vector<16x16x128xf32>
    %73 = arith.addf %66, %72 : vector<16x16x128xf32>
    %c2_39 = arith.constant 2 : index
    %c9_40 = arith.constant 9 : index
    %c0_41 = arith.constant 0 : index
    %74 = vector.load %arg9[%c2_39, %c9_40, %c0_41] : memref<18x32x128xf32, #tpu.memory_space<vmem>>, vector<16x16x128xf32>
    %75 = vector.extract_strided_slice %16 {offsets = [2, 2, 0], sizes = [1, 1, 128], strides = [1, 1, 1]} : vector<3x3x128xf32> to vector<1x1x128xf32>
    %76 = vector.shape_cast %75 : vector<1x1x128xf32> to vector<128xf32>
    %77 = vector.shape_cast %76 : vector<128xf32> to vector<1x1x128xf32>
    %78 = vector.broadcast %77 : vector<1x1x128xf32> to vector<16x16x128xf32>
    %79 = arith.mulf %74, %78 : vector<16x16x128xf32>
    %80 = arith.addf %73, %79 : vector<16x16x128xf32>
    %c0_42 = arith.constant 0 : index
    %c0_43 = arith.constant 0 : index
    %c0_44 = arith.constant 0 : index
    %81 = vector.load %arg5[%c0_42, %c0_43, %c0_44] : memref<1x1x128xf32, #tpu.memory_space<vmem>>, vector<1x1x128xf32>
    %82 = vector.broadcast %81 : vector<1x1x128xf32> to vector<16x16x128xf32>
    %83 = arith.addf %80, %82 : vector<16x16x128xf32>
    %cst_45 = arith.constant 0.000000e+00 : f32
    %cst_46 = arith.constant 6.000000e+00 : f32
    %84 = vector.broadcast %cst_45 : f32 to vector<16x16x128xf32>
    %85 = arith.maximumf %84, %83 : vector<16x16x128xf32>
    %86 = vector.broadcast %cst_46 : f32 to vector<16x16x128xf32>
    %87 = arith.minimumf %86, %85 : vector<16x16x128xf32>
    %88 = vector.shape_cast %87 : vector<16x16x128xf32> to vector<256x128xf32>
    %c0_47 = arith.constant 0 : index
    %c0_48 = arith.constant 0 : index
    %89 = vector.load %arg6[%c0_47, %c0_48] : memref<128x128xf32, #tpu.memory_space<vmem>>, vector<128x128xf32>
    %cst_49 = arith.constant dense<0.000000e+00> : vector<256x128xf32>
    %90 = tpu.matmul %88, %89, %cst_49 {dimension_numbers = #tpu.dot_dimension_numbers<[1], [0], [0], [1], [0, 0, 1, 1], [], []>} : vector<256x128xf32>, vector<128x128xf32>, vector<256x128xf32> -> vector<256x128xf32>
    %c0_50 = arith.constant 0 : index
    %c0_51 = arith.constant 0 : index
    %91 = vector.load %arg7[%c0_50, %c0_51] : memref<1x128xf32, #tpu.memory_space<vmem>>, vector<1x128xf32>
    %92 = vector.broadcast %91 : vector<1x128xf32> to vector<256x128xf32>
    %93 = arith.addf %90, %92 : vector<256x128xf32>
    %94 = arith.addf %93, %2 : vector<256x128xf32>
    %95 = vector.shape_cast %94 : vector<256x128xf32> to vector<16x16x128xf32>
    %c0_52 = arith.constant 0 : index
    %c0_53 = arith.constant 0 : index
    %c0_54 = arith.constant 0 : index
    %c0_55 = arith.constant 0 : index
    %96 = vector.load %arg8[%c0_52, %c0_53, %c0_54, %c0_55] : memref<1x16x16x128xf32, #tpu.memory_space<vmem>>, vector<1x16x16x128xf32>
    %97 = vector.shape_cast %96 : vector<1x16x16x128xf32> to vector<16x16x128xf32>
    %98 = vector.shape_cast %95 : vector<16x16x128xf32> to vector<1x16x16x128xf32>
    tpu.vector_store %arg8[%c0_52, %c0_53, %c0_54, %c0_55], %98 {strides = array<i32>} : memref<1x16x16x128xf32, #tpu.memory_space<vmem>>, vector<1x16x16x128xf32>,
    return
  }
  func.func @transform_0(%arg0: i32) -> (i32, i32, i32, i32) {
    %c0_i32 = arith.constant 0 : i32
    %c0_i32_0 = arith.constant 0 : i32
    %c0_i32_1 = arith.constant 0 : i32
    %c0_i32_2 = arith.constant 0 : i32
    return %arg0, %c0_i32, %c0_i32_0, %c0_i32_1 : i32, i32, i32, i32
  }
  func.func @transform_1(%arg0: i32) -> (i32, i32) {
    %c0_i32 = arith.constant 0 : i32
    %c0_i32_0 = arith.constant 0 : i32
    %c0_i32_1 = arith.constant 0 : i32
    return %c0_i32, %c0_i32_0 : i32, i32
  }
  func.func @transform_2(%arg0: i32) -> (i32, i32) {
    %c0_i32 = arith.constant 0 : i32
    %c0_i32_0 = arith.constant 0 : i32
    %c0_i32_1 = arith.constant 0 : i32
    return %c0_i32, %c0_i32_0 : i32, i32
  }
  func.func @transform_3(%arg0: i32) -> (i32, i32, i32) {
    %c0_i32 = arith.constant 0 : i32
    %c0_i32_0 = arith.constant 0 : i32
    %c0_i32_1 = arith.constant 0 : i32
    %c0_i32_2 = arith.constant 0 : i32
    return %c0_i32, %c0_i32_0, %c0_i32_1 : i32, i32, i32
  }
  func.func @transform_4(%arg0: i32) -> (i32, i32, i32) {
    %c0_i32 = arith.constant 0 : i32
    %c0_i32_0 = arith.constant 0 : i32
    %c0_i32_1 = arith.constant 0 : i32
    %c0_i32_2 = arith.constant 0 : i32
    return %c0_i32, %c0_i32_0, %c0_i32_1 : i32, i32, i32
  }
  func.func @transform_5(%arg0: i32) -> (i32, i32) {
    %c0_i32 = arith.constant 0 : i32
    %c0_i32_0 = arith.constant 0 : i32
    %c0_i32_1 = arith.constant 0 : i32
    return %c0_i32, %c0_i32_0 : i32, i32
  }
  func.func @transform_6(%arg0: i32) -> (i32, i32) {
    %c0_i32 = arith.constant 0 : i32
    %c0_i32_0 = arith.constant 0 : i32
    %c0_i32_1 = arith.constant 0 : i32
    return %c0_i32, %c0_i32_0 : i32, i32
  }
  func.func @transform_7(%arg0: i32) -> (i32, i32, i32, i32) {
    %c0_i32 = arith.constant 0 : i32
    %c0_i32_0 = arith.constant 0 : i32
    %c0_i32_1 = arith.constant 0 : i32
    %c0_i32_2 = arith.constant 0 : i32
    return %arg0, %c0_i32, %c0_i32_0, %c0_i32_1 : i32, i32, i32, i32
  }
}

module attributes {stable_mosaic.version = 11 : i64} {
  func.func @_head_pool_kernel(%arg0: i32, %arg1: memref<1x16x16x128xf32, #tpu.memory_space<vmem>>, %arg2: memref<128x128xf32, #tpu.memory_space<vmem>>, %arg3: memref<1x128xf32, #tpu.memory_space<vmem>>, %arg4: memref<1x1x128xf32, #tpu.memory_space<vmem>>) attributes {dimension_semantics = [#tpu.dimension_semantics<arbitrary>], iteration_bounds = array<i64: 2>, scalar_prefetch = 0 : i64, scratch_operands = 0 : i64, tpu.core_type = #tpu.core_type<tc>, window_params = [{transform_indices = @transform_0, window_bounds = array<i64: 1, 16, 16, 128>}, {pipeline_mode = #tpu.pipeline_mode<synchronous>, transform_indices = @transform_1, window_bounds = array<i64: 128, 128>}, {pipeline_mode = #tpu.pipeline_mode<synchronous>, transform_indices = @transform_2, window_bounds = array<i64: 1, 128>}, {transform_indices = @transform_3, window_bounds = array<i64: 1, 1, 128>}]} {
    %c0 = arith.constant 0 : index
    %c0_0 = arith.constant 0 : index
    %c0_1 = arith.constant 0 : index
    %c0_2 = arith.constant 0 : index
    %0 = vector.load %arg1[%c0, %c0_0, %c0_1, %c0_2] : memref<1x16x16x128xf32, #tpu.memory_space<vmem>>, vector<1x16x16x128xf32>
    %1 = vector.shape_cast %0 : vector<1x16x16x128xf32> to vector<16x16x128xf32>
    %2 = vector.shape_cast %1 : vector<16x16x128xf32> to vector<256x128xf32>
    %c0_3 = arith.constant 0 : index
    %c0_4 = arith.constant 0 : index
    %3 = vector.load %arg2[%c0_3, %c0_4] : memref<128x128xf32, #tpu.memory_space<vmem>>, vector<128x128xf32>
    %cst = arith.constant dense<0.000000e+00> : vector<256x128xf32>
    %4 = tpu.matmul %2, %3, %cst {dimension_numbers = #tpu.dot_dimension_numbers<[1], [0], [0], [1], [0, 0, 1, 1], [], []>} : vector<256x128xf32>, vector<128x128xf32>, vector<256x128xf32> -> vector<256x128xf32>
    %c0_5 = arith.constant 0 : index
    %c0_6 = arith.constant 0 : index
    %5 = vector.load %arg3[%c0_5, %c0_6] : memref<1x128xf32, #tpu.memory_space<vmem>>, vector<1x128xf32>
    %6 = vector.broadcast %5 : vector<1x128xf32> to vector<256x128xf32>
    %7 = arith.addf %4, %6 : vector<256x128xf32>
    %cst_7 = arith.constant 0.000000e+00 : f32
    %cst_8 = arith.constant 6.000000e+00 : f32
    %8 = vector.broadcast %cst_7 : f32 to vector<256x128xf32>
    %9 = arith.maximumf %8, %7 : vector<256x128xf32>
    %10 = vector.broadcast %cst_8 : f32 to vector<256x128xf32>
    %11 = arith.minimumf %10, %9 : vector<256x128xf32>
    %cst_9 = arith.constant dense<0.000000e+00> : vector<128xf32>
    %12 = vector.multi_reduction <add>, %11, %cst_9 [0] : vector<256x128xf32> to vector<128xf32>
    %13 = vector.shape_cast %12 : vector<128xf32> to vector<1x128xf32>
    %cst_10 = arith.constant 3.906250e-03 : f32
    %14 = vector.broadcast %cst_10 : f32 to vector<1x128xf32>
    %15 = arith.mulf %13, %14 : vector<1x128xf32>
    %c0_11 = arith.constant 0 : index
    %c0_12 = arith.constant 0 : index
    %c0_13 = arith.constant 0 : index
    %16 = vector.load %arg4[%c0_11, %c0_12, %c0_13] : memref<1x1x128xf32, #tpu.memory_space<vmem>>, vector<1x1x128xf32>
    %17 = vector.shape_cast %16 : vector<1x1x128xf32> to vector<1x128xf32>
    %18 = vector.shape_cast %15 : vector<1x128xf32> to vector<1x1x128xf32>
    tpu.vector_store %arg4[%c0_11, %c0_12, %c0_13], %18 {strides = array<i32>} : memref<1x1x128xf32, #tpu.memory_space<vmem>>, vector<1x1x128xf32>,
    return
  }
  func.func @transform_0(%arg0: i32) -> (i32, i32, i32, i32) {
    %c0_i32 = arith.constant 0 : i32
    %c0_i32_0 = arith.constant 0 : i32
    %c0_i32_1 = arith.constant 0 : i32
    %c0_i32_2 = arith.constant 0 : i32
    return %arg0, %c0_i32, %c0_i32_0, %c0_i32_1 : i32, i32, i32, i32
  }
  func.func @transform_1(%arg0: i32) -> (i32, i32) {
    %c0_i32 = arith.constant 0 : i32
    %c0_i32_0 = arith.constant 0 : i32
    %c0_i32_1 = arith.constant 0 : i32
    return %c0_i32, %c0_i32_0 : i32, i32
  }
  func.func @transform_2(%arg0: i32) -> (i32, i32) {
    %c0_i32 = arith.constant 0 : i32
    %c0_i32_0 = arith.constant 0 : i32
    %c0_i32_1 = arith.constant 0 : i32
    return %c0_i32, %c0_i32_0 : i32, i32
  }
  func.func @transform_3(%arg0: i32) -> (i32, i32, i32) {
    %c0_i32 = arith.constant 0 : i32
    %c0_i32_0 = arith.constant 0 : i32
    %c0_i32_1 = arith.constant 0 : i32
    return %arg0, %c0_i32, %c0_i32_0 : i32, i32, i32
  }
}

module attributes {stable_mosaic.version = 11 : i64} {
  func.func @_ln_kernel(%arg0: memref<16x64xf32, #tpu.memory_space<vmem>>, %arg1: memref<1x64xf32, #tpu.memory_space<vmem>>, %arg2: memref<1x64xf32, #tpu.memory_space<vmem>>, %arg3: memref<16x64xf32, #tpu.memory_space<vmem>>) attributes {dimension_semantics = [], scalar_prefetch = 0 : i64, scratch_operands = 0 : i64, tpu.core_type = #tpu.core_type<tc>} {
    %c0 = arith.constant 0 : index
    %c0_0 = arith.constant 0 : index
    %0 = vector.load %arg0[%c0, %c0_0] : memref<16x64xf32, #tpu.memory_space<vmem>>, vector<16x64xf32>
    %c0_1 = arith.constant 0 : index
    %c0_2 = arith.constant 0 : index
    %1 = vector.load %arg1[%c0_1, %c0_2] : memref<1x64xf32, #tpu.memory_space<vmem>>, vector<1x64xf32>
    %c0_3 = arith.constant 0 : index
    %c0_4 = arith.constant 0 : index
    %2 = vector.load %arg2[%c0_3, %c0_4] : memref<1x64xf32, #tpu.memory_space<vmem>>, vector<1x64xf32>
    %cst = arith.constant dense<0.000000e+00> : vector<16xf32>
    %3 = vector.multi_reduction <add>, %0, %cst [1] : vector<16x64xf32> to vector<16xf32>
    %4 = vector.shape_cast %3 : vector<16xf32> to vector<16x1xf32>
    %cst_5 = arith.constant 6.400000e+01 : f32
    %5 = vector.broadcast %cst_5 : f32 to vector<16x1xf32>
    %6 = arith.divf %4, %5 : vector<16x1xf32>
    %7 = vector.broadcast %6 : vector<16x1xf32> to vector<16x64xf32>
    %8 = arith.subf %0, %7 : vector<16x64xf32>
    %9 = arith.mulf %8, %8 : vector<16x64xf32>
    %cst_6 = arith.constant dense<0.000000e+00> : vector<16xf32>
    %10 = vector.multi_reduction <add>, %9, %cst_6 [1] : vector<16x64xf32> to vector<16xf32>
    %11 = vector.shape_cast %10 : vector<16xf32> to vector<16x1xf32>
    %cst_7 = arith.constant 6.400000e+01 : f32
    %12 = vector.broadcast %cst_7 : f32 to vector<16x1xf32>
    %13 = arith.divf %11, %12 : vector<16x1xf32>
    %cst_8 = arith.constant 9.99999996E-13 : f32
    %14 = vector.broadcast %cst_8 : f32 to vector<16x1xf32>
    %15 = arith.addf %13, %14 : vector<16x1xf32>
    %16 = math.rsqrt %15 : vector<16x1xf32>
    %17 = vector.broadcast %16 : vector<16x1xf32> to vector<16x64xf32>
    %18 = arith.mulf %8, %17 : vector<16x64xf32>
    %19 = vector.broadcast %1 : vector<1x64xf32> to vector<16x64xf32>
    %20 = arith.mulf %18, %19 : vector<16x64xf32>
    %21 = vector.broadcast %2 : vector<1x64xf32> to vector<16x64xf32>
    %22 = arith.addf %20, %21 : vector<16x64xf32>
    %c0_9 = arith.constant 0 : index
    %c0_10 = arith.constant 0 : index
    %23 = vector.load %arg3[%c0_9, %c0_10] : memref<16x64xf32, #tpu.memory_space<vmem>>, vector<16x64xf32>
    tpu.vector_store %arg3[%c0_9, %c0_10], %22 {strides = array<i32>} : memref<16x64xf32, #tpu.memory_space<vmem>>, vector<16x64xf32>,
    return
  }
}

module attributes {stable_mosaic.version = 11 : i64} {
  func.func @_bert_layer_kernel(%arg0: memref<16x64xf32, #tpu.memory_space<vmem>>, %arg1: memref<2x8xf32, #tpu.memory_space<vmem>>, %arg2: memref<64x192xf32, #tpu.memory_space<vmem>>, %arg3: memref<1x192xf32, #tpu.memory_space<vmem>>, %arg4: memref<64x64xf32, #tpu.memory_space<vmem>>, %arg5: memref<1x64xf32, #tpu.memory_space<vmem>>, %arg6: memref<1x64xf32, #tpu.memory_space<vmem>>, %arg7: memref<1x64xf32, #tpu.memory_space<vmem>>, %arg8: memref<64x128xf32, #tpu.memory_space<vmem>>, %arg9: memref<1x128xf32, #tpu.memory_space<vmem>>, %arg10: memref<128x64xf32, #tpu.memory_space<vmem>>, %arg11: memref<1x64xf32, #tpu.memory_space<vmem>>, %arg12: memref<1x64xf32, #tpu.memory_space<vmem>>, %arg13: memref<1x64xf32, #tpu.memory_space<vmem>>, %arg14: memref<16x64xf32, #tpu.memory_space<vmem>>) attributes {dimension_semantics = [], scalar_prefetch = 0 : i64, scratch_operands = 0 : i64, tpu.core_type = #tpu.core_type<tc>} {
    %c0 = arith.constant 0 : index
    %c0_0 = arith.constant 0 : index
    %0 = vector.load %arg0[%c0, %c0_0] : memref<16x64xf32, #tpu.memory_space<vmem>>, vector<16x64xf32>
    %c0_1 = arith.constant 0 : index
    %c0_2 = arith.constant 0 : index
    %1 = vector.load %arg2[%c0_1, %c0_2] : memref<64x192xf32, #tpu.memory_space<vmem>>, vector<64x192xf32>
    %cst = arith.constant dense<0.000000e+00> : vector<16x192xf32>
    %2 = tpu.matmul %0, %1, %cst {dimension_numbers = #tpu.dot_dimension_numbers<[1], [0], [0], [1], [0, 0, 1, 1], [], []>} : vector<16x64xf32>, vector<64x192xf32>, vector<16x192xf32> -> vector<16x192xf32>
    %c0_3 = arith.constant 0 : index
    %c0_4 = arith.constant 0 : index
    %3 = vector.load %arg3[%c0_3, %c0_4] : memref<1x192xf32, #tpu.memory_space<vmem>>, vector<1x192xf32>
    %4 = vector.broadcast %3 : vector<1x192xf32> to vector<16x192xf32>
    %5 = arith.addf %2, %4 : vector<16x192xf32>
    %6 = vector.extract_strided_slice %5 {offsets = [0, 0], sizes = [8, 64], strides = [1, 1]} : vector<16x192xf32> to vector<8x64xf32>
    %7 = vector.extract_strided_slice %5 {offsets = [0, 64], sizes = [8, 64], strides = [1, 1]} : vector<16x192xf32> to vector<8x64xf32>
    %8 = vector.extract_strided_slice %5 {offsets = [0, 128], sizes = [8, 64], strides = [1, 1]} : vector<16x192xf32> to vector<8x64xf32>
    %c0_5 = arith.constant 0 : index
    %c0_6 = arith.constant 0 : index
    %9 = vector.load %arg1[%c0_5, %c0_6] : memref<2x8xf32, #tpu.memory_space<vmem>>, vector<1x8xf32>
    %10 = vector.extract_strided_slice %6 {offsets = [0, 0], sizes = [8, 16], strides = [1, 1]} : vector<8x64xf32> to vector<8x16xf32>
    %11 = vector.extract_strided_slice %7 {offsets = [0, 0], sizes = [8, 16], strides = [1, 1]} : vector<8x64xf32> to vector<8x16xf32>
    %12 = vector.extract_strided_slice %8 {offsets = [0, 0], sizes = [8, 16], strides = [1, 1]} : vector<8x64xf32> to vector<8x16xf32>
    %cst_7 = arith.constant dense<0.000000e+00> : vector<8x8xf32>
    %13 = tpu.matmul %10, %11, %cst_7 {dimension_numbers = #tpu.dot_dimension_numbers<[1], [1], [0], [0], [0, 0, 1, 0], [], []>} : vector<8x16xf32>, vector<8x16xf32>, vector<8x8xf32> -> vector<8x8xf32>
    %cst_8 = arith.constant 2.500000e-01 : f32
    %14 = vector.broadcast %cst_8 : f32 to vector<8x8xf32>
    %15 = arith.mulf %13, %14 : vector<8x8xf32>
    %16 = vector.broadcast %9 : vector<1x8xf32> to vector<8x8xf32>
    %17 = arith.addf %15, %16 : vector<8x8xf32>
    %cst_9 = arith.constant dense<0xFF800000> : vector<8xf32>
    %18 = vector.multi_reduction <maximumf>, %17, %cst_9 [1] : vector<8x8xf32> to vector<8xf32>
    %19 = vector.shape_cast %18 : vector<8xf32> to vector<8x1xf32>
    %20 = vector.broadcast %19 : vector<8x1xf32> to vector<8x8xf32>
    %21 = arith.subf %17, %20 : vector<8x8xf32>
    %22 = math.exp %21 : vector<8x8xf32>
    %cst_10 = arith.constant dense<0.000000e+00> : vector<8xf32>
    %23 = vector.multi_reduction <add>, %22, %cst_10 [1] : vector<8x8xf32> to vector<8xf32>
    %24 = vector.shape_cast %23 : vector<8xf32> to vector<8x1xf32>
    %25 = tpu.reciprocal %24 {approx = true} : vector<8x1xf32> -> vector<8x1xf32>
    %26 = vector.broadcast %25 : vector<8x1xf32> to vector<8x8xf32>
    %27 = arith.mulf %22, %26 : vector<8x8xf32>
    %cst_11 = arith.constant dense<0.000000e+00> : vector<8x16xf32>
    %28 = tpu.matmul %27, %12, %cst_11 {dimension_numbers = #tpu.dot_dimension_numbers<[1], [0], [0], [1], [0, 0, 1, 1], [], []>} : vector<8x8xf32>, vector<8x16xf32>, vector<8x16xf32> -> vector<8x16xf32>
    %29 = vector.extract_strided_slice %6 {offsets = [0, 16], sizes = [8, 16], strides = [1, 1]} : vector<8x64xf32> to vector<8x16xf32>
    %30 = vector.extract_strided_slice %7 {offsets = [0, 16], sizes = [8, 16], strides = [1, 1]} : vector<8x64xf32> to vector<8x16xf32>
    %31 = vector.extract_strided_slice %8 {offsets = [0, 16], sizes = [8, 16], strides = [1, 1]} : vector<8x64xf32> to vector<8x16xf32>
    %cst_12 = arith.constant dense<0.000000e+00> : vector<8x8xf32>
    %32 = tpu.matmul %29, %30, %cst_12 {dimension_numbers = #tpu.dot_dimension_numbers<[1], [1], [0], [0], [0, 0, 1, 0], [], []>} : vector<8x16xf32>, vector<8x16xf32>, vector<8x8xf32> -> vector<8x8xf32>
    %cst_13 = arith.constant 2.500000e-01 : f32
    %33 = vector.broadcast %cst_13 : f32 to vector<8x8xf32>
    %34 = arith.mulf %32, %33 : vector<8x8xf32>
    %35 = vector.broadcast %9 : vector<1x8xf32> to vector<8x8xf32>
    %36 = arith.addf %34, %35 : vector<8x8xf32>
    %cst_14 = arith.constant dense<0xFF800000> : vector<8xf32>
    %37 = vector.multi_reduction <maximumf>, %36, %cst_14 [1] : vector<8x8xf32> to vector<8xf32>
    %38 = vector.shape_cast %37 : vector<8xf32> to vector<8x1xf32>
    %39 = vector.broadcast %38 : vector<8x1xf32> to vector<8x8xf32>
    %40 = arith.subf %36, %39 : vector<8x8xf32>
    %41 = math.exp %40 : vector<8x8xf32>
    %cst_15 = arith.constant dense<0.000000e+00> : vector<8xf32>
    %42 = vector.multi_reduction <add>, %41, %cst_15 [1] : vector<8x8xf32> to vector<8xf32>
    %43 = vector.shape_cast %42 : vector<8xf32> to vector<8x1xf32>
    %44 = tpu.reciprocal %43 {approx = true} : vector<8x1xf32> -> vector<8x1xf32>
    %45 = vector.broadcast %44 : vector<8x1xf32> to vector<8x8xf32>
    %46 = arith.mulf %41, %45 : vector<8x8xf32>
    %cst_16 = arith.constant dense<0.000000e+00> : vector<8x16xf32>
    %47 = tpu.matmul %46, %31, %cst_16 {dimension_numbers = #tpu.dot_dimension_numbers<[1], [0], [0], [1], [0, 0, 1, 1], [], []>} : vector<8x8xf32>, vector<8x16xf32>, vector<8x16xf32> -> vector<8x16xf32>
    %48 = vector.extract_strided_slice %6 {offsets = [0, 32], sizes = [8, 16], strides = [1, 1]} : vector<8x64xf32> to vector<8x16xf32>
    %49 = vector.extract_strided_slice %7 {offsets = [0, 32], sizes = [8, 16], strides = [1, 1]} : vector<8x64xf32> to vector<8x16xf32>
    %50 = vector.extract_strided_slice %8 {offsets = [0, 32], sizes = [8, 16], strides = [1, 1]} : vector<8x64xf32> to vector<8x16xf32>
    %cst_17 = arith.constant dense<0.000000e+00> : vector<8x8xf32>
    %51 = tpu.matmul %48, %49, %cst_17 {dimension_numbers = #tpu.dot_dimension_numbers<[1], [1], [0], [0], [0, 0, 1, 0], [], []>} : vector<8x16xf32>, vector<8x16xf32>, vector<8x8xf32> -> vector<8x8xf32>
    %cst_18 = arith.constant 2.500000e-01 : f32
    %52 = vector.broadcast %cst_18 : f32 to vector<8x8xf32>
    %53 = arith.mulf %51, %52 : vector<8x8xf32>
    %54 = vector.broadcast %9 : vector<1x8xf32> to vector<8x8xf32>
    %55 = arith.addf %53, %54 : vector<8x8xf32>
    %cst_19 = arith.constant dense<0xFF800000> : vector<8xf32>
    %56 = vector.multi_reduction <maximumf>, %55, %cst_19 [1] : vector<8x8xf32> to vector<8xf32>
    %57 = vector.shape_cast %56 : vector<8xf32> to vector<8x1xf32>
    %58 = vector.broadcast %57 : vector<8x1xf32> to vector<8x8xf32>
    %59 = arith.subf %55, %58 : vector<8x8xf32>
    %60 = math.exp %59 : vector<8x8xf32>
    %cst_20 = arith.constant dense<0.000000e+00> : vector<8xf32>
    %61 = vector.multi_reduction <add>, %60, %cst_20 [1] : vector<8x8xf32> to vector<8xf32>
    %62 = vector.shape_cast %61 : vector<8xf32> to vector<8x1xf32>
    %63 = tpu.reciprocal %62 {approx = true} : vector<8x1xf32> -> vector<8x1xf32>
    %64 = vector.broadcast %63 : vector<8x1xf32> to vector<8x8xf32>
    %65 = arith.mulf %60, %64 : vector<8x8xf32>
    %cst_21 = arith.constant dense<0.000000e+00> : vector<8x16xf32>
    %66 = tpu.matmul %65, %50, %cst_21 {dimension_numbers = #tpu.dot_dimension_numbers<[1], [0], [0], [1], [0, 0, 1, 1], [], []>} : vector<8x8xf32>, vector<8x16xf32>, vector<8x16xf32> -> vector<8x16xf32>
    %67 = vector.extract_strided_slice %6 {offsets = [0, 48], sizes = [8, 16], strides = [1, 1]} : vector<8x64xf32> to vector<8x16xf32>
    %68 = vector.extract_strided_slice %7 {offsets = [0, 48], sizes = [8, 16], strides = [1, 1]} : vector<8x64xf32> to vector<8x16xf32>
    %69 = vector.extract_strided_slice %8 {offsets = [0, 48], sizes = [8, 16], strides = [1, 1]} : vector<8x64xf32> to vector<8x16xf32>
    %cst_22 = arith.constant dense<0.000000e+00> : vector<8x8xf32>
    %70 = tpu.matmul %67, %68, %cst_22 {dimension_numbers = #tpu.dot_dimension_numbers<[1], [1], [0], [0], [0, 0, 1, 0], [], []>} : vector<8x16xf32>, vector<8x16xf32>, vector<8x8xf32> -> vector<8x8xf32>
    %cst_23 = arith.constant 2.500000e-01 : f32
    %71 = vector.broadcast %cst_23 : f32 to vector<8x8xf32>
    %72 = arith.mulf %70, %71 : vector<8x8xf32>
    %73 = vector.broadcast %9 : vector<1x8xf32> to vector<8x8xf32>
    %74 = arith.addf %72, %73 : vector<8x8xf32>
    %cst_24 = arith.constant dense<0xFF800000> : vector<8xf32>
    %75 = vector.multi_reduction <maximumf>, %74, %cst_24 [1] : vector<8x8xf32> to vector<8xf32>
    %76 = vector.shape_cast %75 : vector<8xf32> to vector<8x1xf32>
    %77 = vector.broadcast %76 : vector<8x1xf32> to vector<8x8xf32>
    %78 = arith.subf %74, %77 : vector<8x8xf32>
    %79 = math.exp %78 : vector<8x8xf32>
    %cst_25 = arith.constant dense<0.000000e+00> : vector<8xf32>
    %80 = vector.multi_reduction <add>, %79, %cst_25 [1] : vector<8x8xf32> to vector<8xf32>
    %81 = vector.shape_cast %80 : vector<8xf32> to vector<8x1xf32>
    %82 = tpu.reciprocal %81 {approx = true} : vector<8x1xf32> -> vector<8x1xf32>
    %83 = vector.broadcast %82 : vector<8x1xf32> to vector<8x8xf32>
    %84 = arith.mulf %79, %83 : vector<8x8xf32>
    %cst_26 = arith.constant dense<0.000000e+00> : vector<8x16xf32>
    %85 = tpu.matmul %84, %69, %cst_26 {dimension_numbers = #tpu.dot_dimension_numbers<[1], [0], [0], [1], [0, 0, 1, 1], [], []>} : vector<8x8xf32>, vector<8x16xf32>, vector<8x16xf32> -> vector<8x16xf32>
    %86 = tpu.concatenate %28, %47, %66, %85 in 1 : vector<8x16xf32>, vector<8x16xf32>, vector<8x16xf32>, vector<8x16xf32> -> vector<8x64xf32>
    %87 = vector.extract_strided_slice %5 {offsets = [8, 0], sizes = [8, 64], strides = [1, 1]} : vector<16x192xf32> to vector<8x64xf32>
    %88 = vector.extract_strided_slice %5 {offsets = [8, 64], sizes = [8, 64], strides = [1, 1]} : vector<16x192xf32> to vector<8x64xf32>
    %89 = vector.extract_strided_slice %5 {offsets = [8, 128], sizes = [8, 64], strides = [1, 1]} : vector<16x192xf32> to vector<8x64xf32>
    %c1 = arith.constant 1 : index
    %c0_27 = arith.constant 0 : index
    %90 = vector.load %arg1[%c1, %c0_27] : memref<2x8xf32, #tpu.memory_space<vmem>>, vector<1x8xf32>
    %91 = vector.extract_strided_slice %87 {offsets = [0, 0], sizes = [8, 16], strides = [1, 1]} : vector<8x64xf32> to vector<8x16xf32>
    %92 = vector.extract_strided_slice %88 {offsets = [0, 0], sizes = [8, 16], strides = [1, 1]} : vector<8x64xf32> to vector<8x16xf32>
    %93 = vector.extract_strided_slice %89 {offsets = [0, 0], sizes = [8, 16], strides = [1, 1]} : vector<8x64xf32> to vector<8x16xf32>
    %cst_28 = arith.constant dense<0.000000e+00> : vector<8x8xf32>
    %94 = tpu.matmul %91, %92, %cst_28 {dimension_numbers = #tpu.dot_dimension_numbers<[1], [1], [0], [0], [0, 0, 1, 0], [], []>} : vector<8x16xf32>, vector<8x16xf32>, vector<8x8xf32> -> vector<8x8xf32>
    %cst_29 = arith.constant 2.500000e-01 : f32
    %95 = vector.broadcast %cst_29 : f32 to vector<8x8xf32>
    %96 = arith.mulf %94, %95 : vector<8x8xf32>
    %97 = vector.broadcast %90 : vector<1x8xf32> to vector<8x8xf32>
    %98 = arith.addf %96, %97 : vector<8x8xf32>
    %cst_30 = arith.constant dense<0xFF800000> : vector<8xf32>
    %99 = vector.multi_reduction <maximumf>, %98, %cst_30 [1] : vector<8x8xf32> to vector<8xf32>
    %100 = vector.shape_cast %99 : vector<8xf32> to vector<8x1xf32>
    %101 = vector.broadcast %100 : vector<8x1xf32> to vector<8x8xf32>
    %102 = arith.subf %98, %101 : vector<8x8xf32>
    %103 = math.exp %102 : vector<8x8xf32>
    %cst_31 = arith.constant dense<0.000000e+00> : vector<8xf32>
    %104 = vector.multi_reduction <add>, %103, %cst_31 [1] : vector<8x8xf32> to vector<8xf32>
    %105 = vector.shape_cast %104 : vector<8xf32> to vector<8x1xf32>
    %106 = tpu.reciprocal %105 {approx = true} : vector<8x1xf32> -> vector<8x1xf32>
    %107 = vector.broadcast %106 : vector<8x1xf32> to vector<8x8xf32>
    %108 = arith.mulf %103, %107 : vector<8x8xf32>
    %cst_32 = arith.constant dense<0.000000e+00> : vector<8x16xf32>
    %109 = tpu.matmul %108, %93, %cst_32 {dimension_numbers = #tpu.dot_dimension_numbers<[1], [0], [0], [1], [0, 0, 1, 1], [], []>} : vector<8x8xf32>, vector<8x16xf32>, vector<8x16xf32> -> vector<8x16xf32>
    %110 = vector.extract_strided_slice %87 {offsets = [0, 16], sizes = [8, 16], strides = [1, 1]} : vector<8x64xf32> to vector<8x16xf32>
    %111 = vector.extract_strided_slice %88 {offsets = [0, 16], sizes = [8, 16], strides = [1, 1]} : vector<8x64xf32> to vector<8x16xf32>
    %112 = vector.extract_strided_slice %89 {offsets = [0, 16], sizes = [8, 16], strides = [1, 1]} : vector<8x64xf32> to vector<8x16xf32>
    %cst_33 = arith.constant dense<0.000000e+00> : vector<8x8xf32>
    %113 = tpu.matmul %110, %111, %cst_33 {dimension_numbers = #tpu.dot_dimension_numbers<[1], [1], [0], [0], [0, 0, 1, 0], [], []>} : vector<8x16xf32>, vector<8x16xf32>, vector<8x8xf32> -> vector<8x8xf32>
    %cst_34 = arith.constant 2.500000e-01 : f32
    %114 = vector.broadcast %cst_34 : f32 to vector<8x8xf32>
    %115 = arith.mulf %113, %114 : vector<8x8xf32>
    %116 = vector.broadcast %90 : vector<1x8xf32> to vector<8x8xf32>
    %117 = arith.addf %115, %116 : vector<8x8xf32>
    %cst_35 = arith.constant dense<0xFF800000> : vector<8xf32>
    %118 = vector.multi_reduction <maximumf>, %117, %cst_35 [1] : vector<8x8xf32> to vector<8xf32>
    %119 = vector.shape_cast %118 : vector<8xf32> to vector<8x1xf32>
    %120 = vector.broadcast %119 : vector<8x1xf32> to vector<8x8xf32>
    %121 = arith.subf %117, %120 : vector<8x8xf32>
    %122 = math.exp %121 : vector<8x8xf32>
    %cst_36 = arith.constant dense<0.000000e+00> : vector<8xf32>
    %123 = vector.multi_reduction <add>, %122, %cst_36 [1] : vector<8x8xf32> to vector<8xf32>
    %124 = vector.shape_cast %123 : vector<8xf32> to vector<8x1xf32>
    %125 = tpu.reciprocal %124 {approx = true} : vector<8x1xf32> -> vector<8x1xf32>
    %126 = vector.broadcast %125 : vector<8x1xf32> to vector<8x8xf32>
    %127 = arith.mulf %122, %126 : vector<8x8xf32>
    %cst_37 = arith.constant dense<0.000000e+00> : vector<8x16xf32>
    %128 = tpu.matmul %127, %112, %cst_37 {dimension_numbers = #tpu.dot_dimension_numbers<[1], [0], [0], [1], [0, 0, 1, 1], [], []>} : vector<8x8xf32>, vector<8x16xf32>, vector<8x16xf32> -> vector<8x16xf32>
    %129 = vector.extract_strided_slice %87 {offsets = [0, 32], sizes = [8, 16], strides = [1, 1]} : vector<8x64xf32> to vector<8x16xf32>
    %130 = vector.extract_strided_slice %88 {offsets = [0, 32], sizes = [8, 16], strides = [1, 1]} : vector<8x64xf32> to vector<8x16xf32>
    %131 = vector.extract_strided_slice %89 {offsets = [0, 32], sizes = [8, 16], strides = [1, 1]} : vector<8x64xf32> to vector<8x16xf32>
    %cst_38 = arith.constant dense<0.000000e+00> : vector<8x8xf32>
    %132 = tpu.matmul %129, %130, %cst_38 {dimension_numbers = #tpu.dot_dimension_numbers<[1], [1], [0], [0], [0, 0, 1, 0], [], []>} : vector<8x16xf32>, vector<8x16xf32>, vector<8x8xf32> -> vector<8x8xf32>
    %cst_39 = arith.constant 2.500000e-01 : f32
    %133 = vector.broadcast %cst_39 : f32 to vector<8x8xf32>
    %134 = arith.mulf %132, %133 : vector<8x8xf32>
    %135 = vector.broadcast %90 : vector<1x8xf32> to vector<8x8xf32>
    %136 = arith.addf %134, %135 : vector<8x8xf32>
    %cst_40 = arith.constant dense<0xFF800000> : vector<8xf32>
    %137 = vector.multi_reduction <maximumf>, %136, %cst_40 [1] : vector<8x8xf32> to vector<8xf32>
    %138 = vector.shape_cast %137 : vector<8xf32> to vector<8x1xf32>
    %139 = vector.broadcast %138 : vector<8x1xf32> to vector<8x8xf32>
    %140 = arith.subf %136, %139 : vector<8x8xf32>
    %141 = math.exp %140 : vector<8x8xf32>
    %cst_41 = arith.constant dense<0.000000e+00> : vector<8xf32>
    %142 = vector.multi_reduction <add>, %141, %cst_41 [1] : vector<8x8xf32> to vector<8xf32>
    %143 = vector.shape_cast %142 : vector<8xf32> to vector<8x1xf32>
    %144 = tpu.reciprocal %143 {approx = true} : vector<8x1xf32> -> vector<8x1xf32>
    %145 = vector.broadcast %144 : vector<8x1xf32> to vector<8x8xf32>
    %146 = arith.mulf %141, %145 : vector<8x8xf32>
    %cst_42 = arith.constant dense<0.000000e+00> : vector<8x16xf32>
    %147 = tpu.matmul %146, %131, %cst_42 {dimension_numbers = #tpu.dot_dimension_numbers<[1], [0], [0], [1], [0, 0, 1, 1], [], []>} : vector<8x8xf32>, vector<8x16xf32>, vector<8x16xf32> -> vector<8x16xf32>
    %148 = vector.extract_strided_slice %87 {offsets = [0, 48], sizes = [8, 16], strides = [1, 1]} : vector<8x64xf32> to vector<8x16xf32>
    %149 = vector.extract_strided_slice %88 {offsets = [0, 48], sizes = [8, 16], strides = [1, 1]} : vector<8x64xf32> to vector<8x16xf32>
    %150 = vector.extract_strided_slice %89 {offsets = [0, 48], sizes = [8, 16], strides = [1, 1]} : vector<8x64xf32> to vector<8x16xf32>
    %cst_43 = arith.constant dense<0.000000e+00> : vector<8x8xf32>
    %151 = tpu.matmul %148, %149, %cst_43 {dimension_numbers = #tpu.dot_dimension_numbers<[1], [1], [0], [0], [0, 0, 1, 0], [], []>} : vector<8x16xf32>, vector<8x16xf32>, vector<8x8xf32> -> vector<8x8xf32>
    %cst_44 = arith.constant 2.500000e-01 : f32
    %152 = vector.broadcast %cst_44 : f32 to vector<8x8xf32>
    %153 = arith.mulf %151, %152 : vector<8x8xf32>
    %154 = vector.broadcast %90 : vector<1x8xf32> to vector<8x8xf32>
    %155 = arith.addf %153, %154 : vector<8x8xf32>
    %cst_45 = arith.constant dense<0xFF800000> : vector<8xf32>
    %156 = vector.multi_reduction <maximumf>, %155, %cst_45 [1] : vector<8x8xf32> to vector<8xf32>
    %157 = vector.shape_cast %156 : vector<8xf32> to vector<8x1xf32>
    %158 = vector.broadcast %157 : vector<8x1xf32> to vector<8x8xf32>
    %159 = arith.subf %155, %158 : vector<8x8xf32>
    %160 = math.exp %159 : vector<8x8xf32>
    %cst_46 = arith.constant dense<0.000000e+00> : vector<8xf32>
    %161 = vector.multi_reduction <add>, %160, %cst_46 [1] : vector<8x8xf32> to vector<8xf32>
    %162 = vector.shape_cast %161 : vector<8xf32> to vector<8x1xf32>
    %163 = tpu.reciprocal %162 {approx = true} : vector<8x1xf32> -> vector<8x1xf32>
    %164 = vector.broadcast %163 : vector<8x1xf32> to vector<8x8xf32>
    %165 = arith.mulf %160, %164 : vector<8x8xf32>
    %cst_47 = arith.constant dense<0.000000e+00> : vector<8x16xf32>
    %166 = tpu.matmul %165, %150, %cst_47 {dimension_numbers = #tpu.dot_dimension_numbers<[1], [0], [0], [1], [0, 0, 1, 1], [], []>} : vector<8x8xf32>, vector<8x16xf32>, vector<8x16xf32> -> vector<8x16xf32>
    %167 = tpu.concatenate %109, %128, %147, %166 in 1 : vector<8x16xf32>, vector<8x16xf32>, vector<8x16xf32>, vector<8x16xf32> -> vector<8x64xf32>
    %168 = tpu.concatenate %86, %167 in 0 : vector<8x64xf32>, vector<8x64xf32> -> vector<16x64xf32>
    %c0_48 = arith.constant 0 : index
    %c0_49 = arith.constant 0 : index
    %169 = vector.load %arg4[%c0_48, %c0_49] : memref<64x64xf32, #tpu.memory_space<vmem>>, vector<64x64xf32>
    %cst_50 = arith.constant dense<0.000000e+00> : vector<16x64xf32>
    %170 = tpu.matmul %168, %169, %cst_50 {dimension_numbers = #tpu.dot_dimension_numbers<[1], [0], [0], [1], [0, 0, 1, 1], [], []>} : vector<16x64xf32>, vector<64x64xf32>, vector<16x64xf32> -> vector<16x64xf32>
    %c0_51 = arith.constant 0 : index
    %c0_52 = arith.constant 0 : index
    %171 = vector.load %arg5[%c0_51, %c0_52] : memref<1x64xf32, #tpu.memory_space<vmem>>, vector<1x64xf32>
    %172 = vector.broadcast %171 : vector<1x64xf32> to vector<16x64xf32>
    %173 = arith.addf %170, %172 : vector<16x64xf32>
    %174 = arith.addf %0, %173 : vector<16x64xf32>
    %c0_53 = arith.constant 0 : index
    %c0_54 = arith.constant 0 : index
    %175 = vector.load %arg6[%c0_53, %c0_54] : memref<1x64xf32, #tpu.memory_space<vmem>>, vector<1x64xf32>
    %c0_55 = arith.constant 0 : index
    %c0_56 = arith.constant 0 : index
    %176 = vector.load %arg7[%c0_55, %c0_56] : memref<1x64xf32, #tpu.memory_space<vmem>>, vector<1x64xf32>
    %cst_57 = arith.constant dense<0.000000e+00> : vector<16xf32>
    %177 = vector.multi_reduction <add>, %174, %cst_57 [1] : vector<16x64xf32> to vector<16xf32>
    %178 = vector.shape_cast %177 : vector<16xf32> to vector<16x1xf32>
    %cst_58 = arith.constant 6.400000e+01 : f32
    %179 = vector.broadcast %cst_58 : f32 to vector<16x1xf32>
    %180 = arith.divf %178, %179 : vector<16x1xf32>
    %181 = vector.broadcast %180 : vector<16x1xf32> to vector<16x64xf32>
    %182 = arith.subf %174, %181 : vector<16x64xf32>
    %183 = arith.mulf %182, %182 : vector<16x64xf32>
    %cst_59 = arith.constant dense<0.000000e+00> : vector<16xf32>
    %184 = vector.multi_reduction <add>, %183, %cst_59 [1] : vector<16x64xf32> to vector<16xf32>
    %185 = vector.shape_cast %184 : vector<16xf32> to vector<16x1xf32>
    %cst_60 = arith.constant 6.400000e+01 : f32
    %186 = vector.broadcast %cst_60 : f32 to vector<16x1xf32>
    %187 = arith.divf %185, %186 : vector<16x1xf32>
    %cst_61 = arith.constant 9.99999996E-13 : f32
    %188 = vector.broadcast %cst_61 : f32 to vector<16x1xf32>
    %189 = arith.addf %187, %188 : vector<16x1xf32>
    %190 = math.rsqrt %189 : vector<16x1xf32>
    %191 = vector.broadcast %190 : vector<16x1xf32> to vector<16x64xf32>
    %192 = arith.mulf %182, %191 : vector<16x64xf32>
    %193 = vector.broadcast %175 : vector<1x64xf32> to vector<16x64xf32>
    %194 = arith.mulf %192, %193 : vector<16x64xf32>
    %195 = vector.broadcast %176 : vector<1x64xf32> to vector<16x64xf32>
    %196 = arith.addf %194, %195 : vector<16x64xf32>
    %c0_62 = arith.constant 0 : index
    %c0_63 = arith.constant 0 : index
    %197 = vector.load %arg8[%c0_62, %c0_63] : memref<64x128xf32, #tpu.memory_space<vmem>>, vector<64x128xf32>
    %cst_64 = arith.constant dense<0.000000e+00> : vector<16x128xf32>
    %198 = tpu.matmul %196, %197, %cst_64 {dimension_numbers = #tpu.dot_dimension_numbers<[1], [0], [0], [1], [0, 0, 1, 1], [], []>} : vector<16x64xf32>, vector<64x128xf32>, vector<16x128xf32> -> vector<16x128xf32>
    %c0_65 = arith.constant 0 : index
    %c0_66 = arith.constant 0 : index
    %199 = vector.load %arg9[%c0_65, %c0_66] : memref<1x128xf32, #tpu.memory_space<vmem>>, vector<1x128xf32>
    %200 = vector.broadcast %199 : vector<1x128xf32> to vector<16x128xf32>
    %201 = arith.addf %198, %200 : vector<16x128xf32>
    %cst_67 = arith.constant 5.000000e-01 : f32
    %202 = vector.broadcast %cst_67 : f32 to vector<16x128xf32>
    %203 = arith.mulf %202, %201 : vector<16x128xf32>
    %cst_68 = arith.constant 4.471500e-02 : f32
    %204 = vector.broadcast %cst_68 : f32 to vector<16x128xf32>
    %205 = arith.mulf %204, %201 : vector<16x128xf32>
    %206 = arith.mulf %205, %201 : vector<16x128xf32>
    %207 = arith.mulf %206, %201 : vector<16x128xf32>
    %208 = arith.addf %201, %207 : vector<16x128xf32>
    %cst_69 = arith.constant 0.797884583 : f32
    %209 = vector.broadcast %cst_69 : f32 to vector<16x128xf32>
    %210 = arith.mulf %209, %208 : vector<16x128xf32>
    %211 = math.tanh %210 : vector<16x128xf32>
    %cst_70 = arith.constant 1.000000e+00 : f32
    %212 = vector.broadcast %cst_70 : f32 to vector<16x128xf32>
    %213 = arith.addf %212, %211 : vector<16x128xf32>
    %214 = arith.mulf %203, %213 : vector<16x128xf32>
    %c0_71 = arith.constant 0 : index
    %c0_72 = arith.constant 0 : index
    %215 = vector.load %arg10[%c0_71, %c0_72] : memref<128x64xf32, #tpu.memory_space<vmem>>, vector<128x64xf32>
    %cst_73 = arith.constant dense<0.000000e+00> : vector<16x64xf32>
    %216 = tpu.matmul %214, %215, %cst_73 {dimension_numbers = #tpu.dot_dimension_numbers<[1], [0], [0], [1], [0, 0, 1, 1], [], []>} : vector<16x128xf32>, vector<128x64xf32>, vector<16x64xf32> -> vector<16x64xf32>
    %c0_74 = arith.constant 0 : index
    %c0_75 = arith.constant 0 : index
    %217 = vector.load %arg11[%c0_74, %c0_75] : memref<1x64xf32, #tpu.memory_space<vmem>>, vector<1x64xf32>
    %218 = vector.broadcast %217 : vector<1x64xf32> to vector<16x64xf32>
    %219 = arith.addf %216, %218 : vector<16x64xf32>
    %220 = arith.addf %196, %219 : vector<16x64xf32>
    %c0_76 = arith.constant 0 : index
    %c0_77 = arith.constant 0 : index
    %221 = vector.load %arg12[%c0_76, %c0_77] : memref<1x64xf32, #tpu.memory_space<vmem>>, vector<1x64xf32>
    %c0_78 = arith.constant 0 : index
    %c0_79 = arith.constant 0 : index
    %222 = vector.load %arg13[%c0_78, %c0_79] : memref<1x64xf32, #tpu.memory_space<vmem>>, vector<1x64xf32>
    %cst_80 = arith.constant dense<0.000000e+00> : vector<16xf32>
    %223 = vector.multi_reduction <add>, %220, %cst_80 [1] : vector<16x64xf32> to vector<16xf32>
    %224 = vector.shape_cast %223 : vector<16xf32> to vector<16x1xf32>
    %cst_81 = arith.constant 6.400000e+01 : f32
    %225 = vector.broadcast %cst_81 : f32 to vector<16x1xf32>
    %226 = arith.divf %224, %225 : vector<16x1xf32>
    %227 = vector.broadcast %226 : vector<16x1xf32> to vector<16x64xf32>
    %228 = arith.subf %220, %227 : vector<16x64xf32>
    %229 = arith.mulf %228, %228 : vector<16x64xf32>
    %cst_82 = arith.constant dense<0.000000e+00> : vector<16xf32>
    %230 = vector.multi_reduction <add>, %229, %cst_82 [1] : vector<16x64xf32> to vector<16xf32>
    %231 = vector.shape_cast %230 : vector<16xf32> to vector<16x1xf32>
    %cst_83 = arith.constant 6.400000e+01 : f32
    %232 = vector.broadcast %cst_83 : f32 to vector<16x1xf32>
    %233 = arith.divf %231, %232 : vector<16x1xf32>
    %cst_84 = arith.constant 9.99999996E-13 : f32
    %234 = vector.broadcast %cst_84 : f32 to vector<16x1xf32>
    %235 = arith.addf %233, %234 : vector<16x1xf32>
    %236 = math.rsqrt %235 : vector<16x1xf32>
    %237 = vector.broadcast %236 : vector<16x1xf32> to vector<16x64xf32>
    %238 = arith.mulf %228, %237 : vector<16x64xf32>
    %239 = vector.broadcast %221 : vector<1x64xf32> to vector<16x64xf32>
    %240 = arith.mulf %238, %239 : vector<16x64xf32>
    %241 = vector.broadcast %222 : vector<1x64xf32> to vector<16x64xf32>
    %242 = arith.addf %240, %241 : vector<16x64xf32>
    %c0_85 = arith.constant 0 : index
    %c0_86 = arith.constant 0 : index
    %243 = vector.load %arg14[%c0_85, %c0_86] : memref<16x64xf32, #tpu.memory_space<vmem>>, vector<16x64xf32>
    tpu.vector_store %arg14[%c0_85, %c0_86], %242 {strides = array<i32>} : memref<16x64xf32, #tpu.memory_space<vmem>>, vector<16x64xf32>,
    return
  }
}

module attributes {stable_mosaic.version = 11 : i64} {
  func.func @_cls_kernel(%arg0: memref<2x192xf32, #tpu.memory_space<vmem>>, %arg1: memref<192x64xf32, #tpu.memory_space<vmem>>, %arg2: memref<1x64xf32, #tpu.memory_space<vmem>>, %arg3: memref<64x2xf32, #tpu.memory_space<vmem>>, %arg4: memref<1x2xf32, #tpu.memory_space<vmem>>, %arg5: memref<2x2xf32, #tpu.memory_space<vmem>>) attributes {dimension_semantics = [], scalar_prefetch = 0 : i64, scratch_operands = 0 : i64, tpu.core_type = #tpu.core_type<tc>} {
    %c0 = arith.constant 0 : index
    %c0_0 = arith.constant 0 : index
    %0 = vector.load %arg0[%c0, %c0_0] : memref<2x192xf32, #tpu.memory_space<vmem>>, vector<2x192xf32>
    %c0_1 = arith.constant 0 : index
    %c0_2 = arith.constant 0 : index
    %1 = vector.load %arg1[%c0_1, %c0_2] : memref<192x64xf32, #tpu.memory_space<vmem>>, vector<192x64xf32>
    %cst = arith.constant dense<0.000000e+00> : vector<2x64xf32>
    %2 = tpu.matmul %0, %1, %cst {dimension_numbers = #tpu.dot_dimension_numbers<[1], [0], [0], [1], [0, 0, 1, 1], [], []>} : vector<2x192xf32>, vector<192x64xf32>, vector<2x64xf32> -> vector<2x64xf32>
    %c0_3 = arith.constant 0 : index
    %c0_4 = arith.constant 0 : index
    %3 = vector.load %arg2[%c0_3, %c0_4] : memref<1x64xf32, #tpu.memory_space<vmem>>, vector<1x64xf32>
    %4 = vector.broadcast %3 : vector<1x64xf32> to vector<2x64xf32>
    %5 = arith.addf %2, %4 : vector<2x64xf32>
    %cst_5 = arith.constant 0.000000e+00 : f32
    %6 = vector.broadcast %cst_5 : f32 to vector<2x64xf32>
    %7 = arith.maximumf %5, %6 : vector<2x64xf32>
    %c0_6 = arith.constant 0 : index
    %c0_7 = arith.constant 0 : index
    %8 = vector.load %arg3[%c0_6, %c0_7] : memref<64x2xf32, #tpu.memory_space<vmem>>, vector<64x2xf32>
    %cst_8 = arith.constant dense<0.000000e+00> : vector<2x2xf32>
    %9 = tpu.matmul %7, %8, %cst_8 {dimension_numbers = #tpu.dot_dimension_numbers<[1], [0], [0], [1], [0, 0, 1, 1], [], []>} : vector<2x64xf32>, vector<64x2xf32>, vector<2x2xf32> -> vector<2x2xf32>
    %c0_9 = arith.constant 0 : index
    %c0_10 = arith.constant 0 : index
    %10 = vector.load %arg4[%c0_9, %c0_10] : memref<1x2xf32, #tpu.memory_space<vmem>>, vector<1x2xf32>
    %11 = vector.broadcast %10 : vector<1x2xf32> to vector<2x2xf32>
    %12 = arith.addf %9, %11 : vector<2x2xf32>
    %c0_11 = arith.constant 0 : index
    %c0_12 = arith.constant 0 : index
    %13 = vector.load %arg5[%c0_11, %c0_12] : memref<2x2xf32, #tpu.memory_space<vmem>>, vector<2x2xf32>
    tpu.vector_store %arg5[%c0_11, %c0_12], %12 {strides = array<i32>} : memref<2x2xf32, #tpu.memory_space<vmem>>, vector<2x2xf32>,
    return
  }
}

</mosaic_0001>

<bundles_post_ra>
// kernel: forward.8
= control target key start
LH: loop header
LB: loop body
LE: loop exit
PB: predicated region body
PF: predicated region fallthrough
CT: control target
= control target key end

     0   :  { %vm89_vm0 = vcmask 261120   ;;  %s1661_s1 = inlined_call_operand.vmem [shape: f32[32,128], index: 1, kind: input, shape index: {}]   ;;  %s1662_s0 = inlined_call_operand.vmem [shape: f32[512,32], index: 0, kind: input, shape index: {}]   ;;  %s1663_s2 = inlined_call_operand.vmem [shape: f32[1,128], index: 2, kind: input, shape index: {}]   ;;  %s1664_s3 = inlined_call_operand.vmem [shape: f32[512,128], index: 3, kind: output, shape index: {}]  }
   0x1   :  { %v78_v0 = vld [vmem:[%s1661_s1] sm:$0xff]  ;;  %v79_v1 = vld [vmem:[%s1661_s1 + $0x8] sm:$0xff]  ;;  %v80_v2 = vld [vmem:[%s1661_s1 + $0x10] sm:$0xff] }
   0x2   :  { %v1100_v3 = vpack.c.bf16 %v79_v1, %v78_v0  ;;  %v81_v4 = vld [vmem:[%s1661_s1 + $0x18] sm:$0xff]  ;;  %v14_v5 = vld [vmem:[%s1662_s0] sm:$0xff]  ;;  %v15_v8 = vld [vmem:[%s1662_s0 + $0x8] sm:$0xff] }
   0x3   :  { %v46_v6 = vld [vmem:[%s1662_s0 + $0x100] sm:$0xff]  ;;  %v1104_v7 = vpack.c.bf16 %v81_v4, %v80_v2  ;;  %1004 = vmatprep.mubr.msk.f32.mxu0 %vm89_vm0, %v14_v5  ;;  %v47_v9 = vld [vmem:[%s1662_s0 + $0x108] sm:$0xff]  ;;  %v16_v10 = vld [vmem:[%s1662_s0 + $0x10] sm:$0xff] }
   0x4   :  { %1052 = vmatprep.mubr.msk.f32.mxu1 %vm89_vm0, %v46_v6  ;;  %1101 = vmatprep.subr.bf16.mxu0 %v1100_v3  ;;  %v48_v11 = vld [vmem:[%s1662_s0 + $0x110] sm:$0xff]  ;;  %v17_v12 = vld [vmem:[%s1662_s0 + $0x18] sm:$0xff]  ;;  %v18_v14 = vld [vmem:[%s1662_s0 + $0x20] sm:$0xff] }
   0x5   :  { %1108 = vmatprep.subr.bf16.mxu1 %v1100_v3  ;;  %1103 = vmatpush3.bf16.msra.mxu0 %v1100_v3  ;;  %v49_v13 = vld [vmem:[%s1662_s0 + $0x118] sm:$0xff]  ;;  %v50_v15 = vld [vmem:[%s1662_s0 + $0x120] sm:$0xff]  ;;  %v19_v16 = vld [vmem:[%s1662_s0 + $0x28] sm:$0xff] }
   0x6   :  { %1110 = vmatpush3.bf16.msra.mxu1 %v1100_v3  ;;  %1105 = vmatprep.subr.bf16.mxu0 %v1104_v7  ;;  %v51_v17 = vld [vmem:[%s1662_s0 + $0x128] sm:$0xff]  ;;  %v20_v18 = vld [vmem:[%s1662_s0 + $0x30] sm:$0xff]  ;;  %v21_v20 = vld [vmem:[%s1662_s0 + $0x38] sm:$0xff] }
   0x7   :  { %1109 = vmatprep.subr.bf16.mxu1 %v1104_v7  ;;  %v52_v19 = vld [vmem:[%s1662_s0 + $0x130] sm:$0xff]  ;;  %v53_v21 = vld [vmem:[%s1662_s0 + $0x138] sm:$0xff]  ;;  %v22_v22 = vld [vmem:[%s1662_s0 + $0x40] sm:$0xff] }
   0x8   :  { %v54_v23 = vld [vmem:[%s1662_s0 + $0x140] sm:$0xff]  ;;  %v23_v24 = vld [vmem:[%s1662_s0 + $0x48] sm:$0xff]  ;;  %v24_v26 = vld [vmem:[%s1662_s0 + $0x50] sm:$0xff] }
   0x9   :  { %1107 = vmatpush3.bf16.msra.mxu0 %v1104_v7  ;;  %v55_v25 = vld [vmem:[%s1662_s0 + $0x148] sm:$0xff]  ;;  %v56_v27 = vld [vmem:[%s1662_s0 + $0x150] sm:$0xff]  ;;  %v25_v28 = vld [vmem:[%s1662_s0 + $0x58] sm:$0xff] }
   0xa   :  { %1111 = vmatpush3.bf16.msra.mxu1 %v1104_v7  ;;  %v57_v29 = vld [vmem:[%s1662_s0 + $0x158] sm:$0xff]  ;;  %v26_v30 = vld [vmem:[%s1662_s0 + $0x60] sm:$0xff]  ;;  %v27_v32 = vld [vmem:[%s1662_s0 + $0x68] sm:$0xff] }
   0xb   :  { %v58_v31 = vld [vmem:[%s1662_s0 + $0x160] sm:$0xff]  ;;  %v59_v33 = vld [vmem:[%s1662_s0 + $0x168] sm:$0xff]  ;;  %v28_v34 = vld [vmem:[%s1662_s0 + $0x70] sm:$0xff] }
   0xc   :  { %1005 = vmatmul.mubr.msk.f32.vlgmr.msra.gmra.mrb[0].mxu0 %vm89_vm0, %v15_v8  ;;  %v60_v35 = vld [vmem:[%s1662_s0 + $0x170] sm:$0xff]  ;;  %v29_v36 = vld [vmem:[%s1662_s0 + $0x78] sm:$0xff]  ;;  %v30_v38 = vld [vmem:[%s1662_s0 + $0x80] sm:$0xff] }
   0xd   :  { %1053 = vmatmul.mubr.msk.f32.vlgmr.msra.gmra.mrb[0].mxu1 %vm89_vm0, %v47_v9  ;;  %1007 = vmatprep.mubr.msk.f32.mxu0 %vm89_vm0, %v16_v10  ;;  %v61_v37 = vld [vmem:[%s1662_s0 + $0x178] sm:$0xff]  ;;  %v62_v39 = vld [vmem:[%s1662_s0 + $0x180] sm:$0xff]  ;;  %v31_v40 = vld [vmem:[%s1662_s0 + $0x88] sm:$0xff] }
   0xe   :  { %1055 = vmatprep.mubr.msk.f32.mxu1 %vm89_vm0, %v48_v11  ;;  %v63_v41 = vld [vmem:[%s1662_s0 + $0x188] sm:$0xff]  ;;  %v32_v42 = vld [vmem:[%s1662_s0 + $0x90] sm:$0xff]  ;;  %v33_v44 = vld [vmem:[%s1662_s0 + $0x98] sm:$0xff] }
   0xf   :  { %v64_v43 = vld [vmem:[%s1662_s0 + $0x190] sm:$0xff]  ;;  %v65_v45 = vld [vmem:[%s1662_s0 + $0x198] sm:$0xff]  ;;  %v34_v46 = vld [vmem:[%s1662_s0 + $0xa0] sm:$0xff] }
  0x10   :  { %1008 = vmatmul.mubr.msk.f32.gmra.mrb[2].mxu0 %vm89_vm0, %v17_v12  ;;  %v66_v47 = vld [vmem:[%s1662_s0 + $0x1a0] sm:$0xff]  ;;  %v35_v48 = vld [vmem:[%s1662_s0 + $0xa8] sm:$0xff]  ;;  %v36_v50 = vld [vmem:[%s1662_s0 + $0xb0] sm:$0xff] }
  0x11   :  { %1056 = vmatmul.mubr.msk.f32.gmra.mrb[2].mxu1 %vm89_vm0, %v49_v13  ;;  %1010 = vmatprep.mubr.msk.f32.mxu0 %vm89_vm0, %v18_v14  ;;  %v67_v49 = vld [vmem:[%s1662_s0 + $0x1a8] sm:$0xff]  ;;  %v68_v51 = vld [vmem:[%s1662_s0 + $0x1b0] sm:$0xff]  ;;  %v37_v52 = vld [vmem:[%s1662_s0 + $0xb8] sm:$0xff] }
  0x12   :  { %1058 = vmatprep.mubr.msk.f32.mxu1 %vm89_vm0, %v50_v15  ;;  %v69_v53 = vld [vmem:[%s1662_s0 + $0x1b8] sm:$0xff]  ;;  %v38_v54 = vld [vmem:[%s1662_s0 + $0xc0] sm:$0xff]  ;;  %v39_v56 = vld [vmem:[%s1662_s0 + $0xc8] sm:$0xff] }
  0x13   :  { %v70_v55 = vld [vmem:[%s1662_s0 + $0x1c0] sm:$0xff]  ;;  %v71_v57 = vld [vmem:[%s1662_s0 + $0x1c8] sm:$0xff]  ;;  %v40_v58 = vld [vmem:[%s1662_s0 + $0xd0] sm:$0xff] }
  0x14   :  { %1011 = vmatmul.mubr.msk.f32.gmra.mrb[4].mxu0 %vm89_vm0, %v19_v16  ;;  %v72_v59 = vld [vmem:[%s1662_s0 + $0x1d0] sm:$0xff]  ;;  %v41_v60 = vld [vmem:[%s1662_s0 + $0xd8] sm:$0xff]  ;;  %v42_v62 = vld [vmem:[%s1662_s0 + $0xe0] sm:$0xff] }
  0x15   :  { %1059 = vmatmul.mubr.msk.f32.gmra.mrb[4].mxu1 %vm89_vm0, %v51_v17  ;;  %1013 = vmatprep.mubr.msk.f32.mxu0 %vm89_vm0, %v20_v18  ;;  %v73_v61 = vld [vmem:[%s1662_s0 + $0x1d8] sm:$0xff]  ;;  %v74_v63 = vld [vmem:[%s1662_s0 + $0x1e0] sm:$0xff]  ;;  %v43_v0 = vld [vmem:[%s1662_s0 + $0xe8] sm:$0xff] }
  0x16   :  { %1061 = vmatprep.mubr.msk.f32.mxu1 %vm89_vm0, %v52_v19  ;;  %v75_v1 = vld [vmem:[%s1662_s0 + $0x1e8] sm:$0xff]  ;;  %v44_v2 = vld [vmem:[%s1662_s0 + $0xf0] sm:$0xff]  ;;  %v45_v4 = vld [vmem:[%s1662_s0 + $0xf8] sm:$0xff] }
  0x17   :  { %v76_v3 = vld [vmem:[%s1662_s0 + $0x1f0] sm:$0xff]  ;;  %v77_v5 = vld [vmem:[%s1662_s0 + $0x1f8] sm:$0xff]  ;;  %v1403_v6 = vld [vmem:[%s1663_s2] ss:$0 sm:$0xff] }
  0x18   :  { %1014 = vmatmul.mubr.msk.f32.gmra.mrb[6].mxu0 %vm89_vm0, %v21_v20 }
  0x19   :  { %1062 = vmatmul.mubr.msk.f32.gmra.mrb[6].mxu1 %vm89_vm0, %v53_v21  ;;  %1016 = vmatprep.mubr.msk.f32.mxu0 %vm89_vm0, %v22_v22 }
  0x1a   :  { %1064 = vmatprep.mubr.msk.f32.mxu1 %vm89_vm0, %v54_v23 }
  0x1c   :  { %1017 = vmatmul.mubr.msk.f32.gmra.mrb[8].mxu0 %vm89_vm0, %v23_v24 }
  0x1d   :  { %1065 = vmatmul.mubr.msk.f32.gmra.mrb[8].mxu1 %vm89_vm0, %v55_v25  ;;  %1019 = vmatprep.mubr.msk.f32.mxu0 %vm89_vm0, %v24_v26 }
  0x1e   :  { %1067 = vmatprep.mubr.msk.f32.mxu1 %vm89_vm0, %v56_v27 }
  0x20   :  { %1020 = vmatmul.mubr.msk.f32.gmra.mrb[10].mxu0 %vm89_vm0, %v25_v28 }
  0x21   :  { %1068 = vmatmul.mubr.msk.f32.gmra.mrb[10].mxu1 %vm89_vm0, %v57_v29  ;;  %1022 = vmatprep.mubr.msk.f32.mxu0 %vm89_vm0, %v26_v30 }
  0x22   :  { %1070 = vmatprep.mubr.msk.f32.mxu1 %vm89_vm0, %v58_v31 }
  0x24   :  { %1023 = vmatmul.mubr.msk.f32.gmra.mrb[12].mxu0 %vm89_vm0, %v27_v32 }
  0x25   :  { %1071 = vmatmul.mubr.msk.f32.gmra.mrb[12].mxu1 %vm89_vm0, %v59_v33  ;;  %1025 = vmatprep.mubr.msk.f32.mxu0 %vm89_vm0, %v28_v34 }
  0x26   :  { %1073 = vmatprep.mubr.msk.f32.mxu1 %vm89_vm0, %v60_v35 }
  0x28   :  { %1026 = vmatmul.mubr.msk.f32.gmra.mrb[14].mxu0 %vm89_vm0, %v29_v36 }
  0x29   :  { %1074 = vmatmul.mubr.msk.f32.gmra.mrb[14].mxu1 %vm89_vm0, %v61_v37  ;;  %1028 = vmatprep.mubr.msk.f32.mxu0 %vm89_vm0, %v30_v38 }
  0x2a   :  { %1076 = vmatprep.mubr.msk.f32.mxu1 %vm89_vm0, %v62_v39 }
  0x2c   :  { %1029 = vmatmul.mubr.msk.f32.gmra.mrb[16].mxu0 %vm89_vm0, %v31_v40 }
  0x2d   :  { %1077 = vmatmul.mubr.msk.f32.gmra.mrb[16].mxu1 %vm89_vm0, %v63_v41  ;;  %1031 = vmatprep.mubr.msk.f32.mxu0 %vm89_vm0, %v32_v42 }
  0x2e   :  { %1079 = vmatprep.mubr.msk.f32.mxu1 %vm89_vm0, %v64_v43 }
  0x30   :  { %1032 = vmatmul.mubr.msk.f32.gmra.mrb[18].mxu0 %vm89_vm0, %v33_v44 }
  0x31   :  { %1080 = vmatmul.mubr.msk.f32.gmra.mrb[18].mxu1 %vm89_vm0, %v65_v45  ;;  %1034 = vmatprep.mubr.msk.f32.mxu0 %vm89_vm0, %v34_v46 }
  0x32   :  { %1082 = vmatprep.mubr.msk.f32.mxu1 %vm89_vm0, %v66_v47 }
  0x34   :  { %1035 = vmatmul.mubr.msk.f32.gmra.mrb[20].mxu0 %vm89_vm0, %v35_v48 }
  0x35   :  { %1083 = vmatmul.mubr.msk.f32.gmra.mrb[20].mxu1 %vm89_vm0, %v67_v49  ;;  %1037 = vmatprep.mubr.msk.f32.mxu0 %vm89_vm0, %v36_v50 }
  0x36   :  { %1085 = vmatprep.mubr.msk.f32.mxu1 %vm89_vm0, %v68_v51 }
  0x38   :  { %1038 = vmatmul.mubr.msk.f32.gmra.mrb[22].mxu0 %vm89_vm0, %v37_v52 }
  0x39   :  { %1086 = vmatmul.mubr.msk.f32.gmra.mrb[22].mxu1 %vm89_vm0, %v69_v53  ;;  %1040 = vmatprep.mubr.msk.f32.mxu0 %vm89_vm0, %v38_v54 }
  0x3a   :  { %1088 = vmatprep.mubr.msk.f32.mxu1 %vm89_vm0, %v70_v55 }
  0x3c   :  { %1041 = vmatmul.mubr.msk.f32.gmra.mrb[24].mxu0 %vm89_vm0, %v39_v56 }
  0x3d   :  { %1089 = vmatmul.mubr.msk.f32.gmra.mrb[24].mxu1 %vm89_vm0, %v71_v57  ;;  %1043 = vmatprep.mubr.msk.f32.mxu0 %vm89_vm0, %v40_v58 }
  0x3e   :  { %1091 = vmatprep.mubr.msk.f32.mxu1 %vm89_vm0, %v72_v59 }
  0x40   :  { %1044 = vmatmul.mubr.msk.f32.gmra.mrb[26].mxu0 %vm89_vm0, %v41_v60 }
  0x41   :  { %1092 = vmatmul.mubr.msk.f32.gmra.mrb[26].mxu1 %vm89_vm0, %v73_v61  ;;  %1046 = vmatprep.mubr.msk.f32.mxu0 %vm89_vm0, %v42_v62 }
  0x42   :  { %1094 = vmatprep.mubr.msk.f32.mxu1 %vm89_vm0, %v74_v63 }
  0x44   :  { %1047 = vmatmul.mubr.msk.f32.gmra.mrb[28].mxu0 %vm89_vm0, %v43_v0 }
  0x45   :  { %1095 = vmatmul.mubr.msk.f32.gmra.mrb[28].mxu1 %vm89_vm0, %v75_v1  ;;  %1049 = vmatprep.mubr.msk.f32.mxu0 %vm89_vm0, %v44_v2 }
  0x46   :  { %1097 = vmatprep.mubr.msk.f32.mxu1 %vm89_vm0, %v76_v3 }
  0x48   :  { %1050 = vmatmul.mubr.msk.f32.gmra.mrb[30].mxu0 %vm89_vm0, %v45_v4 }
  0x49   :  { %1098 = vmatmul.mubr.msk.f32.gmra.mrb[30].mxu1 %vm89_vm0, %v77_v5 }
  0xdf   :  { %v1006_v7 = vpop.f32.mrb[0].mxu0 }
  0xe0   :  { %v1054_v8 = vpop.f32.mrb[0].mxu1  ;;  %v354_v9 = vadd.f32 %v1006_v7, %v1403_v6  ;;  %v348_v11 = vpop.f32.mrb[1].mxu0 }
  0xe1   :  { %v514_v10 = vadd.f32 %v1054_v8, %v1403_v6  ;;  %v508_v12 = vpop.f32.mrb[1].mxu1  ;;  %v349_v13 = vadd.f32 %v1403_v6, %v348_v11 }
  0xe2   :  { %v509_v14 = vadd.f32 %v1403_v6, %v508_v12  ;;  %v668_v15 = vmax.f32 %v354_v9, 0.0 }
  0xe3   :  { %v700_v16 = vmax.f32 %v514_v10, 0.0  ;;  %v667_v17 = vmax.f32 %v349_v13, 0.0  ;;  %v1009_v19 = vpop.f32.mrb[2].mxu0 }
  0xe4   :  { %v699_v18 = vmax.f32 %v509_v14, 0.0  ;;  %v1057_v20 = vpop.f32.mrb[2].mxu1  ;;  %v732_v21 = vmin.f32 %v668_v15, 6.0  ;;  %v364_v23 = vadd.f32 %v1009_v19, %v1403_v6  ;;  %v358_v25 = vpop.f32.mrb[3].mxu0 }
  0xe5   :  { %v764_v22 = vmin.f32 %v700_v16, 6.0  ;;  %v524_v24 = vadd.f32 %v1057_v20, %v1403_v6  ;;  %v518_v26 = vpop.f32.mrb[3].mxu1  ;;  %v731_v27 = vmin.f32 %v667_v17, 6.0  ;;  %v359_v29 = vadd.f32 %v1403_v6, %v358_v25 }
  0xe6   :  { %v763_v28 = vmin.f32 %v699_v18, 6.0  ;;  %v519_v30 = vadd.f32 %v1403_v6, %v518_v26  ;;  %796 = vst [vmem:[%s1664_s3 + $0x8] sm:$0xff] %v732_v21  ;;  %v670_v31 = vmax.f32 %v364_v23, 0.0 }
  0xe7   :  { %828 = vst [vmem:[%s1664_s3 + $0x108] sm:$0xff] %v764_v22  ;;  %v702_v32 = vmax.f32 %v524_v24, 0.0  ;;  %795 = vst [vmem:[%s1664_s3] sm:$0xff] %v731_v27  ;;  %v669_v33 = vmax.f32 %v359_v29, 0.0  ;;  %v1012_v35 = vpop.f32.mrb[4].mxu0 }
  0xe8   :  { %827 = vst [vmem:[%s1664_s3 + $0x100] sm:$0xff] %v763_v28  ;;  %v701_v34 = vmax.f32 %v519_v30, 0.0  ;;  %v1060_v36 = vpop.f32.mrb[4].mxu1  ;;  %v734_v37 = vmin.f32 %v670_v31, 6.0  ;;  %v374_v39 = vadd.f32 %v1012_v35, %v1403_v6  ;;  %v368_v41 = vpop.f32.mrb[5].mxu0 }
  0xe9   :  { %v766_v38 = vmin.f32 %v702_v32, 6.0  ;;  %v534_v40 = vadd.f32 %v1060_v36, %v1403_v6  ;;  %v528_v42 = vpop.f32.mrb[5].mxu1  ;;  %v733_v43 = vmin.f32 %v669_v33, 6.0  ;;  %v369_v45 = vadd.f32 %v1403_v6, %v368_v41 }
  0xea   :  { %v765_v44 = vmin.f32 %v701_v34, 6.0  ;;  %v529_v46 = vadd.f32 %v1403_v6, %v528_v42  ;;  %798 = vst [vmem:[%s1664_s3 + $0x18] sm:$0xff] %v734_v37  ;;  %v672_v47 = vmax.f32 %v374_v39, 0.0 }
  0xeb   :  { %830 = vst [vmem:[%s1664_s3 + $0x118] sm:$0xff] %v766_v38  ;;  %v704_v48 = vmax.f32 %v534_v40, 0.0  ;;  %797 = vst [vmem:[%s1664_s3 + $0x10] sm:$0xff] %v733_v43  ;;  %v671_v49 = vmax.f32 %v369_v45, 0.0  ;;  %v1015_v51 = vpop.f32.mrb[6].mxu0 }
  0xec   :  { %829 = vst [vmem:[%s1664_s3 + $0x110] sm:$0xff] %v765_v44  ;;  %v703_v50 = vmax.f32 %v529_v46, 0.0  ;;  %v1063_v52 = vpop.f32.mrb[6].mxu1  ;;  %v736_v53 = vmin.f32 %v672_v47, 6.0  ;;  %v384_v55 = vadd.f32 %v1015_v51, %v1403_v6  ;;  %v378_v57 = vpop.f32.mrb[7].mxu0 }
  0xed   :  { %v768_v54 = vmin.f32 %v704_v48, 6.0  ;;  %v544_v56 = vadd.f32 %v1063_v52, %v1403_v6  ;;  %v538_v58 = vpop.f32.mrb[7].mxu1  ;;  %v735_v59 = vmin.f32 %v671_v49, 6.0  ;;  %v379_v61 = vadd.f32 %v1403_v6, %v378_v57 }
  0xee   :  { %v767_v60 = vmin.f32 %v703_v50, 6.0  ;;  %v539_v62 = vadd.f32 %v1403_v6, %v538_v58  ;;  %800 = vst [vmem:[%s1664_s3 + $0x28] sm:$0xff] %v736_v53  ;;  %v674_v63 = vmax.f32 %v384_v55, 0.0 }
  0xef   :  { %832 = vst [vmem:[%s1664_s3 + $0x128] sm:$0xff] %v768_v54  ;;  %v706_v0 = vmax.f32 %v544_v56, 0.0  ;;  %799 = vst [vmem:[%s1664_s3 + $0x20] sm:$0xff] %v735_v59  ;;  %v673_v1 = vmax.f32 %v379_v61, 0.0  ;;  %v1018_v3 = vpop.f32.mrb[8].mxu0 }
  0xf0   :  { %831 = vst [vmem:[%s1664_s3 + $0x120] sm:$0xff] %v767_v60  ;;  %v705_v2 = vmax.f32 %v539_v62, 0.0  ;;  %v1066_v4 = vpop.f32.mrb[8].mxu1  ;;  %v738_v5 = vmin.f32 %v674_v63, 6.0  ;;  %v394_v8 = vadd.f32 %v1018_v3, %v1403_v6  ;;  %v388_v10 = vpop.f32.mrb[9].mxu0 }
  0xf1   :  { %v770_v7 = vmin.f32 %v706_v0, 6.0  ;;  %v554_v9 = vadd.f32 %v1066_v4, %v1403_v6  ;;  %v548_v11 = vpop.f32.mrb[9].mxu1  ;;  %v737_v12 = vmin.f32 %v673_v1, 6.0  ;;  %v389_v14 = vadd.f32 %v1403_v6, %v388_v10 }
  0xf2   :  { %v769_v13 = vmin.f32 %v705_v2, 6.0  ;;  %v549_v15 = vadd.f32 %v1403_v6, %v548_v11  ;;  %802 = vst [vmem:[%s1664_s3 + $0x38] sm:$0xff] %v738_v5  ;;  %v676_v16 = vmax.f32 %v394_v8, 0.0 }
  0xf3   :  { %834 = vst [vmem:[%s1664_s3 + $0x138] sm:$0xff] %v770_v7  ;;  %v708_v17 = vmax.f32 %v554_v9, 0.0  ;;  %801 = vst [vmem:[%s1664_s3 + $0x30] sm:$0xff] %v737_v12  ;;  %v675_v18 = vmax.f32 %v389_v14, 0.0  ;;  %v1021_v20 = vpop.f32.mrb[10].mxu0 }
  0xf4   :  { %833 = vst [vmem:[%s1664_s3 + $0x130] sm:$0xff] %v769_v13  ;;  %v707_v19 = vmax.f32 %v549_v15, 0.0  ;;  %v1069_v21 = vpop.f32.mrb[10].mxu1  ;;  %v740_v22 = vmin.f32 %v676_v16, 6.0  ;;  %v404_v24 = vadd.f32 %v1021_v20, %v1403_v6  ;;  %v398_v26 = vpop.f32.mrb[11].mxu0 }
  0xf5   :  { %v772_v23 = vmin.f32 %v708_v17, 6.0  ;;  %v564_v25 = vadd.f32 %v1069_v21, %v1403_v6  ;;  %v558_v27 = vpop.f32.mrb[11].mxu1  ;;  %v739_v28 = vmin.f32 %v675_v18, 6.0  ;;  %v399_v30 = vadd.f32 %v1403_v6, %v398_v26 }
  0xf6   :  { %v771_v29 = vmin.f32 %v707_v19, 6.0  ;;  %v559_v31 = vadd.f32 %v1403_v6, %v558_v27  ;;  %804 = vst [vmem:[%s1664_s3 + $0x48] sm:$0xff] %v740_v22  ;;  %v678_v32 = vmax.f32 %v404_v24, 0.0 }
  0xf7   :  { %836 = vst [vmem:[%s1664_s3 + $0x148] sm:$0xff] %v772_v23  ;;  %v710_v33 = vmax.f32 %v564_v25, 0.0  ;;  %803 = vst [vmem:[%s1664_s3 + $0x40] sm:$0xff] %v739_v28  ;;  %v677_v34 = vmax.f32 %v399_v30, 0.0  ;;  %v1024_v36 = vpop.f32.mrb[12].mxu0 }
  0xf8   :  { %835 = vst [vmem:[%s1664_s3 + $0x140] sm:$0xff] %v771_v29  ;;  %v709_v35 = vmax.f32 %v559_v31, 0.0  ;;  %v1072_v37 = vpop.f32.mrb[12].mxu1  ;;  %v742_v38 = vmin.f32 %v678_v32, 6.0  ;;  %v414_v40 = vadd.f32 %v1024_v36, %v1403_v6  ;;  %v408_v42 = vpop.f32.mrb[13].mxu0 }
  0xf9   :  { %v774_v39 = vmin.f32 %v710_v33, 6.0  ;;  %v574_v41 = vadd.f32 %v1072_v37, %v1403_v6  ;;  %v568_v43 = vpop.f32.mrb[13].mxu1  ;;  %v741_v44 = vmin.f32 %v677_v34, 6.0  ;;  %v409_v46 = vadd.f32 %v1403_v6, %v408_v42 }
  0xfa   :  { %v773_v45 = vmin.f32 %v709_v35, 6.0  ;;  %v569_v47 = vadd.f32 %v1403_v6, %v568_v43  ;;  %806 = vst [vmem:[%s1664_s3 + $0x58] sm:$0xff] %v742_v38  ;;  %v680_v48 = vmax.f32 %v414_v40, 0.0 }
  0xfb   :  { %838 = vst [vmem:[%s1664_s3 + $0x158] sm:$0xff] %v774_v39  ;;  %v712_v49 = vmax.f32 %v574_v41, 0.0  ;;  %805 = vst [vmem:[%s1664_s3 + $0x50] sm:$0xff] %v741_v44  ;;  %v679_v50 = vmax.f32 %v409_v46, 0.0  ;;  %v1027_v52 = vpop.f32.mrb[14].mxu0 }
  0xfc   :  { %837 = vst [vmem:[%s1664_s3 + $0x150] sm:$0xff] %v773_v45  ;;  %v711_v51 = vmax.f32 %v569_v47, 0.0  ;;  %v1075_v53 = vpop.f32.mrb[14].mxu1  ;;  %v744_v54 = vmin.f32 %v680_v48, 6.0  ;;  %v424_v56 = vadd.f32 %v1027_v52, %v1403_v6  ;;  %v418_v58 = vpop.f32.mrb[15].mxu0 }
  0xfd   :  { %v776_v55 = vmin.f32 %v712_v49, 6.0  ;;  %v584_v57 = vadd.f32 %v1075_v53, %v1403_v6  ;;  %v578_v59 = vpop.f32.mrb[15].mxu1  ;;  %v743_v60 = vmin.f32 %v679_v50, 6.0  ;;  %v419_v62 = vadd.f32 %v1403_v6, %v418_v58 }
  0xfe   :  { %v775_v61 = vmin.f32 %v711_v51, 6.0  ;;  %v579_v63 = vadd.f32 %v1403_v6, %v578_v59  ;;  %808 = vst [vmem:[%s1664_s3 + $0x68] sm:$0xff] %v744_v54  ;;  %v682_v0 = vmax.f32 %v424_v56, 0.0 }
  0xff   :  { %840 = vst [vmem:[%s1664_s3 + $0x168] sm:$0xff] %v776_v55  ;;  %v714_v1 = vmax.f32 %v584_v57, 0.0  ;;  %807 = vst [vmem:[%s1664_s3 + $0x60] sm:$0xff] %v743_v60  ;;  %v681_v2 = vmax.f32 %v419_v62, 0.0  ;;  %v1030_v4 = vpop.f32.mrb[16].mxu0 }
 0x100   :  { %839 = vst [vmem:[%s1664_s3 + $0x160] sm:$0xff] %v775_v61  ;;  %v713_v3 = vmax.f32 %v579_v63, 0.0  ;;  %v1078_v5 = vpop.f32.mrb[16].mxu1  ;;  %v746_v7 = vmin.f32 %v682_v0, 6.0  ;;  %v434_v9 = vadd.f32 %v1030_v4, %v1403_v6  ;;  %v428_v11 = vpop.f32.mrb[17].mxu0 }
 0x101   :  { %v778_v8 = vmin.f32 %v714_v1, 6.0  ;;  %v594_v10 = vadd.f32 %v1078_v5, %v1403_v6  ;;  %v588_v12 = vpop.f32.mrb[17].mxu1  ;;  %v745_v13 = vmin.f32 %v681_v2, 6.0  ;;  %v429_v15 = vadd.f32 %v1403_v6, %v428_v11 }
 0x102   :  { %v777_v14 = vmin.f32 %v713_v3, 6.0  ;;  %v589_v16 = vadd.f32 %v1403_v6, %v588_v12  ;;  %810 = vst [vmem:[%s1664_s3 + $0x78] sm:$0xff] %v746_v7  ;;  %v684_v17 = vmax.f32 %v434_v9, 0.0 }
 0x103   :  { %842 = vst [vmem:[%s1664_s3 + $0x178] sm:$0xff] %v778_v8  ;;  %v716_v18 = vmax.f32 %v594_v10, 0.0  ;;  %809 = vst [vmem:[%s1664_s3 + $0x70] sm:$0xff] %v745_v13  ;;  %v683_v19 = vmax.f32 %v429_v15, 0.0  ;;  %v1033_v21 = vpop.f32.mrb[18].mxu0 }
 0x104   :  { %841 = vst [vmem:[%s1664_s3 + $0x170] sm:$0xff] %v777_v14  ;;  %v715_v20 = vmax.f32 %v589_v16, 0.0  ;;  %v1081_v22 = vpop.f32.mrb[18].mxu1  ;;  %v748_v23 = vmin.f32 %v684_v17, 6.0  ;;  %v444_v25 = vadd.f32 %v1033_v21, %v1403_v6  ;;  %v438_v27 = vpop.f32.mrb[19].mxu0 }
 0x105   :  { %v780_v24 = vmin.f32 %v716_v18, 6.0  ;;  %v604_v26 = vadd.f32 %v1081_v22, %v1403_v6  ;;  %v598_v28 = vpop.f32.mrb[19].mxu1  ;;  %v747_v29 = vmin.f32 %v683_v19, 6.0  ;;  %v439_v31 = vadd.f32 %v1403_v6, %v438_v27 }
 0x106   :  { %v779_v30 = vmin.f32 %v715_v20, 6.0  ;;  %v599_v32 = vadd.f32 %v1403_v6, %v598_v28  ;;  %812 = vst [vmem:[%s1664_s3 + $0x88] sm:$0xff] %v748_v23  ;;  %v686_v33 = vmax.f32 %v444_v25, 0.0 }
 0x107   :  { %844 = vst [vmem:[%s1664_s3 + $0x188] sm:$0xff] %v780_v24  ;;  %v718_v34 = vmax.f32 %v604_v26, 0.0  ;;  %811 = vst [vmem:[%s1664_s3 + $0x80] sm:$0xff] %v747_v29  ;;  %v685_v35 = vmax.f32 %v439_v31, 0.0  ;;  %v1036_v37 = vpop.f32.mrb[20].mxu0 }
 0x108   :  { %843 = vst [vmem:[%s1664_s3 + $0x180] sm:$0xff] %v779_v30  ;;  %v717_v36 = vmax.f32 %v599_v32, 0.0  ;;  %v1084_v38 = vpop.f32.mrb[20].mxu1  ;;  %v750_v39 = vmin.f32 %v686_v33, 6.0  ;;  %v454_v41 = vadd.f32 %v1036_v37, %v1403_v6  ;;  %v448_v43 = vpop.f32.mrb[21].mxu0 }
 0x109   :  { %v782_v40 = vmin.f32 %v718_v34, 6.0  ;;  %v614_v42 = vadd.f32 %v1084_v38, %v1403_v6  ;;  %v608_v44 = vpop.f32.mrb[21].mxu1  ;;  %v749_v45 = vmin.f32 %v685_v35, 6.0  ;;  %v449_v47 = vadd.f32 %v1403_v6, %v448_v43 }
 0x10a   :  { %v781_v46 = vmin.f32 %v717_v36, 6.0  ;;  %v609_v48 = vadd.f32 %v1403_v6, %v608_v44  ;;  %814 = vst [vmem:[%s1664_s3 + $0x98] sm:$0xff] %v750_v39  ;;  %v688_v49 = vmax.f32 %v454_v41, 0.0 }
 0x10b   :  { %846 = vst [vmem:[%s1664_s3 + $0x198] sm:$0xff] %v782_v40  ;;  %v720_v50 = vmax.f32 %v614_v42, 0.0  ;;  %813 = vst [vmem:[%s1664_s3 + $0x90] sm:$0xff] %v749_v45  ;;  %v687_v51 = vmax.f32 %v449_v47, 0.0  ;;  %v1039_v53 = vpop.f32.mrb[22].mxu0 }
 0x10c   :  { %845 = vst [vmem:[%s1664_s3 + $0x190] sm:$0xff] %v781_v46  ;;  %v719_v52 = vmax.f32 %v609_v48, 0.0  ;;  %v1087_v54 = vpop.f32.mrb[22].mxu1  ;;  %v752_v55 = vmin.f32 %v688_v49, 6.0  ;;  %v464_v57 = vadd.f32 %v1039_v53, %v1403_v6  ;;  %v458_v59 = vpop.f32.mrb[23].mxu0 }
 0x10d   :  { %v784_v56 = vmin.f32 %v720_v50, 6.0  ;;  %v624_v58 = vadd.f32 %v1087_v54, %v1403_v6  ;;  %v618_v60 = vpop.f32.mrb[23].mxu1  ;;  %v751_v61 = vmin.f32 %v687_v51, 6.0  ;;  %v459_v63 = vadd.f32 %v1403_v6, %v458_v59 }
 0x10e   :  { %v783_v62 = vmin.f32 %v719_v52, 6.0  ;;  %v619_v0 = vadd.f32 %v1403_v6, %v618_v60  ;;  %816 = vst [vmem:[%s1664_s3 + $0xa8] sm:$0xff] %v752_v55  ;;  %v690_v1 = vmax.f32 %v464_v57, 0.0 }
 0x10f   :  { %848 = vst [vmem:[%s1664_s3 + $0x1a8] sm:$0xff] %v784_v56  ;;  %v722_v2 = vmax.f32 %v624_v58, 0.0  ;;  %815 = vst [vmem:[%s1664_s3 + $0xa0] sm:$0xff] %v751_v61  ;;  %v689_v3 = vmax.f32 %v459_v63, 0.0  ;;  %v1042_v5 = vpop.f32.mrb[24].mxu0 }
 0x110   :  { %847 = vst [vmem:[%s1664_s3 + $0x1a0] sm:$0xff] %v783_v62  ;;  %v721_v4 = vmax.f32 %v619_v0, 0.0  ;;  %v1090_v7 = vpop.f32.mrb[24].mxu1  ;;  %v754_v8 = vmin.f32 %v690_v1, 6.0  ;;  %v474_v10 = vadd.f32 %v1042_v5, %v1403_v6  ;;  %v468_v12 = vpop.f32.mrb[25].mxu0 }
 0x111   :  { %v786_v9 = vmin.f32 %v722_v2, 6.0  ;;  %v634_v11 = vadd.f32 %v1090_v7, %v1403_v6  ;;  %v628_v13 = vpop.f32.mrb[25].mxu1  ;;  %v753_v14 = vmin.f32 %v689_v3, 6.0  ;;  %v469_v16 = vadd.f32 %v1403_v6, %v468_v12 }
 0x112   :  { %v785_v15 = vmin.f32 %v721_v4, 6.0  ;;  %v629_v17 = vadd.f32 %v1403_v6, %v628_v13  ;;  %818 = vst [vmem:[%s1664_s3 + $0xb8] sm:$0xff] %v754_v8  ;;  %v692_v18 = vmax.f32 %v474_v10, 0.0 }
 0x113   :  { %850 = vst [vmem:[%s1664_s3 + $0x1b8] sm:$0xff] %v786_v9  ;;  %v724_v19 = vmax.f32 %v634_v11, 0.0  ;;  %817 = vst [vmem:[%s1664_s3 + $0xb0] sm:$0xff] %v753_v14  ;;  %v691_v20 = vmax.f32 %v469_v16, 0.0  ;;  %v1045_v22 = vpop.f32.mrb[26].mxu0 }
 0x114   :  { %849 = vst [vmem:[%s1664_s3 + $0x1b0] sm:$0xff] %v785_v15  ;;  %v723_v21 = vmax.f32 %v629_v17, 0.0  ;;  %v1093_v23 = vpop.f32.mrb[26].mxu1  ;;  %v756_v24 = vmin.f32 %v692_v18, 6.0  ;;  %v484_v26 = vadd.f32 %v1045_v22, %v1403_v6  ;;  %v478_v28 = vpop.f32.mrb[27].mxu0 }
 0x115   :  { %v788_v25 = vmin.f32 %v724_v19, 6.0  ;;  %v644_v27 = vadd.f32 %v1093_v23, %v1403_v6  ;;  %v638_v29 = vpop.f32.mrb[27].mxu1  ;;  %v755_v30 = vmin.f32 %v691_v20, 6.0  ;;  %v479_v32 = vadd.f32 %v1403_v6, %v478_v28 }
 0x116   :  { %v787_v31 = vmin.f32 %v723_v21, 6.0  ;;  %v639_v33 = vadd.f32 %v1403_v6, %v638_v29  ;;  %820 = vst [vmem:[%s1664_s3 + $0xc8] sm:$0xff] %v756_v24  ;;  %v694_v34 = vmax.f32 %v484_v26, 0.0 }
 0x117   :  { %852 = vst [vmem:[%s1664_s3 + $0x1c8] sm:$0xff] %v788_v25  ;;  %v726_v35 = vmax.f32 %v644_v27, 0.0  ;;  %819 = vst [vmem:[%s1664_s3 + $0xc0] sm:$0xff] %v755_v30  ;;  %v693_v36 = vmax.f32 %v479_v32, 0.0  ;;  %v1048_v38 = vpop.f32.mrb[28].mxu0 }
 0x118   :  { %851 = vst [vmem:[%s1664_s3 + $0x1c0] sm:$0xff] %v787_v31  ;;  %v725_v37 = vmax.f32 %v639_v33, 0.0  ;;  %v1096_v39 = vpop.f32.mrb[28].mxu1  ;;  %v758_v40 = vmin.f32 %v694_v34, 6.0  ;;  %v494_v42 = vadd.f32 %v1048_v38, %v1403_v6  ;;  %v488_v44 = vpop.f32.mrb[29].mxu0 }
 0x119   :  { %v790_v41 = vmin.f32 %v726_v35, 6.0  ;;  %v654_v43 = vadd.f32 %v1096_v39, %v1403_v6  ;;  %v648_v45 = vpop.f32.mrb[29].mxu1  ;;  %v757_v46 = vmin.f32 %v693_v36, 6.0  ;;  %v489_v48 = vadd.f32 %v1403_v6, %v488_v44 }
 0x11a   :  { %v789_v47 = vmin.f32 %v725_v37, 6.0  ;;  %v649_v49 = vadd.f32 %v1403_v6, %v648_v45  ;;  %822 = vst [vmem:[%s1664_s3 + $0xd8] sm:$0xff] %v758_v40  ;;  %v696_v50 = vmax.f32 %v494_v42, 0.0 }
 0x11b   :  { %854 = vst [vmem:[%s1664_s3 + $0x1d8] sm:$0xff] %v790_v41  ;;  %v728_v51 = vmax.f32 %v654_v43, 0.0  ;;  %821 = vst [vmem:[%s1664_s3 + $0xd0] sm:$0xff] %v757_v46  ;;  %v695_v52 = vmax.f32 %v489_v48, 0.0  ;;  %v1051_v54 = vpop.f32.mrb[30].mxu0 }
 0x11c   :  { %853 = vst [vmem:[%s1664_s3 + $0x1d0] sm:$0xff] %v789_v47  ;;  %v727_v53 = vmax.f32 %v649_v49, 0.0  ;;  %v1099_v55 = vpop.f32.mrb[30].mxu1  ;;  %v760_v56 = vmin.f32 %v696_v50, 6.0  ;;  %v504_v58 = vadd.f32 %v1051_v54, %v1403_v6  ;;  %v498_v60 = vpop.f32.mrb[31].mxu0 }
 0x11d   :  { %v792_v57 = vmin.f32 %v728_v51, 6.0  ;;  %v664_v59 = vadd.f32 %v1099_v55, %v1403_v6  ;;  %v658_v61 = vpop.f32.mrb[31].mxu1  ;;  %v759_v62 = vmin.f32 %v695_v52, 6.0  ;;  %v499_v0 = vadd.f32 %v1403_v6, %v498_v60 }
 0x11e   :  { %v791_v63 = vmin.f32 %v727_v53, 6.0  ;;  %v659_v1 = vadd.f32 %v1403_v6, %v658_v61  ;;  %824 = vst [vmem:[%s1664_s3 + $0xe8] sm:$0xff] %v760_v56  ;;  %v698_v2 = vmax.f32 %v504_v58, 0.0 }
 0x11f   :  { %856 = vst [vmem:[%s1664_s3 + $0x1e8] sm:$0xff] %v792_v57  ;;  %v730_v3 = vmax.f32 %v664_v59, 0.0  ;;  %823 = vst [vmem:[%s1664_s3 + $0xe0] sm:$0xff] %v759_v62  ;;  %v697_v4 = vmax.f32 %v499_v0, 0.0 }
 0x120   :  { %855 = vst [vmem:[%s1664_s3 + $0x1e0] sm:$0xff] %v791_v63  ;;  %v729_v6 = vmax.f32 %v659_v1, 0.0  ;;  %v762_v5 = vmin.f32 %v698_v2, 6.0 }
 0x121   :  { %v794_v7 = vmin.f32 %v730_v3, 6.0  ;;  %v761_v8 = vmin.f32 %v697_v4, 6.0 }
 0x122   :  { %v793_v9 = vmin.f32 %v729_v6, 6.0  ;;  %826 = vst [vmem:[%s1664_s3 + $0xf8] sm:$0xff] %v762_v5 }
 0x123   :  { %858 = vst [vmem:[%s1664_s3 + $0x1f8] sm:$0xff] %v794_v7  ;;  %825 = vst [vmem:[%s1664_s3 + $0xf0] sm:$0xff] %v761_v8 }
 0x124   :  { %857 = vst [vmem:[%s1664_s3 + $0x1f0] sm:$0xff] %v793_v9 }

// kernel: forward.9
= control target key start
LH: loop header
LB: loop body
LE: loop exit
PB: predicated region body
PF: predicated region fallthrough
CT: control target
= control target key end

     0   :  { %s2466_s24 = smov 0   ;;  %s3539_s0 = inlined_call_operand.vmem [shape: f32[2,16,16,128], index: 0, kind: input, shape index: {}]   ;;  %s3540_s1 = inlined_call_operand.vmem [shape: f32[128,128], index: 1, kind: input, shape index: {}]   ;;  %s3541_s2 = inlined_call_operand.vmem [shape: f32[1,128], index: 2, kind: input, shape index: {}]   ;;  %s3542_s3 = inlined_call_operand.vmem [shape: f32[3,3,128], index: 3, kind: input, shape index: {}]   ;;  %s3543_s4 = inlined_call_operand.vmem [shape: f32[1,1,128], index: 4, kind: input, shape index: {}]   ;;  %s3544_s5 = inlined_call_operand.vmem [shape: f32[128,128], index: 5, kind: input, shape index: {}]   ;;  %s3545_s6 = inlined_call_operand.vmem [shape: f32[1,128], index: 6, kind: input, shape index: {}]   ;;  %s3546_s7 = inlined_call_operand.vmem [shape: f32[2,16,16,128], index: 7, kind: output, shape index: {}]  }
   0x1 LB: > { %s2070_s25 = sadd.s32 4294967295, %s2423_s24   ;;  %p2074_p0 = scmp.ge.s32.totalorder %s2423_s24, 1  ;;  %s2423_s24 = sphi %s2466_s24, %s17_s24  }
   0x2   : > { %p237_p1 = scmp.lt.s32.totalorder %s2423_s24, 3 }
   0x4   : > { %p238_p2 = pnand %p2074_p0, %p237_p1 }
   0x5   : > { %v311_v0 = vld [vmem:[%s3540_s1] sm:$0xff] (!%p238_p2)  ;;  %v312_v1 = vld [vmem:[%s3540_s1 + $0x8] sm:$0xff] (!%p238_p2)  ;;  %v313_v2 = vld [vmem:[%s3540_s1 + $0x10] sm:$0xff] (!%p238_p2)  ;;  %p269_p3 = scmp.lt.s32.totalorder (!%p238_p2), %s2070_s25, 1  ;;  %v2425_v59 = vmov (!%p238_p2), 0.0  }
   0x6   : > { %241 = sbr.rel (%p238_p2) target bundleno = 669 (0x29d), region = 48  ;;  %v2342_v3 = vpack.c.bf16 (!%p238_p2), %v312_v1, %v311_v0  ;;  %v314_v4 = vld [vmem:[%s3540_s1 + $0x18] sm:$0xff] (!%p238_p2)  ;;  %v315_v6 = vld [vmem:[%s3540_s1 + $0x20] sm:$0xff] (!%p238_p2)  ;;  %v316_v7 = vld [vmem:[%s3540_s1 + $0x28] sm:$0xff] (!%p238_p2)  ;;  %623 = vst [vmem:[#allocation2] sm:$0xff] (!%p238_p2), %v2425_v59 }
   0x7   : > { %v2346_v5 = vpack.c.bf16 (!%p238_p2), %v314_v4, %v313_v2  ;;  %v2350_v8 = vpack.c.bf16 (!%p238_p2), %v316_v7, %v315_v6  ;;  %v317_v9 = vld [vmem:[%s3540_s1 + $0x30] sm:$0xff] (!%p238_p2)  ;;  %v318_v10 = vld [vmem:[%s3540_s1 + $0x38] sm:$0xff] (!%p238_p2)  ;;  %v319_v13 = vld [vmem:[%s3540_s1 + $0x40] sm:$0xff] (!%p238_p2)  ;;  %624 = vst [vmem:[#allocation2 + $0x8] sm:$0xff] (!%p238_p2), %v2425_v59 }
   0x8   : > { %2343 = vmatprep.subr.bf16.mxu0 (!%p238_p2), %v2342_v3  ;;  %v2354_v12 = vpack.c.bf16 (!%p238_p2), %v318_v10, %v317_v9  ;;  %v320_v14 = vld [vmem:[%s3540_s1 + $0x48] sm:$0xff] (!%p238_p2)  ;;  %v321_v16 = vld [vmem:[%s3540_s1 + $0x50] sm:$0xff] (!%p238_p2)  ;;  %v322_v17 = vld [vmem:[%s3540_s1 + $0x58] sm:$0xff] (!%p238_p2)  ;;  %625 = vst [vmem:[#allocation2 + $0x10] sm:$0xff] (!%p238_p2), %v2425_v59 }
   0x9   : > { %2345 = vmatpush3.bf16.msra.mxu0 (!%p238_p2), %v2342_v3  ;;  %v2358_v15 = vpack.c.bf16 (!%p238_p2), %v320_v14, %v319_v13  ;;  %v2362_v18 = vpack.c.bf16 (!%p238_p2), %v322_v17, %v321_v16  ;;  %v323_v19 = vld [vmem:[%s3540_s1 + $0x60] sm:$0xff] (!%p238_p2)  ;;  %v324_v20 = vld [vmem:[%s3540_s1 + $0x68] sm:$0xff] (!%p238_p2)  ;;  %v325_v22 = vld [vmem:[%s3540_s1 + $0x70] sm:$0xff] (!%p238_p2)  ;;  %626 = vst [vmem:[#allocation2 + $0x18] sm:$0xff] (!%p238_p2), %v2425_v59  ;;  %v763_v17 = vlaneseq (!%p238_p2) }
   0xa   : > { %2347 = vmatprep.subr.bf16.mxu0 (!%p238_p2), %v2346_v5  ;;  %v2366_v21 = vpack.c.bf16 (!%p238_p2), %v324_v20, %v323_v19  ;;  %v326_v23 = vld [vmem:[%s3540_s1 + $0x78] sm:$0xff] (!%p238_p2)  ;;  %v1735_v56 = vld [vmem:[%s3544_s5] sm:$0xff] (!%p238_p2)  ;;  %v1736_v57 = vld [vmem:[%s3544_s5 + $0x8] sm:$0xff] (!%p238_p2)  ;;  %627 = vst [vmem:[#allocation2 + $0x20] sm:$0xff] (!%p238_p2), %v2425_v59 }
   0xb   : > { %v2370_v24 = vpack.c.bf16 (!%p238_p2), %v326_v23, %v325_v22  ;;  %v2374_v58 = vpack.c.bf16 (!%p238_p2), %v1736_v57, %v1735_v56  ;;  %630 = vst [vmem:[#allocation2 + $0x38] sm:$0xff] (!%p238_p2), %v2425_v59  ;;  %631 = vst [vmem:[#allocation2 + $0x40] sm:$0xff] (!%p238_p2), %v2425_v59  ;;  %v1737_v60 = vld [vmem:[%s3544_s5 + $0x10] sm:$0xff] (!%p238_p2)  ;;  %v1738_v61 = vld [vmem:[%s3544_s5 + $0x18] sm:$0xff] (!%p238_p2) }
   0xc   : > { %634 = vst [vmem:[#allocation2 + $0x58] sm:$0xff] (!%p238_p2), %v2425_v59  ;;  %635 = vst [vmem:[#allocation2 + $0x60] sm:$0xff] (!%p238_p2), %v2425_v59  ;;  %v2378_v62 = vpack.c.bf16 (!%p238_p2), %v1738_v61, %v1737_v60  ;;  %v1739_v63 = vld [vmem:[%s3544_s5 + $0x20] sm:$0xff] (!%p238_p2)  ;;  %v1740_v0 = vld [vmem:[%s3544_s5 + $0x28] sm:$0xff] (!%p238_p2) }
   0xd   : > { %s3548_s25 = smov (!%p269_p3, %s2070_s25), 1  ;;  %2349 = vmatpush3.bf16.msra.mxu0 %v2346_v5  ;;  %638 = vst [vmem:[#allocation2 + $0x78] sm:$0xff] %v2425_v59  ;;  %639 = vst [vmem:[#allocation2 + $0x80] sm:$0xff] %v2425_v59  ;;  %2375 = vmatprep.subr.bf16.mxu1 %v2374_v58  ;;  %v2382_v1 = vpack.c.bf16 %v1740_v0, %v1739_v63  ;;  %v1741_v2 = vld [vmem:[%s3544_s5 + $0x30] sm:$0xff]  ;;  %v1742_v3 = vld [vmem:[%s3544_s5 + $0x38] sm:$0xff] }
   0xe   : > { %s2084_s15 = sshll.u32 %s3548_s25, 8  ;;  %2351 = vmatprep.subr.bf16.mxu0 %v2350_v8  ;;  %642 = vst [vmem:[#allocation2 + $0x98] sm:$0xff] %v2425_v59  ;;  %643 = vst [vmem:[#allocation2 + $0xa0] sm:$0xff] %v2425_v59  ;;  %2377 = vmatpush3.bf16.msra.mxu1 %v2374_v58  ;;  %v2386_v4 = vpack.c.bf16 %v1742_v3, %v1741_v2  ;;  %v1743_v5 = vld [vmem:[%s3544_s5 + $0x40] sm:$0xff]  ;;  %v1744_v6 = vld [vmem:[%s3544_s5 + $0x48] sm:$0xff] }
   0xf   : > { %s2500_s18 = scalar_lea.vmem %s3539_s0, %s2084_s15  ;;  %646 = vst [vmem:[#allocation2 + $0xb8] sm:$0xff] %v2425_v59  ;;  %647 = vst [vmem:[#allocation2 + $0xc0] sm:$0xff] %v2425_v59  ;;  %2379 = vmatprep.subr.bf16.mxu1 %v2378_v62  ;;  %v2390_v7 = vpack.c.bf16 %v1744_v6, %v1743_v5  ;;  %v1746_v9 = vld [vmem:[%s3544_s5 + $0x58] sm:$0xff]  ;;  %v1749_v14 = vld [vmem:[%s3544_s5 + $0x70] sm:$0xff]  ;;  %s3470_s29 = scalar_lea.vmem %s3546_s7, %s2084_s15 }
  0x10   : > { %v279_v11 = vld [vmem:[%s2500_s18] sm:$0xff]  ;;  %v280_v25 = vld [vmem:[%s2500_s18 + $0x8] sm:$0xff]  ;;  %v281_v26 = vld [vmem:[%s2500_s18 + $0x10] sm:$0xff]  ;;  %650 = vst [vmem:[#allocation2 + $0xd8] sm:$0xff] %v2425_v59 }
  0x11   : > { %2214 = vmatprep.mubr.f32.mxu0 %v279_v11  ;;  %2353 = vmatpush3.bf16.msra.mxu0 %v2350_v8  ;;  %v282_v27 = vld [vmem:[%s2500_s18 + $0x18] sm:$0xff]  ;;  %v283_v28 = vld [vmem:[%s2500_s18 + $0x20] sm:$0xff]  ;;  %v284_v29 = vld [vmem:[%s2500_s18 + $0x28] sm:$0xff]  ;;  %651 = vst [vmem:[#allocation2 + $0xe0] sm:$0xff] %v2425_v59 }
  0x12   : > { %2355 = vmatprep.subr.bf16.mxu0 %v2354_v12  ;;  %v285_v30 = vld [vmem:[%s2500_s18 + $0x30] sm:$0xff]  ;;  %v286_v31 = vld [vmem:[%s2500_s18 + $0x38] sm:$0xff]  ;;  %v287_v32 = vld [vmem:[%s2500_s18 + $0x40] sm:$0xff]  ;;  %654 = vst [vmem:[#allocation2 + $0xf8] sm:$0xff] %v2425_v59  ;;  %2381 = vmatpush3.bf16.msra.mxu1 %v2378_v62 }
  0x13   : > { %v288_v33 = vld [vmem:[%s2500_s18 + $0x48] sm:$0xff]  ;;  %v289_v34 = vld [vmem:[%s2500_s18 + $0x50] sm:$0xff]  ;;  %v290_v35 = vld [vmem:[%s2500_s18 + $0x58] sm:$0xff]  ;;  %655 = vst [vmem:[#allocation2 + $0x100] sm:$0xff] %v2425_v59  ;;  %2383 = vmatprep.subr.bf16.mxu1 %v2382_v1 }
  0x14   : > { %v291_v36 = vld [vmem:[%s2500_s18 + $0x60] sm:$0xff]  ;;  %v292_v37 = vld [vmem:[%s2500_s18 + $0x68] sm:$0xff]  ;;  %v293_v38 = vld [vmem:[%s2500_s18 + $0x70] sm:$0xff]  ;;  %658 = vst [vmem:[#allocation2 + $0x118] sm:$0xff] %v2425_v59 }
  0x15   : > { %2357 = vmatpush3.bf16.msra.mxu0 %v2354_v12  ;;  %v294_v39 = vld [vmem:[%s2500_s18 + $0x78] sm:$0xff]  ;;  %v295_v40 = vld [vmem:[%s2500_s18 + $0x80] sm:$0xff]  ;;  %v296_v41 = vld [vmem:[%s2500_s18 + $0x88] sm:$0xff]  ;;  %659 = vst [vmem:[#allocation2 + $0x120] sm:$0xff] %v2425_v59 }
  0x16   : > { %2359 = vmatprep.subr.bf16.mxu0 %v2358_v15  ;;  %v297_v42 = vld [vmem:[%s2500_s18 + $0x90] sm:$0xff]  ;;  %v298_v43 = vld [vmem:[%s2500_s18 + $0x98] sm:$0xff]  ;;  %v299_v44 = vld [vmem:[%s2500_s18 + $0xa0] sm:$0xff]  ;;  %662 = vst [vmem:[#allocation2 + $0x138] sm:$0xff] %v2425_v59  ;;  %2385 = vmatpush3.bf16.msra.mxu1 %v2382_v1 }
  0x17   : > { %v300_v45 = vld [vmem:[%s2500_s18 + $0xa8] sm:$0xff]  ;;  %v301_v46 = vld [vmem:[%s2500_s18 + $0xb0] sm:$0xff]  ;;  %v302_v47 = vld [vmem:[%s2500_s18 + $0xb8] sm:$0xff]  ;;  %663 = vst [vmem:[#allocation2 + $0x140] sm:$0xff] %v2425_v59  ;;  %2387 = vmatprep.subr.bf16.mxu1 %v2386_v4 }
  0x18   : > { %v303_v48 = vld [vmem:[%s2500_s18 + $0xc0] sm:$0xff]  ;;  %v304_v49 = vld [vmem:[%s2500_s18 + $0xc8] sm:$0xff]  ;;  %v305_v50 = vld [vmem:[%s2500_s18 + $0xd0] sm:$0xff]  ;;  %666 = vst [vmem:[#allocation2 + $0x158] sm:$0xff] %v2425_v59 }
  0x19   : > { %2361 = vmatpush3.bf16.msra.mxu0 %v2358_v15  ;;  %v306_v51 = vld [vmem:[%s2500_s18 + $0xd8] sm:$0xff]  ;;  %v307_v52 = vld [vmem:[%s2500_s18 + $0xe0] sm:$0xff]  ;;  %v308_v53 = vld [vmem:[%s2500_s18 + $0xe8] sm:$0xff]  ;;  %667 = vst [vmem:[#allocation2 + $0x160] sm:$0xff] %v2425_v59 }
  0x1a   : > { %2363 = vmatprep.subr.bf16.mxu0 %v2362_v18  ;;  %v309_v54 = vld [vmem:[%s2500_s18 + $0xf0] sm:$0xff]  ;;  %v310_v55 = vld [vmem:[%s2500_s18 + $0xf8] sm:$0xff]  ;;  %670 = vst [vmem:[#allocation2 + $0x178] sm:$0xff] %v2425_v59  ;;  %671 = vst [vmem:[#allocation2 + $0x180] sm:$0xff] %v2425_v59  ;;  %2389 = vmatpush3.bf16.msra.mxu1 %v2386_v4 }
  0x1b   : > { %674 = vst [vmem:[#allocation2 + $0x198] sm:$0xff] %v2425_v59  ;;  %675 = vst [vmem:[#allocation2 + $0x1a0] sm:$0xff] %v2425_v59  ;;  %2391 = vmatprep.subr.bf16.mxu1 %v2390_v7  ;;  %v1745_v8 = vld [vmem:[%s3544_s5 + $0x50] sm:$0xff]  ;;  %v1747_v11 = vld [vmem:[%s3544_s5 + $0x60] sm:$0xff] }
  0x1c   : > { %678 = vst [vmem:[#allocation2 + $0x1b8] sm:$0xff] %v2425_v59  ;;  %679 = vst [vmem:[#allocation2 + $0x1c0] sm:$0xff] %v2425_v59  ;;  %v2394_v10 = vpack.c.bf16 %v1746_v9, %v1745_v8  ;;  %v1748_v12 = vld [vmem:[%s3544_s5 + $0x68] sm:$0xff]  ;;  %v1750_v15 = vld [vmem:[%s3544_s5 + $0x78] sm:$0xff] }
  0x1d   : > { %2365 = vmatpush3.bf16.msra.mxu0 %v2362_v18  ;;  %682 = vst [vmem:[#allocation2 + $0x1d8] sm:$0xff] %v2425_v59  ;;  %683 = vst [vmem:[#allocation2 + $0x1e0] sm:$0xff] %v2425_v59  ;;  %v2398_v13 = vpack.c.bf16 %v1748_v12, %v1747_v11  ;;  %v2402_v16 = vpack.c.bf16 %v1750_v15, %v1749_v14  ;;  %v764_v18 = vshrl.u32 %v763_v17, 7  ;;  %v2618_v22 = vld [vmem:[%s3541_s2] ss:$0 sm:$0xff] }
  0x1e   : > { %2367 = vmatprep.subr.bf16.mxu0 %v2366_v21  ;;  %686 = vst [vmem:[#allocation2 + $0x1f8] sm:$0xff] %v2425_v59  ;;  %687 = vst [vmem:[#allocation2 + $0x200] sm:$0xff] %v2425_v59  ;;  %2393 = vmatpush3.bf16.msra.mxu1 %v2390_v7 }
  0x1f   : > { %690 = vst [vmem:[#allocation2 + $0x218] sm:$0xff] %v2425_v59  ;;  %691 = vst [vmem:[#allocation2 + $0x220] sm:$0xff] %v2425_v59  ;;  %2395 = vmatprep.subr.bf16.mxu1 %v2394_v10  ;;  %v765_v19 = vsub.s32 0, %v764_v18  ;;  %v865_v20 = vsub.s32 1, %v764_v18 }
  0x20   : > { %692 = vst [vmem:[#allocation2 + $0x228] sm:$0xff] %v2425_v59  ;;  %693 = vst [vmem:[#allocation2 + $0x230] sm:$0xff] %v2425_v59 }
  0x21   : > { %2369 = vmatpush3.bf16.msra.mxu0 %v2366_v21  ;;  %694 = vst [vmem:[#allocation2 + $0x238] sm:$0xff] %v2425_v59  ;;  %v728_v21 = vld [vmem:[%s3542_s3] sm:$0x7] }
  0x22   : > { %2371 = vmatprep.subr.bf16.mxu0 %v2370_v24  ;;  %2397 = vmatpush3.bf16.msra.mxu1 %v2394_v10  ;;  %v2620_v23 = vrot.slane %v728_v21, %v765_v19 }
  0x23   : > { %2399 = vmatprep.subr.bf16.mxu1 %v2398_v13 }
  0x25   : > { %2373 = vmatpush3.bf16.msra.mxu0 %v2370_v24  ;;  %v965_v24 = vsub.s32 2, %v764_v18 }
  0x26   : > { %2401 = vmatpush3.bf16.msra.mxu1 %v2398_v13 }
  0x27   : > { %2403 = vmatprep.subr.bf16.mxu1 %v2402_v16 }
  0x28   : > { %2215 = vmatmul.mubr.f32.vlgmr.msra.gmra.mrb[0].mxu0 %v280_v25  ;;  %v731_v25 = vld [vmem:[#allocation2 + $0x7] sm:$0xff] }
  0x29   : > { %2217 = vmatprep.mubr.f32.mxu0 %v281_v26 }
  0x2a   : > { %2405 = vmatpush3.bf16.msra.mxu1 %v2402_v16 }
  0x2c   : > { %2218 = vmatmul.mubr.f32.gmra.mrb[2].mxu0 %v282_v27  ;;  %v2622_v27 = vrot.slane %v728_v21, %v865_v20 }
  0x2d   : > { %2220 = vmatprep.mubr.f32.mxu0 %v283_v28  ;;  %v732_v28 = vld [vmem:[#allocation2 + $0xf] sm:$0xff] }
  0x30   : > { %2221 = vmatmul.mubr.f32.gmra.mrb[4].mxu0 %v284_v29 }
  0x31   : > { %2223 = vmatprep.mubr.f32.mxu0 %v285_v30 }
  0x34   : > { %2224 = vmatmul.mubr.f32.gmra.mrb[6].mxu0 %v286_v31 }
  0x35   : > { %2226 = vmatprep.mubr.f32.mxu0 %v287_v32  ;;  %v767_v32 = vmul.f32 %v2620_v23, %v731_v25 }
  0x38   : > { %2227 = vmatmul.mubr.f32.gmra.mrb[8].mxu0 %v288_v33  ;;  %v867_v33 = vmul.f32 0.0, %v2622_v27 }
  0x39   : > { %2229 = vmatprep.mubr.f32.mxu0 %v289_v34  ;;  %v2628_v34 = vrot.slane %v728_v21, %v965_v24 }
  0x3c   : > { %2230 = vmatmul.mubr.f32.gmra.mrb[10].mxu0 %v290_v35 }
  0x3d   : > { %2232 = vmatprep.mubr.f32.mxu0 %v291_v36  ;;  %v931_v36 = vld [vmem:[#allocation2 + $0x9] sm:$0xff] }
  0x40   : > { %2233 = vmatmul.mubr.f32.gmra.mrb[12].mxu0 %v292_v37  ;;  %v768_v37 = vmul.f32 %v2620_v23, %v732_v28 }
  0x41   : > { %2235 = vmatprep.mubr.f32.mxu0 %v293_v38 }
  0x44   : > { %2236 = vmatmul.mubr.f32.gmra.mrb[14].mxu0 %v294_v39 }
  0x45   : > { %2238 = vmatprep.mubr.f32.mxu0 %v295_v40  ;;  %v932_v40 = vld [vmem:[#allocation2 + $0x11] sm:$0xff] }
  0x48   : > { %2239 = vmatmul.mubr.f32.gmra.mrb[16].mxu0 %v296_v41 }
  0x49   : > { %2241 = vmatprep.mubr.f32.mxu0 %v297_v42 }
  0x4c   : > { %2242 = vmatmul.mubr.f32.gmra.mrb[18].mxu0 %v298_v43 }
  0x4d   : > { %2244 = vmatprep.mubr.f32.mxu0 %v299_v44  ;;  %v729_v44 = vld [vmem:[%s3542_s3 + $0x4] sm:$0x7] }
  0x4e   : > { %v2646_v59 = vrot.slane %v729_v44, %v965_v24  ;;  %v2651_v0 = vrot.slane %v729_v44, %v765_v19 }
  0x50   : > { %2245 = vmatmul.mubr.f32.gmra.mrb[20].mxu0 %v300_v45 }
  0x51   : > { %2247 = vmatprep.mubr.f32.mxu0 %v301_v46 }
  0x54   : > { %2248 = vmatmul.mubr.f32.gmra.mrb[22].mxu0 %v302_v47  ;;  %v730_v47 = vld [vmem:[%s3542_s3 + $0x8] sm:$0x7] }
  0x55   : > { %2250 = vmatprep.mubr.f32.mxu0 %v303_v48  ;;  %v899_v48 = vadd.f32 %v867_v33, %v767_v32  ;;  %v2648_v60 = vrot.slane %v730_v47, %v865_v20  ;;  %v2654_v2 = vrot.slane %v730_v47, %v765_v19  ;;  %v2656_v3 = vrot.slane %v730_v47, %v965_v24 }
  0x58   : > { %2251 = vmatmul.mubr.f32.gmra.mrb[24].mxu0 %v304_v49  ;;  %v967_v49 = vmul.f32 %v2628_v34, %v931_v36 }
  0x59   : > { %2253 = vmatprep.mubr.f32.mxu0 %v305_v50 }
  0x5a   : > { %v999_v63 = vadd.f32 %v967_v49, %v899_v48 }
  0x5c   : > { %2254 = vmatmul.mubr.f32.gmra.mrb[26].mxu0 %v306_v51  ;;  %v900_v51 = vadd.f32 %v867_v33, %v768_v37 }
  0x5d   : > { %2256 = vmatprep.mubr.f32.mxu0 %v307_v52  ;;  %v968_v52 = vmul.f32 %v2628_v34, %v932_v40 }
  0x5f   : > { %v1000_v4 = vadd.f32 %v968_v52, %v900_v51 }
  0x60   : > { %2257 = vmatmul.mubr.f32.gmra.mrb[28].mxu0 %v308_v53 }
  0x61   : > { %2259 = vmatprep.mubr.f32.mxu0 %v309_v54 }
  0x64   : > { %2260 = vmatmul.mubr.f32.gmra.mrb[30].mxu0 %v310_v55  ;;  %v2641_v55 = vrot.slane %v729_v44, %v865_v20 }
  0xfb   : > { %v2216_v26 = vpop.f32.mrb[0].mxu0 }
  0xfc   : > { %v406_v29 = vadd.f32 %v2216_v26, %v2618_v22  ;;  %v400_v30 = vpop.f32.mrb[1].mxu0 }
  0xfd   : > { %v401_v31 = vadd.f32 %v2618_v22, %v400_v30 }
  0xfe   : > { %v560_v35 = vmax.f32 %v406_v29, 0.0 }
  0xff   : > { %v559_v38 = vmax.f32 %v401_v31, 0.0  ;;  %v2219_v39 = vpop.f32.mrb[2].mxu0 }
 0x100   : > { %v592_v41 = vmin.f32 %v560_v35, 6.0  ;;  %v416_v42 = vadd.f32 %v2219_v39, %v2618_v22  ;;  %v410_v43 = vpop.f32.mrb[3].mxu0 }
 0x101   : > { %v591_v45 = vmin.f32 %v559_v38, 6.0  ;;  %v411_v46 = vadd.f32 %v2618_v22, %v410_v43 }
 0x102   : > { %697 = vst [vmem:[#allocation2 + $0x30] sm:$0xff] %v592_v41  ;;  %v562_v50 = vmax.f32 %v416_v42, 0.0  ;;  %v1168_v8 = vmul.f32 %v2641_v55, %v592_v41  ;;  %v2661_v9 = vmul.f32 %v2622_v27, %v592_v41 }
 0x103   : > { %696 = vst [vmem:[#allocation2 + $0x28] sm:$0xff] %v591_v45  ;;  %v561_v53 = vmax.f32 %v411_v46, 0.0  ;;  %v2222_v54 = vpop.f32.mrb[4].mxu0  ;;  %v1167_v7 = vmul.f32 %v2641_v55, %v591_v45  ;;  %v869_v14 = vmul.f32 %v2622_v27, %v591_v45 }
 0x104   : > { %v2643_v56 = vmin.f32 %v562_v50, 6.0  ;;  %v426_v57 = vadd.f32 %v2222_v54, %v2618_v22  ;;  %v420_v58 = vpop.f32.mrb[5].mxu0 }
 0x105   : > { %v593_v61 = vmin.f32 %v561_v53, 6.0  ;;  %v421_v62 = vadd.f32 %v2618_v22, %v420_v58 }
 0x106   : > { %699 = vst [vmem:[#allocation2 + $0x50] sm:$0xff] %v2643_v56  ;;  %v564_v1 = vmax.f32 %v426_v57, 0.0  ;;  %v2668_v13 = vmul.f32 %v2648_v60, %v2643_v56  ;;  %v2679_v19 = vmul.f32 %v2641_v55, %v2643_v56 }
 0x107   : > { %698 = vst [vmem:[#allocation2 + $0x48] sm:$0xff] %v593_v61  ;;  %v563_v5 = vmax.f32 %v421_v62, 0.0  ;;  %v2225_v6 = vpop.f32.mrb[6].mxu0  ;;  %v2675_v17 = vmul.f32 %v2648_v60, %v593_v61  ;;  %v2686_v28 = vmul.f32 %v2641_v55, %v593_v61  ;;  %v2689_v29 = vmul.f32 %v2622_v27, %v593_v61 }
 0x108   : > { %v2663_v10 = vmin.f32 %v564_v1, 6.0  ;;  %v436_v11 = vadd.f32 %v2225_v6, %v2618_v22  ;;  %v430_v12 = vpop.f32.mrb[7].mxu0 }
 0x109   : > { %v2671_v15 = vmin.f32 %v563_v5, 6.0  ;;  %v431_v16 = vadd.f32 %v2618_v22, %v430_v12  ;;  %v1232_v18 = vld [vmem:[#allocation2 + $0x31] sm:$0xff] }
 0x10a   : > { %701 = vst [vmem:[#allocation2 + $0x70] sm:$0xff] %v2663_v10  ;;  %v566_v20 = vmax.f32 %v436_v11, 0.0  ;;  %v1031_v21 = vld [vmem:[#allocation2 + $0x27] sm:$0xff]  ;;  %v2682_v25 = vld [vmem:[#allocation2 + $0x2f] sm:$0xff]  ;;  %v1268_v26 = vmul.f32 %v2646_v59, %v1232_v18  ;;  %v2696_v35 = vmul.f32 %v1232_v18, %v2628_v34 }
 0x10b   : > { %v1231_v24 = vld [vmem:[#allocation2 + $0x29] sm:$0xff]  ;;  %700 = vst [vmem:[#allocation2 + $0x68] sm:$0xff] %v2671_v15  ;;  %v565_v30 = vmax.f32 %v431_v16, 0.0  ;;  %v2228_v31 = vpop.f32.mrb[8].mxu0  ;;  %v1067_v32 = vmul.f32 %v2651_v0, %v1031_v21  ;;  %v1068_v33 = vmul.f32 %v2651_v0, %v2682_v25  ;;  %v769_v40 = vmul.f32 %v1031_v21, %v2620_v23 }
 0x10c   : > { %v2698_v36 = vmin.f32 %v566_v20, 6.0  ;;  %v446_v37 = vadd.f32 %v2228_v31, %v2618_v22  ;;  %v440_v38 = vpop.f32.mrb[9].mxu0  ;;  %v1267_v39 = vmul.f32 %v2646_v59, %v1231_v24  ;;  %v969_v51 = vmul.f32 %v1231_v24, %v2628_v34 }
 0x10d   : > { %v2703_v41 = vmin.f32 %v565_v30, 6.0  ;;  %v441_v42 = vadd.f32 %v2618_v22, %v440_v38  ;;  %v1099_v43 = vadd.f32 %v1067_v32, %v999_v63  ;;  %v1100_v44 = vadd.f32 %v1068_v33, %v1000_v4  ;;  %v2706_v45 = vld [vmem:[#allocation2 + $0x51] sm:$0xff] }
 0x10e   : > { %703 = vst [vmem:[#allocation2 + $0x90] sm:$0xff] %v2698_v36  ;;  %v568_v46 = vmax.f32 %v446_v37, 0.0  ;;  %v2709_v47 = vld [vmem:[#allocation2 + $0x47] sm:$0xff]  ;;  %v1569_v49 = vmul.f32 %v2656_v3, %v2706_v45  ;;  %v901_v50 = vadd.f32 %v869_v14, %v769_v40  ;;  %v2719_v58 = vld [vmem:[#allocation2 + $0x4f] sm:$0xff]  ;;  %v2723_v61 = vmul.f32 %v2648_v60, %v2671_v15 }
 0x10f   : > { %v2711_v48 = vld [vmem:[#allocation2 + $0x49] sm:$0xff]  ;;  %702 = vst [vmem:[#allocation2 + $0x88] sm:$0xff] %v2703_v41  ;;  %v567_v52 = vmax.f32 %v441_v42, 0.0  ;;  %v2231_v53 = vpop.f32.mrb[10].mxu0  ;;  %v1199_v54 = vadd.f32 %v1167_v7, %v1099_v43  ;;  %v1368_v57 = vmul.f32 %v2654_v2, %v2709_v47  ;;  %v1200_v5 = vadd.f32 %v1168_v8, %v1100_v44 }
 0x110   : > { %v2725_v62 = vmin.f32 %v568_v46, 6.0  ;;  %v456_v63 = vadd.f32 %v2231_v53, %v2618_v22  ;;  %v450_v1 = vpop.f32.mrb[11].mxu0  ;;  %v1568_v4 = vmul.f32 %v2656_v3, %v2711_v48  ;;  %v1001_v12 = vadd.f32 %v969_v51, %v901_v50  ;;  %v2760_v51 = vld [vmem:[%s3543_s4] ss:$0 sm:$0xff] }
 0x111   : > { %v2730_v6 = vmin.f32 %v567_v52, 6.0  ;;  %v451_v7 = vadd.f32 %v2618_v22, %v450_v1  ;;  %v1299_v11 = vadd.f32 %v1267_v39, %v1199_v54  ;;  %v1300_v16 = vadd.f32 %v1268_v26, %v1200_v5 }
 0x112   : > { %705 = vst [vmem:[#allocation2 + $0xb0] sm:$0xff] %v2725_v62  ;;  %v570_v14 = vmax.f32 %v456_v63, 0.0  ;;  %v1369_v18 = vmul.f32 %v2654_v2, %v2719_v58  ;;  %v1069_v20 = vmul.f32 %v2709_v47, %v2651_v0  ;;  %v2738_v21 = vld [vmem:[#allocation2 + $0x67] sm:$0xff]  ;;  %v1269_v31 = vmul.f32 %v2711_v48, %v2646_v59 }
 0x113   : > { %704 = vst [vmem:[#allocation2 + $0xa8] sm:$0xff] %v2730_v6  ;;  %v569_v8 = vmax.f32 %v451_v7, 0.0  ;;  %v2234_v24 = vpop.f32.mrb[12].mxu0  ;;  %v1400_v30 = vadd.f32 %v1368_v57, %v1299_v11  ;;  %v1370_v32 = vmul.f32 %v2654_v2, %v2738_v21  ;;  %v2745_v26 = vld [vmem:[#allocation2 + $0x69] sm:$0xff]  ;;  %v770_v46 = vmul.f32 %v2682_v25, %v2620_v23 }
 0x114   : > { %v2747_v33 = vmin.f32 %v570_v14, 6.0  ;;  %v466_v37 = vadd.f32 %v2234_v24, %v2618_v22  ;;  %v460_v38 = vpop.f32.mrb[13].mxu0  ;;  %v1401_v39 = vadd.f32 %v1369_v18, %v1300_v16  ;;  %v1101_v40 = vadd.f32 %v1069_v20, %v1001_v12  ;;  %v2773_v12 = vld [vmem:[#allocation2 + $0x6f] sm:$0xff] }
 0x115   : > { %v2750_v42 = vmin.f32 %v569_v8, 6.0  ;;  %v461_v43 = vadd.f32 %v2618_v22, %v460_v38  ;;  %v1500_v44 = vadd.f32 %v2675_v17, %v1400_v30  ;;  %v1570_v54 = vmul.f32 %v2656_v3, %v2745_v26 }
 0x116   : > { %707 = vst [vmem:[#allocation2 + $0xd0] sm:$0xff] %v2747_v33  ;;  %v572_v50 = vmax.f32 %v466_v37, 0.0  ;;  %v1501_v52 = vadd.f32 %v2668_v13, %v1401_v39  ;;  %v1201_v53 = vadd.f32 %v2686_v28, %v1101_v40  ;;  %v902_v63 = vadd.f32 %v2661_v9, %v770_v46 }
 0x117   : > { %706 = vst [vmem:[#allocation2 + $0xc8] sm:$0xff] %v2750_v42  ;;  %v571_v17 = vmax.f32 %v461_v43, 0.0  ;;  %v2237_v57 = vpop.f32.mrb[14].mxu0  ;;  %v1600_v25 = vadd.f32 %v1568_v4, %v1500_v44  ;;  %v1070_v1 = vmul.f32 %v2719_v58, %v2651_v0  ;;  %v1371_v38 = vmul.f32 %v2654_v2, %v2773_v12 }
 0x118   : > { %v2770_v5 = vmin.f32 %v572_v50, 6.0  ;;  %v476_v7 = vadd.f32 %v2237_v57, %v2618_v22  ;;  %v470_v13 = vpop.f32.mrb[15].mxu0  ;;  %v1601_v11 = vadd.f32 %v1569_v49, %v1501_v52  ;;  %v1301_v28 = vadd.f32 %v1269_v31, %v1201_v53 }
 0x119   : > { %v2775_v14 = vmin.f32 %v571_v17, 6.0  ;;  %v471_v16 = vadd.f32 %v2618_v22, %v470_v13  ;;  %v1639_v4 = vadd.f32 %v2760_v51, %v1600_v25  ;;  %v1002_v9 = vadd.f32 %v2696_v35, %v902_v63 }
 0x11a   : > { %709 = vst [vmem:[#allocation2 + $0xf0] sm:$0xff] %v2770_v5  ;;  %v574_v18 = vmax.f32 %v476_v7, 0.0  ;;  %v1640_v20 = vadd.f32 %v2760_v51, %v1601_v11  ;;  %v1402_v8 = vadd.f32 %v1370_v32, %v1301_v28  ;;  %v1270_v49 = vmul.f32 %v2706_v45, %v2646_v59 }
 0x11b   : > { %708 = vst [vmem:[#allocation2 + $0xe8] sm:$0xff] %v2775_v14  ;;  %v573_v24 = vmax.f32 %v471_v16, 0.0  ;;  %v2240_v30 = vpop.f32.mrb[16].mxu0  ;;  %v1671_v31 = vmax.f32 %v1639_v4, 0.0  ;;  %v1102_v37 = vadd.f32 %v1070_v1, %v1002_v9  ;;  %v771_v25 = vmul.f32 %v2709_v47, %v2620_v23  ;;  %v2802_v47 = vld [vmem:[#allocation2 + $0x71] sm:$0xff] }
 0x11c   : > { %v606_v39 = vmin.f32 %v574_v18, 6.0  ;;  %v486_v35 = vadd.f32 %v2240_v30, %v2618_v22  ;;  %v480_v40 = vpop.f32.mrb[17].mxu0  ;;  %v1672_v43 = vmax.f32 %v1640_v20, 0.0  ;;  %v1502_v44 = vadd.f32 %v2723_v61, %v1402_v8 }
 0x11d   : > { %v2789_v32 = vmin.f32 %v573_v24, 6.0  ;;  %v481_v46 = vadd.f32 %v2618_v22, %v480_v40  ;;  %v1703_v50 = vmin.f32 %v1671_v31, 6.0  ;;  %v1202_v52 = vadd.f32 %v2679_v19, %v1102_v37 }
 0x11e   : > { %711 = vst [vmem:[#allocation2 + $0x110] sm:$0xff] %v606_v39  ;;  %v576_v53 = vmax.f32 %v486_v35, 0.0  ;;  %v1704_v17 = vmin.f32 %v1672_v43, 6.0  ;;  %v1602_v57 = vadd.f32 %v1570_v54, %v1502_v44  ;;  %v971_v7 = vmul.f32 %v2711_v48, %v2628_v34  ;;  %v2814_v39 = vld [vmem:[#allocation2 + $0x87] sm:$0xff] }
 0x11f   : > { %710 = vst [vmem:[#allocation2 + $0x108] sm:$0xff] %v2789_v32  ;;  %v575_v63 = vmax.f32 %v481_v46, 0.0  ;;  %v2243_v1 = vpop.f32.mrb[18].mxu0  ;;  %2294 = vmatprep.mubr.f32.mxu1 %v1703_v50  ;;  %v1302_v61 = vadd.f32 %v1270_v49, %v1202_v52  ;;  %v1071_v13 = vmul.f32 %v2738_v21, %v2651_v0  ;;  %v903_v16 = vadd.f32 %v2689_v29, %v771_v25 }
 0x120   : > { %v608_v19 = vmin.f32 %v576_v53, 6.0  ;;  %v496_v11 = vadd.f32 %v2243_v1, %v2618_v22  ;;  %v490_v28 = vpop.f32.mrb[19].mxu0  ;;  %2295 = vmatmul.mubr.f32.vlgmr.msra.gmra.mrb[0].mxu1 %v1704_v17  ;;  %v1641_v54 = vadd.f32 %v2760_v51, %v1602_v57  ;;  %v1471_v48 = vmul.f32 %v2648_v60, %v2663_v10 }
 0x121   : > { %v607_v4 = vmin.f32 %v575_v63, 6.0  ;;  %v491_v9 = vadd.f32 %v2618_v22, %v490_v28  ;;  %v1403_v18 = vadd.f32 %v1371_v38, %v1302_v61  ;;  %v1003_v49 = vadd.f32 %v971_v7, %v903_v16  ;;  %v2830_v16 = vld [vmem:[#allocation2 + $0x89] sm:$0xff] }
 0x122   : > { %713 = vst [vmem:[#allocation2 + $0x130] sm:$0xff] %v608_v19  ;;  %v578_v20 = vmax.f32 %v496_v11, 0.0  ;;  %v1673_v8 = vmax.f32 %v1641_v54, 0.0  ;;  %v872_v24 = vmul.f32 %v2622_v27, %v2643_v56  ;;  %v1571_v29 = vmul.f32 %v2656_v3, %v2802_v47 }
 0x123   : > { %712 = vst [vmem:[#allocation2 + $0x128] sm:$0xff] %v607_v4  ;;  %v577_v30 = vmax.f32 %v491_v9, 0.0  ;;  %v2246_v31 = vpop.f32.mrb[20].mxu0  ;;  %v1503_v37 = vadd.f32 %v1471_v48, %v1403_v18  ;;  %v1171_v38 = vmul.f32 %v2641_v55, %v2671_v15  ;;  %v1103_v46 = vadd.f32 %v1071_v13, %v1003_v49 }
 0x124   : > { %v610_v35 = vmin.f32 %v578_v20, 6.0  ;;  %v506_v40 = vadd.f32 %v2246_v31, %v2618_v22  ;;  %v1705_v43 = vmin.f32 %v1673_v8, 6.0  ;;  %v500_v44 = vpop.f32.mrb[21].mxu0  ;;  %v1271_v53 = vmul.f32 %v2745_v26, %v2646_v59 }
 0x125   : > { %v609_v50 = vmin.f32 %v577_v30, 6.0  ;;  %v501_v56 = vadd.f32 %v2618_v22, %v500_v44  ;;  %v1603_v52 = vadd.f32 %v1571_v29, %v1503_v37  ;;  %v1203_v57 = vadd.f32 %v1171_v38, %v1103_v46 }
 0x126   : > { %715 = vst [vmem:[#allocation2 + $0x150] sm:$0xff] %v610_v35  ;;  %v580_v17 = vmax.f32 %v506_v40, 0.0  ;;  %2297 = vmatprep.mubr.f32.mxu1 %v1705_v43  ;;  %v1372_v25 = vmul.f32 %v2654_v2, %v2814_v39  ;;  %v772_v63 = vmul.f32 %v2719_v58, %v2620_v23  ;;  %v972_v13 = vmul.f32 %v2706_v45, %v2628_v34  ;;  %v2839_v43 = vld [vmem:[#allocation2 + $0x8f] sm:$0xff] }
 0x127   : > { %714 = vst [vmem:[#allocation2 + $0x148] sm:$0xff] %v609_v50  ;;  %v579_v1 = vmax.f32 %v501_v56, 0.0  ;;  %v1642_v61 = vadd.f32 %v2760_v51, %v1603_v52  ;;  %v2249_v7 = vpop.f32.mrb[22].mxu0  ;;  %v1072_v19 = vmul.f32 %v2773_v12, %v2651_v0  ;;  %v1303_v54 = vadd.f32 %v1271_v53, %v1203_v57 }
 0x128   : > { %v612_v11 = vmin.f32 %v580_v17, 6.0  ;;  %v516_v28 = vadd.f32 %v2249_v7, %v2618_v22  ;;  %v510_v4 = vpop.f32.mrb[23].mxu0  ;;  %v904_v9 = vadd.f32 %v872_v24, %v772_v63  ;;  %v1472_v45 = vmul.f32 %v2648_v60, %v2703_v41 }
 0x129   : > { %v611_v58 = vmin.f32 %v579_v1, 6.0  ;;  %v1674_v18 = vmax.f32 %v1642_v61, 0.0  ;;  %v511_v48 = vadd.f32 %v2618_v22, %v510_v4  ;;  %v1404_v8 = vadd.f32 %v1372_v25, %v1303_v54  ;;  %v2850_v25 = vld [vmem:[#allocation2 + $0x91] sm:$0xff] }
 0x12a   : > { %717 = vst [vmem:[#allocation2 + $0x170] sm:$0xff] %v612_v11  ;;  %v582_v20 = vmax.f32 %v516_v28, 0.0  ;;  %v1004_v49 = vadd.f32 %v972_v13, %v904_v9  ;;  %v1572_v31 = vmul.f32 %v2656_v3, %v2830_v16  ;;  %v1172_v24 = vmul.f32 %v2641_v55, %v2663_v10 }
 0x12b   : > { %716 = vst [vmem:[#allocation2 + $0x168] sm:$0xff] %v611_v58  ;;  %v1706_v30 = vmin.f32 %v1674_v18, 6.0  ;;  %v581_v37 = vmax.f32 %v511_v48, 0.0  ;;  %v2252_v29 = vpop.f32.mrb[24].mxu0  ;;  %v1504_v35 = vadd.f32 %v1472_v45, %v1404_v8  ;;  %v773_v56 = vmul.f32 %v2738_v21, %v2620_v23  ;;  %v2869_v8 = vld [vmem:[#allocation2 + $0xa7] sm:$0xff] }
 0x12c   : > { %v614_v38 = vmin.f32 %v582_v20, 6.0  ;;  %v1104_v40 = vadd.f32 %v1072_v19, %v1004_v49  ;;  %v526_v44 = vadd.f32 %v2252_v29, %v2618_v22  ;;  %v520_v46 = vpop.f32.mrb[25].mxu0  ;;  %v873_v52 = vmul.f32 %v2622_v27, %v2671_v15 }
 0x12d   : > { %2298 = vmatmul.mubr.f32.gmra.mrb[2].mxu1 %v1706_v30  ;;  %v2842_v50 = vmin.f32 %v581_v37, 6.0  ;;  %v1604_v53 = vadd.f32 %v1572_v31, %v1504_v35  ;;  %v1272_v57 = vmul.f32 %v2802_v47, %v2646_v59  ;;  %v1373_v1 = vmul.f32 %v2654_v2, %v2839_v43  ;;  %v2875_v31 = vld [vmem:[#allocation2 + $0xa9] sm:$0xff] }
 0x12e   : > { %719 = vst [vmem:[#allocation2 + $0x190] sm:$0xff] %v614_v38  ;;  %v1204_v17 = vadd.f32 %v1172_v24, %v1104_v40  ;;  %v584_v63 = vmax.f32 %v526_v44, 0.0  ;;  %v905_v61 = vadd.f32 %v873_v52, %v773_v56  ;;  %v973_v21 = vmul.f32 %v2745_v26, %v2628_v34 }
 0x12f   : > { %718 = vst [vmem:[#allocation2 + $0x188] sm:$0xff] %v2842_v50  ;;  %v1073_v15 = vmul.f32 %v2814_v39, %v2651_v0  ;;  %v2255_v7 = vpop.f32.mrb[26].mxu0  ;;  %v1643_v13 = vadd.f32 %v2760_v51, %v1604_v53  ;;  %v1473_v11 = vmul.f32 %v2648_v60, %v2698_v36  ;;  %v1573_v4 = vmul.f32 %v2656_v3, %v2850_v25 }
 0x130   : > { %v1304_v19 = vadd.f32 %v1272_v57, %v1204_v17  ;;  %v616_v28 = vmin.f32 %v584_v63, 6.0  ;;  %v530_v54 = vpop.f32.mrb[27].mxu0  ;;  %v1005_v9 = vadd.f32 %v973_v21, %v905_v61  ;;  %v521_v58 = vadd.f32 %v2618_v22, %v520_v46  ;;  %v2897_v61 = vld [vmem:[#allocation2 + $0xaf] sm:$0xff] }
 0x131   : > { %v774_v26 = vmul.f32 %v2773_v12, %v2620_v23  ;;  %v1675_v18 = vmax.f32 %v1643_v13, 0.0  ;;  %v1173_v20 = vmul.f32 %v2641_v55, %v2703_v41  ;;  %v874_v45 = vmul.f32 %v2622_v27, %v2663_v10 }
 0x132   : > { %v1405_v48 = vadd.f32 %v1373_v1, %v1304_v19  ;;  %721 = vst [vmem:[#allocation2 + $0x1b0] sm:$0xff] %v616_v28  ;;  %v1105_v49 = vadd.f32 %v1073_v15, %v1005_v9  ;;  %v1273_v30 = vmul.f32 %v2830_v16, %v2646_v59  ;;  %v583_v37 = vmax.f32 %v521_v58, 0.0  ;;  %v2908_v28 = vld [vmem:[#allocation2 + $0xb1] sm:$0xff] }
 0x133   : > { %v974_v12 = vmul.f32 %v2802_v47, %v2628_v34  ;;  %v2879_v24 = vpop.f32.mrb[28].mxu0  ;;  %v1707_v29 = vmin.f32 %v1675_v18, 6.0  ;;  %v906_v35 = vadd.f32 %v874_v45, %v774_v26  ;;  %v1074_v40 = vmul.f32 %v2839_v43, %v2651_v0 }
 0x134   : > { %v1505_v38 = vadd.f32 %v1473_v11, %v1405_v48  ;;  %v2883_v44 = vpop.f32.mrb[29].mxu0  ;;  %v1205_v10 = vadd.f32 %v1173_v20, %v1105_v49  ;;  %v1374_v46 = vmul.f32 %v2654_v2, %v2869_v8  ;;  %v1474_v56 = vmul.f32 %v2648_v60, %v2730_v6 }
 0x135   : > { %v2889_v52 = vmin.f32 %v583_v37, 6.0  ;;  %2300 = vmatprep.mubr.f32.mxu1 %v1707_v29  ;;  %v1574_v53 = vmul.f32 %v2656_v3, %v2875_v31  ;;  %v1006_v17 = vadd.f32 %v974_v12, %v906_v35  ;;  %v536_v57 = vadd.f32 %v2255_v7, %v2618_v22 }
 0x136   : > { %v1605_v47 = vadd.f32 %v1573_v4, %v1505_v38  ;;  %v1305_v63 = vadd.f32 %v1273_v30, %v1205_v10  ;;  %v1174_v1 = vmul.f32 %v2641_v55, %v2698_v36  ;;  %v775_v21 = vmul.f32 %v2814_v39, %v2620_v23 }
 0x137   : > { %720 = vst [vmem:[#allocation2 + $0x1a8] sm:$0xff] %v2889_v52  ;;  %v875_v15 = vmul.f32 %v2622_v27, %v2703_v41  ;;  %v2903_v13 = vpop.f32.mrb[30].mxu0  ;;  %v1106_v11 = vadd.f32 %v1074_v40, %v1006_v17  ;;  %v1274_v7 = vmul.f32 %v2850_v25, %v2646_v59  ;;  %v586_v4 = vmax.f32 %v536_v57, 0.0 }
 0x138   : > { %v1644_v19 = vadd.f32 %v2760_v51, %v1605_v47  ;;  %v2910_v9 = vpop.f32.mrb[31].mxu0  ;;  %v1406_v58 = vadd.f32 %v1374_v46, %v1305_v63  ;;  %v975_v39 = vmul.f32 %v2830_v16, %v2628_v34  ;;  %v1075_v41 = vmul.f32 %v2869_v8, %v2651_v0 }
 0x139   : > { %v907_v26 = vadd.f32 %v875_v15, %v775_v21  ;;  %v1206_v48 = vadd.f32 %v1174_v1, %v1106_v11  ;;  %v1375_v20 = vmul.f32 %v2654_v2, %v2897_v61  ;;  %v618_v45 = vmin.f32 %v586_v4, 6.0 }
 0x13a   : > { %v1676_v18 = vmax.f32 %v1644_v19, 0.0  ;;  %v1506_v49 = vadd.f32 %v1474_v56, %v1406_v58  ;;  %v1475_v30 = vmul.f32 %v2648_v60, %v2725_v62  ;;  %v1575_v37 = vmul.f32 %v2656_v3, %v2908_v28  ;;  %v2927_v56 = vld [vmem:[#allocation2 + $0xc7] sm:$0xff] }
 0x13b   : > { %v1007_v12 = vadd.f32 %v975_v39, %v907_v26  ;;  %v1306_v38 = vadd.f32 %v1274_v7, %v1206_v48  ;;  %723 = vst [vmem:[#allocation2 + $0x1d0] sm:$0xff] %v618_v45  ;;  %v531_v16 = vadd.f32 %v2618_v22, %v530_v54  ;;  %v776_v35 = vmul.f32 %v2839_v43, %v2620_v23  ;;  %v2946_v39 = vld [vmem:[#allocation2 + $0xc9] sm:$0xff] }
 0x13c   : > { %v1708_v29 = vmin.f32 %v1676_v18, 6.0  ;;  %v1606_v40 = vadd.f32 %v1574_v53, %v1506_v49  ;;  %v1175_v46 = vmul.f32 %v2641_v55, %v2730_v6  ;;  %v876_v47 = vmul.f32 %v2622_v27, %v2698_v36 }
 0x13d   : > { %v1107_v10 = vadd.f32 %v1075_v41, %v1007_v12  ;;  %v1407_v17 = vadd.f32 %v1375_v20, %v1306_v38  ;;  %v1275_v57 = vmul.f32 %v2875_v31, %v2646_v59  ;;  %v585_v63 = vmax.f32 %v531_v16, 0.0 }
 0x13e   : > { %2301 = vmatmul.mubr.f32.gmra.mrb[4].mxu1 %v1708_v29  ;;  %v976_v54 = vmul.f32 %v2850_v25, %v2628_v34  ;;  %v1645_v43 = vadd.f32 %v2760_v51, %v1606_v40  ;;  %v908_v1 = vadd.f32 %v876_v47, %v776_v35  ;;  %v1076_v21 = vmul.f32 %v2897_v61, %v2651_v0 }
 0x13f   : > { %v1207_v53 = vadd.f32 %v1175_v46, %v1107_v10  ;;  %v1507_v15 = vadd.f32 %v1475_v30, %v1407_v17  ;;  %v1376_v36 = vmul.f32 %v2654_v2, %v2927_v56  ;;  %v1476_v19 = vmul.f32 %v2648_v60, %v2750_v42  ;;  %v2955_v30 = vld [vmem:[#allocation2 + $0xcf] sm:$0xff] }
 0x140   : > { %v2942_v11 = vmin.f32 %v585_v63, 6.0  ;;  %v1677_v7 = vmax.f32 %v1645_v43, 0.0  ;;  %v1008_v58 = vadd.f32 %v976_v54, %v908_v1  ;;  %v1176_v25 = vmul.f32 %v2641_v55, %v2725_v62  ;;  %v2968_v10 = vld [vmem:[#allocation2 + $0xd1] sm:$0xff] }
 0x141   : > { %v1307_v4 = vadd.f32 %v1275_v57, %v1207_v53  ;;  %v1607_v26 = vadd.f32 %v1575_v37, %v1507_v15  ;;  %v546_v41 = vadd.f32 %v2879_v24, %v2618_v22  ;;  %v777_v18 = vmul.f32 %v2869_v8, %v2620_v23 }
 0x142   : > { %722 = vst [vmem:[#allocation2 + $0x1c8] sm:$0xff] %v2942_v11  ;;  %v877_v48 = vmul.f32 %v2622_v27, %v2730_v6  ;;  %v1709_v20 = vmin.f32 %v1677_v7, 6.0  ;;  %v1108_v49 = vadd.f32 %v1076_v21, %v1008_v58  ;;  %v977_v37 = vmul.f32 %v2875_v31, %v2628_v34  ;;  %v2981_v7 = vld [vmem:[#allocation2 + $0xe7] sm:$0xff] }
 0x143   : > { %v1408_v45 = vadd.f32 %v1376_v36, %v1307_v4  ;;  %v1646_v12 = vadd.f32 %v2760_v51, %v1607_v26  ;;  %v588_v29 = vmax.f32 %v546_v41, 0.0  ;;  %v1077_v24 = vmul.f32 %v2927_v56, %v2651_v0 }
 0x144   : > { %v909_v38 = vadd.f32 %v877_v48, %v777_v18  ;;  %2303 = vmatprep.mubr.f32.mxu1 %v1709_v20  ;;  %v1576_v6 = vmul.f32 %v2656_v3, %v2946_v39  ;;  %v1208_v16 = vadd.f32 %v1176_v25, %v1108_v49  ;;  %v1276_v35 = vmul.f32 %v2908_v28, %v2646_v59 }
 0x145   : > { %v1508_v8 = vadd.f32 %v1476_v19, %v1408_v45  ;;  %v1678_v40 = vmax.f32 %v1646_v12, 0.0  ;;  %v1377_v31 = vmul.f32 %v2654_v2, %v2955_v30  ;;  %v620_v46 = vmin.f32 %v588_v29, 6.0 }
 0x146   : > { %v1009_v47 = vadd.f32 %v977_v37, %v909_v38  ;;  %v1308_v57 = vadd.f32 %v1276_v35, %v1208_v16  ;;  %v1477_v63 = vmul.f32 %v2648_v60, %v2747_v33  ;;  %v1177_v54 = vmul.f32 %v2641_v55, %v2750_v42 }
 0x147   : > { %v1608_v17 = vadd.f32 %v1576_v6, %v1508_v8  ;;  %v1710_v43 = vmin.f32 %v1678_v40, 6.0  ;;  %725 = vst [vmem:[#allocation2 + $0x1f0] sm:$0xff] %v620_v46  ;;  %v541_v1 = vadd.f32 %v2618_v22, %v2883_v44  ;;  %v778_v21 = vmul.f32 %v2897_v61, %v2620_v23  ;;  %v2987_v44 = vld [vmem:[#allocation2 + $0xe9] sm:$0xff] }
 0x148   : > { %v1109_v53 = vadd.f32 %v1077_v24, %v1009_v47  ;;  %v1409_v36 = vadd.f32 %v1377_v31, %v1308_v57  ;;  %v1577_v19 = vmul.f32 %v2656_v3, %v2968_v10  ;;  %v878_v4 = vmul.f32 %v2622_v27, %v2725_v62  ;;  %v3002_v8 = vld [vmem:[#allocation2 + $0xef] sm:$0xff] }
 0x149   : > { %v1647_v15 = vadd.f32 %v2760_v51, %v1608_v17  ;;  %2304 = vmatmul.mubr.f32.gmra.mrb[6].mxu1 %v1710_v43  ;;  %v1277_v25 = vmul.f32 %v2946_v39, %v2646_v59  ;;  %v587_v26 = vmax.f32 %v541_v1, 0.0  ;;  %v978_v61 = vmul.f32 %v2908_v28, %v2628_v34 }
 0x14a   : > { %v1209_v58 = vadd.f32 %v1177_v54, %v1109_v53  ;;  %v1509_v18 = vadd.f32 %v1477_v63, %v1409_v36  ;;  %v910_v48 = vadd.f32 %v878_v4, %v778_v21  ;;  %v1078_v20 = vmul.f32 %v2955_v30, %v2651_v0  ;;  %v844_v53 = vld [vmem:[#allocation2 + $0xd0] sm:$0xff] }
 0x14b   : > { %v1679_v41 = vmax.f32 %v1647_v15, 0.0  ;;  %v1378_v62 = vmul.f32 %v2654_v2, %v2981_v7  ;;  %v1478_v49 = vmul.f32 %v2648_v60, %v2775_v14  ;;  %v2997_v37 = vmin.f32 %v587_v26, 6.0 }
 0x14c   : > { %v1309_v45 = vadd.f32 %v1277_v25, %v1209_v58  ;;  %v1609_v29 = vadd.f32 %v1577_v19, %v1509_v18  ;;  %v1578_v28 = vmul.f32 %v2656_v3, %v2987_v44  ;;  %v1010_v38 = vadd.f32 %v978_v61, %v910_v48  ;;  %v1543_v25 = vld [vmem:[#allocation2 + $0xf1] sm:$0xff]  ;;  %v3028_v61 = vld [vmem:[#allocation2 + $0x107] sm:$0xff] }
 0x14d   : > { %v1711_v12 = vmin.f32 %v1679_v41, 6.0  ;;  %724 = vst [vmem:[#allocation2 + $0x1e8] sm:$0xff] %v2997_v37  ;;  %v556_v6 = vadd.f32 %v2903_v13, %v2618_v22  ;;  %v779_v16 = vmul.f32 %v2927_v56, %v2620_v23  ;;  %v879_v35 = vmul.f32 %v2622_v27, %v2750_v42 }
 0x14e   : > { %v1410_v24 = vadd.f32 %v1378_v62, %v1309_v45  ;;  %v1648_v40 = vadd.f32 %v2760_v51, %v1609_v29  ;;  %v1110_v31 = vadd.f32 %v1078_v20, %v1010_v38  ;;  %v1178_v46 = vmul.f32 %v2641_v55, %v2747_v33  ;;  %v3037_v45 = vld [vmem:[#allocation2 + $0x109] sm:$0xff] }
 0x14f   : > { %2306 = vmatprep.mubr.f32.mxu1 %v1711_v12  ;;  %v979_v47 = vmul.f32 %v2946_v39, %v2628_v34  ;;  %v590_v57 = vmax.f32 %v556_v6, 0.0  ;;  %v911_v63 = vadd.f32 %v879_v35, %v779_v16  ;;  %v1079_v13 = vmul.f32 %v2981_v7, %v2651_v0 }
 0x150   : > { %v1510_v17 = vadd.f32 %v1478_v49, %v1410_v24  ;;  %v1680_v56 = vmax.f32 %v1648_v40, 0.0  ;;  %v1210_v54 = vadd.f32 %v1178_v46, %v1110_v31  ;;  %v1278_v42 = vmul.f32 %v2968_v10, %v2646_v59  ;;  %v1144_v24 = vld [vmem:[#allocation2 + $0xf0] sm:$0xff] }
 0x151   : > { %v1379_v43 = vmul.f32 %v2654_v2, %v3002_v8  ;;  %v1479_v33 = vmul.f32 %v2648_v60, %v2770_v5  ;;  %v622_v39 = vmin.f32 %v590_v57, 6.0  ;;  %v1011_v21 = vadd.f32 %v979_v47, %v911_v63  ;;  %v3051_v46 = vld [vmem:[#allocation2 + $0x10f] sm:$0xff] }
 0x152   : > { %v1610_v1 = vadd.f32 %v1578_v28, %v1510_v17  ;;  %v1712_v15 = vmin.f32 %v1680_v56, 6.0  ;;  %v1310_v36 = vadd.f32 %v1278_v42, %v1210_v54  ;;  %v1179_v19 = vmul.f32 %v2641_v55, %v2775_v14  ;;  %v3053_v47 = vld [vmem:[#allocation2 + $0x110] sm:$0xff] }
 0x153   : > { %v551_v4 = vadd.f32 %v2618_v22, %v2910_v9  ;;  %727 = vst [vmem:[#allocation2 + $0x210] sm:$0xff] %v622_v39  ;;  %v1111_v26 = vadd.f32 %v1079_v13, %v1011_v21  ;;  %v780_v5 = vmul.f32 %v2955_v30, %v2620_v23  ;;  %v880_v41 = vmul.f32 %v2622_v27, %v844_v53  ;;  %v845_v30 = vld [vmem:[#allocation2 + $0xe8] sm:$0xff]  ;;  %v3060_v54 = vld [vmem:[#allocation2 + $0x111] sm:$0xff] }
 0x154   : > { %v1649_v58 = vadd.f32 %v2760_v51, %v1610_v1  ;;  %2307 = vmatmul.mubr.f32.gmra.mrb[8].mxu1 %v1712_v15  ;;  %v1411_v18 = vadd.f32 %v1379_v43, %v1310_v36  ;;  %v1279_v14 = vmul.f32 %v2987_v44, %v2646_v59  ;;  %v980_v22 = vmul.f32 %v2968_v10, %v2628_v34  ;;  %v1145_v1 = vld [vmem:[#allocation2 + $0x108] sm:$0xff] }
 0x155   : > { %v589_v48 = vmax.f32 %v551_v4, 0.0  ;;  %v1211_v20 = vadd.f32 %v1179_v19, %v1111_v26  ;;  %v912_v62 = vadd.f32 %v880_v41, %v780_v5  ;;  %v1080_v49 = vmul.f32 %v3002_v8, %v2651_v0  ;;  %v3076_v41 = vld [vmem:[#allocation2 + $0x127] sm:$0xff] }
 0x156   : > { %v1681_v9 = vmax.f32 %v1649_v58, 0.0  ;;  %v1511_v12 = vadd.f32 %v1479_v33, %v1411_v18  ;;  %v1579_v29 = vmul.f32 %v2656_v3, %v1543_v25  ;;  %v1380_v28 = vmul.f32 %v2654_v2, %v3028_v61  ;;  %v3078_v18 = vld [vmem:[#allocation2 + $0x128] sm:$0xff] }
 0x157   : > { %v3044_v38 = vmin.f32 %v589_v48, 6.0  ;;  %v1311_v10 = vadd.f32 %v1279_v14, %v1211_v20  ;;  %v1480_v16 = vmul.f32 %v2648_v60, %v2789_v32  ;;  %v1012_v35 = vadd.f32 %v980_v22, %v912_v62  ;;  %v3080_v14 = vld [vmem:[#allocation2 + $0x129] sm:$0xff] }
 0x158   : > { %v1713_v6 = vmin.f32 %v1681_v9, 6.0  ;;  %v1611_v40 = vadd.f32 %v1579_v29, %v1511_v12  ;;  %v1580_v31 = vmul.f32 %v2656_v3, %v3037_v45  ;;  %v781_v17 = vmul.f32 %v2981_v7, %v2620_v23 }
 0x159   : > { %726 = vst [vmem:[#allocation2 + $0x208] sm:$0xff] %v3044_v38  ;;  %v881_v57 = vmul.f32 %v2622_v27, %v845_v30  ;;  %v1412_v63 = vadd.f32 %v1380_v28, %v1311_v10  ;;  %v1112_v13 = vadd.f32 %v1080_v49, %v1012_v35  ;;  %v1180_v32 = vmul.f32 %v2641_v55, %v1144_v24  ;;  %v3095_v10 = vld [vmem:[#allocation2 + $0x12f] sm:$0xff] }
 0x15a   : > { %2309 = vmatprep.mubr.f32.mxu1 %v1713_v6  ;;  %v1280_v56 = vmul.f32 %v1543_v25, %v2646_v59  ;;  %v1650_v42 = vadd.f32 %v2760_v51, %v1611_v40  ;;  %v981_v53 = vmul.f32 %v2987_v44, %v2628_v34  ;;  %v1081_v7 = vmul.f32 %v3028_v61, %v2651_v0 }
 0x15b   : > { %v913_v43 = vadd.f32 %v881_v57, %v781_v17  ;;  %v1512_v33 = vadd.f32 %v1480_v16, %v1412_v63  ;;  %v1212_v39 = vadd.f32 %v1180_v32, %v1112_v13  ;;  %v1381_v21 = vmul.f32 %v2654_v2, %v3051_v46  ;;  %v3103_v63 = vld [vmem:[#allocation2 + $0x130] sm:$0xff] }
 0x15c   : > { %v1481_v15 = vmul.f32 %v2648_v60, %v3053_v47  ;;  %v1682_v36 = vmax.f32 %v1650_v42, 0.0  ;;  %v1581_v19 = vmul.f32 %v2656_v3, %v3060_v54  ;;  %v782_v44 = vmul.f32 %v3002_v8, %v2620_v23  ;;  %v3105_v13 = vld [vmem:[#allocation2 + $0x131] sm:$0xff] }
 0x15d   : > { %v1013_v4 = vadd.f32 %v981_v53, %v913_v43  ;;  %v1612_v58 = vadd.f32 %v1580_v31, %v1512_v33  ;;  %v1312_v26 = vadd.f32 %v1280_v56, %v1212_v39  ;;  %v1181_v5 = vmul.f32 %v2641_v55, %v1145_v1 }
 0x15e   : > { %v882_v48 = vmul.f32 %v1144_v24, %v2622_v27  ;;  %v1714_v22 = vmin.f32 %v1682_v36, 6.0  ;;  %v1281_v20 = vmul.f32 %v3037_v45, %v2646_v59  ;;  %v982_v62 = vmul.f32 %v1543_v25, %v2628_v34 }
 0x15f   : > { %v1113_v9 = vadd.f32 %v1081_v7, %v1013_v4  ;;  %v1651_v8 = vadd.f32 %v2760_v51, %v1612_v58  ;;  %v1413_v49 = vadd.f32 %v1381_v21, %v1312_v26  ;;  %v1082_v12 = vmul.f32 %v3051_v46, %v2651_v0 }
 0x160   : > { %v914_v30 = vadd.f32 %v882_v48, %v782_v44  ;;  %2310 = vmatmul.mubr.f32.gmra.mrb[10].mxu1 %v1714_v22  ;;  %v1382_v28 = vmul.f32 %v2654_v2, %v3076_v41  ;;  %v1482_v24 = vmul.f32 %v2648_v60, %v3078_v18  ;;  %v1582_v6 = vmul.f32 %v2656_v3, %v3080_v14  ;;  %v3119_v44 = vld [vmem:[#allocation2 + $0x147] sm:$0xff] }
 0x161   : > { %v1213_v29 = vadd.f32 %v1181_v5, %v1113_v9  ;;  %v1683_v25 = vmax.f32 %v1651_v8, 0.0  ;;  %v1513_v16 = vadd.f32 %v1481_v15, %v1413_v49  ;;  %v783_v40 = vmul.f32 %v3028_v61, %v2620_v23  ;;  %v3127_v22 = vld [vmem:[#allocation2 + $0x148] sm:$0xff] }
 0x162   : > { %v1014_v35 = vadd.f32 %v982_v62, %v914_v30  ;;  %v1182_v17 = vmul.f32 %v3053_v47, %v2641_v55  ;;  %v1282_v57 = vmul.f32 %v3060_v54, %v2646_v59  ;;  %v883_v32 = vmul.f32 %v1145_v1, %v2622_v27  ;;  %v3131_v8 = vld [vmem:[#allocation2 + $0x149] sm:$0xff] }
 0x163   : > { %v1313_v31 = vadd.f32 %v1281_v20, %v1213_v29  ;;  %v1715_v56 = vmin.f32 %v1683_v25, 6.0  ;;  %v1613_v42 = vadd.f32 %v1581_v19, %v1513_v16  ;;  %v1383_v53 = vmul.f32 %v2654_v2, %v3095_v10 }
 0x164   : > { %v1114_v43 = vadd.f32 %v1082_v12, %v1014_v35  ;;  %v915_v7 = vadd.f32 %v883_v32, %v783_v40  ;;  %v983_v33 = vmul.f32 %v3037_v45, %v2628_v34  ;;  %v1083_v39 = vmul.f32 %v3076_v41, %v2651_v0 }
 0x165   : > { %v1414_v61 = vadd.f32 %v1382_v28, %v1313_v31  ;;  %2312 = vmatprep.mubr.f32.mxu1 %v1715_v56  ;;  %v1652_v21 = vadd.f32 %v2760_v51, %v1613_v42  ;;  %v1483_v1 = vmul.f32 %v2648_v60, %v3103_v63  ;;  %v1583_v36 = vmul.f32 %v2656_v3, %v3105_v13  ;;  %v3150_v56 = vld [vmem:[#allocation2 + $0x14f] sm:$0xff] }
 0x166   : > { %v1214_v15 = vadd.f32 %v1182_v17, %v1114_v43  ;;  %v1015_v4 = vadd.f32 %v983_v33, %v915_v7  ;;  %v784_v45 = vmul.f32 %v3051_v46, %v2620_v23  ;;  %v884_v58 = vmul.f32 %v3053_v47, %v2622_v27  ;;  %v3152_v42 = vld [vmem:[#allocation2 + $0x150] sm:$0xff] }
 0x167   : > { %v1514_v19 = vadd.f32 %v1482_v24, %v1414_v61  ;;  %v1684_v26 = vmax.f32 %v1652_v21, 0.0  ;;  %v1183_v48 = vmul.f32 %v3078_v18, %v2641_v55  ;;  %v984_v9 = vmul.f32 %v3060_v54, %v2628_v34 }
 0x168   : > { %v1314_v5 = vadd.f32 %v1282_v57, %v1214_v15  ;;  %v1115_v62 = vadd.f32 %v1083_v39, %v1015_v4  ;;  %v916_v49 = vadd.f32 %v884_v58, %v784_v45  ;;  %v1084_v46 = vmul.f32 %v3095_v10, %v2651_v0 }
 0x169   : > { %v1614_v20 = vadd.f32 %v1582_v6, %v1514_v19  ;;  %v1716_v30 = vmin.f32 %v1684_v26, 6.0  ;;  %v1283_v12 = vmul.f32 %v3080_v14, %v2646_v59  ;;  %v1384_v29 = vmul.f32 %v2654_v2, %v3119_v44 }
 0x16a   : > { %v1415_v47 = vadd.f32 %v1383_v53, %v1314_v5  ;;  %v1215_v24 = vadd.f32 %v1183_v48, %v1115_v62  ;;  %v1484_v54 = vmul.f32 %v2648_v60, %v3127_v22  ;;  %v1016_v6 = vadd.f32 %v984_v9, %v916_v49  ;;  %v3154_v53 = vld [vmem:[#allocation2 + $0x151] sm:$0xff]  ;;  %v3173_v9 = vld [vmem:[#allocation2 + $0x167] sm:$0xff] }
 0x16b   : > { %v1653_v28 = vadd.f32 %v2760_v51, %v1614_v20  ;;  %2313 = vmatmul.mubr.f32.gmra.mrb[12].mxu1 %v1716_v30  ;;  %v1584_v16 = vmul.f32 %v2656_v3, %v3131_v8  ;;  %v785_v35 = vmul.f32 %v3076_v41, %v2620_v23  ;;  %v885_v40 = vmul.f32 %v3078_v18, %v2622_v27  ;;  %v3175_v20 = vld [vmem:[#allocation2 + $0x168] sm:$0xff] }
 0x16c   : > { %v1515_v25 = vadd.f32 %v1483_v1, %v1415_v47  ;;  %v1315_v17 = vadd.f32 %v1283_v12, %v1215_v24  ;;  %v1116_v57 = vadd.f32 %v1084_v46, %v1016_v6  ;;  %v1184_v32 = vmul.f32 %v3103_v63, %v2641_v55  ;;  %v3181_v47 = vld [vmem:[#allocation2 + $0x169] sm:$0xff] }
 0x16d   : > { %v1685_v31 = vmax.f32 %v1653_v28, 0.0  ;;  %v917_v61 = vadd.f32 %v885_v40, %v785_v35  ;;  %v985_v41 = vmul.f32 %v3080_v14, %v2628_v34  ;;  %v1085_v18 = vmul.f32 %v3119_v44, %v2651_v0 }
 0x16e   : > { %v1615_v43 = vadd.f32 %v1583_v36, %v1515_v25  ;;  %v1416_v33 = vadd.f32 %v1384_v29, %v1315_v17  ;;  %v1216_v39 = vadd.f32 %v1184_v32, %v1116_v57  ;;  %v1284_v21 = vmul.f32 %v3105_v13, %v2646_v59  ;;  %v3198_v32 = vld [vmem:[#allocation2 + $0x16f] sm:$0xff] }
 0x16f   : > { %v1717_v7 = vmin.f32 %v1685_v31, 6.0  ;;  %v1385_v1 = vmul.f32 %v2654_v2, %v3150_v56  ;;  %v1485_v36 = vmul.f32 %v2648_v60, %v3152_v42  ;;  %v1017_v19 = vadd.f32 %v985_v41, %v917_v61 }
 0x170   : > { %v1654_v15 = vadd.f32 %v2760_v51, %v1615_v43  ;;  %v1516_v14 = vadd.f32 %v1484_v54, %v1416_v33  ;;  %v1316_v4 = vadd.f32 %v1284_v21, %v1216_v39  ;;  %v1585_v45 = vmul.f32 %v2656_v3, %v3154_v53  ;;  %v3200_v43 = vld [vmem:[#allocation2 + $0x170] sm:$0xff] }
 0x171   : > { %2315 = vmatprep.mubr.f32.mxu1 %v1717_v7  ;;  %v786_v58 = vmul.f32 %v3095_v10, %v2620_v23  ;;  %v1117_v5 = vadd.f32 %v1085_v18, %v1017_v19  ;;  %v1185_v48 = vmul.f32 %v3127_v22, %v2641_v55  ;;  %v886_v62 = vmul.f32 %v3103_v63, %v2622_v27  ;;  %v3206_v33 = vld [vmem:[#allocation2 + $0x171] sm:$0xff] }
 0x172   : > { %v1686_v26 = vmax.f32 %v1654_v15, 0.0  ;;  %v1616_v49 = vadd.f32 %v1584_v16, %v1516_v14  ;;  %v1417_v46 = vadd.f32 %v1385_v1, %v1316_v4  ;;  %v1285_v30 = vmul.f32 %v3131_v8, %v2646_v59 }
 0x173   : > { %v986_v10 = vmul.f32 %v3105_v13, %v2628_v34  ;;  %v1217_v29 = vadd.f32 %v1185_v48, %v1117_v5  ;;  %v918_v28 = vadd.f32 %v886_v62, %v786_v58  ;;  %v1086_v24 = vmul.f32 %v3150_v56, %v2651_v0  ;;  %v3223_v48 = vld [vmem:[#allocation2 + $0x187] sm:$0xff] }
 0x174   : > { %v1718_v12 = vmin.f32 %v1686_v26, 6.0  ;;  %v1655_v54 = vadd.f32 %v2760_v51, %v1616_v49  ;;  %v1517_v6 = vadd.f32 %v1485_v36, %v1417_v46  ;;  %v1386_v63 = vmul.f32 %v2654_v2, %v3173_v9  ;;  %v3225_v62 = vld [vmem:[#allocation2 + $0x189] sm:$0xff] }
 0x175   : > { %v1486_v25 = vmul.f32 %v2648_v60, %v3175_v20  ;;  %v1317_v16 = vadd.f32 %v1285_v30, %v1217_v29  ;;  %v1586_v13 = vmul.f32 %v2656_v3, %v3181_v47  ;;  %v1018_v35 = vadd.f32 %v986_v10, %v918_v28 }
 0x176   : > { %2316 = vmatmul.mubr.f32.gmra.mrb[14].mxu1 %v1718_v12  ;;  %v787_v40 = vmul.f32 %v3119_v44, %v2620_v23  ;;  %v1687_v31 = vmax.f32 %v1655_v54, 0.0  ;;  %v1617_v17 = vadd.f32 %v1585_v45, %v1517_v6  ;;  %v1186_v57 = vmul.f32 %v3152_v42, %v2641_v55  ;;  %v3236_v12 = vld [vmem:[%s3543_s4] ss:$0 sm:$0xff] }
 0x177   : > { %v887_v61 = vmul.f32 %v3127_v22, %v2622_v27  ;;  %v1418_v41 = vadd.f32 %v1386_v63, %v1317_v16  ;;  %v1118_v18 = vadd.f32 %v1086_v24, %v1018_v35  ;;  %v1286_v7 = vmul.f32 %v3154_v53, %v2646_v59 }
 0x178   : > { %v987_v44 = vmul.f32 %v3131_v8, %v2628_v34  ;;  %v1719_v39 = vmin.f32 %v1687_v31, 6.0  ;;  %v1656_v21 = vadd.f32 %v2760_v51, %v1617_v17  ;;  %v1087_v1 = vmul.f32 %v3173_v9, %v2651_v0 }
 0x179   : > { %v919_v15 = vadd.f32 %v887_v61, %v787_v40  ;;  %v1518_v36 = vadd.f32 %v1486_v25, %v1418_v41  ;;  %v1218_v19 = vadd.f32 %v1186_v57, %v1118_v18  ;;  %v1387_v22 = vmul.f32 %v2654_v2, %v3198_v32  ;;  %v3247_v25 = vld [vmem:[#allocation2 + $0x18f] sm:$0xff] }
 0x17a   : > { %v1487_v14 = vmul.f32 %v2648_v60, %v3200_v43  ;;  %2318 = vmatprep.mubr.f32.mxu1 %v1719_v39  ;;  %v1688_v4 = vmax.f32 %v1656_v21, 0.0  ;;  %v1587_v8 = vmul.f32 %v2656_v3, %v3206_v33  ;;  %v788_v51 = vmul.f32 %v3150_v56, %v2620_v23  ;;  %v3255_v61 = vld [vmem:[#allocation2 + $0x190] sm:$0xff] }
 0x17b   : > { %v1019_v45 = vadd.f32 %v987_v44, %v919_v15  ;;  %v1618_v58 = vadd.f32 %v1586_v13, %v1518_v36  ;;  %v1318_v26 = vadd.f32 %v1286_v7, %v1218_v19  ;;  %v1187_v5 = vmul.f32 %v3175_v20, %v2641_v55  ;;  %v1153_v36 = vld [vmem:[#allocation2 + $0x188] sm:$0xff] }
 0x17c   : > { %v888_v49 = vmul.f32 %v3152_v42, %v2622_v27  ;;  %v1720_v46 = vmin.f32 %v1688_v4, 6.0  ;;  %v1287_v10 = vmul.f32 %v3181_v47, %v2646_v59  ;;  %v988_v56 = vmul.f32 %v3154_v53, %v2628_v34 }
 0x17d   : > { %v1119_v30 = vadd.f32 %v1087_v1, %v1019_v45  ;;  %v1657_v29 = vadd.f32 %v3236_v12, %v1618_v58  ;;  %v1419_v28 = vadd.f32 %v1387_v22, %v1318_v26  ;;  %v1088_v42 = vmul.f32 %v3198_v32, %v2651_v0  ;;  %v3272_v45 = vld [vmem:[#allocation2 + $0x1a7] sm:$0xff] }
 0x17e   : > { %v920_v24 = vadd.f32 %v888_v49, %v788_v51  ;;  %2319 = vmatmul.mubr.f32.gmra.mrb[16].mxu1 %v1720_v46  ;;  %v1388_v6 = vmul.f32 %v2654_v2, %v3223_v48  ;;  %v1488_v53 = vmul.f32 %v2648_v60, %v2842_v50  ;;  %v1588_v63 = vmul.f32 %v2656_v3, %v3225_v62  ;;  %v3257_v50 = vld [vmem:[#allocation2 + $0x191] sm:$0xff] }
 0x17f   : > { %v1219_v54 = vadd.f32 %v1187_v5, %v1119_v30  ;;  %v1689_v16 = vmax.f32 %v1657_v29, 0.0  ;;  %v1519_v13 = vadd.f32 %v1487_v14, %v1419_v28  ;;  %v789_v40 = vmul.f32 %v3173_v9, %v2620_v23 }
 0x180   : > { %v1020_v35 = vadd.f32 %v988_v56, %v920_v24  ;;  %v1188_v17 = vmul.f32 %v3200_v43, %v2641_v55  ;;  %v1288_v57 = vmul.f32 %v3206_v33, %v2646_v59  ;;  %v889_v41 = vmul.f32 %v3175_v20, %v2622_v27 }
 0x181   : > { %v1319_v31 = vadd.f32 %v1287_v10, %v1219_v54  ;;  %v1721_v18 = vmin.f32 %v1689_v16, 6.0  ;;  %v1619_v7 = vadd.f32 %v1587_v8, %v1519_v13  ;;  %v1389_v9 = vmul.f32 %v2654_v2, %v3247_v25  ;;  %v3281_v10 = vld [vmem:[#allocation2 + $0x1a9] sm:$0xff] }
 0x182   : > { %v1120_v44 = vadd.f32 %v1088_v42, %v1020_v35  ;;  %v921_v21 = vadd.f32 %v889_v41, %v789_v40  ;;  %v989_v15 = vmul.f32 %v3181_v47, %v2628_v34  ;;  %v1089_v1 = vmul.f32 %v3223_v48, %v2651_v0 }
 0x183   : > { %v1420_v39 = vadd.f32 %v1388_v6, %v1319_v31  ;;  %2321 = vmatprep.mubr.f32.mxu1 %v1721_v18  ;;  %v1658_v19 = vadd.f32 %v3236_v12, %v1619_v7  ;;  %v1489_v20 = vmul.f32 %v2648_v60, %v3255_v61  ;;  %v1589_v14 = vmul.f32 %v2656_v3, %v3257_v50  ;;  %v3303_v18 = vld [vmem:[#allocation2 + $0x1b1] sm:$0xff] }
 0x184   : > { %v1220_v22 = vadd.f32 %v1188_v17, %v1120_v44  ;;  %v1021_v8 = vadd.f32 %v989_v15, %v921_v21  ;;  %v790_v47 = vmul.f32 %v3198_v32, %v2620_v23  ;;  %v890_v51 = vmul.f32 %v3200_v43, %v2622_v27 }
 0x185   : > { %v1520_v4 = vadd.f32 %v1488_v53, %v1420_v39  ;;  %v1690_v58 = vmax.f32 %v1658_v19, 0.0  ;;  %v1189_v5 = vmul.f32 %v2641_v55, %v1153_v36  ;;  %v990_v49 = vmul.f32 %v3206_v33, %v2628_v34 }
 0x186   : > { %v1320_v26 = vadd.f32 %v1288_v57, %v1220_v22  ;;  %v1121_v30 = vadd.f32 %v1089_v1, %v1021_v8  ;;  %v922_v56 = vadd.f32 %v890_v51, %v790_v47  ;;  %v1090_v29 = vmul.f32 %v3247_v25, %v2651_v0  ;;  %v3299_v57 = vld [vmem:[#allocation2 + $0x1af] sm:$0xff] }
 0x187   : > { %v1620_v46 = vadd.f32 %v1588_v63, %v1520_v4  ;;  %v1722_v28 = vmin.f32 %v1690_v58, 6.0  ;;  %v1289_v43 = vmul.f32 %v3225_v62, %v2646_v59  ;;  %v1390_v24 = vmul.f32 %v2654_v2, %v3272_v45  ;;  %v1155_v1 = vld [vmem:[#allocation2 + $0x1a8] sm:$0xff] }
 0x188   : > { %v1421_v32 = vadd.f32 %v1389_v9, %v1320_v26  ;;  %v1221_v54 = vadd.f32 %v1189_v5, %v1121_v30  ;;  %v1490_v33 = vmul.f32 %v2648_v60, %v2889_v52  ;;  %v1022_v6 = vadd.f32 %v990_v49, %v922_v56  ;;  %v3301_v52 = vld [vmem:[#allocation2 + $0x1b0] sm:$0xff]  ;;  %v3321_v26 = vld [vmem:[#allocation2 + $0x1c7] sm:$0xff] }
 0x189   : > { %v1659_v42 = vadd.f32 %v3236_v12, %v1620_v46  ;;  %2322 = vmatmul.mubr.f32.gmra.mrb[18].mxu1 %v1722_v28  ;;  %v1590_v63 = vmul.f32 %v2656_v3, %v3281_v10  ;;  %v791_v16 = vmul.f32 %v3223_v48, %v2620_v23  ;;  %v891_v13 = vmul.f32 %v1153_v36, %v2622_v27  ;;  %v3327_v56 = vld [vmem:[#allocation2 + $0x1c9] sm:$0xff] }
 0x18a   : > { %v1521_v53 = vadd.f32 %v1489_v20, %v1421_v32  ;;  %v1321_v40 = vadd.f32 %v1289_v43, %v1221_v54  ;;  %v1122_v31 = vadd.f32 %v1090_v29, %v1022_v6  ;;  %v1190_v17 = vmul.f32 %v3255_v61, %v2641_v55 }
 0x18b   : > { %v1691_v35 = vmax.f32 %v1659_v42, 0.0  ;;  %v923_v7 = vadd.f32 %v891_v13, %v791_v16  ;;  %v991_v44 = vmul.f32 %v3225_v62, %v2628_v34  ;;  %v1091_v48 = vmul.f32 %v3272_v45, %v2651_v0 }
 0x18c   : > { %v1621_v41 = vadd.f32 %v1589_v14, %v1521_v53  ;;  %v1422_v39 = vadd.f32 %v1390_v24, %v1321_v40  ;;  %v1222_v21 = vadd.f32 %v1190_v17, %v1122_v31  ;;  %v1290_v15 = vmul.f32 %v3257_v50, %v2646_v59  ;;  %v3346_v40 = vld [vmem:[#allocation2 + $0x1d0] sm:$0xff] }
 0x18d   : > { %v1723_v9 = vmin.f32 %v1691_v35, 6.0  ;;  %v1391_v19 = vmul.f32 %v2654_v2, %v3299_v57  ;;  %v1491_v22 = vmul.f32 %v2648_v60, %v3301_v52  ;;  %v1023_v20 = vadd.f32 %v991_v44, %v923_v7  ;;  %v3344_v35 = vld [vmem:[#allocation2 + $0x1cf] sm:$0xff] }
 0x18e   : > { %v1660_v36 = vadd.f32 %v3236_v12, %v1621_v41  ;;  %v1522_v62 = vadd.f32 %v1490_v33, %v1422_v39  ;;  %v1322_v14 = vadd.f32 %v1290_v15, %v1222_v21  ;;  %v1591_v4 = vmul.f32 %v2656_v3, %v3303_v18  ;;  %v3351_v7 = vld [vmem:[#allocation2 + $0x1d1] sm:$0xff]  ;;  %v1157_v21 = vld [vmem:[#allocation2 + $0x1c8] sm:$0xff] }
 0x18f   : > { %2324 = vmatprep.mubr.f32.mxu1 %v1723_v9  ;;  %v792_v8 = vmul.f32 %v3247_v25, %v2620_v23  ;;  %v1123_v51 = vadd.f32 %v1091_v48, %v1023_v20  ;;  %v1191_v58 = vmul.f32 %v2641_v55, %v1155_v1  ;;  %v892_v5 = vmul.f32 %v3255_v61, %v2622_v27 }
 0x190   : > { %v1692_v47 = vmax.f32 %v1660_v36, 0.0  ;;  %v1622_v49 = vadd.f32 %v1590_v63, %v1522_v62  ;;  %v1423_v46 = vadd.f32 %v1391_v19, %v1322_v14  ;;  %v1291_v30 = vmul.f32 %v3281_v10, %v2646_v59 }
 0x191   : > { %v992_v29 = vmul.f32 %v3257_v50, %v2628_v34  ;;  %v1223_v28 = vadd.f32 %v1191_v58, %v1123_v51  ;;  %v924_v32 = vadd.f32 %v892_v5, %v792_v8  ;;  %v1092_v43 = vmul.f32 %v3299_v57, %v2651_v0  ;;  %v3369_v51 = vld [vmem:[#allocation2 + $0x1e9] sm:$0xff] }
 0x192   : > { %v1724_v25 = vmin.f32 %v1692_v47, 6.0  ;;  %v1661_v24 = vadd.f32 %v3236_v12, %v1622_v49  ;;  %v1523_v42 = vadd.f32 %v1491_v22, %v1423_v46  ;;  %v1392_v61 = vmul.f32 %v2654_v2, %v3321_v26  ;;  %v3367_v47 = vld [vmem:[#allocation2 + $0x1e7] sm:$0xff] }
 0x193   : > { %v1492_v54 = vmul.f32 %v2648_v60, %v2942_v11  ;;  %v1323_v33 = vadd.f32 %v1291_v30, %v1223_v28  ;;  %v1592_v50 = vmul.f32 %v2656_v3, %v3327_v56  ;;  %v1024_v6 = vadd.f32 %v992_v29, %v924_v32 }
 0x194   : > { %2325 = vmatmul.mubr.f32.gmra.mrb[20].mxu1 %v1724_v25  ;;  %v793_v53 = vmul.f32 %v3272_v45, %v2620_v23  ;;  %v1693_v63 = vmax.f32 %v1661_v24, 0.0  ;;  %v1623_v16 = vadd.f32 %v1591_v4, %v1523_v42  ;;  %v1192_v13 = vmul.f32 %v3301_v52, %v2641_v55  ;;  %v3386_v42 = vld [vmem:[#allocation2 + $0x1ef] sm:$0xff] }
 0x195   : > { %v893_v11 = vmul.f32 %v1155_v1, %v2622_v27  ;;  %v1424_v31 = vadd.f32 %v1392_v61, %v1323_v33  ;;  %v1124_v17 = vadd.f32 %v1092_v43, %v1024_v6  ;;  %v1292_v41 = vmul.f32 %v3303_v18, %v2646_v59 }
 0x196   : > { %v993_v45 = vmul.f32 %v3281_v10, %v2628_v34  ;;  %v1725_v44 = vmin.f32 %v1693_v63, 6.0  ;;  %v1662_v48 = vadd.f32 %v3236_v12, %v1623_v16  ;;  %v1093_v39 = vmul.f32 %v3321_v26, %v2651_v0  ;;  %v3394_v63 = vld [vmem:[#allocation2 + $0x1f0] sm:$0xff] }
 0x197   : > { %v925_v9 = vadd.f32 %v893_v11, %v793_v53  ;;  %v1524_v15 = vadd.f32 %v1492_v54, %v1424_v31  ;;  %v1224_v1 = vadd.f32 %v1192_v13, %v1124_v17  ;;  %v1393_v36 = vmul.f32 %v2654_v2, %v3344_v35 }
 0x198   : > { %v1493_v19 = vmul.f32 %v2648_v60, %v3346_v40  ;;  %2327 = vmatprep.mubr.f32.mxu1 %v1725_v44  ;;  %v1694_v22 = vmax.f32 %v1662_v48, 0.0  ;;  %v1593_v10 = vmul.f32 %v2656_v3, %v3351_v7  ;;  %v794_v62 = vmul.f32 %v3299_v57, %v2620_v23  ;;  %v1159_v48 = vld [vmem:[#allocation2 + $0x1e8] sm:$0xff] }
 0x199   : > { %v1025_v20 = vadd.f32 %v993_v45, %v925_v9  ;;  %v1624_v14 = vadd.f32 %v1592_v50, %v1524_v15  ;;  %v1324_v4 = vadd.f32 %v1292_v41, %v1224_v1  ;;  %v1193_v8 = vmul.f32 %v2641_v55, %v1157_v21 }
 0x19a   : > { %v894_v58 = vmul.f32 %v3301_v52, %v2622_v27  ;;  %v1726_v5 = vmin.f32 %v1694_v22, 6.0  ;;  %v1293_v46 = vmul.f32 %v3327_v56, %v2646_v59  ;;  %v994_v30 = vmul.f32 %v3303_v18, %v2628_v34 }
 0x19b   : > { %v1125_v49 = vadd.f32 %v1093_v39, %v1025_v20  ;;  %v1663_v57 = vadd.f32 %v3236_v12, %v1624_v14  ;;  %v1425_v29 = vadd.f32 %v1393_v36, %v1324_v4  ;;  %v1094_v28 = vmul.f32 %v3344_v35, %v2651_v0 }
 0x19c   : > { %v926_v25 = vadd.f32 %v894_v58, %v794_v62  ;;  %2328 = vmatmul.mubr.f32.gmra.mrb[22].mxu1 %v1726_v5  ;;  %v1394_v52 = vmul.f32 %v2654_v2, %v3367_v47  ;;  %v1494_v43 = vmul.f32 %v2648_v60, %v2997_v37  ;;  %v1594_v24 = vmul.f32 %v2656_v3, %v3369_v51  ;;  %v3396_v37 = vld [vmem:[#allocation2 + $0x1f1] sm:$0xff]  ;;  %v1560_v58 = vld [vmem:[#allocation2 + $0x209] sm:$0xff] }
 0x19d   : > { %v1225_v32 = vadd.f32 %v1193_v8, %v1125_v49  ;;  %v1695_v18 = vmax.f32 %v1663_v57, 0.0  ;;  %v1525_v61 = vadd.f32 %v1493_v19, %v1425_v29  ;;  %v795_v33 = vmul.f32 %v3321_v26, %v2620_v23  ;;  %v1360_v19 = vld [vmem:[#allocation2 + $0x207] sm:$0xff] }
 0x19e   : > { %v1026_v54 = vadd.f32 %v994_v30, %v926_v25  ;;  %v1194_v6 = vmul.f32 %v3346_v40, %v2641_v55  ;;  %v1294_v53 = vmul.f32 %v3351_v7, %v2646_v59  ;;  %v895_v16 = vmul.f32 %v1157_v21, %v2622_v27 }
 0x19f   : > { %v1325_v50 = vadd.f32 %v1293_v46, %v1225_v32  ;;  %v1727_v13 = vmin.f32 %v1695_v18, 6.0  ;;  %v1625_v11 = vadd.f32 %v1593_v10, %v1525_v61  ;;  %v1395_v17 = vmul.f32 %v2654_v2, %v3386_v42 }
 0x1a0   : > { %v1126_v31 = vadd.f32 %v1094_v28, %v1026_v54  ;;  %v927_v41 = vadd.f32 %v895_v16, %v795_v33  ;;  %v995_v45 = vmul.f32 %v3327_v56, %v2628_v34  ;;  %v1095_v44 = vmul.f32 %v3367_v47, %v2651_v0  ;;  %v1361_v33 = vld [vmem:[#allocation2 + $0x20f] sm:$0xff] }
 0x1a1   : > { %v1426_v26 = vadd.f32 %v1394_v52, %v1325_v50  ;;  %2330 = vmatprep.mubr.f32.mxu1 %v1727_v13  ;;  %v1664_v9 = vadd.f32 %v3236_v12, %v1625_v11  ;;  %v1495_v21 = vmul.f32 %v2648_v60, %v3394_v63  ;;  %v1595_v15 = vmul.f32 %v2656_v3, %v3396_v37  ;;  %v1461_v50 = vld [vmem:[#allocation2 + $0x210] sm:$0xff]  ;;  %v1161_v13 = vld [vmem:[#allocation2 + $0x208] sm:$0xff] }
 0x1a2   : > { %v1226_v39 = vadd.f32 %v1194_v6, %v1126_v31  ;;  %v1027_v36 = vadd.f32 %v995_v45, %v927_v41  ;;  %v796_v56 = vmul.f32 %v3344_v35, %v2620_v23  ;;  %v896_v22 = vmul.f32 %v3346_v40, %v2622_v27 }
 0x1a3   : > { %v1526_v1 = vadd.f32 %v1494_v43, %v1426_v26  ;;  %v1696_v10 = vmax.f32 %v1664_v9, 0.0  ;;  %v1195_v62 = vmul.f32 %v2641_v55, %v1159_v48  ;;  %v996_v14 = vmul.f32 %v3351_v7, %v2628_v34 }
 0x1a4   : > { %v1326_v20 = vadd.f32 %v1294_v53, %v1226_v39  ;;  %v1127_v8 = vadd.f32 %v1095_v44, %v1027_v36  ;;  %v928_v5 = vadd.f32 %v896_v22, %v796_v56  ;;  %v1096_v49 = vmul.f32 %v3386_v42, %v2651_v0 }
 0x1a5   : > { %v1626_v4 = vadd.f32 %v1594_v24, %v1526_v1  ;;  %v1728_v46 = vmin.f32 %v1696_v10, 6.0  ;;  %v1295_v35 = vmul.f32 %v3369_v51, %v2646_v59  ;;  %v1396_v40 = vmul.f32 %v2654_v2, %v1360_v19  ;;  %v1561_v1 = vld [vmem:[#allocation2 + $0x211] sm:$0xff] }
 0x1a6   : > { %v1427_v30 = vadd.f32 %v1395_v17, %v1326_v20  ;;  %v1227_v29 = vadd.f32 %v1195_v62, %v1127_v8  ;;  %v1496_v7 = vmul.f32 %v2648_v60, %v3044_v38  ;;  %v1028_v25 = vadd.f32 %v996_v14, %v928_v5 }
 0x1a7   : > { %v1665_v57 = vadd.f32 %v3236_v12, %v1626_v4  ;;  %2331 = vmatmul.mubr.f32.gmra.mrb[24].mxu1 %v1728_v46  ;;  %v1596_v32 = vmul.f32 %v2656_v3, %v1560_v58  ;;  %v797_v52 = vmul.f32 %v3367_v47, %v2620_v23  ;;  %v897_v43 = vmul.f32 %v1159_v48, %v2622_v27  ;;  %v1362_v48 = vld [vmem:[#allocation2 + $0x227] sm:$0xff] }
 0x1a8   : > { %v1527_v28 = vadd.f32 %v1495_v21, %v1427_v30  ;;  %v1327_v18 = vadd.f32 %v1295_v35, %v1227_v29  ;;  %v1128_v61 = vadd.f32 %v1096_v49, %v1028_v25  ;;  %v1196_v54 = vmul.f32 %v3394_v63, %v2641_v55  ;;  %v1562_v49 = vld [vmem:[#allocation2 + $0x229] sm:$0xff] }
 0x1a9   : > { %v1697_v24 = vmax.f32 %v1665_v57, 0.0  ;;  %v929_v38 = vadd.f32 %v897_v43, %v797_v52  ;;  %v997_v53 = vmul.f32 %v3369_v51, %v2628_v34  ;;  %v1097_v16 = vmul.f32 %v1360_v19, %v2651_v0 }
 0x1aa   : > { %v1627_v6 = vadd.f32 %v1595_v15, %v1527_v28  ;;  %v1428_v47 = vadd.f32 %v1396_v40, %v1327_v18  ;;  %v1228_v31 = vadd.f32 %v1196_v54, %v1128_v61  ;;  %v1296_v17 = vmul.f32 %v3396_v37, %v2646_v59 }
 0x1ab   : > { %v1729_v11 = vmin.f32 %v1697_v24, 6.0  ;;  %v1397_v41 = vmul.f32 %v2654_v2, %v1361_v33  ;;  %v1497_v45 = vmul.f32 %v2648_v60, %v1461_v50  ;;  %v1029_v44 = vadd.f32 %v997_v53, %v929_v38  ;;  %v1563_v24 = vld [vmem:[#allocation2 + $0x231] sm:$0xff] }
 0x1ac   : > { %v1666_v26 = vadd.f32 %v3236_v12, %v1627_v6  ;;  %v1528_v9 = vadd.f32 %v1496_v7, %v1428_v47  ;;  %v1328_v51 = vadd.f32 %v1296_v17, %v1228_v31  ;;  %v1197_v39 = vmul.f32 %v2641_v55, %v1161_v13 }
 0x1ad   : > { %2333 = vmatprep.mubr.f32.mxu1 %v1729_v11  ;;  %v798_v21 = vmul.f32 %v3386_v42, %v2620_v23  ;;  %v1129_v36 = vadd.f32 %v1097_v16, %v1029_v44  ;;  %v1297_v19 = vmul.f32 %v1560_v58, %v2646_v59  ;;  %v898_v56 = vmul.f32 %v3394_v63, %v2622_v27  ;;  %v2416_v63 = vld [vmem:[#allocation2] sm:$0xff] }
 0x1ae   : > { %v1698_v15 = vmax.f32 %v1666_v26, 0.0  ;;  %v1628_v22 = vadd.f32 %v1596_v32, %v1528_v9  ;;  %v1429_v10 = vadd.f32 %v1397_v41, %v1328_v51  ;;  %v1398_v20 = vmul.f32 %v2654_v2, %v1362_v48  ;;  %v3463_v11 = vld [vmem:[%s3545_s6] ss:$0 sm:$0xff] }
 0x1af   : > { %v998_v62 = vmul.f32 %v3396_v37, %v2628_v34  ;;  %v1229_v4 = vadd.f32 %v1197_v39, %v1129_v36  ;;  %v930_v8 = vadd.f32 %v898_v56, %v798_v21  ;;  %v1098_v23 = vmul.f32 %v1361_v33, %v2651_v0  ;;  %v1363_v34 = vld [vmem:[#allocation2 + $0x22f] sm:$0xff] }
 0x1b0   : > { %v1730_v14 = vmin.f32 %v1698_v15, 6.0  ;;  %v1667_v42 = vadd.f32 %v3236_v12, %v1628_v22  ;;  %v1529_v5 = vadd.f32 %v1497_v45, %v1429_v10  ;;  %v1597_v58 = vmul.f32 %v2656_v3, %v1561_v1 }
 0x1b1   : > { %v1329_v27 = vadd.f32 %v1297_v19, %v1229_v4  ;;  %v1498_v46 = vmul.f32 %v2416_v63, %v2648_v60  ;;  %v1030_v30 = vadd.f32 %v998_v62, %v930_v8  ;;  %v1598_v57 = vmul.f32 %v2656_v3, %v1562_v49 }
 0x1b2   : > { %2334 = vmatmul.mubr.f32.gmra.mrb[26].mxu1 %v1730_v14  ;;  %v1699_v35 = vmax.f32 %v1667_v42, 0.0  ;;  %v1629_v40 = vadd.f32 %v1597_v58, %v1529_v5  ;;  %v1198_v0 = vmul.f32 %v1461_v50, %v2641_v55  ;;  %v1298_v52 = vmul.f32 %v1561_v1, %v2646_v59 }
 0x1b3   : > { %v1430_v37 = vadd.f32 %v1398_v20, %v1329_v27  ;;  %v1130_v29 = vadd.f32 %v1098_v23, %v1030_v30  ;;  %v1399_v43 = vmul.f32 %v2654_v2, %v1363_v34  ;;  %v1599_v55 = vmul.f32 %v2656_v3, %v1563_v24 }
 0x1b4   : > { %v1731_v7 = vmin.f32 %v1699_v35, 6.0  ;;  %v1668_v25 = vadd.f32 %v3236_v12, %v1629_v40 }
 0x1b5   : > { %v1530_v28 = vadd.f32 %v1498_v46, %v1430_v37  ;;  %v1230_v32 = vadd.f32 %v1198_v0, %v1130_v29 }
 0x1b6   : > { %2336 = vmatprep.mubr.f32.mxu1 %v1731_v7  ;;  %v1700_v60 = vmax.f32 %v1668_v25, 0.0 }
 0x1b7   : > { %v1630_v18 = vadd.f32 %v1598_v57, %v1530_v28  ;;  %v1330_v61 = vadd.f32 %v1298_v52, %v1230_v32 }
 0x1b8   : > { %v1732_v54 = vmin.f32 %v1700_v60, 6.0 }
 0x1b9   : > { %v1669_v33 = vadd.f32 %v3236_v12, %v1630_v18  ;;  %v1431_v6 = vadd.f32 %v1399_v43, %v1330_v61 }
 0x1ba   : > { %2337 = vmatmul.mubr.f32.gmra.mrb[28].mxu1 %v1732_v54 }
 0x1bb   : > { %v1701_v50 = vmax.f32 %v1669_v33, 0.0  ;;  %v1531_v38 = vadd.f32 %v1498_v46, %v1431_v6 }
 0x1bd   : > { %v1733_v53 = vmin.f32 %v1701_v50, 6.0  ;;  %v1631_v16 = vadd.f32 %v1599_v55, %v1531_v38 }
 0x1bf   : > { %2339 = vmatprep.mubr.f32.mxu1 %v1733_v53  ;;  %v1670_v59 = vadd.f32 %v3236_v12, %v1631_v16 }
 0x1c1   : > { %v1702_v2 = vmax.f32 %v1670_v59, 0.0 }
 0x1c3   : > { %v1734_v13 = vmin.f32 %v1702_v2, 6.0 }
 0x1c5   : > { %2340 = vmatmul.mubr.f32.gmra.mrb[30].mxu1 %v1734_v13 }
 0x1f3   : > { %v2296_v3 = vpop.f32.mrb[0].mxu1 }
 0x1f4   : > { %v1830_v12 = vadd.f32 %v2296_v3, %v3463_v11  ;;  %v1824_v47 = vpop.f32.mrb[1].mxu1 }
 0x1f5   : > { %v1825_v31 = vadd.f32 %v3463_v11, %v1824_v47 }
 0x1f6   : > { %1984 = vst [vmem:[%s3470_s29 + $0x8] sm:$0xff] %v1830_v12 }
 0x1f7   : > { %1983 = vst [vmem:[%s3470_s29] sm:$0xff] %v1825_v31 }
 0x200   : > { %v2299_v17 = vpop.f32.mrb[2].mxu1 }
 0x201   : > { %v1840_v26 = vadd.f32 %v2299_v17, %v3463_v11  ;;  %v1834_v41 = vpop.f32.mrb[3].mxu1 }
 0x202   : > { %v1835_v45 = vadd.f32 %v3463_v11, %v1834_v41 }
 0x203   : > { %1986 = vst [vmem:[%s3470_s29 + $0x18] sm:$0xff] %v1840_v26 }
 0x204   : > { %1985 = vst [vmem:[%s3470_s29 + $0x10] sm:$0xff] %v1835_v45 }
 0x211   : > { %v2302_v44 = vpop.f32.mrb[4].mxu1 }
 0x212   : > { %v1850_v48 = vadd.f32 %v2302_v44, %v3463_v11  ;;  %v1844_v9 = vpop.f32.mrb[5].mxu1 }
 0x213   : > { %v1845_v51 = vadd.f32 %v3463_v11, %v1844_v9 }
 0x214   : > { %1988 = vst [vmem:[%s3470_s29 + $0x28] sm:$0xff] %v1850_v48 }
 0x215   : > { %1987 = vst [vmem:[%s3470_s29 + $0x20] sm:$0xff] %v1845_v51 }
 0x21c   : > { %v2305_v39 = vpop.f32.mrb[6].mxu1 }
 0x21d   : > { %v1860_v21 = vadd.f32 %v2305_v39, %v3463_v11  ;;  %v1854_v15 = vpop.f32.mrb[7].mxu1 }
 0x21e   : > { %v1855_v1 = vadd.f32 %v3463_v11, %v1854_v15 }
 0x21f   : > { %1990 = vst [vmem:[%s3470_s29 + $0x38] sm:$0xff] %v1860_v21 }
 0x220   : > { %1989 = vst [vmem:[%s3470_s29 + $0x30] sm:$0xff] %v1855_v1 }
 0x227   : > { %v2308_v36 = vpop.f32.mrb[8].mxu1 }
 0x228   : > { %v1870_v19 = vadd.f32 %v2308_v36, %v3463_v11  ;;  %v1864_v56 = vpop.f32.mrb[9].mxu1 }
 0x229   : > { %v1865_v22 = vadd.f32 %v3463_v11, %v1864_v56 }
 0x22a   : > { %1992 = vst [vmem:[%s3470_s29 + $0x48] sm:$0xff] %v1870_v19 }
 0x22b   : > { %1991 = vst [vmem:[%s3470_s29 + $0x40] sm:$0xff] %v1865_v22 }
 0x233   : > { %v2311_v10 = vpop.f32.mrb[10].mxu1 }
 0x234   : > { %v1880_v20 = vadd.f32 %v2311_v10, %v3463_v11  ;;  %v1874_v62 = vpop.f32.mrb[11].mxu1 }
 0x235   : > { %v1875_v14 = vadd.f32 %v3463_v11, %v1874_v62 }
 0x236   : > { %1994 = vst [vmem:[%s3470_s29 + $0x58] sm:$0xff] %v1880_v20 }
 0x237   : > { %1993 = vst [vmem:[%s3470_s29 + $0x50] sm:$0xff] %v1875_v14 }
 0x23e   : > { %v2314_v4 = vpop.f32.mrb[12].mxu1 }
 0x23f   : > { %v1890_v8 = vadd.f32 %v2314_v4, %v3463_v11  ;;  %v1884_v23 = vpop.f32.mrb[13].mxu1 }
 0x240   : > { %v1885_v42 = vadd.f32 %v3463_v11, %v1884_v23 }
 0x241   : > { %1996 = vst [vmem:[%s3470_s29 + $0x68] sm:$0xff] %v1890_v8 }
 0x242   : > { %1995 = vst [vmem:[%s3470_s29 + $0x60] sm:$0xff] %v1885_v42 }
 0x249   : > { %v2317_v5 = vpop.f32.mrb[14].mxu1 }
 0x24a   : > { %v1900_v58 = vadd.f32 %v2317_v5, %v3463_v11  ;;  %v1894_v49 = vpop.f32.mrb[15].mxu1 }
 0x24b   : > { %v1895_v27 = vadd.f32 %v3463_v11, %v1894_v49 }
 0x24c   : > { %1998 = vst [vmem:[%s3470_s29 + $0x78] sm:$0xff] %v1900_v58 }
 0x24d   : > { %1997 = vst [vmem:[%s3470_s29 + $0x70] sm:$0xff] %v1895_v27 }
 0x251   : > { %v2320_v63 = vpop.f32.mrb[16].mxu1 }
 0x252   : > { %v1910_v46 = vadd.f32 %v2320_v63, %v3463_v11  ;;  %v1904_v30 = vpop.f32.mrb[17].mxu1 }
 0x253   : > { %v1905_v35 = vadd.f32 %v3463_v11, %v1904_v30 }
 0x254   : > { %2000 = vst [vmem:[%s3470_s29 + $0x88] sm:$0xff] %v1910_v46 }
 0x255   : > { %1999 = vst [vmem:[%s3470_s29 + $0x80] sm:$0xff] %v1905_v35 }
 0x25c   : > { %v2323_v40 = vpop.f32.mrb[18].mxu1 }
 0x25d   : > { %v1920_v34 = vadd.f32 %v2323_v40, %v3463_v11  ;;  %v1914_v37 = vpop.f32.mrb[19].mxu1 }
 0x25e   : > { %v1915_v57 = vadd.f32 %v3463_v11, %v1914_v37 }
 0x25f   : > { %2002 = vst [vmem:[%s3470_s29 + $0x98] sm:$0xff] %v1920_v34 }
 0x260   : > { %2001 = vst [vmem:[%s3470_s29 + $0x90] sm:$0xff] %v1915_v57 }
 0x267   : > { %v2326_v29 = vpop.f32.mrb[20].mxu1 }
 0x268   : > { %v1930_v0 = vadd.f32 %v2326_v29, %v3463_v11  ;;  %v1924_v7 = vpop.f32.mrb[21].mxu1 }
 0x269   : > { %v1925_v25 = vadd.f32 %v3463_v11, %v1924_v7 }
 0x26a   : > { %2004 = vst [vmem:[%s3470_s29 + $0xa8] sm:$0xff] %v1930_v0 }
 0x26b   : > { %2003 = vst [vmem:[%s3470_s29 + $0xa0] sm:$0xff] %v1925_v25 }
 0x26f   : > { %v2329_v28 = vpop.f32.mrb[22].mxu1 }
 0x270   : > { %v1940_v32 = vadd.f32 %v2329_v28, %v3463_v11  ;;  %v1934_v52 = vpop.f32.mrb[23].mxu1 }
 0x271   : > { %v1935_v43 = vadd.f32 %v3463_v11, %v1934_v52 }
 0x272   : > { %2006 = vst [vmem:[%s3470_s29 + $0xb8] sm:$0xff] %v1940_v32 }
 0x273   : > { %2005 = vst [vmem:[%s3470_s29 + $0xb0] sm:$0xff] %v1935_v43 }
 0x27a   : > { %v2332_v60 = vpop.f32.mrb[24].mxu1 }
 0x27b   : > { %v1950_v24 = vadd.f32 %v2332_v60, %v3463_v11  ;;  %v1944_v18 = vpop.f32.mrb[25].mxu1 }
 0x27c   : > { %v1945_v61 = vadd.f32 %v3463_v11, %v1944_v18 }
 0x27d   : > { %2008 = vst [vmem:[%s3470_s29 + $0xc8] sm:$0xff] %v1950_v24 }
 0x27e   : > { %2007 = vst [vmem:[%s3470_s29 + $0xc0] sm:$0xff] %v1945_v61 }
 0x285   : > { %v2335_v54 = vpop.f32.mrb[26].mxu1 }
 0x286   : > { %v1960_v33 = vadd.f32 %v2335_v54, %v3463_v11  ;;  %v1954_v6 = vpop.f32.mrb[27].mxu1 }
 0x287   : > { %v1955_v55 = vadd.f32 %v3463_v11, %v1954_v6 }
 0x288   : > { %2010 = vst [vmem:[%s3470_s29 + $0xd8] sm:$0xff] %v1960_v33 }
 0x289   : > { %2009 = vst [vmem:[%s3470_s29 + $0xd0] sm:$0xff] %v1955_v55 }
 0x28d   : > { %v2338_v50 = vpop.f32.mrb[28].mxu1 }
 0x28e   : > { %v1970_v38 = vadd.f32 %v2338_v50, %v3463_v11  ;;  %v1964_v53 = vpop.f32.mrb[29].mxu1 }
 0x28f   : > { %v1965_v16 = vadd.f32 %v3463_v11, %v1964_v53 }
 0x290   : > { %2012 = vst [vmem:[%s3470_s29 + $0xe8] sm:$0xff] %v1970_v38 }
 0x291   : > { %2011 = vst [vmem:[%s3470_s29 + $0xe0] sm:$0xff] %v1965_v16 }
 0x298   : > { %v2341_v59 = vpop.f32.mrb[30].mxu1 }
 0x299   : > { %v1980_v2 = vadd.f32 %v2341_v59, %v3463_v11  ;;  %v1974_v13 = vpop.f32.mrb[31].mxu1 }
 0x29a   : > { %v1975_v3 = vadd.f32 %v3463_v11, %v1974_v13 }
 0x29b   : > { %2014 = vst [vmem:[%s3470_s29 + $0xf8] sm:$0xff] %v1980_v2 }
 0x29c   : > { %2013 = vst [vmem:[%s3470_s29 + $0xf0] sm:$0xff] %v1975_v3 }
 0x29d PF: > { %s17_s24 = sadd.s32 1, %s2423_s24  }
 0x29e   : > { %p14_p4 = scmp.ge.s32.totalorder %s17_s24, 4  }
 0x2a0   :  { %16 = sbr.rel (!%p14_p4) target bundleno = 1 (0x1), region = 80 }

// kernel: forward.10
= control target key start
LH: loop header
LB: loop body
LE: loop exit
PB: predicated region body
PF: predicated region fallthrough
CT: control target
= control target key end

     0   :  { %s2530_s24 = smov 0   ;;  %s3635_s0 = inlined_call_operand.vmem [shape: f32[2,16,16,128], index: 0, kind: input, shape index: {}]   ;;  %s3636_s1 = inlined_call_operand.vmem [shape: f32[128,128], index: 1, kind: input, shape index: {}]   ;;  %s3637_s2 = inlined_call_operand.vmem [shape: f32[1,128], index: 2, kind: input, shape index: {}]   ;;  %s3638_s3 = inlined_call_operand.vmem [shape: f32[3,3,128], index: 3, kind: input, shape index: {}]   ;;  %s3639_s4 = inlined_call_operand.vmem [shape: f32[1,1,128], index: 4, kind: input, shape index: {}]   ;;  %s3640_s5 = inlined_call_operand.vmem [shape: f32[128,128], index: 5, kind: input, shape index: {}]   ;;  %s3641_s6 = inlined_call_operand.vmem [shape: f32[1,128], index: 6, kind: input, shape index: {}]   ;;  %s3642_s7 = inlined_call_operand.vmem [shape: f32[2,16,16,128], index: 7, kind: output, shape index: {}]  }
   0x1 LB: > { %s2102_s25 = sadd.s32 4294967295, %s2487_s24   ;;  %p2106_p0 = scmp.ge.s32.totalorder %s2487_s24, 1  ;;  %s2487_s24 = sphi %s2530_s24, %s17_s24  }
   0x2   : > { %p237_p1 = scmp.lt.s32.totalorder %s2487_s24, 3 }
   0x4   : > { %p238_p2 = pnand %p2106_p0, %p237_p1 }
   0x5   : > { %v311_v0 = vld [vmem:[%s3636_s1] sm:$0xff] (!%p238_p2)  ;;  %v312_v1 = vld [vmem:[%s3636_s1 + $0x8] sm:$0xff] (!%p238_p2)  ;;  %v313_v2 = vld [vmem:[%s3636_s1 + $0x10] sm:$0xff] (!%p238_p2)  ;;  %p269_p3 = scmp.lt.s32.totalorder (!%p238_p2), %s2102_s25, 1  ;;  %v2489_v59 = vmov (!%p238_p2), 0.0  }
   0x6   : > { %241 = sbr.rel (%p238_p2) target bundleno = 671 (0x29f), region = 48  ;;  %v2374_v3 = vpack.c.bf16 (!%p238_p2), %v312_v1, %v311_v0  ;;  %v314_v4 = vld [vmem:[%s3636_s1 + $0x18] sm:$0xff] (!%p238_p2)  ;;  %v315_v6 = vld [vmem:[%s3636_s1 + $0x20] sm:$0xff] (!%p238_p2)  ;;  %v316_v7 = vld [vmem:[%s3636_s1 + $0x28] sm:$0xff] (!%p238_p2)  ;;  %623 = vst [vmem:[#allocation2] sm:$0xff] (!%p238_p2), %v2489_v59 }
   0x7   : > { %v2378_v5 = vpack.c.bf16 (!%p238_p2), %v314_v4, %v313_v2  ;;  %v2382_v8 = vpack.c.bf16 (!%p238_p2), %v316_v7, %v315_v6  ;;  %v317_v9 = vld [vmem:[%s3636_s1 + $0x30] sm:$0xff] (!%p238_p2)  ;;  %v318_v10 = vld [vmem:[%s3636_s1 + $0x38] sm:$0xff] (!%p238_p2)  ;;  %v319_v13 = vld [vmem:[%s3636_s1 + $0x40] sm:$0xff] (!%p238_p2)  ;;  %624 = vst [vmem:[#allocation2 + $0x8] sm:$0xff] (!%p238_p2), %v2489_v59 }
   0x8   : > { %2375 = vmatprep.subr.bf16.mxu0 (!%p238_p2), %v2374_v3  ;;  %v2386_v12 = vpack.c.bf16 (!%p238_p2), %v318_v10, %v317_v9  ;;  %v320_v14 = vld [vmem:[%s3636_s1 + $0x48] sm:$0xff] (!%p238_p2)  ;;  %v321_v16 = vld [vmem:[%s3636_s1 + $0x50] sm:$0xff] (!%p238_p2)  ;;  %v322_v17 = vld [vmem:[%s3636_s1 + $0x58] sm:$0xff] (!%p238_p2)  ;;  %625 = vst [vmem:[#allocation2 + $0x10] sm:$0xff] (!%p238_p2), %v2489_v59 }
   0x9   : > { %2377 = vmatpush3.bf16.msra.mxu0 (!%p238_p2), %v2374_v3  ;;  %v2390_v15 = vpack.c.bf16 (!%p238_p2), %v320_v14, %v319_v13  ;;  %v2394_v18 = vpack.c.bf16 (!%p238_p2), %v322_v17, %v321_v16  ;;  %v323_v19 = vld [vmem:[%s3636_s1 + $0x60] sm:$0xff] (!%p238_p2)  ;;  %v324_v20 = vld [vmem:[%s3636_s1 + $0x68] sm:$0xff] (!%p238_p2)  ;;  %v325_v22 = vld [vmem:[%s3636_s1 + $0x70] sm:$0xff] (!%p238_p2)  ;;  %626 = vst [vmem:[#allocation2 + $0x18] sm:$0xff] (!%p238_p2), %v2489_v59  ;;  %v763_v17 = vlaneseq (!%p238_p2) }
   0xa   : > { %2379 = vmatprep.subr.bf16.mxu0 (!%p238_p2), %v2378_v5  ;;  %v2398_v21 = vpack.c.bf16 (!%p238_p2), %v324_v20, %v323_v19  ;;  %v326_v23 = vld [vmem:[%s3636_s1 + $0x78] sm:$0xff] (!%p238_p2)  ;;  %v1735_v56 = vld [vmem:[%s3640_s5] sm:$0xff] (!%p238_p2)  ;;  %v1736_v57 = vld [vmem:[%s3640_s5 + $0x8] sm:$0xff] (!%p238_p2)  ;;  %627 = vst [vmem:[#allocation2 + $0x20] sm:$0xff] (!%p238_p2), %v2489_v59 }
   0xb   : > { %v2402_v24 = vpack.c.bf16 (!%p238_p2), %v326_v23, %v325_v22  ;;  %v2406_v58 = vpack.c.bf16 (!%p238_p2), %v1736_v57, %v1735_v56  ;;  %630 = vst [vmem:[#allocation2 + $0x38] sm:$0xff] (!%p238_p2), %v2489_v59  ;;  %631 = vst [vmem:[#allocation2 + $0x40] sm:$0xff] (!%p238_p2), %v2489_v59  ;;  %v1737_v60 = vld [vmem:[%s3640_s5 + $0x10] sm:$0xff] (!%p238_p2)  ;;  %v1738_v61 = vld [vmem:[%s3640_s5 + $0x18] sm:$0xff] (!%p238_p2) }
   0xc   : > { %634 = vst [vmem:[#allocation2 + $0x58] sm:$0xff] (!%p238_p2), %v2489_v59  ;;  %635 = vst [vmem:[#allocation2 + $0x60] sm:$0xff] (!%p238_p2), %v2489_v59  ;;  %v2410_v62 = vpack.c.bf16 (!%p238_p2), %v1738_v61, %v1737_v60  ;;  %v1739_v63 = vld [vmem:[%s3640_s5 + $0x20] sm:$0xff] (!%p238_p2)  ;;  %v1740_v0 = vld [vmem:[%s3640_s5 + $0x28] sm:$0xff] (!%p238_p2) }
   0xd   : > { %s3644_s25 = smov (!%p269_p3, %s2102_s25), 1  ;;  %2381 = vmatpush3.bf16.msra.mxu0 %v2378_v5  ;;  %638 = vst [vmem:[#allocation2 + $0x78] sm:$0xff] %v2489_v59  ;;  %639 = vst [vmem:[#allocation2 + $0x80] sm:$0xff] %v2489_v59  ;;  %2407 = vmatprep.subr.bf16.mxu1 %v2406_v58  ;;  %v2414_v1 = vpack.c.bf16 %v1740_v0, %v1739_v63  ;;  %v1741_v2 = vld [vmem:[%s3640_s5 + $0x30] sm:$0xff]  ;;  %v1742_v3 = vld [vmem:[%s3640_s5 + $0x38] sm:$0xff] }
   0xe   : > { %s2116_s15 = sshll.u32 %s3644_s25, 8  ;;  %2383 = vmatprep.subr.bf16.mxu0 %v2382_v8  ;;  %642 = vst [vmem:[#allocation2 + $0x98] sm:$0xff] %v2489_v59  ;;  %643 = vst [vmem:[#allocation2 + $0xa0] sm:$0xff] %v2489_v59  ;;  %2409 = vmatpush3.bf16.msra.mxu1 %v2406_v58  ;;  %v2418_v4 = vpack.c.bf16 %v1742_v3, %v1741_v2  ;;  %v1743_v5 = vld [vmem:[%s3640_s5 + $0x40] sm:$0xff]  ;;  %v1744_v6 = vld [vmem:[%s3640_s5 + $0x48] sm:$0xff] }
   0xf   : > { %s2564_s18 = scalar_lea.vmem %s3635_s0, %s2116_s15  ;;  %646 = vst [vmem:[#allocation2 + $0xb8] sm:$0xff] %v2489_v59  ;;  %647 = vst [vmem:[#allocation2 + $0xc0] sm:$0xff] %v2489_v59  ;;  %2411 = vmatprep.subr.bf16.mxu1 %v2410_v62  ;;  %v2422_v7 = vpack.c.bf16 %v1744_v6, %v1743_v5  ;;  %v1746_v9 = vld [vmem:[%s3640_s5 + $0x58] sm:$0xff]  ;;  %v1749_v14 = vld [vmem:[%s3640_s5 + $0x70] sm:$0xff]  ;;  %s3535_s9 = scalar_lea.vmem %s3642_s7, %s2116_s15 }
  0x10   : > { %v279_v11 = vld [vmem:[%s2564_s18] sm:$0xff]  ;;  %v280_v25 = vld [vmem:[%s2564_s18 + $0x8] sm:$0xff]  ;;  %v281_v26 = vld [vmem:[%s2564_s18 + $0x10] sm:$0xff]  ;;  %650 = vst [vmem:[#allocation2 + $0xd8] sm:$0xff] %v2489_v59 }
  0x11   : > { %2246 = vmatprep.mubr.f32.mxu0 %v279_v11  ;;  %2385 = vmatpush3.bf16.msra.mxu0 %v2382_v8  ;;  %v282_v27 = vld [vmem:[%s2564_s18 + $0x18] sm:$0xff]  ;;  %v283_v28 = vld [vmem:[%s2564_s18 + $0x20] sm:$0xff]  ;;  %v284_v29 = vld [vmem:[%s2564_s18 + $0x28] sm:$0xff]  ;;  %651 = vst [vmem:[#allocation2 + $0xe0] sm:$0xff] %v2489_v59 }
  0x12   : > { %2387 = vmatprep.subr.bf16.mxu0 %v2386_v12  ;;  %v285_v30 = vld [vmem:[%s2564_s18 + $0x30] sm:$0xff]  ;;  %v286_v31 = vld [vmem:[%s2564_s18 + $0x38] sm:$0xff]  ;;  %v287_v32 = vld [vmem:[%s2564_s18 + $0x40] sm:$0xff]  ;;  %654 = vst [vmem:[#allocation2 + $0xf8] sm:$0xff] %v2489_v59  ;;  %2413 = vmatpush3.bf16.msra.mxu1 %v2410_v62 }
  0x13   : > { %v288_v33 = vld [vmem:[%s2564_s18 + $0x48] sm:$0xff]  ;;  %v289_v34 = vld [vmem:[%s2564_s18 + $0x50] sm:$0xff]  ;;  %v290_v35 = vld [vmem:[%s2564_s18 + $0x58] sm:$0xff]  ;;  %655 = vst [vmem:[#allocation2 + $0x100] sm:$0xff] %v2489_v59  ;;  %2415 = vmatprep.subr.bf16.mxu1 %v2414_v1 }
  0x14   : > { %v291_v36 = vld [vmem:[%s2564_s18 + $0x60] sm:$0xff]  ;;  %v292_v37 = vld [vmem:[%s2564_s18 + $0x68] sm:$0xff]  ;;  %v293_v38 = vld [vmem:[%s2564_s18 + $0x70] sm:$0xff]  ;;  %658 = vst [vmem:[#allocation2 + $0x118] sm:$0xff] %v2489_v59 }
  0x15   : > { %2389 = vmatpush3.bf16.msra.mxu0 %v2386_v12  ;;  %v294_v39 = vld [vmem:[%s2564_s18 + $0x78] sm:$0xff]  ;;  %v295_v40 = vld [vmem:[%s2564_s18 + $0x80] sm:$0xff]  ;;  %v296_v41 = vld [vmem:[%s2564_s18 + $0x88] sm:$0xff]  ;;  %659 = vst [vmem:[#allocation2 + $0x120] sm:$0xff] %v2489_v59 }
  0x16   : > { %2391 = vmatprep.subr.bf16.mxu0 %v2390_v15  ;;  %v297_v42 = vld [vmem:[%s2564_s18 + $0x90] sm:$0xff]  ;;  %v298_v43 = vld [vmem:[%s2564_s18 + $0x98] sm:$0xff]  ;;  %v299_v44 = vld [vmem:[%s2564_s18 + $0xa0] sm:$0xff]  ;;  %662 = vst [vmem:[#allocation2 + $0x138] sm:$0xff] %v2489_v59  ;;  %2417 = vmatpush3.bf16.msra.mxu1 %v2414_v1 }
  0x17   : > { %v300_v45 = vld [vmem:[%s2564_s18 + $0xa8] sm:$0xff]  ;;  %v301_v46 = vld [vmem:[%s2564_s18 + $0xb0] sm:$0xff]  ;;  %v302_v47 = vld [vmem:[%s2564_s18 + $0xb8] sm:$0xff]  ;;  %663 = vst [vmem:[#allocation2 + $0x140] sm:$0xff] %v2489_v59  ;;  %2419 = vmatprep.subr.bf16.mxu1 %v2418_v4 }
  0x18   : > { %v303_v48 = vld [vmem:[%s2564_s18 + $0xc0] sm:$0xff]  ;;  %v304_v49 = vld [vmem:[%s2564_s18 + $0xc8] sm:$0xff]  ;;  %v305_v50 = vld [vmem:[%s2564_s18 + $0xd0] sm:$0xff]  ;;  %666 = vst [vmem:[#allocation2 + $0x158] sm:$0xff] %v2489_v59 }
  0x19   : > { %2393 = vmatpush3.bf16.msra.mxu0 %v2390_v15  ;;  %v306_v51 = vld [vmem:[%s2564_s18 + $0xd8] sm:$0xff]  ;;  %v307_v52 = vld [vmem:[%s2564_s18 + $0xe0] sm:$0xff]  ;;  %v308_v53 = vld [vmem:[%s2564_s18 + $0xe8] sm:$0xff]  ;;  %667 = vst [vmem:[#allocation2 + $0x160] sm:$0xff] %v2489_v59 }
  0x1a   : > { %2395 = vmatprep.subr.bf16.mxu0 %v2394_v18  ;;  %v309_v54 = vld [vmem:[%s2564_s18 + $0xf0] sm:$0xff]  ;;  %v310_v55 = vld [vmem:[%s2564_s18 + $0xf8] sm:$0xff]  ;;  %670 = vst [vmem:[#allocation2 + $0x178] sm:$0xff] %v2489_v59  ;;  %671 = vst [vmem:[#allocation2 + $0x180] sm:$0xff] %v2489_v59  ;;  %2421 = vmatpush3.bf16.msra.mxu1 %v2418_v4 }
  0x1b   : > { %674 = vst [vmem:[#allocation2 + $0x198] sm:$0xff] %v2489_v59  ;;  %675 = vst [vmem:[#allocation2 + $0x1a0] sm:$0xff] %v2489_v59  ;;  %2423 = vmatprep.subr.bf16.mxu1 %v2422_v7  ;;  %v1745_v8 = vld [vmem:[%s3640_s5 + $0x50] sm:$0xff]  ;;  %v1747_v11 = vld [vmem:[%s3640_s5 + $0x60] sm:$0xff] }
  0x1c   : > { %678 = vst [vmem:[#allocation2 + $0x1b8] sm:$0xff] %v2489_v59  ;;  %679 = vst [vmem:[#allocation2 + $0x1c0] sm:$0xff] %v2489_v59  ;;  %v2426_v10 = vpack.c.bf16 %v1746_v9, %v1745_v8  ;;  %v1748_v12 = vld [vmem:[%s3640_s5 + $0x68] sm:$0xff]  ;;  %v1750_v15 = vld [vmem:[%s3640_s5 + $0x78] sm:$0xff] }
  0x1d   : > { %2397 = vmatpush3.bf16.msra.mxu0 %v2394_v18  ;;  %682 = vst [vmem:[#allocation2 + $0x1d8] sm:$0xff] %v2489_v59  ;;  %683 = vst [vmem:[#allocation2 + $0x1e0] sm:$0xff] %v2489_v59  ;;  %v2430_v13 = vpack.c.bf16 %v1748_v12, %v1747_v11  ;;  %v2434_v16 = vpack.c.bf16 %v1750_v15, %v1749_v14  ;;  %v764_v18 = vshrl.u32 %v763_v17, 7  ;;  %v2682_v22 = vld [vmem:[%s3637_s2] ss:$0 sm:$0xff] }
  0x1e   : > { %2399 = vmatprep.subr.bf16.mxu0 %v2398_v21  ;;  %686 = vst [vmem:[#allocation2 + $0x1f8] sm:$0xff] %v2489_v59  ;;  %687 = vst [vmem:[#allocation2 + $0x200] sm:$0xff] %v2489_v59  ;;  %2425 = vmatpush3.bf16.msra.mxu1 %v2422_v7 }
  0x1f   : > { %690 = vst [vmem:[#allocation2 + $0x218] sm:$0xff] %v2489_v59  ;;  %691 = vst [vmem:[#allocation2 + $0x220] sm:$0xff] %v2489_v59  ;;  %2427 = vmatprep.subr.bf16.mxu1 %v2426_v10  ;;  %v765_v19 = vsub.s32 0, %v764_v18  ;;  %v865_v20 = vsub.s32 1, %v764_v18 }
  0x20   : > { %692 = vst [vmem:[#allocation2 + $0x228] sm:$0xff] %v2489_v59  ;;  %693 = vst [vmem:[#allocation2 + $0x230] sm:$0xff] %v2489_v59 }
  0x21   : > { %2401 = vmatpush3.bf16.msra.mxu0 %v2398_v21  ;;  %694 = vst [vmem:[#allocation2 + $0x238] sm:$0xff] %v2489_v59  ;;  %v728_v21 = vld [vmem:[%s3638_s3] sm:$0x7] }
  0x22   : > { %2403 = vmatprep.subr.bf16.mxu0 %v2402_v24  ;;  %2429 = vmatpush3.bf16.msra.mxu1 %v2426_v10  ;;  %v2684_v23 = vrot.slane %v728_v21, %v765_v19 }
  0x23   : > { %2431 = vmatprep.subr.bf16.mxu1 %v2430_v13 }
  0x25   : > { %2405 = vmatpush3.bf16.msra.mxu0 %v2402_v24  ;;  %v965_v24 = vsub.s32 2, %v764_v18 }
  0x26   : > { %2433 = vmatpush3.bf16.msra.mxu1 %v2430_v13 }
  0x27   : > { %2435 = vmatprep.subr.bf16.mxu1 %v2434_v16 }
  0x28   : > { %2247 = vmatmul.mubr.f32.vlgmr.msra.gmra.mrb[0].mxu0 %v280_v25  ;;  %v731_v25 = vld [vmem:[#allocation2 + $0x7] sm:$0xff] }
  0x29   : > { %2249 = vmatprep.mubr.f32.mxu0 %v281_v26 }
  0x2a   : > { %2437 = vmatpush3.bf16.msra.mxu1 %v2434_v16 }
  0x2c   : > { %2250 = vmatmul.mubr.f32.gmra.mrb[2].mxu0 %v282_v27  ;;  %v2686_v27 = vrot.slane %v728_v21, %v865_v20 }
  0x2d   : > { %2252 = vmatprep.mubr.f32.mxu0 %v283_v28  ;;  %v732_v28 = vld [vmem:[#allocation2 + $0xf] sm:$0xff] }
  0x30   : > { %2253 = vmatmul.mubr.f32.gmra.mrb[4].mxu0 %v284_v29 }
  0x31   : > { %2255 = vmatprep.mubr.f32.mxu0 %v285_v30 }
  0x34   : > { %2256 = vmatmul.mubr.f32.gmra.mrb[6].mxu0 %v286_v31 }
  0x35   : > { %2258 = vmatprep.mubr.f32.mxu0 %v287_v32  ;;  %v767_v32 = vmul.f32 %v2684_v23, %v731_v25 }
  0x38   : > { %2259 = vmatmul.mubr.f32.gmra.mrb[8].mxu0 %v288_v33  ;;  %v867_v33 = vmul.f32 0.0, %v2686_v27 }
  0x39   : > { %2261 = vmatprep.mubr.f32.mxu0 %v289_v34  ;;  %v2692_v34 = vrot.slane %v728_v21, %v965_v24 }
  0x3c   : > { %2262 = vmatmul.mubr.f32.gmra.mrb[10].mxu0 %v290_v35 }
  0x3d   : > { %2264 = vmatprep.mubr.f32.mxu0 %v291_v36  ;;  %v931_v36 = vld [vmem:[#allocation2 + $0x9] sm:$0xff] }
  0x40   : > { %2265 = vmatmul.mubr.f32.gmra.mrb[12].mxu0 %v292_v37  ;;  %v768_v37 = vmul.f32 %v2684_v23, %v732_v28 }
  0x41   : > { %2267 = vmatprep.mubr.f32.mxu0 %v293_v38 }
  0x44   : > { %2268 = vmatmul.mubr.f32.gmra.mrb[14].mxu0 %v294_v39 }
  0x45   : > { %2270 = vmatprep.mubr.f32.mxu0 %v295_v40  ;;  %v932_v40 = vld [vmem:[#allocation2 + $0x11] sm:$0xff] }
  0x48   : > { %2271 = vmatmul.mubr.f32.gmra.mrb[16].mxu0 %v296_v41 }
  0x49   : > { %2273 = vmatprep.mubr.f32.mxu0 %v297_v42 }
  0x4c   : > { %2274 = vmatmul.mubr.f32.gmra.mrb[18].mxu0 %v298_v43 }
  0x4d   : > { %2276 = vmatprep.mubr.f32.mxu0 %v299_v44  ;;  %v729_v44 = vld [vmem:[%s3638_s3 + $0x4] sm:$0x7] }
  0x4e   : > { %v2710_v59 = vrot.slane %v729_v44, %v965_v24  ;;  %v2715_v0 = vrot.slane %v729_v44, %v765_v19 }
  0x50   : > { %2277 = vmatmul.mubr.f32.gmra.mrb[20].mxu0 %v300_v45 }
  0x51   : > { %2279 = vmatprep.mubr.f32.mxu0 %v301_v46 }
  0x54   : > { %2280 = vmatmul.mubr.f32.gmra.mrb[22].mxu0 %v302_v47  ;;  %v730_v47 = vld [vmem:[%s3638_s3 + $0x8] sm:$0x7] }
  0x55   : > { %2282 = vmatprep.mubr.f32.mxu0 %v303_v48  ;;  %v899_v48 = vadd.f32 %v867_v33, %v767_v32  ;;  %v2712_v60 = vrot.slane %v730_v47, %v865_v20  ;;  %v2718_v2 = vrot.slane %v730_v47, %v765_v19  ;;  %v2720_v3 = vrot.slane %v730_v47, %v965_v24 }
  0x58   : > { %2283 = vmatmul.mubr.f32.gmra.mrb[24].mxu0 %v304_v49  ;;  %v967_v49 = vmul.f32 %v2692_v34, %v931_v36 }
  0x59   : > { %2285 = vmatprep.mubr.f32.mxu0 %v305_v50 }
  0x5a   : > { %v999_v63 = vadd.f32 %v967_v49, %v899_v48 }
  0x5c   : > { %2286 = vmatmul.mubr.f32.gmra.mrb[26].mxu0 %v306_v51  ;;  %v900_v51 = vadd.f32 %v867_v33, %v768_v37 }
  0x5d   : > { %2288 = vmatprep.mubr.f32.mxu0 %v307_v52  ;;  %v968_v52 = vmul.f32 %v2692_v34, %v932_v40 }
  0x5f   : > { %v1000_v4 = vadd.f32 %v968_v52, %v900_v51 }
  0x60   : > { %2289 = vmatmul.mubr.f32.gmra.mrb[28].mxu0 %v308_v53 }
  0x61   : > { %2291 = vmatprep.mubr.f32.mxu0 %v309_v54 }
  0x64   : > { %2292 = vmatmul.mubr.f32.gmra.mrb[30].mxu0 %v310_v55  ;;  %v2705_v55 = vrot.slane %v729_v44, %v865_v20 }
  0xfb   : > { %v2248_v26 = vpop.f32.mrb[0].mxu0 }
  0xfc   : > { %v406_v29 = vadd.f32 %v2248_v26, %v2682_v22  ;;  %v400_v30 = vpop.f32.mrb[1].mxu0 }
  0xfd   : > { %v401_v31 = vadd.f32 %v2682_v22, %v400_v30 }
  0xfe   : > { %v560_v35 = vmax.f32 %v406_v29, 0.0 }
  0xff   : > { %v559_v38 = vmax.f32 %v401_v31, 0.0  ;;  %v2251_v39 = vpop.f32.mrb[2].mxu0 }
 0x100   : > { %v592_v41 = vmin.f32 %v560_v35, 6.0  ;;  %v416_v42 = vadd.f32 %v2251_v39, %v2682_v22  ;;  %v410_v43 = vpop.f32.mrb[3].mxu0 }
 0x101   : > { %v591_v45 = vmin.f32 %v559_v38, 6.0  ;;  %v411_v46 = vadd.f32 %v2682_v22, %v410_v43 }
 0x102   : > { %697 = vst [vmem:[#allocation2 + $0x30] sm:$0xff] %v592_v41  ;;  %v562_v50 = vmax.f32 %v416_v42, 0.0  ;;  %v1168_v8 = vmul.f32 %v2705_v55, %v592_v41  ;;  %v2725_v9 = vmul.f32 %v2686_v27, %v592_v41 }
 0x103   : > { %696 = vst [vmem:[#allocation2 + $0x28] sm:$0xff] %v591_v45  ;;  %v561_v53 = vmax.f32 %v411_v46, 0.0  ;;  %v2254_v54 = vpop.f32.mrb[4].mxu0  ;;  %v1167_v7 = vmul.f32 %v2705_v55, %v591_v45  ;;  %v869_v14 = vmul.f32 %v2686_v27, %v591_v45 }
 0x104   : > { %v2707_v56 = vmin.f32 %v562_v50, 6.0  ;;  %v426_v57 = vadd.f32 %v2254_v54, %v2682_v22  ;;  %v420_v58 = vpop.f32.mrb[5].mxu0 }
 0x105   : > { %v593_v61 = vmin.f32 %v561_v53, 6.0  ;;  %v421_v62 = vadd.f32 %v2682_v22, %v420_v58 }
 0x106   : > { %699 = vst [vmem:[#allocation2 + $0x50] sm:$0xff] %v2707_v56  ;;  %v564_v1 = vmax.f32 %v426_v57, 0.0  ;;  %v2732_v13 = vmul.f32 %v2712_v60, %v2707_v56  ;;  %v2743_v19 = vmul.f32 %v2705_v55, %v2707_v56 }
 0x107   : > { %698 = vst [vmem:[#allocation2 + $0x48] sm:$0xff] %v593_v61  ;;  %v563_v5 = vmax.f32 %v421_v62, 0.0  ;;  %v2257_v6 = vpop.f32.mrb[6].mxu0  ;;  %v2739_v17 = vmul.f32 %v2712_v60, %v593_v61  ;;  %v2750_v28 = vmul.f32 %v2705_v55, %v593_v61  ;;  %v2753_v29 = vmul.f32 %v2686_v27, %v593_v61 }
 0x108   : > { %v2727_v10 = vmin.f32 %v564_v1, 6.0  ;;  %v436_v11 = vadd.f32 %v2257_v6, %v2682_v22  ;;  %v430_v12 = vpop.f32.mrb[7].mxu0 }
 0x109   : > { %v2735_v15 = vmin.f32 %v563_v5, 6.0  ;;  %v431_v16 = vadd.f32 %v2682_v22, %v430_v12  ;;  %v1232_v18 = vld [vmem:[#allocation2 + $0x31] sm:$0xff] }
 0x10a   : > { %701 = vst [vmem:[#allocation2 + $0x70] sm:$0xff] %v2727_v10  ;;  %v566_v20 = vmax.f32 %v436_v11, 0.0  ;;  %v1031_v21 = vld [vmem:[#allocation2 + $0x27] sm:$0xff]  ;;  %v2746_v25 = vld [vmem:[#allocation2 + $0x2f] sm:$0xff]  ;;  %v1268_v26 = vmul.f32 %v2710_v59, %v1232_v18  ;;  %v2760_v35 = vmul.f32 %v1232_v18, %v2692_v34 }
 0x10b   : > { %v1231_v24 = vld [vmem:[#allocation2 + $0x29] sm:$0xff]  ;;  %700 = vst [vmem:[#allocation2 + $0x68] sm:$0xff] %v2735_v15  ;;  %v565_v30 = vmax.f32 %v431_v16, 0.0  ;;  %v2260_v31 = vpop.f32.mrb[8].mxu0  ;;  %v1067_v32 = vmul.f32 %v2715_v0, %v1031_v21  ;;  %v1068_v33 = vmul.f32 %v2715_v0, %v2746_v25  ;;  %v769_v40 = vmul.f32 %v1031_v21, %v2684_v23 }
 0x10c   : > { %v2762_v36 = vmin.f32 %v566_v20, 6.0  ;;  %v446_v37 = vadd.f32 %v2260_v31, %v2682_v22  ;;  %v440_v38 = vpop.f32.mrb[9].mxu0  ;;  %v1267_v39 = vmul.f32 %v2710_v59, %v1231_v24  ;;  %v969_v51 = vmul.f32 %v1231_v24, %v2692_v34 }
 0x10d   : > { %v2767_v41 = vmin.f32 %v565_v30, 6.0  ;;  %v441_v42 = vadd.f32 %v2682_v22, %v440_v38  ;;  %v1099_v43 = vadd.f32 %v1067_v32, %v999_v63  ;;  %v1100_v44 = vadd.f32 %v1068_v33, %v1000_v4  ;;  %v2770_v45 = vld [vmem:[#allocation2 + $0x51] sm:$0xff] }
 0x10e   : > { %703 = vst [vmem:[#allocation2 + $0x90] sm:$0xff] %v2762_v36  ;;  %v568_v46 = vmax.f32 %v446_v37, 0.0  ;;  %v2773_v47 = vld [vmem:[#allocation2 + $0x47] sm:$0xff]  ;;  %v1569_v49 = vmul.f32 %v2720_v3, %v2770_v45  ;;  %v901_v50 = vadd.f32 %v869_v14, %v769_v40  ;;  %v2783_v58 = vld [vmem:[#allocation2 + $0x4f] sm:$0xff]  ;;  %v2787_v61 = vmul.f32 %v2712_v60, %v2735_v15 }
 0x10f   : > { %v2775_v48 = vld [vmem:[#allocation2 + $0x49] sm:$0xff]  ;;  %702 = vst [vmem:[#allocation2 + $0x88] sm:$0xff] %v2767_v41  ;;  %v567_v52 = vmax.f32 %v441_v42, 0.0  ;;  %v2263_v53 = vpop.f32.mrb[10].mxu0  ;;  %v1199_v54 = vadd.f32 %v1167_v7, %v1099_v43  ;;  %v1368_v57 = vmul.f32 %v2718_v2, %v2773_v47  ;;  %v1200_v5 = vadd.f32 %v1168_v8, %v1100_v44 }
 0x110   : > { %v2789_v62 = vmin.f32 %v568_v46, 6.0  ;;  %v456_v63 = vadd.f32 %v2263_v53, %v2682_v22  ;;  %v450_v1 = vpop.f32.mrb[11].mxu0  ;;  %v1568_v4 = vmul.f32 %v2720_v3, %v2775_v48  ;;  %v1001_v12 = vadd.f32 %v969_v51, %v901_v50  ;;  %v2824_v51 = vld [vmem:[%s3639_s4] ss:$0 sm:$0xff] }
 0x111   : > { %v2794_v6 = vmin.f32 %v567_v52, 6.0  ;;  %v451_v7 = vadd.f32 %v2682_v22, %v450_v1  ;;  %v1299_v11 = vadd.f32 %v1267_v39, %v1199_v54  ;;  %v1300_v16 = vadd.f32 %v1268_v26, %v1200_v5 }
 0x112   : > { %705 = vst [vmem:[#allocation2 + $0xb0] sm:$0xff] %v2789_v62  ;;  %v570_v14 = vmax.f32 %v456_v63, 0.0  ;;  %v1369_v18 = vmul.f32 %v2718_v2, %v2783_v58  ;;  %v1069_v20 = vmul.f32 %v2773_v47, %v2715_v0  ;;  %v2802_v21 = vld [vmem:[#allocation2 + $0x67] sm:$0xff]  ;;  %v1269_v31 = vmul.f32 %v2775_v48, %v2710_v59 }
 0x113   : > { %704 = vst [vmem:[#allocation2 + $0xa8] sm:$0xff] %v2794_v6  ;;  %v569_v8 = vmax.f32 %v451_v7, 0.0  ;;  %v2266_v24 = vpop.f32.mrb[12].mxu0  ;;  %v1400_v30 = vadd.f32 %v1368_v57, %v1299_v11  ;;  %v1370_v32 = vmul.f32 %v2718_v2, %v2802_v21  ;;  %v2809_v26 = vld [vmem:[#allocation2 + $0x69] sm:$0xff]  ;;  %v770_v46 = vmul.f32 %v2746_v25, %v2684_v23 }
 0x114   : > { %v2811_v33 = vmin.f32 %v570_v14, 6.0  ;;  %v466_v37 = vadd.f32 %v2266_v24, %v2682_v22  ;;  %v460_v38 = vpop.f32.mrb[13].mxu0  ;;  %v1401_v39 = vadd.f32 %v1369_v18, %v1300_v16  ;;  %v1101_v40 = vadd.f32 %v1069_v20, %v1001_v12  ;;  %v2837_v12 = vld [vmem:[#allocation2 + $0x6f] sm:$0xff] }
 0x115   : > { %v2814_v42 = vmin.f32 %v569_v8, 6.0  ;;  %v461_v43 = vadd.f32 %v2682_v22, %v460_v38  ;;  %v1500_v44 = vadd.f32 %v2739_v17, %v1400_v30  ;;  %v1570_v54 = vmul.f32 %v2720_v3, %v2809_v26 }
 0x116   : > { %707 = vst [vmem:[#allocation2 + $0xd0] sm:$0xff] %v2811_v33  ;;  %v572_v50 = vmax.f32 %v466_v37, 0.0  ;;  %v1501_v52 = vadd.f32 %v2732_v13, %v1401_v39  ;;  %v1201_v53 = vadd.f32 %v2750_v28, %v1101_v40  ;;  %v902_v63 = vadd.f32 %v2725_v9, %v770_v46 }
 0x117   : > { %706 = vst [vmem:[#allocation2 + $0xc8] sm:$0xff] %v2814_v42  ;;  %v571_v17 = vmax.f32 %v461_v43, 0.0  ;;  %v2269_v57 = vpop.f32.mrb[14].mxu0  ;;  %v1600_v25 = vadd.f32 %v1568_v4, %v1500_v44  ;;  %v1070_v1 = vmul.f32 %v2783_v58, %v2715_v0  ;;  %v1371_v38 = vmul.f32 %v2718_v2, %v2837_v12 }
 0x118   : > { %v2834_v5 = vmin.f32 %v572_v50, 6.0  ;;  %v476_v7 = vadd.f32 %v2269_v57, %v2682_v22  ;;  %v470_v13 = vpop.f32.mrb[15].mxu0  ;;  %v1601_v11 = vadd.f32 %v1569_v49, %v1501_v52  ;;  %v1301_v28 = vadd.f32 %v1269_v31, %v1201_v53 }
 0x119   : > { %v2839_v14 = vmin.f32 %v571_v17, 6.0  ;;  %v471_v16 = vadd.f32 %v2682_v22, %v470_v13  ;;  %v1639_v4 = vadd.f32 %v2824_v51, %v1600_v25  ;;  %v1002_v9 = vadd.f32 %v2760_v35, %v902_v63 }
 0x11a   : > { %709 = vst [vmem:[#allocation2 + $0xf0] sm:$0xff] %v2834_v5  ;;  %v574_v18 = vmax.f32 %v476_v7, 0.0  ;;  %v1640_v20 = vadd.f32 %v2824_v51, %v1601_v11  ;;  %v1402_v8 = vadd.f32 %v1370_v32, %v1301_v28  ;;  %v1270_v49 = vmul.f32 %v2770_v45, %v2710_v59 }
 0x11b   : > { %708 = vst [vmem:[#allocation2 + $0xe8] sm:$0xff] %v2839_v14  ;;  %v573_v24 = vmax.f32 %v471_v16, 0.0  ;;  %v2272_v30 = vpop.f32.mrb[16].mxu0  ;;  %v1671_v31 = vmax.f32 %v1639_v4, 0.0  ;;  %v1102_v37 = vadd.f32 %v1070_v1, %v1002_v9  ;;  %v771_v25 = vmul.f32 %v2773_v47, %v2684_v23  ;;  %v2866_v47 = vld [vmem:[#allocation2 + $0x71] sm:$0xff] }
 0x11c   : > { %v606_v39 = vmin.f32 %v574_v18, 6.0  ;;  %v486_v35 = vadd.f32 %v2272_v30, %v2682_v22  ;;  %v480_v40 = vpop.f32.mrb[17].mxu0  ;;  %v1672_v43 = vmax.f32 %v1640_v20, 0.0  ;;  %v1502_v44 = vadd.f32 %v2787_v61, %v1402_v8 }
 0x11d   : > { %v2853_v32 = vmin.f32 %v573_v24, 6.0  ;;  %v481_v46 = vadd.f32 %v2682_v22, %v480_v40  ;;  %v1703_v50 = vmin.f32 %v1671_v31, 6.0  ;;  %v1202_v52 = vadd.f32 %v2743_v19, %v1102_v37 }
 0x11e   : > { %711 = vst [vmem:[#allocation2 + $0x110] sm:$0xff] %v606_v39  ;;  %v576_v53 = vmax.f32 %v486_v35, 0.0  ;;  %v1704_v17 = vmin.f32 %v1672_v43, 6.0  ;;  %v1602_v57 = vadd.f32 %v1570_v54, %v1502_v44  ;;  %v971_v7 = vmul.f32 %v2775_v48, %v2692_v34  ;;  %v2878_v39 = vld [vmem:[#allocation2 + $0x87] sm:$0xff] }
 0x11f   : > { %710 = vst [vmem:[#allocation2 + $0x108] sm:$0xff] %v2853_v32  ;;  %v575_v63 = vmax.f32 %v481_v46, 0.0  ;;  %v2275_v1 = vpop.f32.mrb[18].mxu0  ;;  %2326 = vmatprep.mubr.f32.mxu1 %v1703_v50  ;;  %v1302_v61 = vadd.f32 %v1270_v49, %v1202_v52  ;;  %v1071_v13 = vmul.f32 %v2802_v21, %v2715_v0  ;;  %v903_v16 = vadd.f32 %v2753_v29, %v771_v25 }
 0x120   : > { %v608_v19 = vmin.f32 %v576_v53, 6.0  ;;  %v496_v11 = vadd.f32 %v2275_v1, %v2682_v22  ;;  %v490_v28 = vpop.f32.mrb[19].mxu0  ;;  %2327 = vmatmul.mubr.f32.vlgmr.msra.gmra.mrb[0].mxu1 %v1704_v17  ;;  %v1641_v54 = vadd.f32 %v2824_v51, %v1602_v57  ;;  %v1471_v48 = vmul.f32 %v2712_v60, %v2727_v10 }
 0x121   : > { %v607_v4 = vmin.f32 %v575_v63, 6.0  ;;  %v491_v9 = vadd.f32 %v2682_v22, %v490_v28  ;;  %v1403_v18 = vadd.f32 %v1371_v38, %v1302_v61  ;;  %v1003_v49 = vadd.f32 %v971_v7, %v903_v16  ;;  %v2894_v16 = vld [vmem:[#allocation2 + $0x89] sm:$0xff] }
 0x122   : > { %713 = vst [vmem:[#allocation2 + $0x130] sm:$0xff] %v608_v19  ;;  %v578_v20 = vmax.f32 %v496_v11, 0.0  ;;  %v1673_v8 = vmax.f32 %v1641_v54, 0.0  ;;  %v872_v24 = vmul.f32 %v2686_v27, %v2707_v56  ;;  %v1571_v29 = vmul.f32 %v2720_v3, %v2866_v47 }
 0x123   : > { %712 = vst [vmem:[#allocation2 + $0x128] sm:$0xff] %v607_v4  ;;  %v577_v30 = vmax.f32 %v491_v9, 0.0  ;;  %v2278_v31 = vpop.f32.mrb[20].mxu0  ;;  %v1503_v37 = vadd.f32 %v1471_v48, %v1403_v18  ;;  %v1171_v38 = vmul.f32 %v2705_v55, %v2735_v15  ;;  %v1103_v46 = vadd.f32 %v1071_v13, %v1003_v49 }
 0x124   : > { %v610_v35 = vmin.f32 %v578_v20, 6.0  ;;  %v506_v40 = vadd.f32 %v2278_v31, %v2682_v22  ;;  %v1705_v43 = vmin.f32 %v1673_v8, 6.0  ;;  %v500_v44 = vpop.f32.mrb[21].mxu0  ;;  %v1271_v53 = vmul.f32 %v2809_v26, %v2710_v59 }
 0x125   : > { %v609_v50 = vmin.f32 %v577_v30, 6.0  ;;  %v501_v56 = vadd.f32 %v2682_v22, %v500_v44  ;;  %v1603_v52 = vadd.f32 %v1571_v29, %v1503_v37  ;;  %v1203_v57 = vadd.f32 %v1171_v38, %v1103_v46 }
 0x126   : > { %715 = vst [vmem:[#allocation2 + $0x150] sm:$0xff] %v610_v35  ;;  %v580_v17 = vmax.f32 %v506_v40, 0.0  ;;  %2329 = vmatprep.mubr.f32.mxu1 %v1705_v43  ;;  %v1372_v25 = vmul.f32 %v2718_v2, %v2878_v39  ;;  %v772_v63 = vmul.f32 %v2783_v58, %v2684_v23  ;;  %v972_v13 = vmul.f32 %v2770_v45, %v2692_v34  ;;  %v2903_v43 = vld [vmem:[#allocation2 + $0x8f] sm:$0xff] }
 0x127   : > { %714 = vst [vmem:[#allocation2 + $0x148] sm:$0xff] %v609_v50  ;;  %v579_v1 = vmax.f32 %v501_v56, 0.0  ;;  %v1642_v61 = vadd.f32 %v2824_v51, %v1603_v52  ;;  %v2281_v7 = vpop.f32.mrb[22].mxu0  ;;  %v1072_v19 = vmul.f32 %v2837_v12, %v2715_v0  ;;  %v1303_v54 = vadd.f32 %v1271_v53, %v1203_v57 }
 0x128   : > { %v612_v11 = vmin.f32 %v580_v17, 6.0  ;;  %v516_v28 = vadd.f32 %v2281_v7, %v2682_v22  ;;  %v510_v4 = vpop.f32.mrb[23].mxu0  ;;  %v904_v9 = vadd.f32 %v872_v24, %v772_v63  ;;  %v1472_v45 = vmul.f32 %v2712_v60, %v2767_v41 }
 0x129   : > { %v611_v58 = vmin.f32 %v579_v1, 6.0  ;;  %v1674_v18 = vmax.f32 %v1642_v61, 0.0  ;;  %v511_v48 = vadd.f32 %v2682_v22, %v510_v4  ;;  %v1404_v8 = vadd.f32 %v1372_v25, %v1303_v54  ;;  %v2914_v25 = vld [vmem:[#allocation2 + $0x91] sm:$0xff] }
 0x12a   : > { %717 = vst [vmem:[#allocation2 + $0x170] sm:$0xff] %v612_v11  ;;  %v582_v20 = vmax.f32 %v516_v28, 0.0  ;;  %v1004_v49 = vadd.f32 %v972_v13, %v904_v9  ;;  %v1572_v31 = vmul.f32 %v2720_v3, %v2894_v16  ;;  %v1172_v24 = vmul.f32 %v2705_v55, %v2727_v10 }
 0x12b   : > { %716 = vst [vmem:[#allocation2 + $0x168] sm:$0xff] %v611_v58  ;;  %v1706_v30 = vmin.f32 %v1674_v18, 6.0  ;;  %v581_v37 = vmax.f32 %v511_v48, 0.0  ;;  %v2284_v29 = vpop.f32.mrb[24].mxu0  ;;  %v1504_v35 = vadd.f32 %v1472_v45, %v1404_v8  ;;  %v773_v56 = vmul.f32 %v2802_v21, %v2684_v23  ;;  %v2933_v8 = vld [vmem:[#allocation2 + $0xa7] sm:$0xff] }
 0x12c   : > { %v614_v38 = vmin.f32 %v582_v20, 6.0  ;;  %v1104_v40 = vadd.f32 %v1072_v19, %v1004_v49  ;;  %v526_v44 = vadd.f32 %v2284_v29, %v2682_v22  ;;  %v520_v46 = vpop.f32.mrb[25].mxu0  ;;  %v873_v52 = vmul.f32 %v2686_v27, %v2735_v15 }
 0x12d   : > { %2330 = vmatmul.mubr.f32.gmra.mrb[2].mxu1 %v1706_v30  ;;  %v2906_v50 = vmin.f32 %v581_v37, 6.0  ;;  %v1604_v53 = vadd.f32 %v1572_v31, %v1504_v35  ;;  %v1272_v57 = vmul.f32 %v2866_v47, %v2710_v59  ;;  %v1373_v1 = vmul.f32 %v2718_v2, %v2903_v43  ;;  %v2939_v31 = vld [vmem:[#allocation2 + $0xa9] sm:$0xff] }
 0x12e   : > { %719 = vst [vmem:[#allocation2 + $0x190] sm:$0xff] %v614_v38  ;;  %v1204_v17 = vadd.f32 %v1172_v24, %v1104_v40  ;;  %v584_v63 = vmax.f32 %v526_v44, 0.0  ;;  %v905_v61 = vadd.f32 %v873_v52, %v773_v56  ;;  %v973_v21 = vmul.f32 %v2809_v26, %v2692_v34 }
 0x12f   : > { %718 = vst [vmem:[#allocation2 + $0x188] sm:$0xff] %v2906_v50  ;;  %v1073_v15 = vmul.f32 %v2878_v39, %v2715_v0  ;;  %v2287_v7 = vpop.f32.mrb[26].mxu0  ;;  %v1643_v13 = vadd.f32 %v2824_v51, %v1604_v53  ;;  %v1473_v11 = vmul.f32 %v2712_v60, %v2762_v36  ;;  %v1573_v4 = vmul.f32 %v2720_v3, %v2914_v25 }
 0x130   : > { %v1304_v19 = vadd.f32 %v1272_v57, %v1204_v17  ;;  %v616_v28 = vmin.f32 %v584_v63, 6.0  ;;  %v530_v54 = vpop.f32.mrb[27].mxu0  ;;  %v1005_v9 = vadd.f32 %v973_v21, %v905_v61  ;;  %v521_v58 = vadd.f32 %v2682_v22, %v520_v46  ;;  %v2961_v61 = vld [vmem:[#allocation2 + $0xaf] sm:$0xff] }
 0x131   : > { %v774_v26 = vmul.f32 %v2837_v12, %v2684_v23  ;;  %v1675_v18 = vmax.f32 %v1643_v13, 0.0  ;;  %v1173_v20 = vmul.f32 %v2705_v55, %v2767_v41  ;;  %v874_v45 = vmul.f32 %v2686_v27, %v2727_v10 }
 0x132   : > { %v1405_v48 = vadd.f32 %v1373_v1, %v1304_v19  ;;  %721 = vst [vmem:[#allocation2 + $0x1b0] sm:$0xff] %v616_v28  ;;  %v1105_v49 = vadd.f32 %v1073_v15, %v1005_v9  ;;  %v1273_v30 = vmul.f32 %v2894_v16, %v2710_v59  ;;  %v583_v37 = vmax.f32 %v521_v58, 0.0  ;;  %v2972_v28 = vld [vmem:[#allocation2 + $0xb1] sm:$0xff] }
 0x133   : > { %v974_v12 = vmul.f32 %v2866_v47, %v2692_v34  ;;  %v2943_v24 = vpop.f32.mrb[28].mxu0  ;;  %v1707_v29 = vmin.f32 %v1675_v18, 6.0  ;;  %v906_v35 = vadd.f32 %v874_v45, %v774_v26  ;;  %v1074_v40 = vmul.f32 %v2903_v43, %v2715_v0 }
 0x134   : > { %v1505_v38 = vadd.f32 %v1473_v11, %v1405_v48  ;;  %v2947_v44 = vpop.f32.mrb[29].mxu0  ;;  %v1205_v10 = vadd.f32 %v1173_v20, %v1105_v49  ;;  %v1374_v46 = vmul.f32 %v2718_v2, %v2933_v8  ;;  %v1474_v56 = vmul.f32 %v2712_v60, %v2794_v6 }
 0x135   : > { %v2953_v52 = vmin.f32 %v583_v37, 6.0  ;;  %2332 = vmatprep.mubr.f32.mxu1 %v1707_v29  ;;  %v1574_v53 = vmul.f32 %v2720_v3, %v2939_v31  ;;  %v1006_v17 = vadd.f32 %v974_v12, %v906_v35  ;;  %v536_v57 = vadd.f32 %v2287_v7, %v2682_v22 }
 0x136   : > { %v1605_v47 = vadd.f32 %v1573_v4, %v1505_v38  ;;  %v1305_v63 = vadd.f32 %v1273_v30, %v1205_v10  ;;  %v1174_v1 = vmul.f32 %v2705_v55, %v2762_v36  ;;  %v775_v21 = vmul.f32 %v2878_v39, %v2684_v23 }
 0x137   : > { %720 = vst [vmem:[#allocation2 + $0x1a8] sm:$0xff] %v2953_v52  ;;  %v875_v15 = vmul.f32 %v2686_v27, %v2767_v41  ;;  %v2967_v13 = vpop.f32.mrb[30].mxu0  ;;  %v1106_v11 = vadd.f32 %v1074_v40, %v1006_v17  ;;  %v1274_v7 = vmul.f32 %v2914_v25, %v2710_v59  ;;  %v586_v4 = vmax.f32 %v536_v57, 0.0 }
 0x138   : > { %v1644_v19 = vadd.f32 %v2824_v51, %v1605_v47  ;;  %v2974_v9 = vpop.f32.mrb[31].mxu0  ;;  %v1406_v58 = vadd.f32 %v1374_v46, %v1305_v63  ;;  %v975_v39 = vmul.f32 %v2894_v16, %v2692_v34  ;;  %v1075_v41 = vmul.f32 %v2933_v8, %v2715_v0 }
 0x139   : > { %v907_v26 = vadd.f32 %v875_v15, %v775_v21  ;;  %v1206_v48 = vadd.f32 %v1174_v1, %v1106_v11  ;;  %v1375_v20 = vmul.f32 %v2718_v2, %v2961_v61  ;;  %v618_v45 = vmin.f32 %v586_v4, 6.0 }
 0x13a   : > { %v1676_v18 = vmax.f32 %v1644_v19, 0.0  ;;  %v1506_v49 = vadd.f32 %v1474_v56, %v1406_v58  ;;  %v1475_v30 = vmul.f32 %v2712_v60, %v2789_v62  ;;  %v1575_v37 = vmul.f32 %v2720_v3, %v2972_v28  ;;  %v2991_v56 = vld [vmem:[#allocation2 + $0xc7] sm:$0xff] }
 0x13b   : > { %v1007_v12 = vadd.f32 %v975_v39, %v907_v26  ;;  %v1306_v38 = vadd.f32 %v1274_v7, %v1206_v48  ;;  %723 = vst [vmem:[#allocation2 + $0x1d0] sm:$0xff] %v618_v45  ;;  %v531_v16 = vadd.f32 %v2682_v22, %v530_v54  ;;  %v776_v35 = vmul.f32 %v2903_v43, %v2684_v23  ;;  %v3010_v39 = vld [vmem:[#allocation2 + $0xc9] sm:$0xff] }
 0x13c   : > { %v1708_v29 = vmin.f32 %v1676_v18, 6.0  ;;  %v1606_v40 = vadd.f32 %v1574_v53, %v1506_v49  ;;  %v1175_v46 = vmul.f32 %v2705_v55, %v2794_v6  ;;  %v876_v47 = vmul.f32 %v2686_v27, %v2762_v36 }
 0x13d   : > { %v1107_v10 = vadd.f32 %v1075_v41, %v1007_v12  ;;  %v1407_v17 = vadd.f32 %v1375_v20, %v1306_v38  ;;  %v1275_v57 = vmul.f32 %v2939_v31, %v2710_v59  ;;  %v585_v63 = vmax.f32 %v531_v16, 0.0 }
 0x13e   : > { %2333 = vmatmul.mubr.f32.gmra.mrb[4].mxu1 %v1708_v29  ;;  %v976_v54 = vmul.f32 %v2914_v25, %v2692_v34  ;;  %v1645_v43 = vadd.f32 %v2824_v51, %v1606_v40  ;;  %v908_v1 = vadd.f32 %v876_v47, %v776_v35  ;;  %v1076_v21 = vmul.f32 %v2961_v61, %v2715_v0 }
 0x13f   : > { %v1207_v53 = vadd.f32 %v1175_v46, %v1107_v10  ;;  %v1507_v15 = vadd.f32 %v1475_v30, %v1407_v17  ;;  %v1376_v36 = vmul.f32 %v2718_v2, %v2991_v56  ;;  %v1476_v19 = vmul.f32 %v2712_v60, %v2814_v42  ;;  %v3019_v30 = vld [vmem:[#allocation2 + $0xcf] sm:$0xff] }
 0x140   : > { %v3006_v11 = vmin.f32 %v585_v63, 6.0  ;;  %v1677_v7 = vmax.f32 %v1645_v43, 0.0  ;;  %v1008_v58 = vadd.f32 %v976_v54, %v908_v1  ;;  %v1176_v25 = vmul.f32 %v2705_v55, %v2789_v62  ;;  %v3032_v10 = vld [vmem:[#allocation2 + $0xd1] sm:$0xff] }
 0x141   : > { %v1307_v4 = vadd.f32 %v1275_v57, %v1207_v53  ;;  %v1607_v26 = vadd.f32 %v1575_v37, %v1507_v15  ;;  %v546_v41 = vadd.f32 %v2943_v24, %v2682_v22  ;;  %v777_v18 = vmul.f32 %v2933_v8, %v2684_v23 }
 0x142   : > { %722 = vst [vmem:[#allocation2 + $0x1c8] sm:$0xff] %v3006_v11  ;;  %v877_v48 = vmul.f32 %v2686_v27, %v2794_v6  ;;  %v1709_v20 = vmin.f32 %v1677_v7, 6.0  ;;  %v1108_v49 = vadd.f32 %v1076_v21, %v1008_v58  ;;  %v977_v37 = vmul.f32 %v2939_v31, %v2692_v34  ;;  %v3045_v7 = vld [vmem:[#allocation2 + $0xe7] sm:$0xff] }
 0x143   : > { %v1408_v45 = vadd.f32 %v1376_v36, %v1307_v4  ;;  %v1646_v12 = vadd.f32 %v2824_v51, %v1607_v26  ;;  %v588_v29 = vmax.f32 %v546_v41, 0.0  ;;  %v1077_v24 = vmul.f32 %v2991_v56, %v2715_v0 }
 0x144   : > { %v909_v38 = vadd.f32 %v877_v48, %v777_v18  ;;  %2335 = vmatprep.mubr.f32.mxu1 %v1709_v20  ;;  %v1576_v6 = vmul.f32 %v2720_v3, %v3010_v39  ;;  %v1208_v16 = vadd.f32 %v1176_v25, %v1108_v49  ;;  %v1276_v35 = vmul.f32 %v2972_v28, %v2710_v59 }
 0x145   : > { %v1508_v8 = vadd.f32 %v1476_v19, %v1408_v45  ;;  %v1678_v40 = vmax.f32 %v1646_v12, 0.0  ;;  %v1377_v31 = vmul.f32 %v2718_v2, %v3019_v30  ;;  %v620_v46 = vmin.f32 %v588_v29, 6.0 }
 0x146   : > { %v1009_v47 = vadd.f32 %v977_v37, %v909_v38  ;;  %v1308_v57 = vadd.f32 %v1276_v35, %v1208_v16  ;;  %v1477_v63 = vmul.f32 %v2712_v60, %v2811_v33  ;;  %v1177_v54 = vmul.f32 %v2705_v55, %v2814_v42 }
 0x147   : > { %v1608_v17 = vadd.f32 %v1576_v6, %v1508_v8  ;;  %v1710_v43 = vmin.f32 %v1678_v40, 6.0  ;;  %725 = vst [vmem:[#allocation2 + $0x1f0] sm:$0xff] %v620_v46  ;;  %v541_v1 = vadd.f32 %v2682_v22, %v2947_v44  ;;  %v778_v21 = vmul.f32 %v2961_v61, %v2684_v23  ;;  %v3051_v44 = vld [vmem:[#allocation2 + $0xe9] sm:$0xff] }
 0x148   : > { %v1109_v53 = vadd.f32 %v1077_v24, %v1009_v47  ;;  %v1409_v36 = vadd.f32 %v1377_v31, %v1308_v57  ;;  %v1577_v19 = vmul.f32 %v2720_v3, %v3032_v10  ;;  %v878_v4 = vmul.f32 %v2686_v27, %v2789_v62  ;;  %v3066_v8 = vld [vmem:[#allocation2 + $0xef] sm:$0xff] }
 0x149   : > { %v1647_v15 = vadd.f32 %v2824_v51, %v1608_v17  ;;  %2336 = vmatmul.mubr.f32.gmra.mrb[6].mxu1 %v1710_v43  ;;  %v1277_v25 = vmul.f32 %v3010_v39, %v2710_v59  ;;  %v587_v26 = vmax.f32 %v541_v1, 0.0  ;;  %v978_v61 = vmul.f32 %v2972_v28, %v2692_v34 }
 0x14a   : > { %v1209_v58 = vadd.f32 %v1177_v54, %v1109_v53  ;;  %v1509_v18 = vadd.f32 %v1477_v63, %v1409_v36  ;;  %v910_v48 = vadd.f32 %v878_v4, %v778_v21  ;;  %v1078_v20 = vmul.f32 %v3019_v30, %v2715_v0  ;;  %v844_v53 = vld [vmem:[#allocation2 + $0xd0] sm:$0xff] }
 0x14b   : > { %v1679_v41 = vmax.f32 %v1647_v15, 0.0  ;;  %v1378_v62 = vmul.f32 %v2718_v2, %v3045_v7  ;;  %v1478_v49 = vmul.f32 %v2712_v60, %v2839_v14  ;;  %v3061_v37 = vmin.f32 %v587_v26, 6.0 }
 0x14c   : > { %v1309_v45 = vadd.f32 %v1277_v25, %v1209_v58  ;;  %v1609_v29 = vadd.f32 %v1577_v19, %v1509_v18  ;;  %v1578_v28 = vmul.f32 %v2720_v3, %v3051_v44  ;;  %v1010_v38 = vadd.f32 %v978_v61, %v910_v48  ;;  %v1543_v25 = vld [vmem:[#allocation2 + $0xf1] sm:$0xff]  ;;  %v3092_v61 = vld [vmem:[#allocation2 + $0x107] sm:$0xff] }
 0x14d   : > { %v1711_v12 = vmin.f32 %v1679_v41, 6.0  ;;  %724 = vst [vmem:[#allocation2 + $0x1e8] sm:$0xff] %v3061_v37  ;;  %v556_v6 = vadd.f32 %v2967_v13, %v2682_v22  ;;  %v779_v16 = vmul.f32 %v2991_v56, %v2684_v23  ;;  %v879_v35 = vmul.f32 %v2686_v27, %v2814_v42 }
 0x14e   : > { %v1410_v24 = vadd.f32 %v1378_v62, %v1309_v45  ;;  %v1648_v40 = vadd.f32 %v2824_v51, %v1609_v29  ;;  %v1110_v31 = vadd.f32 %v1078_v20, %v1010_v38  ;;  %v1178_v46 = vmul.f32 %v2705_v55, %v2811_v33  ;;  %v3101_v45 = vld [vmem:[#allocation2 + $0x109] sm:$0xff] }
 0x14f   : > { %2338 = vmatprep.mubr.f32.mxu1 %v1711_v12  ;;  %v979_v47 = vmul.f32 %v3010_v39, %v2692_v34  ;;  %v590_v57 = vmax.f32 %v556_v6, 0.0  ;;  %v911_v63 = vadd.f32 %v879_v35, %v779_v16  ;;  %v1079_v13 = vmul.f32 %v3045_v7, %v2715_v0 }
 0x150   : > { %v1510_v17 = vadd.f32 %v1478_v49, %v1410_v24  ;;  %v1680_v56 = vmax.f32 %v1648_v40, 0.0  ;;  %v1210_v54 = vadd.f32 %v1178_v46, %v1110_v31  ;;  %v1278_v42 = vmul.f32 %v3032_v10, %v2710_v59  ;;  %v1144_v24 = vld [vmem:[#allocation2 + $0xf0] sm:$0xff] }
 0x151   : > { %v1379_v43 = vmul.f32 %v2718_v2, %v3066_v8  ;;  %v1479_v33 = vmul.f32 %v2712_v60, %v2834_v5  ;;  %v622_v39 = vmin.f32 %v590_v57, 6.0  ;;  %v1011_v21 = vadd.f32 %v979_v47, %v911_v63  ;;  %v3115_v46 = vld [vmem:[#allocation2 + $0x10f] sm:$0xff] }
 0x152   : > { %v1610_v1 = vadd.f32 %v1578_v28, %v1510_v17  ;;  %v1712_v15 = vmin.f32 %v1680_v56, 6.0  ;;  %v1310_v36 = vadd.f32 %v1278_v42, %v1210_v54  ;;  %v1179_v19 = vmul.f32 %v2705_v55, %v2839_v14  ;;  %v3117_v47 = vld [vmem:[#allocation2 + $0x110] sm:$0xff] }
 0x153   : > { %v551_v4 = vadd.f32 %v2682_v22, %v2974_v9  ;;  %727 = vst [vmem:[#allocation2 + $0x210] sm:$0xff] %v622_v39  ;;  %v1111_v26 = vadd.f32 %v1079_v13, %v1011_v21  ;;  %v780_v5 = vmul.f32 %v3019_v30, %v2684_v23  ;;  %v880_v41 = vmul.f32 %v2686_v27, %v844_v53  ;;  %v845_v30 = vld [vmem:[#allocation2 + $0xe8] sm:$0xff]  ;;  %v3124_v54 = vld [vmem:[#allocation2 + $0x111] sm:$0xff] }
 0x154   : > { %v1649_v58 = vadd.f32 %v2824_v51, %v1610_v1  ;;  %2339 = vmatmul.mubr.f32.gmra.mrb[8].mxu1 %v1712_v15  ;;  %v1411_v18 = vadd.f32 %v1379_v43, %v1310_v36  ;;  %v1279_v14 = vmul.f32 %v3051_v44, %v2710_v59  ;;  %v980_v22 = vmul.f32 %v3032_v10, %v2692_v34  ;;  %v1145_v1 = vld [vmem:[#allocation2 + $0x108] sm:$0xff] }
 0x155   : > { %v589_v48 = vmax.f32 %v551_v4, 0.0  ;;  %v1211_v20 = vadd.f32 %v1179_v19, %v1111_v26  ;;  %v912_v62 = vadd.f32 %v880_v41, %v780_v5  ;;  %v1080_v49 = vmul.f32 %v3066_v8, %v2715_v0  ;;  %v3140_v41 = vld [vmem:[#allocation2 + $0x127] sm:$0xff] }
 0x156   : > { %v1681_v9 = vmax.f32 %v1649_v58, 0.0  ;;  %v1511_v12 = vadd.f32 %v1479_v33, %v1411_v18  ;;  %v1579_v29 = vmul.f32 %v2720_v3, %v1543_v25  ;;  %v1380_v28 = vmul.f32 %v2718_v2, %v3092_v61  ;;  %v3142_v18 = vld [vmem:[#allocation2 + $0x128] sm:$0xff] }
 0x157   : > { %v3108_v38 = vmin.f32 %v589_v48, 6.0  ;;  %v1311_v10 = vadd.f32 %v1279_v14, %v1211_v20  ;;  %v1480_v16 = vmul.f32 %v2712_v60, %v2853_v32  ;;  %v1012_v35 = vadd.f32 %v980_v22, %v912_v62  ;;  %v3144_v14 = vld [vmem:[#allocation2 + $0x129] sm:$0xff] }
 0x158   : > { %v1713_v6 = vmin.f32 %v1681_v9, 6.0  ;;  %v1611_v40 = vadd.f32 %v1579_v29, %v1511_v12  ;;  %v1580_v31 = vmul.f32 %v2720_v3, %v3101_v45  ;;  %v781_v17 = vmul.f32 %v3045_v7, %v2684_v23 }
 0x159   : > { %726 = vst [vmem:[#allocation2 + $0x208] sm:$0xff] %v3108_v38  ;;  %v881_v57 = vmul.f32 %v2686_v27, %v845_v30  ;;  %v1412_v63 = vadd.f32 %v1380_v28, %v1311_v10  ;;  %v1112_v13 = vadd.f32 %v1080_v49, %v1012_v35  ;;  %v1180_v32 = vmul.f32 %v2705_v55, %v1144_v24  ;;  %v3159_v10 = vld [vmem:[#allocation2 + $0x12f] sm:$0xff] }
 0x15a   : > { %2341 = vmatprep.mubr.f32.mxu1 %v1713_v6  ;;  %v1280_v56 = vmul.f32 %v1543_v25, %v2710_v59  ;;  %v1650_v42 = vadd.f32 %v2824_v51, %v1611_v40  ;;  %v981_v53 = vmul.f32 %v3051_v44, %v2692_v34  ;;  %v1081_v7 = vmul.f32 %v3092_v61, %v2715_v0 }
 0x15b   : > { %v913_v43 = vadd.f32 %v881_v57, %v781_v17  ;;  %v1512_v33 = vadd.f32 %v1480_v16, %v1412_v63  ;;  %v1212_v39 = vadd.f32 %v1180_v32, %v1112_v13  ;;  %v1381_v21 = vmul.f32 %v2718_v2, %v3115_v46  ;;  %v3167_v63 = vld [vmem:[#allocation2 + $0x130] sm:$0xff] }
 0x15c   : > { %v1481_v15 = vmul.f32 %v2712_v60, %v3117_v47  ;;  %v1682_v36 = vmax.f32 %v1650_v42, 0.0  ;;  %v1581_v19 = vmul.f32 %v2720_v3, %v3124_v54  ;;  %v782_v44 = vmul.f32 %v3066_v8, %v2684_v23  ;;  %v3169_v13 = vld [vmem:[#allocation2 + $0x131] sm:$0xff] }
 0x15d   : > { %v1013_v4 = vadd.f32 %v981_v53, %v913_v43  ;;  %v1612_v58 = vadd.f32 %v1580_v31, %v1512_v33  ;;  %v1312_v26 = vadd.f32 %v1280_v56, %v1212_v39  ;;  %v1181_v5 = vmul.f32 %v2705_v55, %v1145_v1 }
 0x15e   : > { %v882_v48 = vmul.f32 %v1144_v24, %v2686_v27  ;;  %v1714_v22 = vmin.f32 %v1682_v36, 6.0  ;;  %v1281_v20 = vmul.f32 %v3101_v45, %v2710_v59  ;;  %v982_v62 = vmul.f32 %v1543_v25, %v2692_v34 }
 0x15f   : > { %v1113_v9 = vadd.f32 %v1081_v7, %v1013_v4  ;;  %v1651_v8 = vadd.f32 %v2824_v51, %v1612_v58  ;;  %v1413_v49 = vadd.f32 %v1381_v21, %v1312_v26  ;;  %v1082_v12 = vmul.f32 %v3115_v46, %v2715_v0 }
 0x160   : > { %v914_v30 = vadd.f32 %v882_v48, %v782_v44  ;;  %2342 = vmatmul.mubr.f32.gmra.mrb[10].mxu1 %v1714_v22  ;;  %v1382_v28 = vmul.f32 %v2718_v2, %v3140_v41  ;;  %v1482_v24 = vmul.f32 %v2712_v60, %v3142_v18  ;;  %v1582_v6 = vmul.f32 %v2720_v3, %v3144_v14  ;;  %v3183_v44 = vld [vmem:[#allocation2 + $0x147] sm:$0xff] }
 0x161   : > { %v1213_v29 = vadd.f32 %v1181_v5, %v1113_v9  ;;  %v1683_v25 = vmax.f32 %v1651_v8, 0.0  ;;  %v1513_v16 = vadd.f32 %v1481_v15, %v1413_v49  ;;  %v783_v40 = vmul.f32 %v3092_v61, %v2684_v23  ;;  %v3191_v22 = vld [vmem:[#allocation2 + $0x148] sm:$0xff] }
 0x162   : > { %v1014_v35 = vadd.f32 %v982_v62, %v914_v30  ;;  %v1182_v17 = vmul.f32 %v3117_v47, %v2705_v55  ;;  %v1282_v57 = vmul.f32 %v3124_v54, %v2710_v59  ;;  %v883_v32 = vmul.f32 %v1145_v1, %v2686_v27  ;;  %v3195_v8 = vld [vmem:[#allocation2 + $0x149] sm:$0xff] }
 0x163   : > { %v1313_v31 = vadd.f32 %v1281_v20, %v1213_v29  ;;  %v1715_v56 = vmin.f32 %v1683_v25, 6.0  ;;  %v1613_v42 = vadd.f32 %v1581_v19, %v1513_v16  ;;  %v1383_v53 = vmul.f32 %v2718_v2, %v3159_v10 }
 0x164   : > { %v1114_v43 = vadd.f32 %v1082_v12, %v1014_v35  ;;  %v915_v7 = vadd.f32 %v883_v32, %v783_v40  ;;  %v983_v33 = vmul.f32 %v3101_v45, %v2692_v34  ;;  %v1083_v39 = vmul.f32 %v3140_v41, %v2715_v0 }
 0x165   : > { %v1414_v61 = vadd.f32 %v1382_v28, %v1313_v31  ;;  %2344 = vmatprep.mubr.f32.mxu1 %v1715_v56  ;;  %v1652_v21 = vadd.f32 %v2824_v51, %v1613_v42  ;;  %v1483_v1 = vmul.f32 %v2712_v60, %v3167_v63  ;;  %v1583_v36 = vmul.f32 %v2720_v3, %v3169_v13  ;;  %v3214_v56 = vld [vmem:[#allocation2 + $0x14f] sm:$0xff] }
 0x166   : > { %v1214_v15 = vadd.f32 %v1182_v17, %v1114_v43  ;;  %v1015_v4 = vadd.f32 %v983_v33, %v915_v7  ;;  %v784_v45 = vmul.f32 %v3115_v46, %v2684_v23  ;;  %v884_v58 = vmul.f32 %v3117_v47, %v2686_v27  ;;  %v3216_v42 = vld [vmem:[#allocation2 + $0x150] sm:$0xff] }
 0x167   : > { %v1514_v19 = vadd.f32 %v1482_v24, %v1414_v61  ;;  %v1684_v26 = vmax.f32 %v1652_v21, 0.0  ;;  %v1183_v48 = vmul.f32 %v3142_v18, %v2705_v55  ;;  %v984_v9 = vmul.f32 %v3124_v54, %v2692_v34 }
 0x168   : > { %v1314_v5 = vadd.f32 %v1282_v57, %v1214_v15  ;;  %v1115_v62 = vadd.f32 %v1083_v39, %v1015_v4  ;;  %v916_v49 = vadd.f32 %v884_v58, %v784_v45  ;;  %v1084_v46 = vmul.f32 %v3159_v10, %v2715_v0 }
 0x169   : > { %v1614_v20 = vadd.f32 %v1582_v6, %v1514_v19  ;;  %v1716_v30 = vmin.f32 %v1684_v26, 6.0  ;;  %v1283_v12 = vmul.f32 %v3144_v14, %v2710_v59  ;;  %v1384_v29 = vmul.f32 %v2718_v2, %v3183_v44 }
 0x16a   : > { %v1415_v47 = vadd.f32 %v1383_v53, %v1314_v5  ;;  %v1215_v24 = vadd.f32 %v1183_v48, %v1115_v62  ;;  %v1484_v54 = vmul.f32 %v2712_v60, %v3191_v22  ;;  %v1016_v6 = vadd.f32 %v984_v9, %v916_v49  ;;  %v3218_v53 = vld [vmem:[#allocation2 + $0x151] sm:$0xff]  ;;  %v3237_v9 = vld [vmem:[#allocation2 + $0x167] sm:$0xff] }
 0x16b   : > { %v1653_v28 = vadd.f32 %v2824_v51, %v1614_v20  ;;  %2345 = vmatmul.mubr.f32.gmra.mrb[12].mxu1 %v1716_v30  ;;  %v1584_v16 = vmul.f32 %v2720_v3, %v3195_v8  ;;  %v785_v35 = vmul.f32 %v3140_v41, %v2684_v23  ;;  %v885_v40 = vmul.f32 %v3142_v18, %v2686_v27  ;;  %v3239_v20 = vld [vmem:[#allocation2 + $0x168] sm:$0xff] }
 0x16c   : > { %v1515_v25 = vadd.f32 %v1483_v1, %v1415_v47  ;;  %v1315_v17 = vadd.f32 %v1283_v12, %v1215_v24  ;;  %v1116_v57 = vadd.f32 %v1084_v46, %v1016_v6  ;;  %v1184_v32 = vmul.f32 %v3167_v63, %v2705_v55  ;;  %v3245_v47 = vld [vmem:[#allocation2 + $0x169] sm:$0xff] }
 0x16d   : > { %v1685_v31 = vmax.f32 %v1653_v28, 0.0  ;;  %v917_v61 = vadd.f32 %v885_v40, %v785_v35  ;;  %v985_v41 = vmul.f32 %v3144_v14, %v2692_v34  ;;  %v1085_v18 = vmul.f32 %v3183_v44, %v2715_v0 }
 0x16e   : > { %v1615_v43 = vadd.f32 %v1583_v36, %v1515_v25  ;;  %v1416_v33 = vadd.f32 %v1384_v29, %v1315_v17  ;;  %v1216_v39 = vadd.f32 %v1184_v32, %v1116_v57  ;;  %v1284_v21 = vmul.f32 %v3169_v13, %v2710_v59  ;;  %v3262_v32 = vld [vmem:[#allocation2 + $0x16f] sm:$0xff] }
 0x16f   : > { %v1717_v7 = vmin.f32 %v1685_v31, 6.0  ;;  %v1385_v1 = vmul.f32 %v2718_v2, %v3214_v56  ;;  %v1485_v36 = vmul.f32 %v2712_v60, %v3216_v42  ;;  %v1017_v19 = vadd.f32 %v985_v41, %v917_v61 }
 0x170   : > { %v1654_v15 = vadd.f32 %v2824_v51, %v1615_v43  ;;  %v1516_v14 = vadd.f32 %v1484_v54, %v1416_v33  ;;  %v1316_v4 = vadd.f32 %v1284_v21, %v1216_v39  ;;  %v1585_v45 = vmul.f32 %v2720_v3, %v3218_v53  ;;  %v3264_v43 = vld [vmem:[#allocation2 + $0x170] sm:$0xff] }
 0x171   : > { %2347 = vmatprep.mubr.f32.mxu1 %v1717_v7  ;;  %v786_v58 = vmul.f32 %v3159_v10, %v2684_v23  ;;  %v1117_v5 = vadd.f32 %v1085_v18, %v1017_v19  ;;  %v1185_v48 = vmul.f32 %v3191_v22, %v2705_v55  ;;  %v886_v62 = vmul.f32 %v3167_v63, %v2686_v27  ;;  %v3270_v33 = vld [vmem:[#allocation2 + $0x171] sm:$0xff] }
 0x172   : > { %v1686_v26 = vmax.f32 %v1654_v15, 0.0  ;;  %v1616_v49 = vadd.f32 %v1584_v16, %v1516_v14  ;;  %v1417_v46 = vadd.f32 %v1385_v1, %v1316_v4  ;;  %v1285_v30 = vmul.f32 %v3195_v8, %v2710_v59 }
 0x173   : > { %v986_v10 = vmul.f32 %v3169_v13, %v2692_v34  ;;  %v1217_v29 = vadd.f32 %v1185_v48, %v1117_v5  ;;  %v918_v28 = vadd.f32 %v886_v62, %v786_v58  ;;  %v1086_v24 = vmul.f32 %v3214_v56, %v2715_v0  ;;  %v3287_v48 = vld [vmem:[#allocation2 + $0x187] sm:$0xff] }
 0x174   : > { %v1718_v12 = vmin.f32 %v1686_v26, 6.0  ;;  %v1655_v54 = vadd.f32 %v2824_v51, %v1616_v49  ;;  %v1517_v6 = vadd.f32 %v1485_v36, %v1417_v46  ;;  %v1386_v63 = vmul.f32 %v2718_v2, %v3237_v9  ;;  %v3289_v62 = vld [vmem:[#allocation2 + $0x189] sm:$0xff] }
 0x175   : > { %v1486_v25 = vmul.f32 %v2712_v60, %v3239_v20  ;;  %v1317_v16 = vadd.f32 %v1285_v30, %v1217_v29  ;;  %v1586_v13 = vmul.f32 %v2720_v3, %v3245_v47  ;;  %v1018_v35 = vadd.f32 %v986_v10, %v918_v28 }
 0x176   : > { %2348 = vmatmul.mubr.f32.gmra.mrb[14].mxu1 %v1718_v12  ;;  %v787_v40 = vmul.f32 %v3183_v44, %v2684_v23  ;;  %v1687_v31 = vmax.f32 %v1655_v54, 0.0  ;;  %v1617_v17 = vadd.f32 %v1585_v45, %v1517_v6  ;;  %v1186_v57 = vmul.f32 %v3216_v42, %v2705_v55  ;;  %v3300_v12 = vld [vmem:[%s3639_s4] ss:$0 sm:$0xff] }
 0x177   : > { %v887_v61 = vmul.f32 %v3191_v22, %v2686_v27  ;;  %v1418_v41 = vadd.f32 %v1386_v63, %v1317_v16  ;;  %v1118_v18 = vadd.f32 %v1086_v24, %v1018_v35  ;;  %v1286_v7 = vmul.f32 %v3218_v53, %v2710_v59 }
 0x178   : > { %v987_v44 = vmul.f32 %v3195_v8, %v2692_v34  ;;  %v1719_v39 = vmin.f32 %v1687_v31, 6.0  ;;  %v1656_v21 = vadd.f32 %v2824_v51, %v1617_v17  ;;  %v1087_v1 = vmul.f32 %v3237_v9, %v2715_v0 }
 0x179   : > { %v919_v15 = vadd.f32 %v887_v61, %v787_v40  ;;  %v1518_v36 = vadd.f32 %v1486_v25, %v1418_v41  ;;  %v1218_v19 = vadd.f32 %v1186_v57, %v1118_v18  ;;  %v1387_v22 = vmul.f32 %v2718_v2, %v3262_v32  ;;  %v3311_v25 = vld [vmem:[#allocation2 + $0x18f] sm:$0xff] }
 0x17a   : > { %v1487_v14 = vmul.f32 %v2712_v60, %v3264_v43  ;;  %2350 = vmatprep.mubr.f32.mxu1 %v1719_v39  ;;  %v1688_v4 = vmax.f32 %v1656_v21, 0.0  ;;  %v1587_v8 = vmul.f32 %v2720_v3, %v3270_v33  ;;  %v788_v51 = vmul.f32 %v3214_v56, %v2684_v23  ;;  %v3319_v61 = vld [vmem:[#allocation2 + $0x190] sm:$0xff] }
 0x17b   : > { %v1019_v45 = vadd.f32 %v987_v44, %v919_v15  ;;  %v1618_v58 = vadd.f32 %v1586_v13, %v1518_v36  ;;  %v1318_v26 = vadd.f32 %v1286_v7, %v1218_v19  ;;  %v1187_v5 = vmul.f32 %v3239_v20, %v2705_v55  ;;  %v1153_v36 = vld [vmem:[#allocation2 + $0x188] sm:$0xff] }
 0x17c   : > { %v888_v49 = vmul.f32 %v3216_v42, %v2686_v27  ;;  %v1720_v46 = vmin.f32 %v1688_v4, 6.0  ;;  %v1287_v10 = vmul.f32 %v3245_v47, %v2710_v59  ;;  %v988_v56 = vmul.f32 %v3218_v53, %v2692_v34 }
 0x17d   : > { %v1119_v30 = vadd.f32 %v1087_v1, %v1019_v45  ;;  %v1657_v29 = vadd.f32 %v3300_v12, %v1618_v58  ;;  %v1419_v28 = vadd.f32 %v1387_v22, %v1318_v26  ;;  %v1088_v42 = vmul.f32 %v3262_v32, %v2715_v0  ;;  %v3336_v45 = vld [vmem:[#allocation2 + $0x1a7] sm:$0xff] }
 0x17e   : > { %v920_v24 = vadd.f32 %v888_v49, %v788_v51  ;;  %2351 = vmatmul.mubr.f32.gmra.mrb[16].mxu1 %v1720_v46  ;;  %v1388_v6 = vmul.f32 %v2718_v2, %v3287_v48  ;;  %v1488_v53 = vmul.f32 %v2712_v60, %v2906_v50  ;;  %v1588_v63 = vmul.f32 %v2720_v3, %v3289_v62  ;;  %v3321_v50 = vld [vmem:[#allocation2 + $0x191] sm:$0xff] }
 0x17f   : > { %v1219_v54 = vadd.f32 %v1187_v5, %v1119_v30  ;;  %v1689_v16 = vmax.f32 %v1657_v29, 0.0  ;;  %v1519_v13 = vadd.f32 %v1487_v14, %v1419_v28  ;;  %v789_v40 = vmul.f32 %v3237_v9, %v2684_v23 }
 0x180   : > { %v1020_v35 = vadd.f32 %v988_v56, %v920_v24  ;;  %v1188_v17 = vmul.f32 %v3264_v43, %v2705_v55  ;;  %v1288_v57 = vmul.f32 %v3270_v33, %v2710_v59  ;;  %v889_v41 = vmul.f32 %v3239_v20, %v2686_v27 }
 0x181   : > { %v1319_v31 = vadd.f32 %v1287_v10, %v1219_v54  ;;  %v1721_v18 = vmin.f32 %v1689_v16, 6.0  ;;  %v1619_v7 = vadd.f32 %v1587_v8, %v1519_v13  ;;  %v1389_v9 = vmul.f32 %v2718_v2, %v3311_v25  ;;  %v3345_v10 = vld [vmem:[#allocation2 + $0x1a9] sm:$0xff] }
 0x182   : > { %v1120_v44 = vadd.f32 %v1088_v42, %v1020_v35  ;;  %v921_v21 = vadd.f32 %v889_v41, %v789_v40  ;;  %v989_v15 = vmul.f32 %v3245_v47, %v2692_v34  ;;  %v1089_v1 = vmul.f32 %v3287_v48, %v2715_v0 }
 0x183   : > { %v1420_v39 = vadd.f32 %v1388_v6, %v1319_v31  ;;  %2353 = vmatprep.mubr.f32.mxu1 %v1721_v18  ;;  %v1658_v19 = vadd.f32 %v3300_v12, %v1619_v7  ;;  %v1489_v20 = vmul.f32 %v2712_v60, %v3319_v61  ;;  %v1589_v14 = vmul.f32 %v2720_v3, %v3321_v50  ;;  %v3367_v18 = vld [vmem:[#allocation2 + $0x1b1] sm:$0xff] }
 0x184   : > { %v1220_v22 = vadd.f32 %v1188_v17, %v1120_v44  ;;  %v1021_v8 = vadd.f32 %v989_v15, %v921_v21  ;;  %v790_v47 = vmul.f32 %v3262_v32, %v2684_v23  ;;  %v890_v51 = vmul.f32 %v3264_v43, %v2686_v27 }
 0x185   : > { %v1520_v4 = vadd.f32 %v1488_v53, %v1420_v39  ;;  %v1690_v58 = vmax.f32 %v1658_v19, 0.0  ;;  %v1189_v5 = vmul.f32 %v2705_v55, %v1153_v36  ;;  %v990_v49 = vmul.f32 %v3270_v33, %v2692_v34 }
 0x186   : > { %v1320_v26 = vadd.f32 %v1288_v57, %v1220_v22  ;;  %v1121_v30 = vadd.f32 %v1089_v1, %v1021_v8  ;;  %v922_v56 = vadd.f32 %v890_v51, %v790_v47  ;;  %v1090_v29 = vmul.f32 %v3311_v25, %v2715_v0  ;;  %v3363_v57 = vld [vmem:[#allocation2 + $0x1af] sm:$0xff] }
 0x187   : > { %v1620_v46 = vadd.f32 %v1588_v63, %v1520_v4  ;;  %v1722_v28 = vmin.f32 %v1690_v58, 6.0  ;;  %v1289_v43 = vmul.f32 %v3289_v62, %v2710_v59  ;;  %v1390_v24 = vmul.f32 %v2718_v2, %v3336_v45  ;;  %v1155_v1 = vld [vmem:[#allocation2 + $0x1a8] sm:$0xff] }
 0x188   : > { %v1421_v32 = vadd.f32 %v1389_v9, %v1320_v26  ;;  %v1221_v54 = vadd.f32 %v1189_v5, %v1121_v30  ;;  %v1490_v33 = vmul.f32 %v2712_v60, %v2953_v52  ;;  %v1022_v6 = vadd.f32 %v990_v49, %v922_v56  ;;  %v3365_v52 = vld [vmem:[#allocation2 + $0x1b0] sm:$0xff]  ;;  %v3385_v26 = vld [vmem:[#allocation2 + $0x1c7] sm:$0xff] }
 0x189   : > { %v1659_v42 = vadd.f32 %v3300_v12, %v1620_v46  ;;  %2354 = vmatmul.mubr.f32.gmra.mrb[18].mxu1 %v1722_v28  ;;  %v1590_v63 = vmul.f32 %v2720_v3, %v3345_v10  ;;  %v791_v16 = vmul.f32 %v3287_v48, %v2684_v23  ;;  %v891_v13 = vmul.f32 %v1153_v36, %v2686_v27  ;;  %v3391_v56 = vld [vmem:[#allocation2 + $0x1c9] sm:$0xff] }
 0x18a   : > { %v1521_v53 = vadd.f32 %v1489_v20, %v1421_v32  ;;  %v1321_v40 = vadd.f32 %v1289_v43, %v1221_v54  ;;  %v1122_v31 = vadd.f32 %v1090_v29, %v1022_v6  ;;  %v1190_v17 = vmul.f32 %v3319_v61, %v2705_v55 }
 0x18b   : > { %v1691_v35 = vmax.f32 %v1659_v42, 0.0  ;;  %v923_v7 = vadd.f32 %v891_v13, %v791_v16  ;;  %v991_v44 = vmul.f32 %v3289_v62, %v2692_v34  ;;  %v1091_v48 = vmul.f32 %v3336_v45, %v2715_v0 }
 0x18c   : > { %v1621_v41 = vadd.f32 %v1589_v14, %v1521_v53  ;;  %v1422_v39 = vadd.f32 %v1390_v24, %v1321_v40  ;;  %v1222_v21 = vadd.f32 %v1190_v17, %v1122_v31  ;;  %v1290_v15 = vmul.f32 %v3321_v50, %v2710_v59  ;;  %v3410_v40 = vld [vmem:[#allocation2 + $0x1d0] sm:$0xff] }
 0x18d   : > { %v1723_v9 = vmin.f32 %v1691_v35, 6.0  ;;  %v1391_v19 = vmul.f32 %v2718_v2, %v3363_v57  ;;  %v1491_v22 = vmul.f32 %v2712_v60, %v3365_v52  ;;  %v1023_v20 = vadd.f32 %v991_v44, %v923_v7  ;;  %v3408_v35 = vld [vmem:[#allocation2 + $0x1cf] sm:$0xff] }
 0x18e   : > { %v1660_v36 = vadd.f32 %v3300_v12, %v1621_v41  ;;  %v1522_v62 = vadd.f32 %v1490_v33, %v1422_v39  ;;  %v1322_v14 = vadd.f32 %v1290_v15, %v1222_v21  ;;  %v1591_v4 = vmul.f32 %v2720_v3, %v3367_v18  ;;  %v3415_v7 = vld [vmem:[#allocation2 + $0x1d1] sm:$0xff]  ;;  %v1157_v21 = vld [vmem:[#allocation2 + $0x1c8] sm:$0xff] }
 0x18f   : > { %2356 = vmatprep.mubr.f32.mxu1 %v1723_v9  ;;  %v792_v8 = vmul.f32 %v3311_v25, %v2684_v23  ;;  %v1123_v51 = vadd.f32 %v1091_v48, %v1023_v20  ;;  %v1191_v58 = vmul.f32 %v2705_v55, %v1155_v1  ;;  %v892_v5 = vmul.f32 %v3319_v61, %v2686_v27 }
 0x190   : > { %v1692_v47 = vmax.f32 %v1660_v36, 0.0  ;;  %v1622_v49 = vadd.f32 %v1590_v63, %v1522_v62  ;;  %v1423_v46 = vadd.f32 %v1391_v19, %v1322_v14  ;;  %v1291_v30 = vmul.f32 %v3345_v10, %v2710_v59 }
 0x191   : > { %v992_v29 = vmul.f32 %v3321_v50, %v2692_v34  ;;  %v1223_v28 = vadd.f32 %v1191_v58, %v1123_v51  ;;  %v924_v32 = vadd.f32 %v892_v5, %v792_v8  ;;  %v1092_v43 = vmul.f32 %v3363_v57, %v2715_v0  ;;  %v3433_v51 = vld [vmem:[#allocation2 + $0x1e9] sm:$0xff] }
 0x192   : > { %v1724_v25 = vmin.f32 %v1692_v47, 6.0  ;;  %v1661_v24 = vadd.f32 %v3300_v12, %v1622_v49  ;;  %v1523_v42 = vadd.f32 %v1491_v22, %v1423_v46  ;;  %v1392_v61 = vmul.f32 %v2718_v2, %v3385_v26  ;;  %v3431_v47 = vld [vmem:[#allocation2 + $0x1e7] sm:$0xff] }
 0x193   : > { %v1492_v54 = vmul.f32 %v2712_v60, %v3006_v11  ;;  %v1323_v33 = vadd.f32 %v1291_v30, %v1223_v28  ;;  %v1592_v50 = vmul.f32 %v2720_v3, %v3391_v56  ;;  %v1024_v6 = vadd.f32 %v992_v29, %v924_v32 }
 0x194   : > { %2357 = vmatmul.mubr.f32.gmra.mrb[20].mxu1 %v1724_v25  ;;  %v793_v53 = vmul.f32 %v3336_v45, %v2684_v23  ;;  %v1693_v63 = vmax.f32 %v1661_v24, 0.0  ;;  %v1623_v16 = vadd.f32 %v1591_v4, %v1523_v42  ;;  %v1192_v13 = vmul.f32 %v3365_v52, %v2705_v55  ;;  %v3450_v42 = vld [vmem:[#allocation2 + $0x1ef] sm:$0xff] }
 0x195   : > { %v893_v11 = vmul.f32 %v1155_v1, %v2686_v27  ;;  %v1424_v31 = vadd.f32 %v1392_v61, %v1323_v33  ;;  %v1124_v17 = vadd.f32 %v1092_v43, %v1024_v6  ;;  %v1292_v41 = vmul.f32 %v3367_v18, %v2710_v59 }
 0x196   : > { %v993_v45 = vmul.f32 %v3345_v10, %v2692_v34  ;;  %v1725_v44 = vmin.f32 %v1693_v63, 6.0  ;;  %v1662_v48 = vadd.f32 %v3300_v12, %v1623_v16  ;;  %v1093_v39 = vmul.f32 %v3385_v26, %v2715_v0  ;;  %v3458_v63 = vld [vmem:[#allocation2 + $0x1f0] sm:$0xff] }
 0x197   : > { %v925_v9 = vadd.f32 %v893_v11, %v793_v53  ;;  %v1524_v15 = vadd.f32 %v1492_v54, %v1424_v31  ;;  %v1224_v1 = vadd.f32 %v1192_v13, %v1124_v17  ;;  %v1393_v36 = vmul.f32 %v2718_v2, %v3408_v35 }
 0x198   : > { %v1493_v19 = vmul.f32 %v2712_v60, %v3410_v40  ;;  %2359 = vmatprep.mubr.f32.mxu1 %v1725_v44  ;;  %v1694_v22 = vmax.f32 %v1662_v48, 0.0  ;;  %v1593_v10 = vmul.f32 %v2720_v3, %v3415_v7  ;;  %v794_v62 = vmul.f32 %v3363_v57, %v2684_v23  ;;  %v1159_v48 = vld [vmem:[#allocation2 + $0x1e8] sm:$0xff] }
 0x199   : > { %v1025_v20 = vadd.f32 %v993_v45, %v925_v9  ;;  %v1624_v14 = vadd.f32 %v1592_v50, %v1524_v15  ;;  %v1324_v4 = vadd.f32 %v1292_v41, %v1224_v1  ;;  %v1193_v8 = vmul.f32 %v2705_v55, %v1157_v21 }
 0x19a   : > { %v894_v58 = vmul.f32 %v3365_v52, %v2686_v27  ;;  %v1726_v5 = vmin.f32 %v1694_v22, 6.0  ;;  %v1293_v46 = vmul.f32 %v3391_v56, %v2710_v59  ;;  %v994_v30 = vmul.f32 %v3367_v18, %v2692_v34 }
 0x19b   : > { %v1125_v49 = vadd.f32 %v1093_v39, %v1025_v20  ;;  %v1663_v57 = vadd.f32 %v3300_v12, %v1624_v14  ;;  %v1425_v29 = vadd.f32 %v1393_v36, %v1324_v4  ;;  %v1094_v28 = vmul.f32 %v3408_v35, %v2715_v0 }
 0x19c   : > { %v926_v25 = vadd.f32 %v894_v58, %v794_v62  ;;  %2360 = vmatmul.mubr.f32.gmra.mrb[22].mxu1 %v1726_v5  ;;  %v1394_v52 = vmul.f32 %v2718_v2, %v3431_v47  ;;  %v1494_v43 = vmul.f32 %v2712_v60, %v3061_v37  ;;  %v1594_v24 = vmul.f32 %v2720_v3, %v3433_v51  ;;  %v3460_v37 = vld [vmem:[#allocation2 + $0x1f1] sm:$0xff]  ;;  %v1560_v58 = vld [vmem:[#allocation2 + $0x209] sm:$0xff] }
 0x19d   : > { %v1225_v32 = vadd.f32 %v1193_v8, %v1125_v49  ;;  %v1695_v18 = vmax.f32 %v1663_v57, 0.0  ;;  %v1525_v61 = vadd.f32 %v1493_v19, %v1425_v29  ;;  %v795_v33 = vmul.f32 %v3385_v26, %v2684_v23  ;;  %v1360_v19 = vld [vmem:[#allocation2 + $0x207] sm:$0xff] }
 0x19e   : > { %v1026_v54 = vadd.f32 %v994_v30, %v926_v25  ;;  %v1194_v6 = vmul.f32 %v3410_v40, %v2705_v55  ;;  %v1294_v53 = vmul.f32 %v3415_v7, %v2710_v59  ;;  %v895_v16 = vmul.f32 %v1157_v21, %v2686_v27 }
 0x19f   : > { %v1325_v50 = vadd.f32 %v1293_v46, %v1225_v32  ;;  %v1727_v13 = vmin.f32 %v1695_v18, 6.0  ;;  %v1625_v11 = vadd.f32 %v1593_v10, %v1525_v61  ;;  %v1395_v17 = vmul.f32 %v2718_v2, %v3450_v42 }
 0x1a0   : > { %v1126_v31 = vadd.f32 %v1094_v28, %v1026_v54  ;;  %v927_v41 = vadd.f32 %v895_v16, %v795_v33  ;;  %v995_v45 = vmul.f32 %v3391_v56, %v2692_v34  ;;  %v1095_v44 = vmul.f32 %v3431_v47, %v2715_v0  ;;  %v1361_v33 = vld [vmem:[#allocation2 + $0x20f] sm:$0xff] }
 0x1a1   : > { %v1426_v26 = vadd.f32 %v1394_v52, %v1325_v50  ;;  %2362 = vmatprep.mubr.f32.mxu1 %v1727_v13  ;;  %v1664_v9 = vadd.f32 %v3300_v12, %v1625_v11  ;;  %v1495_v21 = vmul.f32 %v2712_v60, %v3458_v63  ;;  %v1595_v15 = vmul.f32 %v2720_v3, %v3460_v37  ;;  %v1461_v50 = vld [vmem:[#allocation2 + $0x210] sm:$0xff]  ;;  %v1161_v13 = vld [vmem:[#allocation2 + $0x208] sm:$0xff] }
 0x1a2   : > { %v1226_v39 = vadd.f32 %v1194_v6, %v1126_v31  ;;  %v1027_v36 = vadd.f32 %v995_v45, %v927_v41  ;;  %v796_v56 = vmul.f32 %v3408_v35, %v2684_v23  ;;  %v896_v22 = vmul.f32 %v3410_v40, %v2686_v27 }
 0x1a3   : > { %v1526_v1 = vadd.f32 %v1494_v43, %v1426_v26  ;;  %v1696_v10 = vmax.f32 %v1664_v9, 0.0  ;;  %v1195_v62 = vmul.f32 %v2705_v55, %v1159_v48  ;;  %v996_v14 = vmul.f32 %v3415_v7, %v2692_v34 }
 0x1a4   : > { %v1326_v20 = vadd.f32 %v1294_v53, %v1226_v39  ;;  %v1127_v8 = vadd.f32 %v1095_v44, %v1027_v36  ;;  %v928_v5 = vadd.f32 %v896_v22, %v796_v56  ;;  %v1096_v49 = vmul.f32 %v3450_v42, %v2715_v0 }
 0x1a5   : > { %v1626_v4 = vadd.f32 %v1594_v24, %v1526_v1  ;;  %v1728_v46 = vmin.f32 %v1696_v10, 6.0  ;;  %v1295_v35 = vmul.f32 %v3433_v51, %v2710_v59  ;;  %v1396_v40 = vmul.f32 %v2718_v2, %v1360_v19  ;;  %v1561_v1 = vld [vmem:[#allocation2 + $0x211] sm:$0xff] }
 0x1a6   : > { %v1427_v30 = vadd.f32 %v1395_v17, %v1326_v20  ;;  %v1227_v29 = vadd.f32 %v1195_v62, %v1127_v8  ;;  %v1496_v7 = vmul.f32 %v2712_v60, %v3108_v38  ;;  %v1028_v25 = vadd.f32 %v996_v14, %v928_v5 }
 0x1a7   : > { %v1665_v57 = vadd.f32 %v3300_v12, %v1626_v4  ;;  %2363 = vmatmul.mubr.f32.gmra.mrb[24].mxu1 %v1728_v46  ;;  %v1596_v32 = vmul.f32 %v2720_v3, %v1560_v58  ;;  %v797_v52 = vmul.f32 %v3431_v47, %v2684_v23  ;;  %v897_v43 = vmul.f32 %v1159_v48, %v2686_v27  ;;  %v1362_v48 = vld [vmem:[#allocation2 + $0x227] sm:$0xff] }
 0x1a8   : > { %v1527_v28 = vadd.f32 %v1495_v21, %v1427_v30  ;;  %v1327_v18 = vadd.f32 %v1295_v35, %v1227_v29  ;;  %v1128_v61 = vadd.f32 %v1096_v49, %v1028_v25  ;;  %v1196_v54 = vmul.f32 %v3458_v63, %v2705_v55  ;;  %v1562_v49 = vld [vmem:[#allocation2 + $0x229] sm:$0xff] }
 0x1a9   : > { %v1697_v24 = vmax.f32 %v1665_v57, 0.0  ;;  %v929_v38 = vadd.f32 %v897_v43, %v797_v52  ;;  %v997_v53 = vmul.f32 %v3433_v51, %v2692_v34  ;;  %v1097_v16 = vmul.f32 %v1360_v19, %v2715_v0 }
 0x1aa   : > { %v1627_v6 = vadd.f32 %v1595_v15, %v1527_v28  ;;  %v1428_v47 = vadd.f32 %v1396_v40, %v1327_v18  ;;  %v1228_v31 = vadd.f32 %v1196_v54, %v1128_v61  ;;  %v1296_v17 = vmul.f32 %v3460_v37, %v2710_v59 }
 0x1ab   : > { %v1729_v11 = vmin.f32 %v1697_v24, 6.0  ;;  %v1397_v41 = vmul.f32 %v2718_v2, %v1361_v33  ;;  %v1497_v45 = vmul.f32 %v2712_v60, %v1461_v50  ;;  %v1029_v44 = vadd.f32 %v997_v53, %v929_v38  ;;  %v1563_v24 = vld [vmem:[#allocation2 + $0x231] sm:$0xff] }
 0x1ac   : > { %v1666_v26 = vadd.f32 %v3300_v12, %v1627_v6  ;;  %v1528_v9 = vadd.f32 %v1496_v7, %v1428_v47  ;;  %v1328_v51 = vadd.f32 %v1296_v17, %v1228_v31  ;;  %v1197_v39 = vmul.f32 %v2705_v55, %v1161_v13  ;;  %v2449_v17 = vld [vmem:[%s2564_s18 + $0x8] sm:$0xff] }
 0x1ad   : > { %2365 = vmatprep.mubr.f32.mxu1 %v1729_v11  ;;  %v798_v21 = vmul.f32 %v3450_v42, %v2684_v23  ;;  %v1129_v36 = vadd.f32 %v1097_v16, %v1029_v44  ;;  %v1297_v19 = vmul.f32 %v1560_v58, %v2710_v59  ;;  %v898_v56 = vmul.f32 %v3458_v63, %v2686_v27  ;;  %v2448_v63 = vld [vmem:[#allocation2] sm:$0xff] }
 0x1ae   : > { %v1698_v15 = vmax.f32 %v1666_v26, 0.0  ;;  %v1628_v22 = vadd.f32 %v1596_v32, %v1528_v9  ;;  %v1429_v10 = vadd.f32 %v1397_v41, %v1328_v51  ;;  %v1398_v20 = vmul.f32 %v2718_v2, %v1362_v48  ;;  %v3527_v11 = vld [vmem:[%s3641_s6] ss:$0 sm:$0xff] }
 0x1af   : > { %v998_v62 = vmul.f32 %v3460_v37, %v2692_v34  ;;  %v1229_v4 = vadd.f32 %v1197_v39, %v1129_v36  ;;  %v930_v8 = vadd.f32 %v898_v56, %v798_v21  ;;  %v1098_v23 = vmul.f32 %v1361_v33, %v2715_v0  ;;  %v1363_v34 = vld [vmem:[#allocation2 + $0x22f] sm:$0xff]  ;;  %v2450_v41 = vld [vmem:[%s2564_s18] sm:$0xff]  ;;  %v2451_v39 = vld [vmem:[%s2564_s18 + $0x18] sm:$0xff] }
 0x1b0   : > { %v1730_v14 = vmin.f32 %v1698_v15, 6.0  ;;  %v1667_v42 = vadd.f32 %v3300_v12, %v1628_v22  ;;  %v1529_v5 = vadd.f32 %v1497_v45, %v1429_v10  ;;  %v1597_v58 = vmul.f32 %v2720_v3, %v1561_v1  ;;  %v2452_v15 = vld [vmem:[%s2564_s18 + $0x10] sm:$0xff]  ;;  %v2453_v10 = vld [vmem:[%s2564_s18 + $0x28] sm:$0xff] }
 0x1b1   : > { %v1329_v27 = vadd.f32 %v1297_v19, %v1229_v4  ;;  %v1498_v46 = vmul.f32 %v2448_v63, %v2712_v60  ;;  %v1030_v30 = vadd.f32 %v998_v62, %v930_v8  ;;  %v1598_v57 = vmul.f32 %v2720_v3, %v1562_v49  ;;  %v2454_v62 = vld [vmem:[%s2564_s18 + $0x20] sm:$0xff]  ;;  %v2456_v49 = vld [vmem:[%s2564_s18 + $0x30] sm:$0xff] }
 0x1b2   : > { %2366 = vmatmul.mubr.f32.gmra.mrb[26].mxu1 %v1730_v14  ;;  %v1699_v35 = vmax.f32 %v1667_v42, 0.0  ;;  %v1629_v40 = vadd.f32 %v1597_v58, %v1529_v5  ;;  %v1198_v0 = vmul.f32 %v1461_v50, %v2705_v55  ;;  %v1298_v52 = vmul.f32 %v1561_v1, %v2710_v59  ;;  %v2455_v5 = vld [vmem:[%s2564_s18 + $0x38] sm:$0xff] }
 0x1b3   : > { %v1430_v37 = vadd.f32 %v1398_v20, %v1329_v27  ;;  %v1130_v29 = vadd.f32 %v1098_v23, %v1030_v30  ;;  %v1399_v43 = vmul.f32 %v2718_v2, %v1363_v34  ;;  %v1599_v55 = vmul.f32 %v2720_v3, %v1563_v24 }
 0x1b4   : > { %v1731_v7 = vmin.f32 %v1699_v35, 6.0  ;;  %v1668_v25 = vadd.f32 %v3300_v12, %v1629_v40  ;;  %v2457_v40 = vld [vmem:[%s2564_s18 + $0x48] sm:$0xff] }
 0x1b5   : > { %v1530_v28 = vadd.f32 %v1498_v46, %v1430_v37  ;;  %v1230_v32 = vadd.f32 %v1198_v0, %v1130_v29  ;;  %v2458_v37 = vld [vmem:[%s2564_s18 + $0x40] sm:$0xff] }
 0x1b6   : > { %2368 = vmatprep.mubr.f32.mxu1 %v1731_v7  ;;  %v1700_v60 = vmax.f32 %v1668_v25, 0.0 }
 0x1b7   : > { %v1630_v18 = vadd.f32 %v1598_v57, %v1530_v28  ;;  %v1330_v61 = vadd.f32 %v1298_v52, %v1230_v32  ;;  %v2459_v28 = vld [vmem:[%s2564_s18 + $0x58] sm:$0xff]  ;;  %v2460_v52 = vld [vmem:[%s2564_s18 + $0x50] sm:$0xff] }
 0x1b8   : > { %v1732_v54 = vmin.f32 %v1700_v60, 6.0 }
 0x1b9   : > { %v1669_v33 = vadd.f32 %v3300_v12, %v1630_v18  ;;  %v1431_v6 = vadd.f32 %v1399_v43, %v1330_v61 }
 0x1ba   : > { %2369 = vmatmul.mubr.f32.gmra.mrb[28].mxu1 %v1732_v54  ;;  %v2461_v54 = vld [vmem:[%s2564_s18 + $0x68] sm:$0xff] }
 0x1bb   : > { %v1701_v50 = vmax.f32 %v1669_v33, 0.0  ;;  %v1531_v38 = vadd.f32 %v1498_v46, %v1431_v6  ;;  %v2462_v6 = vld [vmem:[%s2564_s18 + $0x60] sm:$0xff] }
 0x1bd   : > { %v1733_v59 = vmin.f32 %v1701_v50, 6.0  ;;  %v1631_v53 = vadd.f32 %v1599_v55, %v1531_v38 }
 0x1bf   : > { %2371 = vmatprep.mubr.f32.mxu1 %v1733_v59  ;;  %v1670_v2 = vadd.f32 %v3300_v12, %v1631_v53 }
 0x1c1   : > { %v1702_v16 = vmax.f32 %v1670_v2, 0.0  ;;  %v2463_v2 = vld [vmem:[%s2564_s18 + $0x78] sm:$0xff] }
 0x1c3   : > { %v1734_v13 = vmin.f32 %v1702_v16, 6.0 }
 0x1c5   : > { %2372 = vmatmul.mubr.f32.gmra.mrb[30].mxu1 %v1734_v13  ;;  %v2464_v13 = vld [vmem:[%s2564_s18 + $0x70] sm:$0xff] }
 0x1f3   : > { %v2328_v3 = vpop.f32.mrb[0].mxu1 }
 0x1f4   : > { %v1830_v47 = vadd.f32 %v2328_v3, %v3527_v11  ;;  %v1824_v31 = vpop.f32.mrb[1].mxu1 }
 0x1f5   : > { %v1825_v12 = vadd.f32 %v3527_v11, %v1824_v31 }
 0x1f6   : > { %v1984_v26 = vadd.f32 %v2449_v17, %v1830_v47 }
 0x1f7   : > { %v1983_v45 = vadd.f32 %v2450_v41, %v1825_v12 }
 0x1f8   : > { %2016 = vst [vmem:[%s3535_s9 + $0x8] sm:$0xff] %v1984_v26  ;;  %v2465_v26 = vld [vmem:[%s2564_s18 + $0x88] sm:$0xff] }
 0x1f9   : > { %2015 = vst [vmem:[%s3535_s9] sm:$0xff] %v1983_v45  ;;  %v2466_v45 = vld [vmem:[%s2564_s18 + $0x80] sm:$0xff] }
 0x200   : > { %v2331_v44 = vpop.f32.mrb[2].mxu1 }
 0x201   : > { %v1840_v48 = vadd.f32 %v2331_v44, %v3527_v11  ;;  %v1834_v9 = vpop.f32.mrb[3].mxu1 }
 0x202   : > { %v1835_v51 = vadd.f32 %v3527_v11, %v1834_v9 }
 0x203   : > { %v1986_v21 = vadd.f32 %v2451_v39, %v1840_v48 }
 0x204   : > { %v1985_v1 = vadd.f32 %v2452_v15, %v1835_v51 }
 0x205   : > { %2018 = vst [vmem:[%s3535_s9 + $0x18] sm:$0xff] %v1986_v21  ;;  %v2467_v21 = vld [vmem:[%s2564_s18 + $0x98] sm:$0xff] }
 0x206   : > { %2017 = vst [vmem:[%s3535_s9 + $0x10] sm:$0xff] %v1985_v1  ;;  %v2468_v1 = vld [vmem:[%s2564_s18 + $0x90] sm:$0xff] }
 0x211   : > { %v2334_v36 = vpop.f32.mrb[4].mxu1 }
 0x212   : > { %v1850_v19 = vadd.f32 %v2334_v36, %v3527_v11  ;;  %v1844_v56 = vpop.f32.mrb[5].mxu1 }
 0x213   : > { %v1845_v22 = vadd.f32 %v3527_v11, %v1844_v56 }
 0x214   : > { %v1988_v20 = vadd.f32 %v2453_v10, %v1850_v19 }
 0x215   : > { %v1987_v14 = vadd.f32 %v2454_v62, %v1845_v22 }
 0x216   : > { %2020 = vst [vmem:[%s3535_s9 + $0x28] sm:$0xff] %v1988_v20  ;;  %v2469_v20 = vld [vmem:[%s2564_s18 + $0xa8] sm:$0xff] }
 0x217   : > { %2019 = vst [vmem:[%s3535_s9 + $0x20] sm:$0xff] %v1987_v14  ;;  %v2470_v14 = vld [vmem:[%s2564_s18 + $0xa0] sm:$0xff] }
 0x21c   : > { %v2337_v4 = vpop.f32.mrb[6].mxu1 }
 0x21d   : > { %v1860_v8 = vadd.f32 %v2337_v4, %v3527_v11  ;;  %v1854_v23 = vpop.f32.mrb[7].mxu1 }
 0x21e   : > { %v1855_v42 = vadd.f32 %v3527_v11, %v1854_v23 }
 0x21f   : > { %v1990_v58 = vadd.f32 %v2455_v5, %v1860_v8 }
 0x220   : > { %v1989_v27 = vadd.f32 %v2456_v49, %v1855_v42 }
 0x221   : > { %2022 = vst [vmem:[%s3535_s9 + $0x38] sm:$0xff] %v1990_v58  ;;  %v2471_v58 = vld [vmem:[%s2564_s18 + $0xb8] sm:$0xff] }
 0x222   : > { %2021 = vst [vmem:[%s3535_s9 + $0x30] sm:$0xff] %v1989_v27  ;;  %v2472_v27 = vld [vmem:[%s2564_s18 + $0xb0] sm:$0xff] }
 0x227   : > { %v2340_v63 = vpop.f32.mrb[8].mxu1 }
 0x228   : > { %v1870_v46 = vadd.f32 %v2340_v63, %v3527_v11  ;;  %v1864_v30 = vpop.f32.mrb[9].mxu1 }
 0x229   : > { %v1865_v35 = vadd.f32 %v3527_v11, %v1864_v30 }
 0x22a   : > { %v1992_v34 = vadd.f32 %v2457_v40, %v1870_v46 }
 0x22b   : > { %v1991_v57 = vadd.f32 %v2458_v37, %v1865_v35 }
 0x22c   : > { %2024 = vst [vmem:[%s3535_s9 + $0x48] sm:$0xff] %v1992_v34  ;;  %v2473_v34 = vld [vmem:[%s2564_s18 + $0xc8] sm:$0xff] }
 0x22d   : > { %2023 = vst [vmem:[%s3535_s9 + $0x40] sm:$0xff] %v1991_v57  ;;  %v2474_v57 = vld [vmem:[%s2564_s18 + $0xc0] sm:$0xff] }
 0x233   : > { %v2343_v29 = vpop.f32.mrb[10].mxu1 }
 0x234   : > { %v1880_v0 = vadd.f32 %v2343_v29, %v3527_v11  ;;  %v1874_v7 = vpop.f32.mrb[11].mxu1 }
 0x235   : > { %v1875_v25 = vadd.f32 %v3527_v11, %v1874_v7 }
 0x236   : > { %v1994_v32 = vadd.f32 %v2459_v28, %v1880_v0 }
 0x237   : > { %v1993_v43 = vadd.f32 %v2460_v52, %v1875_v25 }
 0x238   : > { %2026 = vst [vmem:[%s3535_s9 + $0x58] sm:$0xff] %v1994_v32  ;;  %v2475_v32 = vld [vmem:[%s2564_s18 + $0xd8] sm:$0xff] }
 0x239   : > { %2025 = vst [vmem:[%s3535_s9 + $0x50] sm:$0xff] %v1993_v43  ;;  %v2476_v43 = vld [vmem:[%s2564_s18 + $0xd0] sm:$0xff] }
 0x23e   : > { %v2346_v60 = vpop.f32.mrb[12].mxu1 }
 0x23f   : > { %v1890_v24 = vadd.f32 %v2346_v60, %v3527_v11  ;;  %v1884_v18 = vpop.f32.mrb[13].mxu1 }
 0x240   : > { %v1885_v61 = vadd.f32 %v3527_v11, %v1884_v18 }
 0x241   : > { %v1996_v33 = vadd.f32 %v2461_v54, %v1890_v24 }
 0x242   : > { %v1995_v55 = vadd.f32 %v2462_v6, %v1885_v61 }
 0x243   : > { %2028 = vst [vmem:[%s3535_s9 + $0x68] sm:$0xff] %v1996_v33  ;;  %v2477_v33 = vld [vmem:[%s2564_s18 + $0xe8] sm:$0xff] }
 0x244   : > { %2027 = vst [vmem:[%s3535_s9 + $0x60] sm:$0xff] %v1995_v55  ;;  %v2478_v55 = vld [vmem:[%s2564_s18 + $0xe0] sm:$0xff] }
 0x249   : > { %v2349_v50 = vpop.f32.mrb[14].mxu1 }
 0x24a   : > { %v1900_v38 = vadd.f32 %v2349_v50, %v3527_v11  ;;  %v1894_v59 = vpop.f32.mrb[15].mxu1 }
 0x24b   : > { %v1895_v53 = vadd.f32 %v3527_v11, %v1894_v59 }
 0x24c   : > { %v1998_v16 = vadd.f32 %v2463_v2, %v1900_v38 }
 0x24d   : > { %v1997_v3 = vadd.f32 %v2464_v13, %v1895_v53 }
 0x24e   : > { %2030 = vst [vmem:[%s3535_s9 + $0x78] sm:$0xff] %v1998_v16  ;;  %v2479_v16 = vld [vmem:[%s2564_s18 + $0xf8] sm:$0xff] }
 0x24f   : > { %2029 = vst [vmem:[%s3535_s9 + $0x70] sm:$0xff] %v1997_v3  ;;  %v2480_v3 = vld [vmem:[%s2564_s18 + $0xf0] sm:$0xff] }
 0x251   : > { %v2352_v47 = vpop.f32.mrb[16].mxu1 }
 0x252   : > { %v1910_v31 = vadd.f32 %v2352_v47, %v3527_v11  ;;  %v1904_v12 = vpop.f32.mrb[17].mxu1 }
 0x253   : > { %v1905_v17 = vadd.f32 %v3527_v11, %v1904_v12 }
 0x254   : > { %v2000_v41 = vadd.f32 %v2465_v26, %v1910_v31 }
 0x255   : > { %v1999_v44 = vadd.f32 %v2466_v45, %v1905_v17 }
 0x256   : > { %2032 = vst [vmem:[%s3535_s9 + $0x88] sm:$0xff] %v2000_v41 }
 0x257   : > { %2031 = vst [vmem:[%s3535_s9 + $0x80] sm:$0xff] %v1999_v44 }
 0x25c   : > { %v2355_v48 = vpop.f32.mrb[18].mxu1 }
 0x25d   : > { %v1920_v9 = vadd.f32 %v2355_v48, %v3527_v11  ;;  %v1914_v51 = vpop.f32.mrb[19].mxu1 }
 0x25e   : > { %v1915_v39 = vadd.f32 %v3527_v11, %v1914_v51 }
 0x25f   : > { %v2002_v15 = vadd.f32 %v2467_v21, %v1920_v9 }
 0x260   : > { %v2001_v36 = vadd.f32 %v2468_v1, %v1915_v39 }
 0x261   : > { %2034 = vst [vmem:[%s3535_s9 + $0x98] sm:$0xff] %v2002_v15 }
 0x262   : > { %2033 = vst [vmem:[%s3535_s9 + $0x90] sm:$0xff] %v2001_v36 }
 0x267   : > { %v2358_v19 = vpop.f32.mrb[20].mxu1 }
 0x268   : > { %v1930_v56 = vadd.f32 %v2358_v19, %v3527_v11  ;;  %v1924_v22 = vpop.f32.mrb[21].mxu1 }
 0x269   : > { %v1925_v10 = vadd.f32 %v3527_v11, %v1924_v22 }
 0x26a   : > { %v2004_v62 = vadd.f32 %v2469_v20, %v1930_v56 }
 0x26b   : > { %v2003_v4 = vadd.f32 %v2470_v14, %v1925_v10 }
 0x26c   : > { %2036 = vst [vmem:[%s3535_s9 + $0xa8] sm:$0xff] %v2004_v62 }
 0x26d   : > { %2035 = vst [vmem:[%s3535_s9 + $0xa0] sm:$0xff] %v2003_v4 }
 0x26f   : > { %v2361_v8 = vpop.f32.mrb[22].mxu1 }
 0x270   : > { %v1940_v23 = vadd.f32 %v2361_v8, %v3527_v11  ;;  %v1934_v42 = vpop.f32.mrb[23].mxu1 }
 0x271   : > { %v1935_v5 = vadd.f32 %v3527_v11, %v1934_v42 }
 0x272   : > { %v2006_v49 = vadd.f32 %v2471_v58, %v1940_v23 }
 0x273   : > { %v2005_v63 = vadd.f32 %v2472_v27, %v1935_v5 }
 0x274   : > { %2038 = vst [vmem:[%s3535_s9 + $0xb8] sm:$0xff] %v2006_v49 }
 0x275   : > { %2037 = vst [vmem:[%s3535_s9 + $0xb0] sm:$0xff] %v2005_v63 }
 0x27a   : > { %v2364_v46 = vpop.f32.mrb[24].mxu1 }
 0x27b   : > { %v1950_v30 = vadd.f32 %v2364_v46, %v3527_v11  ;;  %v1944_v35 = vpop.f32.mrb[25].mxu1 }
 0x27c   : > { %v1945_v40 = vadd.f32 %v3527_v11, %v1944_v35 }
 0x27d   : > { %v2008_v37 = vadd.f32 %v2473_v34, %v1950_v30 }
 0x27e   : > { %v2007_v29 = vadd.f32 %v2474_v57, %v1945_v40 }
 0x27f   : > { %2040 = vst [vmem:[%s3535_s9 + $0xc8] sm:$0xff] %v2008_v37 }
 0x280   : > { %2039 = vst [vmem:[%s3535_s9 + $0xc0] sm:$0xff] %v2007_v29 }
 0x285   : > { %v2367_v0 = vpop.f32.mrb[26].mxu1 }
 0x286   : > { %v1960_v7 = vadd.f32 %v2367_v0, %v3527_v11  ;;  %v1954_v25 = vpop.f32.mrb[27].mxu1 }
 0x287   : > { %v1955_v28 = vadd.f32 %v3527_v11, %v1954_v25 }
 0x288   : > { %v2010_v52 = vadd.f32 %v2475_v32, %v1960_v7 }
 0x289   : > { %v2009_v60 = vadd.f32 %v2476_v43, %v1955_v28 }
 0x28a   : > { %2042 = vst [vmem:[%s3535_s9 + $0xd8] sm:$0xff] %v2010_v52 }
 0x28b   : > { %2041 = vst [vmem:[%s3535_s9 + $0xd0] sm:$0xff] %v2009_v60 }
 0x28d   : > { %v2370_v24 = vpop.f32.mrb[28].mxu1 }
 0x28e   : > { %v1970_v18 = vadd.f32 %v2370_v24, %v3527_v11  ;;  %v1964_v61 = vpop.f32.mrb[29].mxu1 }
 0x28f   : > { %v1965_v54 = vadd.f32 %v3527_v11, %v1964_v61 }
 0x290   : > { %v2012_v6 = vadd.f32 %v2477_v33, %v1970_v18 }
 0x291   : > { %v2011_v50 = vadd.f32 %v2478_v55, %v1965_v54 }
 0x292   : > { %2044 = vst [vmem:[%s3535_s9 + $0xe8] sm:$0xff] %v2012_v6 }
 0x293   : > { %2043 = vst [vmem:[%s3535_s9 + $0xe0] sm:$0xff] %v2011_v50 }
 0x298   : > { %v2373_v38 = vpop.f32.mrb[30].mxu1 }
 0x299   : > { %v1980_v59 = vadd.f32 %v2373_v38, %v3527_v11  ;;  %v1974_v53 = vpop.f32.mrb[31].mxu1 }
 0x29a   : > { %v1975_v2 = vadd.f32 %v3527_v11, %v1974_v53 }
 0x29b   : > { %v2014_v13 = vadd.f32 %v2479_v16, %v1980_v59 }
 0x29c   : > { %v2013_v47 = vadd.f32 %v2480_v3, %v1975_v2 }
 0x29d   : > { %2046 = vst [vmem:[%s3535_s9 + $0xf8] sm:$0xff] %v2014_v13 }
 0x29e   : > { %2045 = vst [vmem:[%s3535_s9 + $0xf0] sm:$0xff] %v2013_v47 }
 0x29f PF: > { %s17_s24 = sadd.s32 1, %s2487_s24  }
 0x2a0   : > { %p14_p4 = scmp.ge.s32.totalorder %s17_s24, 4  }
 0x2a2   :  { %16 = sbr.rel (!%p14_p4) target bundleno = 1 (0x1), region = 80 }

// kernel: forward.11
= control target key start
LH: loop header
LB: loop body
LE: loop exit
PB: predicated region body
PF: predicated region fallthrough
CT: control target
= control target key end

     0   :  { %s820_s12 = smov 0   ;;  %s1005_s0 = inlined_call_operand.vmem [shape: f32[2,16,16,128], index: 0, kind: input, shape index: {}]   ;;  %s1006_s1 = inlined_call_operand.vmem [shape: f32[128,128], index: 1, kind: input, shape index: {}]   ;;  %s1007_s2 = inlined_call_operand.vmem [shape: f32[1,128], index: 2, kind: input, shape index: {}]   ;;  %s1008_s3 = inlined_call_operand.vmem [shape: f32[2,1,128], index: 3, kind: output, shape index: {}]  }
   0x1 LB: > { %s597_s13 = sadd.s32 4294967295, %s798_s12   ;;  %p601_p0 = scmp.ge.s32.totalorder %s798_s12, 1  ;;  %s798_s12 = sphi %s820_s12, %s13_s12  }
   0x2   : > { %p137_p1 = scmp.lt.s32.totalorder %s798_s12, 3 }
   0x4   : > { %p138_p2 = pnand %p601_p0, %p137_p1 }
   0x5   : > { %v199_v0 = vld [vmem:[%s1006_s1] sm:$0xff] (!%p138_p2)  ;;  %v200_v1 = vld [vmem:[%s1006_s1 + $0x8] sm:$0xff] (!%p138_p2)  ;;  %v201_v2 = vld [vmem:[%s1006_s1 + $0x10] sm:$0xff] (!%p138_p2)  ;;  %p159_p3 = scmp.lt.s32.totalorder (!%p138_p2), %s597_s13, 1 }
   0x6   : > { %141 = sbr.rel (%p138_p2) target bundleno = 338 (0x152), region = 32  ;;  %v736_v3 = vpack.c.bf16 (!%p138_p2), %v200_v1, %v199_v0  ;;  %v202_v4 = vld [vmem:[%s1006_s1 + $0x18] sm:$0xff] (!%p138_p2)  ;;  %v203_v6 = vld [vmem:[%s1006_s1 + $0x20] sm:$0xff] (!%p138_p2)  ;;  %v204_v7 = vld [vmem:[%s1006_s1 + $0x28] sm:$0xff] (!%p138_p2) }
   0x7   : > { %v740_v5 = vpack.c.bf16 (!%p138_p2), %v202_v4, %v201_v2  ;;  %v744_v8 = vpack.c.bf16 (!%p138_p2), %v204_v7, %v203_v6  ;;  %v205_v9 = vld [vmem:[%s1006_s1 + $0x30] sm:$0xff] (!%p138_p2)  ;;  %v206_v10 = vld [vmem:[%s1006_s1 + $0x38] sm:$0xff] (!%p138_p2)  ;;  %v207_v13 = vld [vmem:[%s1006_s1 + $0x40] sm:$0xff] (!%p138_p2) }
   0x8   : > { %737 = vmatprep.subr.bf16.mxu0 (!%p138_p2), %v736_v3  ;;  %768 = vmatprep.subr.bf16.mxu1 (!%p138_p2), %v736_v3  ;;  %v748_v12 = vpack.c.bf16 (!%p138_p2), %v206_v10, %v205_v9  ;;  %v208_v14 = vld [vmem:[%s1006_s1 + $0x48] sm:$0xff] (!%p138_p2)  ;;  %v209_v17 = vld [vmem:[%s1006_s1 + $0x50] sm:$0xff] (!%p138_p2)  ;;  %v210_v18 = vld [vmem:[%s1006_s1 + $0x58] sm:$0xff] (!%p138_p2) }
   0x9   : > { %739 = vmatpush3.bf16.msra.mxu0 (!%p138_p2), %v736_v3  ;;  %776 = vmatpush3.bf16.msra.mxu1 (!%p138_p2), %v736_v3  ;;  %v752_v16 = vpack.c.bf16 (!%p138_p2), %v208_v14, %v207_v13  ;;  %v756_v19 = vpack.c.bf16 (!%p138_p2), %v210_v18, %v209_v17  ;;  %v211_v20 = vld [vmem:[%s1006_s1 + $0x60] sm:$0xff] (!%p138_p2)  ;;  %v212_v21 = vld [vmem:[%s1006_s1 + $0x68] sm:$0xff] (!%p138_p2)  ;;  %v213_v23 = vld [vmem:[%s1006_s1 + $0x70] sm:$0xff] (!%p138_p2) }
   0xa   : > { %741 = vmatprep.subr.bf16.mxu0 (!%p138_p2), %v740_v5  ;;  %769 = vmatprep.subr.bf16.mxu1 (!%p138_p2), %v740_v5  ;;  %v760_v22 = vpack.c.bf16 (!%p138_p2), %v212_v21, %v211_v20  ;;  %v214_v24 = vld [vmem:[%s1006_s1 + $0x78] sm:$0xff] (!%p138_p2)  ;;  %v919_v56 = vld [vmem:[%s1007_s2] ss:$0 sm:$0xff] (!%p138_p2) }
   0xb   : > { %v764_v25 = vpack.c.bf16 (!%p138_p2), %v214_v24, %v213_v23 }
   0xd   : > { %s1010_s13 = smov (!%p159_p3, %s597_s13), 1  ;;  %743 = vmatpush3.bf16.msra.mxu0 %v740_v5  ;;  %777 = vmatpush3.bf16.msra.mxu1 %v740_v5 }
   0xe   : > { %s607_s26 = sshll.u32 %s1010_s13, 8  ;;  %745 = vmatprep.subr.bf16.mxu0 %v744_v8  ;;  %770 = vmatprep.subr.bf16.mxu1 %v744_v8 }
   0xf   : > { %s852_s29 = scalar_lea.vmem %s1005_s0, %s607_s26 }
  0x10   : > { %v167_v11 = vld [vmem:[%s852_s29] sm:$0xff]  ;;  %v168_v26 = vld [vmem:[%s852_s29 + $0x8] sm:$0xff]  ;;  %v169_v28 = vld [vmem:[%s852_s29 + $0x10] sm:$0xff] }
  0x11   : > { %688 = vmatprep.mubr.f32.mxu0 %v167_v11  ;;  %v183_v15 = vld [vmem:[%s852_s29 + $0x80] sm:$0xff]  ;;  %747 = vmatpush3.bf16.msra.mxu0 %v744_v8  ;;  %v184_v27 = vld [vmem:[%s852_s29 + $0x88] sm:$0xff]  ;;  %v185_v29 = vld [vmem:[%s852_s29 + $0x90] sm:$0xff] }
  0x12   : > { %778 = vmatpush3.bf16.msra.mxu1 %v744_v8  ;;  %749 = vmatprep.subr.bf16.mxu0 %v748_v12  ;;  %v170_v30 = vld [vmem:[%s852_s29 + $0x18] sm:$0xff]  ;;  %v171_v32 = vld [vmem:[%s852_s29 + $0x20] sm:$0xff]  ;;  %v172_v34 = vld [vmem:[%s852_s29 + $0x28] sm:$0xff] }
  0x13   : > { %771 = vmatprep.subr.bf16.mxu1 %v748_v12  ;;  %712 = vmatprep.mubr.f32.mxu1 %v183_v15  ;;  %v186_v31 = vld [vmem:[%s852_s29 + $0x98] sm:$0xff]  ;;  %v187_v33 = vld [vmem:[%s852_s29 + $0xa0] sm:$0xff]  ;;  %v188_v35 = vld [vmem:[%s852_s29 + $0xa8] sm:$0xff] }
  0x14   : > { %v173_v36 = vld [vmem:[%s852_s29 + $0x30] sm:$0xff]  ;;  %v174_v38 = vld [vmem:[%s852_s29 + $0x38] sm:$0xff]  ;;  %v175_v40 = vld [vmem:[%s852_s29 + $0x40] sm:$0xff] }
  0x15   : > { %751 = vmatpush3.bf16.msra.mxu0 %v748_v12  ;;  %v189_v37 = vld [vmem:[%s852_s29 + $0xb0] sm:$0xff]  ;;  %v190_v39 = vld [vmem:[%s852_s29 + $0xb8] sm:$0xff]  ;;  %v191_v41 = vld [vmem:[%s852_s29 + $0xc0] sm:$0xff] }
  0x16   : > { %779 = vmatpush3.bf16.msra.mxu1 %v748_v12  ;;  %753 = vmatprep.subr.bf16.mxu0 %v752_v16  ;;  %v176_v42 = vld [vmem:[%s852_s29 + $0x48] sm:$0xff]  ;;  %v177_v44 = vld [vmem:[%s852_s29 + $0x50] sm:$0xff]  ;;  %v178_v46 = vld [vmem:[%s852_s29 + $0x58] sm:$0xff] }
  0x17   : > { %772 = vmatprep.subr.bf16.mxu1 %v752_v16  ;;  %v192_v43 = vld [vmem:[%s852_s29 + $0xc8] sm:$0xff]  ;;  %v193_v45 = vld [vmem:[%s852_s29 + $0xd0] sm:$0xff]  ;;  %v194_v47 = vld [vmem:[%s852_s29 + $0xd8] sm:$0xff] }
  0x18   : > { %v179_v48 = vld [vmem:[%s852_s29 + $0x60] sm:$0xff]  ;;  %v180_v50 = vld [vmem:[%s852_s29 + $0x68] sm:$0xff]  ;;  %v181_v52 = vld [vmem:[%s852_s29 + $0x70] sm:$0xff] }
  0x19   : > { %755 = vmatpush3.bf16.msra.mxu0 %v752_v16  ;;  %v195_v49 = vld [vmem:[%s852_s29 + $0xe0] sm:$0xff]  ;;  %v196_v51 = vld [vmem:[%s852_s29 + $0xe8] sm:$0xff]  ;;  %v197_v53 = vld [vmem:[%s852_s29 + $0xf0] sm:$0xff] }
  0x1a   : > { %780 = vmatpush3.bf16.msra.mxu1 %v752_v16  ;;  %757 = vmatprep.subr.bf16.mxu0 %v756_v19  ;;  %v182_v54 = vld [vmem:[%s852_s29 + $0x78] sm:$0xff] }
  0x1b   : > { %773 = vmatprep.subr.bf16.mxu1 %v756_v19  ;;  %v198_v55 = vld [vmem:[%s852_s29 + $0xf8] sm:$0xff]  ;;  %s166_s29 = scalar_lea.vmem %s1008_s3, %s1010_s13 }
  0x1d   : > { %759 = vmatpush3.bf16.msra.mxu0 %v756_v19 }
  0x1e   : > { %781 = vmatpush3.bf16.msra.mxu1 %v756_v19  ;;  %761 = vmatprep.subr.bf16.mxu0 %v760_v22 }
  0x1f   : > { %774 = vmatprep.subr.bf16.mxu1 %v760_v22 }
  0x21   : > { %763 = vmatpush3.bf16.msra.mxu0 %v760_v22 }
  0x22   : > { %782 = vmatpush3.bf16.msra.mxu1 %v760_v22  ;;  %765 = vmatprep.subr.bf16.mxu0 %v764_v25 }
  0x23   : > { %775 = vmatprep.subr.bf16.mxu1 %v764_v25 }
  0x25   : > { %767 = vmatpush3.bf16.msra.mxu0 %v764_v25 }
  0x26   : > { %783 = vmatpush3.bf16.msra.mxu1 %v764_v25 }
  0x28   : > { %689 = vmatmul.mubr.f32.vlgmr.msra.gmra.mrb[0].mxu0 %v168_v26 }
  0x29   : > { %713 = vmatmul.mubr.f32.vlgmr.msra.gmra.mrb[0].mxu1 %v184_v27  ;;  %691 = vmatprep.mubr.f32.mxu0 %v169_v28 }
  0x2a   : > { %715 = vmatprep.mubr.f32.mxu1 %v185_v29 }
  0x2c   : > { %692 = vmatmul.mubr.f32.gmra.mrb[2].mxu0 %v170_v30 }
  0x2d   : > { %716 = vmatmul.mubr.f32.gmra.mrb[2].mxu1 %v186_v31  ;;  %694 = vmatprep.mubr.f32.mxu0 %v171_v32 }
  0x2e   : > { %718 = vmatprep.mubr.f32.mxu1 %v187_v33 }
  0x30   : > { %695 = vmatmul.mubr.f32.gmra.mrb[4].mxu0 %v172_v34 }
  0x31   : > { %719 = vmatmul.mubr.f32.gmra.mrb[4].mxu1 %v188_v35  ;;  %697 = vmatprep.mubr.f32.mxu0 %v173_v36 }
  0x32   : > { %721 = vmatprep.mubr.f32.mxu1 %v189_v37 }
  0x34   : > { %698 = vmatmul.mubr.f32.gmra.mrb[6].mxu0 %v174_v38 }
  0x35   : > { %722 = vmatmul.mubr.f32.gmra.mrb[6].mxu1 %v190_v39  ;;  %700 = vmatprep.mubr.f32.mxu0 %v175_v40 }
  0x36   : > { %724 = vmatprep.mubr.f32.mxu1 %v191_v41 }
  0x38   : > { %701 = vmatmul.mubr.f32.gmra.mrb[8].mxu0 %v176_v42 }
  0x39   : > { %725 = vmatmul.mubr.f32.gmra.mrb[8].mxu1 %v192_v43  ;;  %703 = vmatprep.mubr.f32.mxu0 %v177_v44 }
  0x3a   : > { %727 = vmatprep.mubr.f32.mxu1 %v193_v45 }
  0x3c   : > { %704 = vmatmul.mubr.f32.gmra.mrb[10].mxu0 %v178_v46 }
  0x3d   : > { %728 = vmatmul.mubr.f32.gmra.mrb[10].mxu1 %v194_v47  ;;  %706 = vmatprep.mubr.f32.mxu0 %v179_v48 }
  0x3e   : > { %730 = vmatprep.mubr.f32.mxu1 %v195_v49 }
  0x40   : > { %707 = vmatmul.mubr.f32.gmra.mrb[12].mxu0 %v180_v50 }
  0x41   : > { %731 = vmatmul.mubr.f32.gmra.mrb[12].mxu1 %v196_v51  ;;  %709 = vmatprep.mubr.f32.mxu0 %v181_v52 }
  0x42   : > { %733 = vmatprep.mubr.f32.mxu1 %v197_v53 }
  0x44   : > { %710 = vmatmul.mubr.f32.gmra.mrb[14].mxu0 %v182_v54 }
  0x45   : > { %734 = vmatmul.mubr.f32.gmra.mrb[14].mxu1 %v198_v55 }
  0xfb   : > { %v690_v57 = vpop.f32.mrb[0].mxu0 }
  0xfc   : > { %v921_v58 = vpop.f32.mrb[0].mxu1  ;;  %v294_v59 = vadd.f32 %v690_v57, %v919_v56  ;;  %v288_v60 = vpop.f32.mrb[1].mxu0 }
  0xfd   : > { %v924_v61 = vpop.f32.mrb[1].mxu1  ;;  %v289_v62 = vadd.f32 %v919_v56, %v288_v60 }
  0xfe   : > { %v448_v63 = vmax.f32 %v294_v59, 0.0 }
  0xff   : > { %v447_v0 = vmax.f32 %v289_v62, 0.0  ;;  %v693_v1 = vpop.f32.mrb[2].mxu0 }
 0x100   : > { %v927_v2 = vpop.f32.mrb[2].mxu1  ;;  %v480_v3 = vmin.f32 %v448_v63, 6.0  ;;  %v304_v4 = vadd.f32 %v693_v1, %v919_v56  ;;  %v298_v5 = vpop.f32.mrb[3].mxu0 }
 0x101   : > { %v930_v6 = vpop.f32.mrb[3].mxu1  ;;  %v479_v7 = vmin.f32 %v447_v0, 6.0  ;;  %v299_v8 = vadd.f32 %v919_v56, %v298_v5 }
 0x102   : > { %v450_v10 = vmax.f32 %v304_v4, 0.0 }
 0x103   : > { %v511_v9 = vadd.f32 %v480_v3, %v479_v7  ;;  %v449_v11 = vmax.f32 %v299_v8, 0.0  ;;  %v696_v12 = vpop.f32.mrb[4].mxu0  ;;  %v369_v8 = vadd.f32 %v919_v56, %v924_v61  ;;  %v379_v61 = vadd.f32 %v919_v56, %v930_v6 }
 0x104   : > { %v933_v13 = vpop.f32.mrb[4].mxu1  ;;  %v314_v14 = vadd.f32 %v696_v12, %v919_v56  ;;  %v308_v15 = vpop.f32.mrb[5].mxu0  ;;  %v482_v19 = vmin.f32 %v450_v10, 6.0 }
 0x105   : > { %v936_v16 = vpop.f32.mrb[5].mxu1  ;;  %v481_v17 = vmin.f32 %v449_v11, 6.0  ;;  %v309_v18 = vadd.f32 %v919_v56, %v308_v15 }
 0x106   : > { %v452_v21 = vmax.f32 %v314_v14, 0.0 }
 0x107   : > { %v512_v20 = vadd.f32 %v511_v9, %v481_v17  ;;  %v451_v22 = vmax.f32 %v309_v18, 0.0  ;;  %v699_v23 = vpop.f32.mrb[6].mxu0 }
 0x108   : > { %v939_v24 = vpop.f32.mrb[6].mxu1  ;;  %v324_v25 = vadd.f32 %v699_v23, %v919_v56  ;;  %v318_v26 = vpop.f32.mrb[7].mxu0  ;;  %v484_v31 = vmin.f32 %v452_v21, 6.0  ;;  %v374_v23 = vadd.f32 %v921_v58, %v919_v56  ;;  %v389_v58 = vadd.f32 %v919_v56, %v936_v16 }
 0x109   : > { %v942_v27 = vpop.f32.mrb[7].mxu1  ;;  %v483_v28 = vmin.f32 %v451_v22, 6.0  ;;  %v513_v29 = vadd.f32 %v512_v20, %v482_v19  ;;  %v319_v30 = vadd.f32 %v919_v56, %v318_v26 }
 0x10a   : > { %v454_v33 = vmax.f32 %v324_v25, 0.0  ;;  %v463_v25 = vmax.f32 %v369_v8, 0.0 }
 0x10b   : > { %v514_v32 = vadd.f32 %v513_v29, %v483_v28  ;;  %v453_v34 = vmax.f32 %v319_v30, 0.0  ;;  %v702_v35 = vpop.f32.mrb[8].mxu0 }
 0x10c   : > { %v945_v36 = vpop.f32.mrb[8].mxu1  ;;  %v334_v37 = vadd.f32 %v702_v35, %v919_v56  ;;  %v328_v38 = vpop.f32.mrb[9].mxu0  ;;  %v486_v43 = vmin.f32 %v454_v33, 6.0  ;;  %v464_v33 = vmax.f32 %v374_v23, 0.0  ;;  %v384_v35 = vadd.f32 %v927_v2, %v919_v56 }
 0x10d   : > { %v948_v39 = vpop.f32.mrb[9].mxu1  ;;  %v485_v40 = vmin.f32 %v453_v34, 6.0  ;;  %v515_v41 = vadd.f32 %v514_v32, %v484_v31  ;;  %v329_v42 = vadd.f32 %v919_v56, %v328_v38  ;;  %v495_v34 = vmin.f32 %v463_v25, 6.0 }
 0x10e   : > { %v456_v45 = vmax.f32 %v334_v37, 0.0  ;;  %v466_v6 = vmax.f32 %v384_v35, 0.0 }
 0x10f   : > { %v516_v44 = vadd.f32 %v515_v41, %v485_v40  ;;  %v455_v46 = vmax.f32 %v329_v42, 0.0  ;;  %v705_v47 = vpop.f32.mrb[10].mxu0  ;;  %v465_v40 = vmax.f32 %v379_v61, 0.0  ;;  %v496_v42 = vmin.f32 %v464_v33, 6.0 }
 0x110   : > { %v951_v48 = vpop.f32.mrb[10].mxu1  ;;  %v344_v49 = vadd.f32 %v705_v47, %v919_v56  ;;  %v338_v50 = vpop.f32.mrb[11].mxu0  ;;  %v488_v55 = vmin.f32 %v456_v45, 6.0  ;;  %v399_v47 = vadd.f32 %v919_v56, %v942_v27  ;;  %v498_v2 = vmin.f32 %v466_v6, 6.0 }
 0x111   : > { %v954_v51 = vpop.f32.mrb[11].mxu1  ;;  %v487_v52 = vmin.f32 %v455_v46, 6.0  ;;  %v517_v53 = vadd.f32 %v516_v44, %v486_v43  ;;  %v339_v54 = vadd.f32 %v919_v56, %v338_v50  ;;  %v394_v43 = vadd.f32 %v933_v13, %v919_v56 }
 0x112   : > { %v458_v59 = vmax.f32 %v344_v49, 0.0  ;;  %v497_v45 = vmin.f32 %v465_v40, 6.0  ;;  %v467_v46 = vmax.f32 %v389_v58, 0.0 }
 0x113   : > { %v518_v57 = vadd.f32 %v517_v53, %v487_v52  ;;  %v457_v60 = vmax.f32 %v339_v54, 0.0  ;;  %v708_v62 = vpop.f32.mrb[12].mxu0  ;;  %v468_v50 = vmax.f32 %v394_v43, 0.0  ;;  %v404_v52 = vadd.f32 %v939_v24, %v919_v56 }
 0x114   : > { %v957_v63 = vpop.f32.mrb[12].mxu1  ;;  %v354_v0 = vadd.f32 %v708_v62, %v919_v56  ;;  %v348_v1 = vpop.f32.mrb[13].mxu0  ;;  %v490_v9 = vmin.f32 %v458_v59, 6.0  ;;  %v499_v16 = vmin.f32 %v467_v46, 6.0  ;;  %v469_v54 = vmax.f32 %v399_v47, 0.0 }
 0x115   : > { %v960_v3 = vpop.f32.mrb[13].mxu1  ;;  %v489_v4 = vmin.f32 %v457_v60, 6.0  ;;  %v519_v5 = vadd.f32 %v518_v57, %v488_v55  ;;  %v349_v7 = vadd.f32 %v919_v56, %v348_v1  ;;  %v409_v55 = vadd.f32 %v919_v56, %v948_v39 }
 0x116   : > { %v460_v11 = vmax.f32 %v354_v0, 0.0  ;;  %v500_v13 = vmin.f32 %v468_v50, 6.0  ;;  %v470_v59 = vmax.f32 %v404_v52, 0.0  ;;  %v414_v60 = vadd.f32 %v945_v36, %v919_v56 }
 0x117   : > { %v520_v10 = vadd.f32 %v519_v5, %v489_v4  ;;  %v459_v12 = vmax.f32 %v349_v7, 0.0  ;;  %v711_v14 = vpop.f32.mrb[14].mxu0  ;;  %v501_v27 = vmin.f32 %v469_v54, 6.0  ;;  %v471_v0 = vmax.f32 %v409_v55, 0.0 }
 0x118   : > { %v965_v15 = vpop.f32.mrb[14].mxu1  ;;  %v364_v17 = vadd.f32 %v711_v14, %v919_v56  ;;  %v358_v18 = vpop.f32.mrb[15].mxu0  ;;  %v492_v26 = vmin.f32 %v460_v11, 6.0  ;;  %v419_v1 = vadd.f32 %v919_v56, %v954_v51  ;;  %v502_v24 = vmin.f32 %v470_v59, 6.0 }
 0x119   : > { %v438_v19 = vpop.f32.mrb[15].mxu1  ;;  %v491_v20 = vmin.f32 %v459_v12, 6.0  ;;  %v521_v21 = vadd.f32 %v520_v10, %v490_v9  ;;  %v359_v22 = vadd.f32 %v919_v56, %v358_v18  ;;  %v472_v5 = vmax.f32 %v414_v60, 0.0 }
 0x11a   : > { %v462_v29 = vmax.f32 %v364_v17, 0.0  ;;  %v424_v7 = vadd.f32 %v951_v48, %v919_v56  ;;  %v503_v39 = vmin.f32 %v471_v0, 6.0  ;;  %v473_v9 = vmax.f32 %v419_v1, 0.0 }
 0x11b   : > { %v522_v28 = vadd.f32 %v521_v21, %v491_v20  ;;  %v461_v30 = vmax.f32 %v359_v22, 0.0  ;;  %v429_v10 = vadd.f32 %v919_v56, %v960_v3  ;;  %v504_v36 = vmin.f32 %v472_v5, 6.0 }
 0x11c   : > { %v494_v37 = vmin.f32 %v462_v29, 6.0  ;;  %v474_v12 = vmax.f32 %v424_v7, 0.0  ;;  %v434_v14 = vadd.f32 %v957_v63, %v919_v56  ;;  %v505_v51 = vmin.f32 %v473_v9, 6.0 }
 0x11d   : > { %v493_v31 = vmin.f32 %v461_v30, 6.0  ;;  %v523_v32 = vadd.f32 %v522_v28, %v492_v26  ;;  %v475_v18 = vmax.f32 %v429_v10, 0.0  ;;  %v439_v20 = vadd.f32 %v919_v56, %v438_v19 }
 0x11e   : > { %v506_v22 = vmin.f32 %v474_v12, 6.0  ;;  %v476_v48 = vmax.f32 %v434_v14, 0.0  ;;  %v444_v61 = vadd.f32 %v965_v15, %v919_v56 }
 0x11f   : > { %v524_v38 = vadd.f32 %v523_v32, %v493_v31  ;;  %v507_v25 = vmin.f32 %v475_v18, 6.0  ;;  %v477_v3 = vmax.f32 %v439_v20, 0.0 }
 0x120   : > { %v508_v28 = vmin.f32 %v476_v48, 6.0  ;;  %v478_v30 = vmax.f32 %v444_v61, 0.0 }
 0x121   : > { %v525_v41 = vadd.f32 %v524_v38, %v494_v37  ;;  %v509_v63 = vmin.f32 %v477_v3, 6.0 }
 0x122   : > { %v510_v32 = vmin.f32 %v478_v30, 6.0 }
 0x123   : > { %v526_v44 = vadd.f32 %v525_v41, %v495_v34 }
 0x125   : > { %v527_v49 = vadd.f32 %v526_v44, %v496_v42 }
 0x127   : > { %v528_v53 = vadd.f32 %v527_v49, %v497_v45 }
 0x129   : > { %v529_v57 = vadd.f32 %v528_v53, %v498_v2 }
 0x12b   : > { %v530_v62 = vadd.f32 %v529_v57, %v499_v16 }
 0x12d   : > { %v531_v4 = vadd.f32 %v530_v62, %v500_v13 }
 0x12f   : > { %v532_v8 = vadd.f32 %v531_v4, %v501_v27 }
 0x131   : > { %v533_v11 = vadd.f32 %v532_v8, %v502_v24 }
 0x133   : > { %v534_v17 = vadd.f32 %v533_v11, %v503_v39 }
 0x135   : > { %v535_v21 = vadd.f32 %v534_v17, %v504_v36 }
 0x137   : > { %v536_v23 = vadd.f32 %v535_v21, %v505_v51 }
 0x139   : > { %v537_v26 = vadd.f32 %v536_v23, %v506_v22 }
 0x13b   : > { %v538_v29 = vadd.f32 %v537_v26, %v507_v25 }
 0x13d   : > { %v539_v31 = vadd.f32 %v538_v29, %v508_v28 }
 0x13f   : > { %v540_v33 = vadd.f32 %v539_v31, %v509_v63 }
 0x141   : > { %v541_v34 = vadd.f32 %v540_v33, %v510_v32 }
 0x143   : > { %v542_v19 = vrot.slane %v541_v34, 4 }
 0x145   : > { %v543_v35 = vadd.f32 %v542_v19, %v541_v34 }
 0x147   : > { %v544_v37 = vrot.slane %v543_v35, 2 }
 0x149   : > { %v545_v38 = vadd.f32 %v544_v37, %v543_v35 }
 0x14b   : > { %v546_v40 = vrot.slane %v545_v38, 1 }
 0x14d   : > { %v547_v58 = vadd.f32 %v546_v40, %v545_v38 }
 0x14f   : > { %v548_v56 = vmul.f32 0.00390625, %v547_v58 }
 0x151   : > { %549 = vst [vmem:[%s166_s29] sm:$0x1] %v548_v56 }
 0x152 PF: > { %s13_s12 = sadd.s32 1, %s798_s12  }
 0x153   : > { %p10_p4 = scmp.ge.s32.totalorder %s13_s12, 4  }
 0x155   :  { %12 = sbr.rel (!%p10_p4) target bundleno = 1 (0x1), region = 62 }

// kernel: forward.12
= control target key start
LH: loop header
LB: loop body
LE: loop exit
PB: predicated region body
PF: predicated region fallthrough
CT: control target
= control target key end

     0   :  { %vm18_vm0 = vcmask 523264   ;;  %s118_s0 = inlined_call_operand.vmem [shape: f32[16,64], index: 0, kind: input, shape index: {}]   ;;  %s119_s1 = inlined_call_operand.vmem [shape: f32[1,64], index: 1, kind: input, shape index: {}]   ;;  %s120_s2 = inlined_call_operand.vmem [shape: f32[1,64], index: 2, kind: input, shape index: {}]   ;;  %s121_s3 = inlined_call_operand.vmem [shape: f32[16,64], index: 3, kind: output, shape index: {}]  }
   0x1   :  { %v14_v0 = vld [vmem:[%s118_s0] sm:$0xff]  ;;  %v15_v1 = vld [vmem:[%s118_s0 + $0x8] sm:$0xff] }
   0x2   :  { %v19_v2 = vsel %vm18_vm0, %v14_v0, 0.0  ;;  %v22_v3 = vsel %vm18_vm0, %v15_v1, 0.0  ;;  %v68_v21 = vld [vmem:[%s119_s1] ss:$0 sm:$0xff] }
   0x3   :  { %20 = vadd.xlane.f32.xlu0 %v19_v2  ;;  %v69_v23 = vld [vmem:[%s120_s2] ss:$0 sm:$0xff] }
   0x7   :  { %23 = vadd.xlane.f32.xlu0 %v22_v3 }
  0x90   :  { %v21_v4 = vpop.xlane.xlu0 %20 }
  0x91   :  { %v26_v5 = vmul.f32 0.015625, %v21_v4 }
  0x93   :  { %v28_v6 = vsub.f32 %v14_v0, %v26_v5 }
  0x94   :  { %v24_v7 = vpop.xlane.xlu0 %23 }
  0x95   :  { %v27_v8 = vmul.f32 0.015625, %v24_v7  ;;  %v30_v9 = vmul.f32 %v28_v6, %v28_v6 }
  0x97   :  { %v29_v10 = vsub.f32 %v15_v1, %v27_v8  ;;  %v32_v11 = vsel %vm18_vm0, %v30_v9, 0.0 }
  0x98   :  { %33 = vadd.xlane.f32.xlu1 %v32_v11 }
  0x99   :  { %v31_v12 = vmul.f32 %v29_v10, %v29_v10 }
  0x9b   :  { %v35_v13 = vsel %vm18_vm0, %v31_v12, 0.0 }
  0x9c   :  { %36 = vadd.xlane.f32.xlu1 %v35_v13 }
 0x125   :  { %v34_v14 = vpop.xlane.xlu1 %33 }
 0x126   :  { %v38_v15 = vmul.f32 0.015625, %v34_v14 }
 0x128   :  { %v40_v16 = vadd.f32 1e-12, %v38_v15 }
 0x129   :  { %v37_v17 = vpop.xlane.xlu1 %36 }
 0x12a   :  { %70 = vrsqrt.f32 %v40_v16  ;;  %v39_v18 = vmul.f32 0.015625, %v37_v17 }
 0x12c   :  { %v41_v19 = vadd.f32 1e-12, %v39_v18 }
 0x12e   :  { %72 = vrsqrt.f32 %v41_v19 }
 0x134   :  { %v71_v20 = vpop.eup %70 }
 0x135   :  { %v44_v22 = vmul.f32 %v71_v20, %v28_v6 }
 0x137   :  { %v52_v24 = vmul.f32 %v68_v21, %v44_v22 }
 0x138   :  { %v73_v25 = vpop.eup %72 }
 0x139   :  { %v60_v26 = vadd.f32 %v69_v23, %v52_v24  ;;  %v45_v27 = vmul.f32 %v73_v25, %v29_v10 }
 0x13b   :  { %62 = vst.msk [vmem:[%s121_s3] sm:$0xff] %vm18_vm0, %v60_v26  ;;  %v53_v28 = vmul.f32 %v68_v21, %v45_v27 }
 0x13d   :  { %v61_v29 = vadd.f32 %v69_v23, %v53_v28 }
 0x13f   :  { %63 = vst.msk [vmem:[%s121_s3 + $0x8] sm:$0xff] %vm18_vm0, %v61_v29 }

// kernel: forward.15
= control target key start
LH: loop header
LB: loop body
LE: loop exit
PB: predicated region body
PF: predicated region fallthrough
CT: control target
= control target key end

     0   :  { %v350_v3 = vmov 0.0|0.0   ;;  %vm63_vm0 = vcmask 523264   ;;  %s519_s0 = inlined_call_operand.vmem [shape: f32[2,192], index: 0, kind: input, shape index: {}]   ;;  %s520_s1 = inlined_call_operand.vmem [shape: f32[192,64], index: 1, kind: input, shape index: {}]   ;;  %s521_s2 = inlined_call_operand.vmem [shape: f32[1,64], index: 2, kind: input, shape index: {}]   ;;  %s522_s3 = inlined_call_operand.vmem [shape: f32[64,2], index: 3, kind: input, shape index: {}]   ;;  %s523_s4 = inlined_call_operand.vmem [shape: f32[1,2], index: 4, kind: input, shape index: {}]   ;;  %s524_s5 = inlined_call_operand.hbm [shape: f32[2,2], index: 5, kind: output, shape index: {}]  }
   0x1   :  { %v22_v0 = vld [vmem:[%s520_s1] sm:$0xff]  ;;  %v23_v1 = vld [vmem:[%s520_s1 + $0x8] sm:$0xff]  ;;  %v24_v2 = vld [vmem:[%s520_s1 + $0x10] sm:$0xff]  ;;  %274 = vmatprep.subr.bf16.mxu0 %v350_v3  ;;  %310 = vmatprep.subr.bf16.mxu1 %v350_v3 }
   0x2   :  { %v275_v4 = vpack.c.bf16 %v23_v1, %v22_v0  ;;  %v25_v5 = vld [vmem:[%s520_s1 + $0x18] sm:$0xff]  ;;  %v26_v7 = vld [vmem:[%s520_s1 + $0x20] sm:$0xff]  ;;  %v27_v8 = vld [vmem:[%s520_s1 + $0x28] sm:$0xff] }
   0x3   :  { %v278_v6 = vpack.c.bf16 %v25_v5, %v24_v2  ;;  %v281_v9 = vpack.c.bf16 %v27_v8, %v26_v7  ;;  %v28_v10 = vld [vmem:[%s520_s1 + $0x30] sm:$0xff]  ;;  %v29_v11 = vld [vmem:[%s520_s1 + $0x38] sm:$0xff]  ;;  %v242_v12 = vld.sshfl [vmem:[%s519_s0] sm:$0x33 pattern:$0x76325410] }
   0x4   :  { %276 = vmatpush1.bf16.msra.mxu0 %v275_v4  ;;  %v137_v13 = vld [vmem:[%s522_s3] sm:$0xff]  ;;  %v138_v14 = vld [vmem:[%s522_s3 + $0x8] sm:$0xff]  ;;  %v61_v15 = vcombine.high %v242_v12, %v242_v12  ;;  %v139_v17 = vld [vmem:[%s522_s3 + $0x10] sm:$0xff] }
   0x5   :  { %277 = vmatprep.subr.bf16.mxu0 %v350_v3  ;;  %v311_v16 = vpack.c.bf16 %v138_v14, %v137_v13  ;;  %v140_v18 = vld [vmem:[%s522_s3 + $0x18] sm:$0xff] }
   0x8   :  { %279 = vmatpush1.bf16.msra.mxu0 %v278_v6 }
   0x9   :  { %280 = vmatprep.subr.bf16.mxu0 %v350_v3 }
   0xa   :  { %10 = vsyncpa [#allocation3], 0  ;;  %v284_v19 = vpack.c.bf16 %v29_v11, %v28_v10  ;;  %243 = vmatprep.mubr.msk.f32.mxu0 %vm63_vm0, %v61_v15  ;;  %v30_v20 = vld [vmem:[%s520_s1 + $0x40] sm:$0xff]  ;;  %v31_v21 = vld [vmem:[%s520_s1 + $0x48] sm:$0xff]  ;;  %312 = vmatpush3.bf16.msra.mxu1 %v311_v16  ;;  %v314_v22 = vpack.c.bf16 %v140_v18, %v139_v17  ;;  %vm351_vm1 = vmmov 0   ;;  %v352_v51 = vmov 0.0  }
   0xb   :  { %313 = vmatprep.subr.bf16.mxu1 %v350_v3  ;;  %v141_v23 = vld [vmem:[%s522_s3 + $0x20] sm:$0xff]  ;;  %v142_v24 = vld [vmem:[%s522_s3 + $0x28] sm:$0xff]  ;;  %v287_v25 = vpack.c.bf16 %v31_v21, %v30_v20  ;;  %v32_v26 = vld [vmem:[%s520_s1 + $0x50] sm:$0xff]  ;;  %271 = vmatprep.mubr.msk.f32.mxu1 %vm351_vm1, %v352_v51  ;;  %vm225_vm2 = vcmask 9216  }
   0xc   :  { %282 = vmatpush1.bf16.msra.mxu0 %v281_v9  ;;  %v33_v27 = vld [vmem:[%s520_s1 + $0x58] sm:$0xff]  ;;  %v317_v28 = vpack.c.bf16 %v142_v24, %v141_v23  ;;  %v34_v30 = vld [vmem:[%s520_s1 + $0x60] sm:$0xff]  ;;  %v35_v31 = vld [vmem:[%s520_s1 + $0x68] sm:$0xff] }
   0xd   :  { %283 = vmatprep.subr.bf16.mxu0 %v350_v3  ;;  %v290_v29 = vpack.c.bf16 %v33_v27, %v32_v26  ;;  %v293_v32 = vpack.c.bf16 %v35_v31, %v34_v30  ;;  %v36_v33 = vld [vmem:[%s520_s1 + $0x70] sm:$0xff]  ;;  %v37_v34 = vld [vmem:[%s520_s1 + $0x78] sm:$0xff]  ;;  %v38_v36 = vld [vmem:[%s520_s1 + $0x80] sm:$0xff] }
   0xe   :  { %315 = vmatpush3.bf16.msra.mxu1 %v314_v22  ;;  %v296_v35 = vpack.c.bf16 %v37_v34, %v36_v33  ;;  %v39_v37 = vld [vmem:[%s520_s1 + $0x88] sm:$0xff]  ;;  %v40_v39 = vld [vmem:[%s520_s1 + $0x90] sm:$0xff]  ;;  %v41_v40 = vld [vmem:[%s520_s1 + $0x98] sm:$0xff] }
   0xf   :  { %316 = vmatprep.subr.bf16.mxu1 %v350_v3  ;;  %v299_v38 = vpack.c.bf16 %v39_v37, %v38_v36  ;;  %v302_v41 = vpack.c.bf16 %v41_v40, %v40_v39  ;;  %v42_v42 = vld [vmem:[%s520_s1 + $0xa0] sm:$0xff]  ;;  %v43_v43 = vld [vmem:[%s520_s1 + $0xa8] sm:$0xff]  ;;  %v44_v45 = vld [vmem:[%s520_s1 + $0xb0] sm:$0xff] }
  0x10   :  { %285 = vmatpush1.bf16.msra.mxu0 %v284_v19  ;;  %v305_v44 = vpack.c.bf16 %v43_v43, %v42_v42  ;;  %v45_v46 = vld [vmem:[%s520_s1 + $0xb8] sm:$0xff]  ;;  %v143_v48 = vld [vmem:[%s522_s3 + $0x30] sm:$0xff]  ;;  %v241_v52 = vld [vmem:[%s521_s2] ss:$0 sm:$0xff] }
  0x11   :  { %286 = vmatprep.subr.bf16.mxu0 %v350_v3  ;;  %v308_v47 = vpack.c.bf16 %v45_v46, %v44_v45  ;;  %v144_v49 = vld [vmem:[%s522_s3 + $0x38] sm:$0xff]  ;;  %v244_v57 = vld [vmem:[%s523_s4] ss:$0 sm:$0xff]  ;;  %s353_s3 = smov [#allocation2]  }
  0x12   :  { %318 = vmatpush3.bf16.msra.mxu1 %v317_v28  ;;  %v320_v50 = vpack.c.bf16 %v144_v49, %v143_v48  ;;  %s233_s10 = sshll.u32 %s353_s3, 4  ;;  %s234_s10 = int_to_ptr.vmem [resolvable:$true] %s233_s10 }
  0x13   :  { %319 = vmatprep.subr.bf16.mxu1 %v350_v3  ;;  %s326_s11 = scalar_lea.vmem %s234_s10, 32  ;;  %p331_p1 = scmp.lt.s32.totalorder %s234_s10, %s234_s10 }
  0x14   :  { %288 = vmatpush1.bf16.msra.mxu0 %v287_v25  ;;  %p327_p0 = scmp.ne.s32.totalorder %s234_s10, %s326_s11  ;;  %p332_p2 = scmp.lt.s32.totalorder %s326_s11, %s326_s11 }
  0x15   :  { %289 = vmatprep.subr.bf16.mxu0 %v350_v3 }
  0x16   :  { %321 = vmatpush3.bf16.msra.mxu1 %v320_v50  ;;  %p333_p3 = por %p332_p2, %p331_p1 }
  0x18   :  { %291 = vmatpush1.bf16.msra.mxu0 %v290_v29  ;;  %p334_p4 = pnand %p333_p3, %p327_p0 }
  0x19   :  { %292 = vmatprep.subr.bf16.mxu0 %v350_v3 }
  0x1c   :  { %294 = vmatpush1.bf16.msra.mxu0 %v293_v32 }
  0x1d   :  { %295 = vmatprep.subr.bf16.mxu0 %v350_v3 }
  0x20   :  { %297 = vmatpush1.bf16.msra.mxu0 %v296_v35 }
  0x21   :  { %298 = vmatprep.subr.bf16.mxu0 %v350_v3 }
  0x24   :  { %300 = vmatpush1.bf16.msra.mxu0 %v299_v38 }
  0x25   :  { %301 = vmatprep.subr.bf16.mxu0 %v350_v3 }
  0x28   :  { %303 = vmatpush1.bf16.msra.mxu0 %v302_v41 }
  0x29   :  { %304 = vmatprep.subr.bf16.mxu0 %v350_v3 }
  0x2c   :  { %306 = vmatpush1.bf16.msra.mxu0 %v305_v44 }
  0x2d   :  { %307 = vmatprep.subr.bf16.mxu0 %v350_v3 }
  0x30   :  { %309 = vmatpush1.bf16.msra.mxu0 %v308_v47 }
  0x33   :  { %131 = vmatmul.mubr.f32.vlgmr.msra.gmra.mrb[0].mxu0 %v242_v12 }
 0x106   :  { %v132_v53 = vpop.f32.mrb[0].mxu0 }
 0x107   :  { %v133_v54 = vadd.f32 %v241_v52, %v132_v53  ;;  %v134_v55 = vpop.f32.mrb[1].mxu0 }
 0x109   :  { %v136_v56 = vmax.f32 %v133_v54, 0.0 }
 0x10b   :  { %272 = vmatmul.mubr.msk.f32.vlgmr.msra.gmra.mrb[0].mxu1 %vm63_vm0, %v136_v56 }
 0x1de   :  { %v221_v58 = vpop.f32.mrb[0].mxu1 }
 0x1df   :  { %v222_v59 = vadd.f32 %v244_v57, %v221_v58  ;;  %v273_v60 = vpop.f32.mrb[1].mxu1 }
 0x1e1   :  { %226 = vst.msk [vmem:[#allocation2] sm:$0x3] %vm225_vm2, %v222_v59 }
 0x1e2   :  { %337 = shalt.err (!%p334_p4)
}
 0x1e3   :  { %s338_s13 = scalar_lea.hbm %s524_s5, 32 }
 0x1e4   :  { %p339_p5 = scmp.ne.s32.totalorder %s524_s5, %s338_s13  ;;  %p342_p6 = scmp.lt.u32.totalorder %s338_s13, %s524_s5 }
 0x1e6   :  { %p344_p7 = pnand %p342_p6, %p339_p5 }
 0x1e8   :  { %347 = shalt.err (!%p344_p7)
}
 0x1e9   :  { %236 = dma.vmem_to_hbm [thread:$0]  %s234_s10, 32, %s524_s5, [#allocation3]  }
 0x1ea   :  { %348 = dma.done.wait [#allocation3], 32  }
 0x1eb   :  { %349 = vsyncadd [#allocation3], 4294967264 }
 0x1ec   :  { %240 = vsyncpa [#allocation3], 1 }

// kernel: forward.13
= control target key start
LH: loop header
LB: loop body
LE: loop exit
PB: predicated region body
PF: predicated region fallthrough
CT: control target
= control target key end

     0   :  { %v2337_v3 = vmov 0.0   ;;  %vm77_vm0 = vcmask 523264   ;;  %v67_v26 = vlaneseq  ;;  %vm2338_vm1 = vmmov 0   ;;  %s2339_s16 = smov 48   ;;  %s2340_s17 = smov 64   ;;  %s2796_s2 = inlined_call_operand.vmem [shape: f32[64,192], index: 2, kind: input, shape index: {}]   ;;  %s2797_s0 = inlined_call_operand.vmem [shape: f32[16,64], index: 0, kind: input, shape index: {}]   ;;  %s2798_s3 = inlined_call_operand.vmem [shape: f32[1,192], index: 3, kind: input, shape index: {}]   ;;  %s2799_s1 = inlined_call_operand.vmem [shape: f32[2,8], index: 1, kind: input, shape index: {}]   ;;  %s2800_s4 = inlined_call_operand.vmem [shape: f32[64,64], index: 4, kind: input, shape index: {}]   ;;  %s2801_s5 = inlined_call_operand.vmem [shape: f32[1,64], index: 5, kind: input, shape index: {}]   ;;  %s2802_s8 = inlined_call_operand.vmem [shape: f32[64,128], index: 8, kind: input, shape index: {}]   ;;  %s2803_s10 = inlined_call_operand.vmem [shape: f32[128,64], index: 10, kind: input, shape index: {}]   ;;  %s2804_s6 = inlined_call_operand.vmem [shape: f32[1,64], index: 6, kind: input, shape index: {}]   ;;  %s2805_s7 = inlined_call_operand.vmem [shape: f32[1,64], index: 7, kind: input, shape index: {}]   ;;  %s2806_s9 = inlined_call_operand.vmem [shape: f32[1,128], index: 9, kind: input, shape index: {}]   ;;  %s2807_s11 = inlined_call_operand.vmem [shape: f32[1,64], index: 11, kind: input, shape index: {}]   ;;  %s2808_s12 = inlined_call_operand.vmem [shape: f32[1,64], index: 12, kind: input, shape index: {}]   ;;  %s2809_s13 = inlined_call_operand.vmem [shape: f32[1,64], index: 13, kind: input, shape index: {}]   ;;  %s2810_s14 = inlined_call_operand.vmem [shape: f32[16,64], index: 14, kind: output, shape index: {}]  }
   0x1   :  { %v50_v0 = vld [vmem:[%s2796_s2 + $0x8] sm:$0xff]  ;;  %v52_v1 = vld [vmem:[%s2796_s2 + $0x18] sm:$0xff]  ;;  %v49_v2 = vld [vmem:[%s2796_s2] sm:$0xff]  ;;  %148 = vmatprep.mubr.f32.mxu0 %v2337_v3  ;;  %2051 = vmatprep.subr.mxu1 %v2337_v3  ;;  %vm165_vm2 = vcmask 130048   ;;  %vm246_vm3 = vcmask 64512   ;;  %s2341_s19 = smov 112  }
   0x2   :  { %v2204_v4 = vpack.c.bf16 %v52_v1, %v50_v0  ;;  %v51_v5 = vld [vmem:[%s2796_s2 + $0x10] sm:$0xff]  ;;  %v54_v6 = vld [vmem:[%s2796_s2 + $0x28] sm:$0xff]  ;;  %v56_v7 = vld [vmem:[%s2796_s2 + $0x38] sm:$0xff]  ;;  %v68_v27 = vshrl.u32 %v67_v26, 7  ;;  %2053 = vmatprep.mubr.msk.f32.mxu1 %vm2338_vm1, %v2337_v3  ;;  %s2342_s20 = smov 32   ;;  %s2343_s23 = smov 96  }
   0x3   :  { %v2206_v8 = vpack.c.bf16 %v51_v5, %v49_v2  ;;  %v2208_v9 = vpack.c.bf16 %v56_v7, %v54_v6  ;;  %v53_v10 = vld [vmem:[%s2796_s2 + $0x20] sm:$0xff]  ;;  %v55_v11 = vld [vmem:[%s2796_s2 + $0x30] sm:$0xff]  ;;  %v58_v12 = vld [vmem:[%s2796_s2 + $0x48] sm:$0xff]  ;;  %s2345_s24 = smov 16   ;;  %vm846_vm4 = vcmask 261120   ;;  %vm848_vm5 = vcmask 392192  }
   0x4   :  { %2205 = vmatprep.subr.bf16.mxu0 %v2204_v4  ;;  %v60_v13 = vld [vmem:[%s2796_s2 + $0x58] sm:$0xff]  ;;  %v2210_v14 = vpack.c.bf16 %v55_v11, %v53_v10  ;;  %v57_v16 = vld [vmem:[%s2796_s2 + $0x40] sm:$0xff]  ;;  %v59_v17 = vld [vmem:[%s2796_s2 + $0x50] sm:$0xff]  ;;  %v69_v28 = vsub.s32 0, %v68_v27  ;;  %v73_v34 = vsub.s32 1, %v68_v27 }
   0x5   :  { %2207 = vmatpush1.bf16.msra.mxu0 %v2206_v8  ;;  %v2212_v15 = vpack.c.bf16 %v60_v13, %v58_v12  ;;  %v62_v18 = vld [vmem:[%s2796_s2 + $0x68] sm:$0xff]  ;;  %v64_v19 = vld [vmem:[%s2796_s2 + $0x78] sm:$0xff]  ;;  %v2214_v20 = vpack.c.bf16 %v59_v17, %v57_v16  ;;  %v61_v22 = vld [vmem:[%s2796_s2 + $0x60] sm:$0xff] }
   0x6   :  { %2209 = vmatprep.subr.bf16.mxu0 %v2208_v9  ;;  %v2216_v21 = vpack.c.bf16 %v64_v19, %v62_v18  ;;  %v63_v23 = vld [vmem:[%s2796_s2 + $0x70] sm:$0xff]  ;;  %v2474_v25 = vld [vmem:[%s2797_s0] sm:$0xff]  ;;  %v2533_v55 = vld [vmem:[%s2797_s0 + $0x8] sm:$0xff]  ;;  %s2344_s0 = smov 80  }
   0x7   :  { %v2218_v24 = vpack.c.bf16 %v63_v23, %v61_v22  ;;  %v65_v29 = vld [vmem:[%s2798_s3] sm:$0x3] }
   0x8   :  { %v2485_v30 = vrot.slane %v65_v29, %v69_v28  ;;  %v2494_v35 = vrot.slane %v65_v29, %v73_v34  ;;  %v2510_v39 = vld [vmem:[%s2799_s1] ss:$0 sm:$0xff] }
   0x9   :  { %2211 = vmatpush1.bf16.msra.mxu0 %v2210_v14 }
   0xa   :  { %2213 = vmatprep.subr.bf16.mxu0 %v2212_v15 }
   0xd   :  { %2215 = vmatpush1.bf16.msra.mxu0 %v2214_v20 }
   0xe   :  { %2217 = vmatprep.subr.bf16.mxu0 %v2216_v21 }
  0x11   :  { %2219 = vmatpush1.bf16.msra.mxu0 %v2218_v24 }
  0x12   :  { %2076 = vmatprep.subr.mxu0 %v2337_v3 }
  0x14   :  { %1942 = vmatmul.mubr.msk.f32.vlgmr.msra.gmra.mrb[0].mxu0 %vm77_vm0, %v2474_v25 }
  0x15   :  { %154 = vmatprep.mubr.f32.mxu0 %v2337_v3 }
  0x18   :  { %1943 = vmatmul.mubr.msk.f32.gmra.mrb[2].mxu0 %vm77_vm0, %v2533_v55 }
  0x19   :  { %2078 = vmatprep.mubr.msk.f32.mxu0 %vm2338_vm1, %v2337_v3 }
  0xe7   :  { %v150_v31 = vpop.f32.mrb[0].mxu0 }
  0xe8   :  { %v2488_v32 = vadd.f32 %v150_v31, %v2485_v30  ;;  %v152_v33 = vpop.f32.mrb[1].mxu0 }
  0xe9   :  { %v2499_v37 = vadd.f32 %v152_v33, %v2494_v35 }
  0xea   :  { %333 = vrot.lane.b32.xlu1 %v2488_v32, %s2339_s16  ;;  %163 = vrot.lane.b32.xlu0 %v2488_v32, %s2340_s17 }
  0xeb   :  { %v156_v63 = vpop.f32.mrb[2].mxu0 }
  0xec   :  { %v157_v0 = vadd.f32 %v156_v63, %v2485_v30  ;;  %v2546_v1 = vpop.f32.mrb[3].mxu0 }
 0x15c   :  { %v164_v36 = vpop.permute.xlu0 %163  ;;  %v334_v49 = vpop.permute.xlu1 %333 }
 0x15d   :  { %2052 = vmatpush3.xpose.msk.msra.mxu1 %vm165_vm2, %v164_v36  ;;  %v1959_v36 = vld [vmem:[%s2799_s1 + $0x1] ss:$0 sm:$0xff] }
 0x15e   :  { %2056 = vmatprep.subr.mxu1 %v2337_v3 }
 0x160   :  { %2054 = vmatmul.mubr.msk.f32.vlgmr.msra.gmra.mrb[0].mxu1 %vm165_vm2, %v2488_v32 }
 0x161   :  { %2057 = vmatpush3.msra.mxu1 %v2499_v37  ;;  %2058 = vmatprep.mubr.msk.f32.mxu1 %vm2338_vm1, %v2337_v3 }
 0x162   :  { %2061 = vmatprep.subr.mxu1 %v2337_v3 }
 0x233   :  { %v236_v38 = vpop.f32.mrb[0].mxu1 }
 0x234   :  { %v240_v40 = vmul.f32 0.25, %v236_v38  ;;  %v2055_v41 = vpop.f32.mrb[1].mxu1 }
 0x236   :  { %v245_v42 = vadd.f32 %v2510_v39, %v240_v40 }
 0x238   :  { %v247_v43 = vsel %vm246_vm3, %v245_v42, -inf }
 0x239   :  { %248 = vmax.xlane.f32.xlu0 %v247_v43 }
 0x24f   :  { %423 = vrot.lane.b32.xlu0 %v2499_v37, %s2341_s19 }
 0x253   :  { %501 = vrot.lane.b32.xlu0 %v2488_v32, %s2342_s20 }
 0x2c6   :  { %v249_v44 = vpop.xlane.xlu0 %248 }
 0x2c7   :  { %v250_v45 = vsub.f32 %v245_v42, %v249_v44 }
 0x2c9   :  { %v251_v46 = vmul.f32 1.442695, %v250_v45 }
 0x2ca   :  { %v424_v54 = vpop.permute.xlu0 %423 }
 0x2cb   :  { %2293 = vpow2.f32 %v251_v46 }
 0x2ce   :  { %v502_v8 = vpop.permute.xlu0 %501 }
 0x2d5   :  { %v2294_v47 = vpop.eup %2293 }
 0x2d6   :  { %v253_v48 = vsel %vm246_vm3, %v2294_v47, 0.0 }
 0x2d7   :  { %254 = vadd.xlane.f32.xlu1 %v253_v48 }
 0x2e8   :  { %331 = vrot.lane.b32.xlu1 %v2488_v32, %s2341_s19 }
 0x364   :  { %v255_v50 = vpop.xlane.xlu1 %254 }
 0x365   :  { %2295 = vrcp.f32 %v255_v50 }
 0x368   :  { %v332_v53 = vpop.permute.xlu1 %331 }
 0x36f   :  { %v2296_v51 = vpop.eup %2295 }
 0x370   :  { %v257_v52 = vmul.f32 %v2296_v51, %v2294_v47 }
 0x372   :  { %2059 = vmatmul.mubr.msk.f32.vlgmr.msra.gmra.mrb[2].mxu1 %vm246_vm3, %v257_v52 }
 0x373   :  { %2062 = vmatpush3.xpose.msk.msra.mxu1 %vm165_vm2, %v334_v49  ;;  %2063 = vmatprep.mubr.msk.f32.mxu1 %vm2338_vm1, %v2337_v3 }
 0x374   :  { %2066 = vmatprep.subr.mxu1 %v2337_v3 }
 0x376   :  { %2064 = vmatmul.mubr.msk.f32.vlgmr.msra.gmra.mrb[4].mxu1 %vm165_vm2, %v332_v53 }
 0x377   :  { %2067 = vmatpush3.msra.mxu1 %v424_v54  ;;  %2068 = vmatprep.mubr.msk.f32.mxu1 %vm2338_vm1, %v2337_v3 }
 0x378   :  { %2071 = vmatprep.subr.mxu1 %v2337_v3 }
 0x445   :  { %v2539_v56 = vpop.f32.mrb[2].mxu1 }
 0x446   :  { %v2060_v57 = vpop.f32.mrb[3].mxu1 }
 0x449   :  { %v405_v58 = vpop.f32.mrb[4].mxu1 }
 0x44a   :  { %v409_v59 = vmul.f32 0.25, %v405_v58  ;;  %v2065_v60 = vpop.f32.mrb[5].mxu1 }
 0x44c   :  { %v410_v61 = vadd.f32 %v2510_v39, %v409_v59 }
 0x44e   :  { %v411_v62 = vsel %vm246_vm3, %v410_v61, -inf }
 0x44f   :  { %412 = vmax.xlane.f32.xlu1 %v411_v62 }
 0x460   :  { %499 = vrot.lane.b32.xlu1 %v2488_v32, %s2343_s23 }
 0x464   :  { %1018 = vrot.lane.b32.xlu1 %v157_v0, %s2341_s19 }
 0x468   :  { %1186 = vrot.lane.b32.xlu1 %v157_v0, %s2343_s23 }
 0x46c   :  { %1353 = vrot.lane.b32.xlu1 %v157_v0, %s2344_s0 }
 0x4dc   :  { %v413_v2 = vpop.xlane.xlu1 %412 }
 0x4dd   :  { %v414_v4 = vsub.f32 %v410_v61, %v413_v2 }
 0x4df   :  { %v415_v5 = vmul.f32 1.442695, %v414_v4 }
 0x4e0   :  { %v500_v15 = vpop.permute.xlu1 %499 }
 0x4e1   :  { %2297 = vpow2.f32 %v415_v5 }
 0x4e4   :  { %v1019_v17 = vpop.permute.xlu1 %1018 }
 0x4e8   :  { %v1187_v19 = vpop.permute.xlu1 %1186 }
 0x4eb   :  { %v2298_v6 = vpop.eup %2297 }
 0x4ec   :  { %v417_v7 = vsel %vm246_vm3, %v2298_v6, 0.0  ;;  %v1354_v21 = vpop.permute.xlu1 %1353 }
 0x4ed   :  { %418 = vadd.xlane.f32.xlu0 %v417_v7 }
 0x503   :  { %668 = vrot.lane.b32.xlu0 %v2488_v32, %s2345_s24 }
 0x507   :  { %666 = vrot.lane.b32.xlu0 %v2488_v32, %s2344_s0 }
 0x50b   :  { %852 = vrot.lane.b32.xlu0 %v157_v0, %s2340_s17 }
 0x50f   :  { %1020 = vrot.lane.b32.xlu0 %v157_v0, %s2339_s16 }
 0x513   :  { %1188 = vrot.lane.b32.xlu0 %v157_v0, %s2342_s20 }
 0x517   :  { %1355 = vrot.lane.b32.xlu0 %v157_v0, %s2345_s24 }
 0x57a   :  { %v419_v9 = vpop.xlane.xlu0 %418 }
 0x57b   :  { %2299 = vrcp.f32 %v419_v9 }
 0x57e   :  { %v669_v10 = vpop.permute.xlu0 %668 }
 0x582   :  { %v667_v11 = vpop.permute.xlu0 %666 }
 0x585   :  { %v2300_v12 = vpop.eup %2299 }
 0x586   :  { %v421_v13 = vmul.f32 %v2300_v12, %v2298_v6  ;;  %v853_v14 = vpop.permute.xlu0 %852 }
 0x588   :  { %2069 = vmatmul.mubr.msk.f32.vlgmr.msra.gmra.mrb[6].mxu1 %vm246_vm3, %v421_v13 }
 0x589   :  { %2072 = vmatpush3.xpose.msk.msra.mxu1 %vm165_vm2, %v502_v8  ;;  %2073 = vmatprep.mubr.msk.f32.mxu1 %vm2338_vm1, %v2337_v3 }
 0x58a   :  { %2081 = vmatprep.subr.mxu1 %v2337_v3  ;;  %v1021_v16 = vpop.permute.xlu0 %1020 }
 0x58c   :  { %2074 = vmatmul.mubr.msk.f32.vlgmr.msra.gmra.mrb[8].mxu1 %vm165_vm2, %v500_v15 }
 0x58d   :  { %2082 = vmatpush3.xpose.msk.msra.mxu1 %vm165_vm2, %v669_v10  ;;  %2083 = vmatprep.mubr.msk.f32.mxu1 %vm2338_vm1, %v2337_v3  ;;  %v159_v10 = vadd.f32 %v2546_v1, %v2494_v35 }
 0x58e   :  { %2091 = vmatprep.subr.mxu1 %v2337_v3  ;;  %v1189_v18 = vpop.permute.xlu0 %1188 }
 0x590   :  { %2084 = vmatmul.mubr.msk.f32.vlgmr.msra.gmra.mrb[10].mxu1 %vm165_vm2, %v667_v11 }
 0x591   :  { %2092 = vmatpush3.xpose.msk.msra.mxu1 %vm165_vm2, %v853_v14  ;;  %2093 = vmatprep.mubr.msk.f32.mxu1 %vm2338_vm1, %v2337_v3 }
 0x592   :  { %2101 = vmatprep.subr.mxu1 %v2337_v3  ;;  %v1356_v20 = vpop.permute.xlu0 %1355 }
 0x594   :  { %2094 = vmatmul.mubr.msk.f32.vlgmr.msra.gmra.mrb[12].mxu1 %vm165_vm2, %v157_v0 }
 0x595   :  { %2102 = vmatpush3.xpose.msk.msra.mxu1 %vm165_vm2, %v1021_v16  ;;  %2103 = vmatprep.mubr.msk.f32.mxu1 %vm2338_vm1, %v2337_v3 }
 0x596   :  { %2111 = vmatprep.subr.mxu1 %v2337_v3 }
 0x598   :  { %2104 = vmatmul.mubr.msk.f32.vlgmr.msra.gmra.mrb[14].mxu1 %vm165_vm2, %v1019_v17 }
 0x599   :  { %2112 = vmatpush3.xpose.msk.msra.mxu1 %vm165_vm2, %v1189_v18  ;;  %2113 = vmatprep.mubr.msk.f32.mxu1 %vm2338_vm1, %v2337_v3 }
 0x59a   :  { %2121 = vmatprep.subr.mxu1 %v2337_v3 }
 0x59c   :  { %2114 = vmatmul.mubr.msk.f32.vlgmr.msra.gmra.mrb[16].mxu1 %vm165_vm2, %v1187_v19 }
 0x59d   :  { %2122 = vmatpush3.xpose.msk.msra.mxu1 %vm165_vm2, %v1356_v20  ;;  %2123 = vmatprep.mubr.msk.f32.mxu1 %vm2338_vm1, %v2337_v3 }
 0x5a0   :  { %2124 = vmatmul.mubr.msk.f32.vlgmr.msra.gmra.mrb[18].mxu1 %vm165_vm2, %v1354_v21 }
 0x65b   :  { %v2590_v22 = vpop.f32.mrb[6].mxu1 }
 0x65c   :  { %v2070_v23 = vpop.f32.mrb[7].mxu1 }
 0x65f   :  { %v573_v24 = vpop.f32.mrb[8].mxu1 }
 0x660   :  { %v577_v26 = vmul.f32 0.25, %v573_v24  ;;  %v2075_v27 = vpop.f32.mrb[9].mxu1 }
 0x662   :  { %v578_v28 = vadd.f32 %v2510_v39, %v577_v26 }
 0x663   :  { %v740_v29 = vpop.f32.mrb[10].mxu1 }
 0x664   :  { %v744_v30 = vmul.f32 0.25, %v740_v29  ;;  %v2085_v31 = vpop.f32.mrb[11].mxu1  ;;  %v579_v32 = vsel %vm246_vm3, %v578_v28, -inf }
 0x665   :  { %580 = vmax.xlane.f32.xlu0 %v579_v32 }
 0x666   :  { %v745_v33 = vadd.f32 %v2510_v39, %v744_v30 }
 0x667   :  { %v924_v34 = vpop.f32.mrb[12].mxu1 }
 0x668   :  { %v928_v38 = vmul.f32 0.25, %v924_v34  ;;  %v2095_v40 = vpop.f32.mrb[13].mxu1  ;;  %v746_v41 = vsel %vm246_vm3, %v745_v33, -inf }
 0x669   :  { %747 = vmax.xlane.f32.xlu1 %v746_v41 }
 0x66a   :  { %v933_v42 = vadd.f32 %v1959_v36, %v928_v38 }
 0x66b   :  { %v1092_v43 = vpop.f32.mrb[14].mxu1 }
 0x66c   :  { %v1096_v44 = vmul.f32 0.25, %v1092_v43  ;;  %v934_v45 = vsel %vm246_vm3, %v933_v42, -inf  ;;  %v2105_v46 = vpop.f32.mrb[15].mxu1 }
 0x66d   :  { %935 = vmax.xlane.f32.xlu0 %v934_v45 }
 0x66e   :  { %v1097_v47 = vadd.f32 %v1959_v36, %v1096_v44 }
 0x66f   :  { %v1260_v48 = vpop.f32.mrb[16].mxu1 }
 0x670   :  { %v1264_v39 = vmul.f32 0.25, %v1260_v48  ;;  %v1098_v49 = vsel %vm246_vm3, %v1097_v47, -inf  ;;  %v2115_v50 = vpop.f32.mrb[17].mxu1 }
 0x671   :  { %1099 = vmax.xlane.f32.xlu0 %v1098_v49 }
 0x672   :  { %v1265_v51 = vadd.f32 %v1959_v36, %v1264_v39 }
 0x673   :  { %v1427_v52 = vpop.f32.mrb[18].mxu1 }
 0x674   :  { %v1431_v53 = vmul.f32 0.25, %v1427_v52  ;;  %v1266_v54 = vsel %vm246_vm3, %v1265_v51, -inf  ;;  %v2125_v57 = vpop.f32.mrb[19].mxu1  ;;  %v1535_v52 = vld [vmem:[%s2800_s4] sm:$0xff] }
 0x675   :  { %1267 = vmax.xlane.f32.xlu1 %v1266_v54  ;;  %v1537_v54 = vld [vmem:[%s2800_s4 + $0x10] sm:$0xff] }
 0x676   :  { %v1432_v58 = vadd.f32 %v1959_v36, %v1431_v53  ;;  %v1536_v53 = vld [vmem:[%s2800_s4 + $0x8] sm:$0xff] }
 0x677   :  { %v2220_v57 = vpack.c.bf16 %v1536_v53, %v1535_v52  ;;  %v1684_v52 = vld [vmem:[%s2802_s8 + $0x30] sm:$0xff]  ;;  %v1685_v53 = vld [vmem:[%s2802_s8 + $0x38] sm:$0xff] }
 0x678   :  { %v1433_v59 = vsel %vm246_vm3, %v1432_v58, -inf }
 0x679   :  { %1434 = vmax.xlane.f32.xlu0 %v1433_v59 }
 0x686   :  { %590 = vrot.lane.b32.xlu1 %v2499_v37, %s2343_s23 }
 0x6f2   :  { %v581_v60 = vpop.xlane.xlu0 %580 }
 0x6f3   :  { %v582_v61 = vsub.f32 %v578_v28, %v581_v60 }
 0x6f5   :  { %v583_v62 = vmul.f32 1.442695, %v582_v61 }
 0x6f6   :  { %v748_v63 = vpop.xlane.xlu1 %747 }
 0x6f7   :  { %2301 = vpow2.f32 %v583_v62  ;;  %v749_v0 = vsub.f32 %v745_v33, %v748_v63  ;;  %v1539_v63 = vld [vmem:[%s2800_s4 + $0x20] sm:$0xff] }
 0x6f9   :  { %v750_v2 = vmul.f32 1.442695, %v749_v0  ;;  %v1540_v0 = vld [vmem:[%s2800_s4 + $0x28] sm:$0xff] }
 0x6fa   :  { %v936_v11 = vpop.xlane.xlu0 %935 }
 0x6fb   :  { %2303 = vpow2.f32 %v750_v2  ;;  %v937_v12 = vsub.f32 %v933_v42, %v936_v11  ;;  %v2228_v2 = vpack.c.bf16 %v1540_v0, %v1539_v63 }
 0x6fd   :  { %v938_v15 = vmul.f32 1.442695, %v937_v12 }
 0x6fe   :  { %v1100_v13 = vpop.xlane.xlu0 %1099 }
 0x6ff   :  { %v1101_v14 = vsub.f32 %v1097_v47, %v1100_v13  ;;  %2305 = vpow2.f32 %v938_v15 }
 0x701   :  { %v2302_v4 = vpop.eup %2301  ;;  %v1102_v18 = vmul.f32 1.442695, %v1101_v14 }
 0x702   :  { %v1268_v5 = vpop.xlane.xlu1 %1267  ;;  %v585_v6 = vsel %vm246_vm3, %v2302_v4, 0.0 }
 0x703   :  { %586 = vadd.xlane.f32.xlu1 %v585_v6  ;;  %v1269_v16 = vsub.f32 %v1265_v51, %v1268_v5  ;;  %2307 = vpow2.f32 %v1102_v18  ;;  %v1542_v5 = vld [vmem:[%s2800_s4 + $0x38] sm:$0xff] }
 0x705   :  { %v2304_v7 = vpop.eup %2303  ;;  %v1270_v19 = vmul.f32 1.442695, %v1269_v16 }
 0x706   :  { %v591_v8 = vpop.permute.xlu1 %590  ;;  %v752_v9 = vsel %vm246_vm3, %v2304_v7, 0.0  ;;  %v1435_v17 = vpop.xlane.xlu0 %1434 }
 0x707   :  { %2077 = vmatpush3.msra.mxu0 %v591_v8  ;;  %753 = vadd.xlane.f32.xlu0 %v752_v9  ;;  %v1436_v20 = vsub.f32 %v1432_v58, %v1435_v17  ;;  %2309 = vpow2.f32 %v1270_v19 }
 0x708   :  { %2086 = vmatprep.subr.mxu0 %v2337_v3 }
 0x709   :  { %v1437_v21 = vmul.f32 1.442695, %v1436_v20  ;;  %v2306_v35 = vpop.eup %2305 }
 0x70a   :  { %v940_v23 = vsel %vm246_vm3, %v2306_v35, 0.0 }
 0x70b   :  { %2311 = vpow2.f32 %v1437_v21 }
 0x70d   :  { %v2308_v1 = vpop.eup %2307 }
 0x70e   :  { %v1104_v26 = vsel %vm246_vm3, %v2308_v1, 0.0 }
 0x711   :  { %v2310_v24 = vpop.eup %2309 }
 0x714   :  { %1110 = vrot.lane.b32.xlu1 %v159_v10, %s2341_s19 }
 0x715   :  { %v2312_v27 = vpop.eup %2311 }
 0x716   :  { %v1439_v28 = vsel %vm246_vm3, %v2312_v27, 0.0 }
 0x71d   :  { %757 = vrot.lane.b32.xlu0 %v2499_v37, %s2344_s0  ;;  %v1272_v37 = vsel %vm246_vm3, %v2310_v24, 0.0 }
 0x738   :  { %941 = vadd.xlane.f32.xlu1 %v940_v23 }
 0x73c   :  { %1273 = vadd.xlane.f32.xlu1 %v1272_v37  ;;  %1105 = vadd.xlane.f32.xlu0 %v1104_v26  ;;  %v1970_v26 = vld [vmem:[%s2801_s5] ss:$0 sm:$0xff] }
 0x740   :  { %1440 = vadd.xlane.f32.xlu0 %v1439_v28 }
 0x74d   :  { %1277 = vrot.lane.b32.xlu1 %v159_v10, %s2343_s23 }
 0x751   :  { %834 = vrot.lane.b32.xlu1 %v2590_v22, %s2345_s24 }
 0x756   :  { %1444 = vrot.lane.b32.xlu0 %v159_v10, %s2344_s0 }
 0x790   :  { %v587_v29 = vpop.xlane.xlu1 %586 }
 0x791   :  { %2313 = vrcp.f32 %v587_v29 }
 0x794   :  { %v754_v30 = vpop.xlane.xlu0 %753  ;;  %v1111_v22 = vpop.permute.xlu1 %1110 }
 0x795   :  { %2315 = vrcp.f32 %v754_v30 }
 0x798   :  { %v758_v33 = vpop.permute.xlu0 %757 }
 0x79b   :  { %v2314_v31 = vpop.eup %2313 }
 0x79c   :  { %v589_v32 = vmul.f32 %v2314_v31, %v2302_v4  ;;  %v1541_v4 = vld [vmem:[%s2800_s4 + $0x30] sm:$0xff] }
 0x79d   :  { %v2232_v6 = vpack.c.bf16 %v1542_v5, %v1541_v4  ;;  %v1973_v4 = vld [vmem:[%s2804_s6] ss:$0 sm:$0xff] }
 0x79e   :  { %2079 = vmatmul.mubr.msk.f32.vlgmr.msra.gmra.mrb[4].mxu0 %vm246_vm3, %v589_v32 }
 0x79f   :  { %v2316_v34 = vpop.eup %2315  ;;  %2087 = vmatpush3.msra.mxu0 %v758_v33  ;;  %2088 = vmatprep.mubr.msk.f32.mxu0 %vm2338_vm1, %v2337_v3 }
 0x7a0   :  { %v756_v36 = vmul.f32 %v2316_v34, %v2304_v7  ;;  %2096 = vmatprep.subr.mxu0 %v2337_v3 }
 0x7a2   :  { %2089 = vmatmul.mubr.msk.f32.vlgmr.msra.gmra.mrb[6].mxu0 %vm246_vm3, %v756_v36 }
 0x7a3   :  { %2097 = vmatpush3.msra.mxu0 %v159_v10  ;;  %2098 = vmatprep.mubr.msk.f32.mxu0 %vm2338_vm1, %v2337_v3 }
 0x7a4   :  { %2106 = vmatprep.subr.mxu0 %v2337_v3 }
 0x7c5   :  { %v942_v38 = vpop.xlane.xlu1 %941 }
 0x7c6   :  { %2317 = vrcp.f32 %v942_v38 }
 0x7c9   :  { %v1106_v40 = vpop.xlane.xlu0 %1105  ;;  %v1274_v41 = vpop.xlane.xlu1 %1273 }
 0x7ca   :  { %2319 = vrcp.f32 %v1106_v40 }
 0x7cb   :  { %2321 = vrcp.f32 %v1274_v41 }
 0x7cd   :  { %v1441_v42 = vpop.xlane.xlu0 %1440  ;;  %v1278_v48 = vpop.permute.xlu1 %1277 }
 0x7ce   :  { %2323 = vrcp.f32 %v1441_v42 }
 0x7d0   :  { %v2318_v43 = vpop.eup %2317 }
 0x7d1   :  { %v944_v44 = vmul.f32 %v2318_v43, %v2306_v35  ;;  %v1445_v50 = vpop.permute.xlu0 %1444  ;;  %v835_v15 = vpop.permute.xlu1 %834 }
 0x7d2   :  { %v845_v17 = vsel %vm165_vm2, %v2539_v56, %v835_v15 }
 0x7d3   :  { %2099 = vmatmul.mubr.msk.f32.vlgmr.msra.gmra.mrb[8].mxu0 %vm246_vm3, %v944_v44 }
 0x7d4   :  { %2107 = vmatpush3.msra.mxu0 %v1111_v22  ;;  %2108 = vmatprep.mubr.msk.f32.mxu0 %vm2338_vm1, %v2337_v3  ;;  %v2320_v45 = vpop.eup %2319 }
 0x7d5   :  { %2116 = vmatprep.subr.mxu0 %v2337_v3  ;;  %v1108_v46 = vmul.f32 %v2320_v45, %v2308_v1  ;;  %v2322_v47 = vpop.eup %2321  ;;  %v1679_v45 = vld [vmem:[%s2802_s8 + $0x8] sm:$0xff] }
 0x7d6   :  { %v1276_v39 = vmul.f32 %v2322_v47, %v2310_v24  ;;  %v1680_v47 = vld [vmem:[%s2802_s8 + $0x10] sm:$0xff] }
 0x7d7   :  { %2109 = vmatmul.mubr.msk.f32.vlgmr.msra.gmra.mrb[10].mxu0 %vm246_vm3, %v1108_v46 }
 0x7d8   :  { %2117 = vmatpush3.msra.mxu0 %v1278_v48  ;;  %2118 = vmatprep.mubr.msk.f32.mxu0 %vm2338_vm1, %v2337_v3  ;;  %v2324_v49 = vpop.eup %2323  ;;  %v1681_v48 = vld [vmem:[%s2802_s8 + $0x18] sm:$0xff] }
 0x7d9   :  { %2126 = vmatprep.subr.mxu0 %v2337_v3  ;;  %v1443_v51 = vmul.f32 %v2324_v49, %v2312_v27  ;;  %v1682_v49 = vld [vmem:[%s2802_s8 + $0x20] sm:$0xff] }
 0x7db   :  { %2119 = vmatmul.mubr.msk.f32.vlgmr.msra.gmra.mrb[12].mxu0 %vm246_vm3, %v1276_v39  ;;  %v2240_v39 = vpack.c.bf16 %v1681_v48, %v1680_v47 }
 0x7dc   :  { %2127 = vmatpush3.msra.mxu0 %v1445_v50  ;;  %2128 = vmatprep.mubr.msk.f32.mxu0 %vm2338_vm1, %v2337_v3  ;;  %v1538_v3 = vld [vmem:[%s2800_s4 + $0x18] sm:$0xff]  ;;  %v1683_v50 = vld [vmem:[%s2802_s8 + $0x28] sm:$0xff] }
 0x7dd   :  { %v2224_v58 = vpack.c.bf16 %v1538_v3, %v1537_v54  ;;  %2221 = vmatprep.subr.bf16.mxu0 %v2220_v57  ;;  %v2248_v54 = vpack.c.bf16 %v1685_v53, %v1684_v52  ;;  %v1793_v3 = vld [vmem:[%s2803_s10 + $0x8] sm:$0xff] }
 0x7df   :  { %2129 = vmatmul.mubr.msk.f32.vlgmr.msra.gmra.mrb[14].mxu0 %vm246_vm3, %v1443_v51  ;;  %v2244_v51 = vpack.c.bf16 %v1683_v50, %v1682_v49 }
 0x7e0   :  { %2223 = vmatpush3.bf16.msra.mxu0 %v2220_v57  ;;  %v1792_v57 = vld [vmem:[%s2803_s10] sm:$0xff] }
 0x7e1   :  { %2225 = vmatprep.subr.bf16.mxu0 %v2224_v58 }
 0x7e4   :  { %2227 = vmatpush3.bf16.msra.mxu0 %v2224_v58  ;;  %v2252_v58 = vpack.c.bf16 %v1793_v3, %v1792_v57 }
 0x7e5   :  { %2229 = vmatprep.subr.bf16.mxu0 %v2228_v2 }
 0x7e6   :  { %2253 = vmatprep.subr.bf16.mxu1 %v2252_v58 }
 0x7e7   :  { %2255 = vmatpush3.bf16.msra.mxu1 %v2252_v58 }
 0x7e8   :  { %2231 = vmatpush3.bf16.msra.mxu0 %v2228_v2 }
 0x7e9   :  { %2233 = vmatprep.subr.bf16.mxu0 %v2232_v6 }
 0x7ec   :  { %2235 = vmatpush3.bf16.msra.mxu0 %v2232_v6 }
 0x871   :  { %v662_v59 = vpop.f32.mrb[4].mxu0 }
 0x872   :  { %v2080_v60 = vpop.f32.mrb[5].mxu0  ;;  %838 = vrot.lane.b32.xlu0 %v662_v59, %s2342_s20 }
 0x875   :  { %v829_v61 = vpop.f32.mrb[6].mxu0 }
 0x876   :  { %842 = vrot.lane.b32.xlu0 %v829_v61, %s2339_s16  ;;  %v2090_v62 = vpop.f32.mrb[7].mxu0 }
 0x8a6   :  { %v1014_v7 = vpop.f32.mrb[8].mxu0 }
 0x8a7   :  { %v2100_v8 = vpop.f32.mrb[9].mxu0 }
 0x8a8   :  { %v1974_v8 = vld [vmem:[%s2805_s7] ss:$0 sm:$0xff] }
 0x8aa   :  { %v1182_v9 = vpop.f32.mrb[10].mxu0 }
 0x8ab   :  { %1521 = vrot.lane.b32.xlu1 %v1182_v9, %s2345_s24  ;;  %v2110_v10 = vpop.f32.mrb[11].mxu0 }
 0x8ae   :  { %v1349_v11 = vpop.f32.mrb[12].mxu0 }
 0x8af   :  { %1525 = vrot.lane.b32.xlu1 %v1349_v11, %s2342_s20  ;;  %v2120_v12 = vpop.f32.mrb[13].mxu0 }
 0x8b2   :  { %v1516_v13 = vpop.f32.mrb[14].mxu0 }
 0x8b3   :  { %1529 = vrot.lane.b32.xlu0 %v1516_v13, %s2339_s16  ;;  %v2130_v14 = vpop.f32.mrb[15].mxu0  ;;  %v1794_v13 = vld [vmem:[%s2803_s10 + $0x10] sm:$0xff] }
 0x8b4   :  { %v1795_v14 = vld [vmem:[%s2803_s10 + $0x18] sm:$0xff] }
 0x8b5   :  { %v2256_v15 = vpack.c.bf16 %v1795_v14, %v1794_v13 }
 0x8b7   :  { %2257 = vmatprep.subr.bf16.mxu1 %v2256_v15 }
 0x8b8   :  { %2259 = vmatpush3.bf16.msra.mxu1 %v2256_v15 }
 0x8e4   :  { %v839_v16 = vpop.permute.xlu0 %838 }
 0x8e5   :  { %v847_v18 = vsel %vm846_vm4, %v845_v17, %v839_v16  ;;  %v1796_v16 = vld [vmem:[%s2803_s10 + $0x20] sm:$0xff]  ;;  %v1797_v17 = vld [vmem:[%s2803_s10 + $0x28] sm:$0xff] }
 0x8e8   :  { %v843_v19 = vpop.permute.xlu0 %842 }
 0x8e9   :  { %v849_v20 = vsel %vm848_vm5, %v847_v18, %v843_v19  ;;  %v2260_v18 = vpack.c.bf16 %v1797_v17, %v1796_v16  ;;  %v1798_v19 = vld [vmem:[%s2803_s10 + $0x30] sm:$0xff] }
 0x8ea   :  { %2147 = vmatprep.mubr.msk.f32.mxu0 %vm77_vm0, %v849_v20  ;;  %v1799_v20 = vld [vmem:[%s2803_s10 + $0x38] sm:$0xff] }
 0x8eb   :  { %2261 = vmatprep.subr.bf16.mxu1 %v2260_v18 }
 0x8ec   :  { %2263 = vmatpush3.bf16.msra.mxu1 %v2260_v18 }
 0x91d   :  { %v1522_v21 = vpop.permute.xlu1 %1521 }
 0x91e   :  { %v1532_v1 = vsel %vm165_vm2, %v1014_v7, %v1522_v21  ;;  %v2264_v21 = vpack.c.bf16 %v1799_v20, %v1798_v19  ;;  %v1979_v19 = vld [vmem:[%s2808_s12] ss:$0 sm:$0xff] }
 0x920   :  { %2265 = vmatprep.subr.bf16.mxu1 %v2264_v21 }
 0x921   :  { %v1526_v35 = vpop.permute.xlu1 %1525  ;;  %2267 = vmatpush3.bf16.msra.mxu1 %v2264_v21 }
 0x922   :  { %v1533_v23 = vsel %vm846_vm4, %v1532_v1, %v1526_v35  ;;  %v1800_v35 = vld [vmem:[%s2803_s10 + $0x40] sm:$0xff]  ;;  %v1801_v1 = vld [vmem:[%s2803_s10 + $0x48] sm:$0xff] }
 0x925   :  { %v1530_v24 = vpop.permute.xlu0 %1529 }
 0x926   :  { %v1534_v37 = vsel %vm848_vm5, %v1533_v23, %v1530_v24  ;;  %v2268_v23 = vpack.c.bf16 %v1801_v1, %v1800_v35  ;;  %v1802_v24 = vld [vmem:[%s2803_s10 + $0x50] sm:$0xff]  ;;  %v1980_v35 = vld [vmem:[%s2809_s13] ss:$0 sm:$0xff] }
 0x927   :  { %2148 = vmatmul.mubr.msk.f32.vlgmr.msra.gmra.mrb[16].mxu0 %vm77_vm0, %v1534_v37  ;;  %v1803_v37 = vld [vmem:[%s2803_s10 + $0x58] sm:$0xff] }
 0x928   :  { %2269 = vmatprep.subr.bf16.mxu1 %v2268_v23 }
 0x929   :  { %2271 = vmatpush3.bf16.msra.mxu1 %v2268_v23 }
 0x9fa   :  { %v2149_v27 = vpop.f32.mrb[16].mxu0 }
 0x9fb   :  { %v1628_v56 = vadd.f32 %v2149_v27, %v1970_v26  ;;  %v1622_v28 = vpop.f32.mrb[17].mxu0  ;;  %v1804_v27 = vld [vmem:[%s2803_s10 + $0x60] sm:$0xff] }
 0x9fc   :  { %v1623_v29 = vadd.f32 %v1970_v26, %v1622_v28  ;;  %v2272_v26 = vpack.c.bf16 %v1803_v37, %v1802_v24 }
 0x9fd   :  { %v1632_v30 = vadd.f32 %v1628_v56, %v2533_v55  ;;  %v1805_v56 = vld [vmem:[%s2803_s10 + $0x68] sm:$0xff] }
 0x9fe   :  { %v1631_v31 = vadd.f32 %v1623_v29, %v2474_v25  ;;  %v1678_v25 = vld [vmem:[%s2802_s8] sm:$0xff]  ;;  %2273 = vmatprep.subr.bf16.mxu1 %v2272_v26  ;;  %v2276_v28 = vpack.c.bf16 %v1805_v56, %v1804_v27  ;;  %v1806_v29 = vld [vmem:[%s2803_s10 + $0x70] sm:$0xff] }
 0x9ff   :  { %v1638_v32 = vsel %vm77_vm0, %v1632_v30, 0.0  ;;  %v2236_v46 = vpack.c.bf16 %v1679_v45, %v1678_v25  ;;  %2275 = vmatpush3.bf16.msra.mxu1 %v2272_v26 }
 0xa00   :  { %1639 = vadd.xlane.f32.xlu0 %v1638_v32  ;;  %v1635_v33 = vsel %vm77_vm0, %v1631_v31, 0.0  ;;  %2277 = vmatprep.subr.bf16.mxu1 %v2276_v28  ;;  %v1975_v32 = vld [vmem:[%s2806_s9] ss:$0 sm:$0xff] }
 0xa01   :  { %1636 = vadd.xlane.f32.xlu1 %v1635_v33  ;;  %2237 = vmatprep.subr.bf16.mxu0 %v2236_v46 }
 0xa02   :  { %2239 = vmatpush3.bf16.msra.mxu0 %v2236_v46 }
 0xa03   :  { %2241 = vmatprep.subr.bf16.mxu0 %v2240_v39  ;;  %2279 = vmatpush3.bf16.msra.mxu1 %v2276_v28 }
 0xa06   :  { %2243 = vmatpush3.bf16.msra.mxu0 %v2240_v39 }
 0xa07   :  { %2245 = vmatprep.subr.bf16.mxu0 %v2244_v51 }
 0xa0a   :  { %2247 = vmatpush3.bf16.msra.mxu0 %v2244_v51 }
 0xa0b   :  { %2249 = vmatprep.subr.bf16.mxu0 %v2248_v54 }
 0xa0e   :  { %2251 = vmatpush3.bf16.msra.mxu0 %v2248_v54  ;;  %v1978_v54 = vld [vmem:[%s2807_s11] ss:$0 sm:$0xff] }
 0xa8d   :  { %v1640_v34 = vpop.xlane.xlu0 %1639 }
 0xa8e   :  { %v1643_v36 = vmul.f32 0.015625, %v1640_v34  ;;  %v1637_v22 = vpop.xlane.xlu1 %1636 }
 0xa8f   :  { %v1642_v38 = vmul.f32 0.015625, %v1637_v22 }
 0xa90   :  { %v1645_v40 = vsub.f32 %v1632_v30, %v1643_v36  ;;  %v1807_v30 = vld [vmem:[%s2803_s10 + $0x78] sm:$0xff] }
 0xa91   :  { %v1644_v41 = vsub.f32 %v1631_v31, %v1642_v38  ;;  %v2280_v31 = vpack.c.bf16 %v1807_v30, %v1806_v29 }
 0xa92   :  { %v1647_v42 = vmul.f32 %v1645_v40, %v1645_v40 }
 0xa93   :  { %v1646_v43 = vmul.f32 %v1644_v41, %v1644_v41  ;;  %2281 = vmatprep.subr.bf16.mxu1 %v2280_v31 }
 0xa94   :  { %v1651_v44 = vsel %vm77_vm0, %v1647_v42, 0.0  ;;  %2283 = vmatpush3.bf16.msra.mxu1 %v2280_v31 }
 0xa95   :  { %1652 = vadd.xlane.f32.xlu1 %v1651_v44  ;;  %v1648_v55 = vsel %vm77_vm0, %v1646_v43, 0.0 }
 0xa96   :  { %1649 = vadd.xlane.f32.xlu0 %v1648_v55 }
 0xb22   :  { %v1653_v59 = vpop.xlane.xlu1 %1652 }
 0xb23   :  { %v1655_v60 = vmul.f32 0.015625, %v1653_v59  ;;  %v1650_v61 = vpop.xlane.xlu0 %1649 }
 0xb24   :  { %v1654_v62 = vmul.f32 0.015625, %v1650_v61 }
 0xb25   :  { %v1657_v63 = vadd.f32 1e-12, %v1655_v60 }
 0xb26   :  { %v1656_v0 = vadd.f32 1e-12, %v1654_v62 }
 0xb27   :  { %2325 = vrsqrt.f32 %v1657_v63 }
 0xb28   :  { %2327 = vrsqrt.f32 %v1656_v0 }
 0xb31   :  { %v2326_v2 = vpop.eup %2325 }
 0xb32   :  { %v2328_v5 = vpop.eup %2327  ;;  %v1661_v6 = vmul.f32 %v2326_v2, %v1645_v40 }
 0xb33   :  { %v1660_v7 = vmul.f32 %v2328_v5, %v1644_v41 }
 0xb34   :  { %v1669_v9 = vmul.f32 %v1973_v4, %v1661_v6 }
 0xb35   :  { %v1668_v10 = vmul.f32 %v1973_v4, %v1660_v7 }
 0xb36   :  { %v2722_v12 = vadd.f32 %v1974_v8, %v1669_v9 }
 0xb37   :  { %v2720_v11 = vadd.f32 %v1974_v8, %v1668_v10 }
 0xb39   :  { %2166 = vmatprep.mubr.msk.f32.mxu0 %vm77_vm0, %v2720_v11 }
 0xb3a   :  { %2167 = vmatmul.mubr.msk.f32.vlgmr.msra.gmra.mrb[18].mxu0 %vm77_vm0, %v2722_v12 }
 0xc0d   :  { %v2168_v33 = vpop.f32.mrb[18].mxu0 }
 0xc0e   :  { %v1771_v34 = vadd.f32 %v2168_v33, %v1975_v32  ;;  %v1765_v36 = vpop.f32.mrb[19].mxu0 }
 0xc0f   :  { %v1766_v22 = vadd.f32 %v1975_v32, %v1765_v36 }
 0xc10   :  { %v1777_v38 = vmul.f32 0.044715, %v1771_v34  ;;  %v1775_v51 = vmul.f32 0.5, %v1771_v34 }
 0xc11   :  { %v1776_v40 = vmul.f32 0.044715, %v1766_v22  ;;  %v1774_v49 = vmul.f32 0.5, %v1766_v22 }
 0xc12   :  { %v1779_v41 = vmul.f32 %v1777_v38, %v1771_v34 }
 0xc13   :  { %v1778_v42 = vmul.f32 %v1776_v40, %v1766_v22 }
 0xc14   :  { %v1781_v43 = vmul.f32 %v1779_v41, %v1771_v34 }
 0xc15   :  { %v1780_v44 = vmul.f32 %v1778_v42, %v1766_v22 }
 0xc16   :  { %v1783_v55 = vadd.f32 %v1781_v43, %v1771_v34 }
 0xc17   :  { %v1782_v25 = vadd.f32 %v1780_v44, %v1766_v22 }
 0xc18   :  { %v1785_v45 = vmul.f32 0.7978846, %v1783_v55 }
 0xc19   :  { %v1784_v46 = vmul.f32 0.7978846, %v1782_v25 }
 0xc1a   :  { %2329 = vtanh.f32 %v1785_v45 }
 0xc1b   :  { %2331 = vtanh.f32 %v1784_v46 }
 0xc24   :  { %v2330_v47 = vpop.eup %2329 }
 0xc25   :  { %v2332_v48 = vpop.eup %2331  ;;  %v1789_v39 = vadd.f32 1.0, %v2330_v47 }
 0xc26   :  { %v1788_v50 = vadd.f32 1.0, %v2332_v48 }
 0xc27   :  { %v1791_v53 = vmul.f32 %v1789_v39, %v1775_v51 }
 0xc28   :  { %v1790_v52 = vmul.f32 %v1788_v50, %v1774_v49 }
 0xc2a   :  { %2201 = vmatprep.mubr.f32.mxu1 %v1790_v52 }
 0xc2b   :  { %2202 = vmatmul.mubr.f32.vlgmr.msra.gmra.mrb[20].mxu1 %v1791_v53 }
 0xcfe   :  { %v2203_v57 = vpop.f32.mrb[20].mxu1 }
 0xcff   :  { %v1887_v3 = vadd.f32 %v2203_v57, %v1978_v54  ;;  %v1881_v58 = vpop.f32.mrb[21].mxu1 }
 0xd00   :  { %v1882_v59 = vadd.f32 %v1978_v54, %v1881_v58 }
 0xd01   :  { %v1891_v60 = vadd.f32 %v1887_v3, %v2722_v12 }
 0xd02   :  { %v1890_v61 = vadd.f32 %v1882_v59, %v2720_v11 }
 0xd03   :  { %v1897_v62 = vsel %vm77_vm0, %v1891_v60, 0.0 }
 0xd04   :  { %1898 = vadd.xlane.f32.xlu1 %v1897_v62  ;;  %v1894_v63 = vsel %vm77_vm0, %v1890_v61, 0.0 }
 0xd05   :  { %1895 = vadd.xlane.f32.xlu0 %v1894_v63 }
 0xd91   :  { %v1899_v0 = vpop.xlane.xlu1 %1898 }
 0xd92   :  { %v1901_v2 = vmul.f32 0.015625, %v1899_v0  ;;  %v1896_v4 = vpop.xlane.xlu0 %1895 }
 0xd93   :  { %v1900_v5 = vmul.f32 0.015625, %v1896_v4 }
 0xd94   :  { %v1903_v6 = vsub.f32 %v1891_v60, %v1901_v2 }
 0xd95   :  { %v1902_v7 = vsub.f32 %v1890_v61, %v1900_v5 }
 0xd96   :  { %v1905_v8 = vmul.f32 %v1903_v6, %v1903_v6 }
 0xd97   :  { %v1904_v9 = vmul.f32 %v1902_v7, %v1902_v7 }
 0xd98   :  { %v1909_v10 = vsel %vm77_vm0, %v1905_v8, 0.0 }
 0xd99   :  { %1910 = vadd.xlane.f32.xlu1 %v1909_v10  ;;  %v1906_v12 = vsel %vm77_vm0, %v1904_v9, 0.0 }
 0xd9a   :  { %1907 = vadd.xlane.f32.xlu0 %v1906_v12 }
 0xe26   :  { %v1911_v11 = vpop.xlane.xlu1 %1910 }
 0xe27   :  { %v1913_v13 = vmul.f32 0.015625, %v1911_v11  ;;  %v1908_v14 = vpop.xlane.xlu0 %1907 }
 0xe28   :  { %v1912_v15 = vmul.f32 0.015625, %v1908_v14 }
 0xe29   :  { %v1915_v16 = vadd.f32 1e-12, %v1913_v13 }
 0xe2a   :  { %v1914_v17 = vadd.f32 1e-12, %v1912_v15 }
 0xe2b   :  { %2333 = vrsqrt.f32 %v1915_v16 }
 0xe2c   :  { %2335 = vrsqrt.f32 %v1914_v17 }
 0xe35   :  { %v2334_v18 = vpop.eup %2333 }
 0xe36   :  { %v2336_v20 = vpop.eup %2335  ;;  %v1919_v21 = vmul.f32 %v2334_v18, %v1903_v6 }
 0xe37   :  { %v1918_v1 = vmul.f32 %v2336_v20, %v1902_v7 }
 0xe38   :  { %v1927_v23 = vmul.f32 %v1979_v19, %v1919_v21 }
 0xe39   :  { %v1926_v24 = vmul.f32 %v1979_v19, %v1918_v1 }
 0xe3a   :  { %v1935_v37 = vadd.f32 %v1980_v35, %v1927_v23 }
 0xe3b   :  { %v1934_v26 = vadd.f32 %v1980_v35, %v1926_v24 }
 0xe3c   :  { %1937 = vst.msk [vmem:[%s2810_s14 + $0x8] sm:$0xff] %vm77_vm0, %v1935_v37 }
 0xe3d   :  { %1936 = vst.msk [vmem:[%s2810_s14] sm:$0xff] %vm77_vm0, %v1934_v26 }

</bundles_post_ra>
